<compile_context>
chip_gen: v7x
topology: tpu7x:2x2x1
jax: 0.10.0
libtpu: 0.0.40
codegen_flags: <defaults>
</compile_context>

<pallas_src>
import functools
import math

import jax
import jax.numpy as jnp
from jax import lax
from jax.experimental import pallas as pl
from jax.experimental.pallas import tpu as pltpu

# Module constants (from the PyTorch source)
N_EMBED = 384
BLOCK_SIZE = 256  # causal mask capacity; we only need T <= BLOCK_SIZE


# ---------------------------------------------------------------------------
# Fused kernel: QKV projection (all heads) + causal softmax attention per head
# + VMEM-scratch head assembly + output projection, for one batch element.
# Grid: (B,).
# ---------------------------------------------------------------------------
def _mha_fused_kernel(x_ref, wqkv_ref, wp_ref, bp_ref, o_ref, y_scratch,
                      *, num_heads):
    # x_ref    : (T, C)  f32  — this batch element's sequence
    # wqkv_ref : (C, 3C) bf16 — [Wq_all*scale | Wk_all | Wv_all]
    # wp_ref   : (C, C)  bf16 — output projection weight, already transposed
    # bp_ref   : (1, C)  f32  — output projection bias
    # o_ref    : (T, C)  f32  — final output tile (lane-dense, 384 wide)
    # y_scratch: (T, C)  bf16 — VMEM scratch holding the concatenated heads
    x = x_ref[...].astype(jnp.bfloat16)
    T, C = x.shape
    hs = C // num_heads

    # Single wide GEMM for all heads' q, k, v: (T, C) @ (C, 3C) -> (T, 3C),
    # bf16 operands, f32 accumulate.  The 1/sqrt(n_embed) scale is already
    # folded into the Wq columns.
    qkv = jnp.dot(x, wqkv_ref[...], preferred_element_type=jnp.float32)
    q_all = qkv[:, 0:C]
    k_all = qkv[:, C:2 * C]
    v_all = qkv[:, 2 * C:3 * C]

    row = lax.broadcasted_iota(jnp.int32, (T, T), 0)
    col = lax.broadcasted_iota(jnp.int32, (T, T), 1)
    causal = col <= row  # tril mask (diagonal always unmasked -> no NaN rows)

    for h in range(num_heads):  # static unrolled loop, H small (6)
        lo, hi = h * hs, (h + 1) * hs
        q = q_all[:, lo:hi].astype(jnp.bfloat16)
        k = k_all[:, lo:hi].astype(jnp.bfloat16)
        v = v_all[:, lo:hi].astype(jnp.bfloat16)

        # q @ k^T with the transpose absorbed into the MXU contraction.
        s = lax.dot_general(
            q, k,
            dimension_numbers=(((1,), (1,)), ((), ())),
            preferred_element_type=jnp.float32,
        )
        s = jnp.where(causal, s, -jnp.inf)

        # softmax along last dim, f32 math (safe: diagonal always unmasked)
        s = s - jnp.max(s, axis=-1, keepdims=True)
        p = jnp.exp(s)
        inv = pl.reciprocal(jnp.sum(p, axis=-1, keepdims=True), approx=True)

        # Normalize the (T, hs) head output instead of the (T, T) probs.
        out_h = jnp.dot(p.astype(jnp.bfloat16), v,
                        preferred_element_type=jnp.float32) * inv

        # Assemble heads in VMEM scratch (no register-level concat).
        y_scratch[:, lo:hi] = out_h.astype(jnp.bfloat16)

    # Fused output projection from the scratch: y @ Wp^T + bp
    acc = jnp.dot(y_scratch[...], wp_ref[...],
                  preferred_element_type=jnp.float32)
    o_ref[...] = (acc + bp_ref[...]).astype(o_ref.dtype)


# ---------------------------------------------------------------------------
# Python wrapper
# ---------------------------------------------------------------------------
def multi_head_attention(x, params):
    """x: (B, T, C) float32.  params: dict of stacked head weights + proj."""
    B, T, C = x.shape
    assert C == N_EMBED and T <= BLOCK_SIZE
    wq, wk, wv = params["wq"], params["wk"], params["wv"]  # (H, C, hs)
    H, _, hs = wq.shape
    assert H * hs == C

    # (H, C, hs) -> (C, H*hs): columns h*hs:(h+1)*hs correspond to head h.
    def stack(w):
        return jnp.transpose(w, (1, 0, 2)).reshape(C, H * hs)

    # PyTorch scales scores by C**-0.5 with C == n_embed (x.shape[-1]), NOT
    # head_size — fold that scale into the Wq columns (one-time weight prep).
    scale = 1.0 / math.sqrt(N_EMBED)
    wqkv = jnp.concatenate(
        [stack(wq) * scale, stack(wk), stack(wv)], axis=1)      # (C, 3C) f32
    wqkv = wqkv.astype(jnp.bfloat16)                            # bf16 weight DMA
    wp_t = params["wp"].T.astype(jnp.bfloat16)                  # (C, C) bf16
    bp = params["bp"].reshape(1, C).astype(jnp.float32)         # (1, C) f32

    kernel = functools.partial(_mha_fused_kernel, num_heads=H)

    out = pl.pallas_call(
        kernel,
        out_shape=jax.ShapeDtypeStruct((B, T, C), jnp.float32),
        grid_spec=pltpu.PrefetchScalarGridSpec(
            num_scalar_prefetch=0,
            grid=(B,),
            in_specs=[
                pl.BlockSpec((None, T, C), lambda b: (b, 0, 0)),     # x
                pl.BlockSpec((C, 3 * C), lambda b: (0, 0)),          # Wqkv (resident)
                pl.BlockSpec((C, C), lambda b: (0, 0)),              # Wp^T (resident)
                pl.BlockSpec((1, C), lambda b: (0, 0)),              # bias
            ],
            out_specs=pl.BlockSpec((None, T, C), lambda b: (b, 0, 0)),
            scratch_shapes=[pltpu.VMEM((T, C), jnp.bfloat16)],       # head assembly
        ),
        compiler_params=pltpu.CompilerParams(
            dimension_semantics=("parallel",)
        ),
    )(x, wqkv, wp_t, bp)

    return out


# ---------------------------------------------------------------------------
# Pure-JAX reference (mirrors the PyTorch forward, dropout = identity)
# ---------------------------------------------------------------------------
def reference(x, params):
    B, T, C = x.shape
    wq, wk, wv = params["wq"], params["wk"], params["wv"]
    H, _, hs = wq.shape
    outs = []
    for h in range(H):
        q = x @ wq[h]
        k = x @ wk[h]
        v = x @ wv[h]
        wei = (q @ jnp.swapaxes(k, -2, -1)) * (C ** -0.5)
        mask = jnp.tril(jnp.ones((T, T), dtype=bool))
        wei = jnp.where(mask, wei, -jnp.inf)
        wei = jax.nn.softmax(wei, axis=-1)
        outs.append(wei @ v)
    cat = jnp.concatenate(outs, axis=-1)
    return cat @ params["wp"].T + params["bp"]


if __name__ == "__main__":
    # B=4 so each v7x TensorCore gets >=2 grid steps; T=128, C=n_embed=384,
    # 6 heads of 64.
    B, T, C = 4, 128, N_EMBED
    num_heads, head_size = 6, N_EMBED // 6

    key = jax.random.PRNGKey(0)
    kx, kq, kk, kv, kp, kb = jax.random.split(key, 6)

    x = jax.random.normal(kx, (B, T, C), dtype=jnp.float32)

    # Deterministic parameter init (synthetic, no checkpoint). Stored already
    # transposed as (H, C, head_size) so kernels compute x @ W directly.
    scale = 1.0 / math.sqrt(C)
    params = {
        "wq": jax.random.normal(kq, (num_heads, C, head_size), jnp.float32) * scale,
        "wk": jax.random.normal(kk, (num_heads, C, head_size), jnp.float32) * scale,
        "wv": jax.random.normal(kv, (num_heads, C, head_size), jnp.float32) * scale,
        "wp": jax.random.normal(kp, (C, C), jnp.float32) * scale,   # torch Linear (out, in)
        "bp": jax.random.normal(kb, (C,), jnp.float32) * 0.01,
    }

    out = multi_head_attention(x, params)
    out = jax.block_until_ready(out)

    ref = reference(x, params)
    assert out.shape == (B, T, C)
    # bf16 MXU operands (f32 accumulate) -> bf16-level tolerance vs f32 reference.
    assert jnp.allclose(out, ref, atol=5e-2, rtol=5e-2), "mismatch vs reference"

    print("KERNEL_OK")
</pallas_src>

<mosaic_0001>
module attributes {stable_mosaic.version = 11 : i64} {
  func.func @_mha_fused_kernel(%arg0: i32, %arg1: memref<1x128x384xf32, #tpu.memory_space<vmem>>, %arg2: memref<384x1152xbf16, #tpu.memory_space<vmem>>, %arg3: memref<384x384xbf16, #tpu.memory_space<vmem>>, %arg4: memref<1x384xf32, #tpu.memory_space<vmem>>, %arg5: memref<1x128x384xf32, #tpu.memory_space<vmem>>, %arg6: memref<128x384xbf16, #tpu.memory_space<vmem>>) attributes {dimension_semantics = [#tpu.dimension_semantics<parallel>], iteration_bounds = array<i64: 4>, scalar_prefetch = 0 : i64, scratch_operands = 1 : i64, tpu.core_type = #tpu.core_type<tc>, window_params = [{transform_indices = @transform_0, window_bounds = array<i64: 1, 128, 384>}, {pipeline_mode = #tpu.pipeline_mode<synchronous>, transform_indices = @transform_1, window_bounds = array<i64: 384, 1152>}, {pipeline_mode = #tpu.pipeline_mode<synchronous>, transform_indices = @transform_2, window_bounds = array<i64: 384, 384>}, {pipeline_mode = #tpu.pipeline_mode<synchronous>, transform_indices = @transform_3, window_bounds = array<i64: 1, 384>}, {transform_indices = @transform_4, window_bounds = array<i64: 1, 128, 384>}]} {
    %c0 = arith.constant 0 : index
    %c0_0 = arith.constant 0 : index
    %c0_1 = arith.constant 0 : index
    %0 = vector.load %arg1[%c0, %c0_0, %c0_1] : memref<1x128x384xf32, #tpu.memory_space<vmem>>, vector<1x128x384xf32>
    %1 = vector.shape_cast %0 : vector<1x128x384xf32> to vector<128x384xf32>
    %2 = arith.truncf %1 : vector<128x384xf32> to vector<128x384xbf16>
    %c0_2 = arith.constant 0 : index
    %c0_3 = arith.constant 0 : index
    %3 = vector.load %arg2[%c0_2, %c0_3] : memref<384x1152xbf16, #tpu.memory_space<vmem>>, vector<384x1152xbf16>
    %cst = arith.constant dense<0.000000e+00> : vector<128x1152xf32>
    %4 = tpu.matmul %2, %3, %cst {dimension_numbers = #tpu.dot_dimension_numbers<[1], [0], [0], [1], [0, 0, 1, 1], [], []>} : vector<128x384xbf16>, vector<384x1152xbf16>, vector<128x1152xf32> -> vector<128x1152xf32>
    %5 = vector.extract_strided_slice %4 {offsets = [0, 0], sizes = [128, 384], strides = [1, 1]} : vector<128x1152xf32> to vector<128x384xf32>
    %6 = vector.extract_strided_slice %4 {offsets = [0, 384], sizes = [128, 384], strides = [1, 1]} : vector<128x1152xf32> to vector<128x384xf32>
    %7 = vector.extract_strided_slice %4 {offsets = [0, 768], sizes = [128, 384], strides = [1, 1]} : vector<128x1152xf32> to vector<128x384xf32>
    %8 = tpu.iota {dimensions = array<i32: 0>} : vector<128x128xi32>
    %9 = tpu.iota {dimensions = array<i32: 1>} : vector<128x128xi32>
    %10 = arith.cmpi sle, %9, %8 : vector<128x128xi32>
    %11 = vector.extract_strided_slice %5 {offsets = [0, 0], sizes = [128, 64], strides = [1, 1]} : vector<128x384xf32> to vector<128x64xf32>
    %12 = arith.truncf %11 : vector<128x64xf32> to vector<128x64xbf16>
    %13 = vector.extract_strided_slice %6 {offsets = [0, 0], sizes = [128, 64], strides = [1, 1]} : vector<128x384xf32> to vector<128x64xf32>
    %14 = arith.truncf %13 : vector<128x64xf32> to vector<128x64xbf16>
    %15 = vector.extract_strided_slice %7 {offsets = [0, 0], sizes = [128, 64], strides = [1, 1]} : vector<128x384xf32> to vector<128x64xf32>
    %16 = arith.truncf %15 : vector<128x64xf32> to vector<128x64xbf16>
    %cst_4 = arith.constant dense<0.000000e+00> : vector<128x128xf32>
    %17 = tpu.matmul %12, %14, %cst_4 {dimension_numbers = #tpu.dot_dimension_numbers<[1], [1], [0], [0], [0, 0, 1, 0], [], []>} : vector<128x64xbf16>, vector<128x64xbf16>, vector<128x128xf32> -> vector<128x128xf32>
    %cst_5 = arith.constant 0xFF800000 : f32
    %18 = vector.broadcast %cst_5 : f32 to vector<128x128xf32>
    %19 = arith.select %10, %17, %18 : vector<128x128xi1>, vector<128x128xf32>
    %cst_6 = arith.constant dense<0xFF800000> : vector<128xf32>
    %20 = vector.multi_reduction <maximumf>, %19, %cst_6 [1] : vector<128x128xf32> to vector<128xf32>
    %21 = vector.shape_cast %20 : vector<128xf32> to vector<128x1xf32>
    %22 = vector.broadcast %21 : vector<128x1xf32> to vector<128x128xf32>
    %23 = arith.subf %19, %22 : vector<128x128xf32>
    %24 = math.exp %23 : vector<128x128xf32>
    %cst_7 = arith.constant dense<0.000000e+00> : vector<128xf32>
    %25 = vector.multi_reduction <add>, %24, %cst_7 [1] : vector<128x128xf32> to vector<128xf32>
    %26 = vector.shape_cast %25 : vector<128xf32> to vector<128x1xf32>
    %27 = tpu.reciprocal %26 {approx = true} : vector<128x1xf32> -> vector<128x1xf32>
    %28 = arith.truncf %24 : vector<128x128xf32> to vector<128x128xbf16>
    %cst_8 = arith.constant dense<0.000000e+00> : vector<128x64xf32>
    %29 = tpu.matmul %28, %16, %cst_8 {dimension_numbers = #tpu.dot_dimension_numbers<[1], [0], [0], [1], [0, 0, 1, 1], [], []>} : vector<128x128xbf16>, vector<128x64xbf16>, vector<128x64xf32> -> vector<128x64xf32>
    %30 = vector.broadcast %27 : vector<128x1xf32> to vector<128x64xf32>
    %31 = arith.mulf %29, %30 : vector<128x64xf32>
    %32 = arith.truncf %31 : vector<128x64xf32> to vector<128x64xbf16>
    %c0_9 = arith.constant 0 : index
    %c0_10 = arith.constant 0 : index
    %33 = vector.load %arg6[%c0_9, %c0_10] : memref<128x384xbf16, #tpu.memory_space<vmem>>, vector<128x64xbf16>
    tpu.vector_store %arg6[%c0_9, %c0_10], %32 {strides = array<i32>} : memref<128x384xbf16, #tpu.memory_space<vmem>>, vector<128x64xbf16>,
    %34 = vector.extract_strided_slice %5 {offsets = [0, 64], sizes = [128, 64], strides = [1, 1]} : vector<128x384xf32> to vector<128x64xf32>
    %35 = arith.truncf %34 : vector<128x64xf32> to vector<128x64xbf16>
    %36 = vector.extract_strided_slice %6 {offsets = [0, 64], sizes = [128, 64], strides = [1, 1]} : vector<128x384xf32> to vector<128x64xf32>
    %37 = arith.truncf %36 : vector<128x64xf32> to vector<128x64xbf16>
    %38 = vector.extract_strided_slice %7 {offsets = [0, 64], sizes = [128, 64], strides = [1, 1]} : vector<128x384xf32> to vector<128x64xf32>
    %39 = arith.truncf %38 : vector<128x64xf32> to vector<128x64xbf16>
    %cst_11 = arith.constant dense<0.000000e+00> : vector<128x128xf32>
    %40 = tpu.matmul %35, %37, %cst_11 {dimension_numbers = #tpu.dot_dimension_numbers<[1], [1], [0], [0], [0, 0, 1, 0], [], []>} : vector<128x64xbf16>, vector<128x64xbf16>, vector<128x128xf32> -> vector<128x128xf32>
    %cst_12 = arith.constant 0xFF800000 : f32
    %41 = vector.broadcast %cst_12 : f32 to vector<128x128xf32>
    %42 = arith.select %10, %40, %41 : vector<128x128xi1>, vector<128x128xf32>
    %cst_13 = arith.constant dense<0xFF800000> : vector<128xf32>
    %43 = vector.multi_reduction <maximumf>, %42, %cst_13 [1] : vector<128x128xf32> to vector<128xf32>
    %44 = vector.shape_cast %43 : vector<128xf32> to vector<128x1xf32>
    %45 = vector.broadcast %44 : vector<128x1xf32> to vector<128x128xf32>
    %46 = arith.subf %42, %45 : vector<128x128xf32>
    %47 = math.exp %46 : vector<128x128xf32>
    %cst_14 = arith.constant dense<0.000000e+00> : vector<128xf32>
    %48 = vector.multi_reduction <add>, %47, %cst_14 [1] : vector<128x128xf32> to vector<128xf32>
    %49 = vector.shape_cast %48 : vector<128xf32> to vector<128x1xf32>
    %50 = tpu.reciprocal %49 {approx = true} : vector<128x1xf32> -> vector<128x1xf32>
    %51 = arith.truncf %47 : vector<128x128xf32> to vector<128x128xbf16>
    %cst_15 = arith.constant dense<0.000000e+00> : vector<128x64xf32>
    %52 = tpu.matmul %51, %39, %cst_15 {dimension_numbers = #tpu.dot_dimension_numbers<[1], [0], [0], [1], [0, 0, 1, 1], [], []>} : vector<128x128xbf16>, vector<128x64xbf16>, vector<128x64xf32> -> vector<128x64xf32>
    %53 = vector.broadcast %50 : vector<128x1xf32> to vector<128x64xf32>
    %54 = arith.mulf %52, %53 : vector<128x64xf32>
    %55 = arith.truncf %54 : vector<128x64xf32> to vector<128x64xbf16>
    %c0_16 = arith.constant 0 : index
    %c64 = arith.constant 64 : index
    %56 = vector.load %arg6[%c0_16, %c64] : memref<128x384xbf16, #tpu.memory_space<vmem>>, vector<128x64xbf16>
    tpu.vector_store %arg6[%c0_16, %c64], %55 {strides = array<i32>} : memref<128x384xbf16, #tpu.memory_space<vmem>>, vector<128x64xbf16>,
    %57 = vector.extract_strided_slice %5 {offsets = [0, 128], sizes = [128, 64], strides = [1, 1]} : vector<128x384xf32> to vector<128x64xf32>
    %58 = arith.truncf %57 : vector<128x64xf32> to vector<128x64xbf16>
    %59 = vector.extract_strided_slice %6 {offsets = [0, 128], sizes = [128, 64], strides = [1, 1]} : vector<128x384xf32> to vector<128x64xf32>
    %60 = arith.truncf %59 : vector<128x64xf32> to vector<128x64xbf16>
    %61 = vector.extract_strided_slice %7 {offsets = [0, 128], sizes = [128, 64], strides = [1, 1]} : vector<128x384xf32> to vector<128x64xf32>
    %62 = arith.truncf %61 : vector<128x64xf32> to vector<128x64xbf16>
    %cst_17 = arith.constant dense<0.000000e+00> : vector<128x128xf32>
    %63 = tpu.matmul %58, %60, %cst_17 {dimension_numbers = #tpu.dot_dimension_numbers<[1], [1], [0], [0], [0, 0, 1, 0], [], []>} : vector<128x64xbf16>, vector<128x64xbf16>, vector<128x128xf32> -> vector<128x128xf32>
    %cst_18 = arith.constant 0xFF800000 : f32
    %64 = vector.broadcast %cst_18 : f32 to vector<128x128xf32>
    %65 = arith.select %10, %63, %64 : vector<128x128xi1>, vector<128x128xf32>
    %cst_19 = arith.constant dense<0xFF800000> : vector<128xf32>
    %66 = vector.multi_reduction <maximumf>, %65, %cst_19 [1] : vector<128x128xf32> to vector<128xf32>
    %67 = vector.shape_cast %66 : vector<128xf32> to vector<128x1xf32>
    %68 = vector.broadcast %67 : vector<128x1xf32> to vector<128x128xf32>
    %69 = arith.subf %65, %68 : vector<128x128xf32>
    %70 = math.exp %69 : vector<128x128xf32>
    %cst_20 = arith.constant dense<0.000000e+00> : vector<128xf32>
    %71 = vector.multi_reduction <add>, %70, %cst_20 [1] : vector<128x128xf32> to vector<128xf32>
    %72 = vector.shape_cast %71 : vector<128xf32> to vector<128x1xf32>
    %73 = tpu.reciprocal %72 {approx = true} : vector<128x1xf32> -> vector<128x1xf32>
    %74 = arith.truncf %70 : vector<128x128xf32> to vector<128x128xbf16>
    %cst_21 = arith.constant dense<0.000000e+00> : vector<128x64xf32>
    %75 = tpu.matmul %74, %62, %cst_21 {dimension_numbers = #tpu.dot_dimension_numbers<[1], [0], [0], [1], [0, 0, 1, 1], [], []>} : vector<128x128xbf16>, vector<128x64xbf16>, vector<128x64xf32> -> vector<128x64xf32>
    %76 = vector.broadcast %73 : vector<128x1xf32> to vector<128x64xf32>
    %77 = arith.mulf %75, %76 : vector<128x64xf32>
    %78 = arith.truncf %77 : vector<128x64xf32> to vector<128x64xbf16>
    %c0_22 = arith.constant 0 : index
    %c128 = arith.constant 128 : index
    %79 = vector.load %arg6[%c0_22, %c128] : memref<128x384xbf16, #tpu.memory_space<vmem>>, vector<128x64xbf16>
    tpu.vector_store %arg6[%c0_22, %c128], %78 {strides = array<i32>} : memref<128x384xbf16, #tpu.memory_space<vmem>>, vector<128x64xbf16>,
    %80 = vector.extract_strided_slice %5 {offsets = [0, 192], sizes = [128, 64], strides = [1, 1]} : vector<128x384xf32> to vector<128x64xf32>
    %81 = arith.truncf %80 : vector<128x64xf32> to vector<128x64xbf16>
    %82 = vector.extract_strided_slice %6 {offsets = [0, 192], sizes = [128, 64], strides = [1, 1]} : vector<128x384xf32> to vector<128x64xf32>
    %83 = arith.truncf %82 : vector<128x64xf32> to vector<128x64xbf16>
    %84 = vector.extract_strided_slice %7 {offsets = [0, 192], sizes = [128, 64], strides = [1, 1]} : vector<128x384xf32> to vector<128x64xf32>
    %85 = arith.truncf %84 : vector<128x64xf32> to vector<128x64xbf16>
    %cst_23 = arith.constant dense<0.000000e+00> : vector<128x128xf32>
    %86 = tpu.matmul %81, %83, %cst_23 {dimension_numbers = #tpu.dot_dimension_numbers<[1], [1], [0], [0], [0, 0, 1, 0], [], []>} : vector<128x64xbf16>, vector<128x64xbf16>, vector<128x128xf32> -> vector<128x128xf32>
    %cst_24 = arith.constant 0xFF800000 : f32
    %87 = vector.broadcast %cst_24 : f32 to vector<128x128xf32>
    %88 = arith.select %10, %86, %87 : vector<128x128xi1>, vector<128x128xf32>
    %cst_25 = arith.constant dense<0xFF800000> : vector<128xf32>
    %89 = vector.multi_reduction <maximumf>, %88, %cst_25 [1] : vector<128x128xf32> to vector<128xf32>
    %90 = vector.shape_cast %89 : vector<128xf32> to vector<128x1xf32>
    %91 = vector.broadcast %90 : vector<128x1xf32> to vector<128x128xf32>
    %92 = arith.subf %88, %91 : vector<128x128xf32>
    %93 = math.exp %92 : vector<128x128xf32>
    %cst_26 = arith.constant dense<0.000000e+00> : vector<128xf32>
    %94 = vector.multi_reduction <add>, %93, %cst_26 [1] : vector<128x128xf32> to vector<128xf32>
    %95 = vector.shape_cast %94 : vector<128xf32> to vector<128x1xf32>
    %96 = tpu.reciprocal %95 {approx = true} : vector<128x1xf32> -> vector<128x1xf32>
    %97 = arith.truncf %93 : vector<128x128xf32> to vector<128x128xbf16>
    %cst_27 = arith.constant dense<0.000000e+00> : vector<128x64xf32>
    %98 = tpu.matmul %97, %85, %cst_27 {dimension_numbers = #tpu.dot_dimension_numbers<[1], [0], [0], [1], [0, 0, 1, 1], [], []>} : vector<128x128xbf16>, vector<128x64xbf16>, vector<128x64xf32> -> vector<128x64xf32>
    %99 = vector.broadcast %96 : vector<128x1xf32> to vector<128x64xf32>
    %100 = arith.mulf %98, %99 : vector<128x64xf32>
    %101 = arith.truncf %100 : vector<128x64xf32> to vector<128x64xbf16>
    %c0_28 = arith.constant 0 : index
    %c192 = arith.constant 192 : index
    %102 = vector.load %arg6[%c0_28, %c192] : memref<128x384xbf16, #tpu.memory_space<vmem>>, vector<128x64xbf16>
    tpu.vector_store %arg6[%c0_28, %c192], %101 {strides = array<i32>} : memref<128x384xbf16, #tpu.memory_space<vmem>>, vector<128x64xbf16>,
    %103 = vector.extract_strided_slice %5 {offsets = [0, 256], sizes = [128, 64], strides = [1, 1]} : vector<128x384xf32> to vector<128x64xf32>
    %104 = arith.truncf %103 : vector<128x64xf32> to vector<128x64xbf16>
    %105 = vector.extract_strided_slice %6 {offsets = [0, 256], sizes = [128, 64], strides = [1, 1]} : vector<128x384xf32> to vector<128x64xf32>
    %106 = arith.truncf %105 : vector<128x64xf32> to vector<128x64xbf16>
    %107 = vector.extract_strided_slice %7 {offsets = [0, 256], sizes = [128, 64], strides = [1, 1]} : vector<128x384xf32> to vector<128x64xf32>
    %108 = arith.truncf %107 : vector<128x64xf32> to vector<128x64xbf16>
    %cst_29 = arith.constant dense<0.000000e+00> : vector<128x128xf32>
    %109 = tpu.matmul %104, %106, %cst_29 {dimension_numbers = #tpu.dot_dimension_numbers<[1], [1], [0], [0], [0, 0, 1, 0], [], []>} : vector<128x64xbf16>, vector<128x64xbf16>, vector<128x128xf32> -> vector<128x128xf32>
    %cst_30 = arith.constant 0xFF800000 : f32
    %110 = vector.broadcast %cst_30 : f32 to vector<128x128xf32>
    %111 = arith.select %10, %109, %110 : vector<128x128xi1>, vector<128x128xf32>
    %cst_31 = arith.constant dense<0xFF800000> : vector<128xf32>
    %112 = vector.multi_reduction <maximumf>, %111, %cst_31 [1] : vector<128x128xf32> to vector<128xf32>
    %113 = vector.shape_cast %112 : vector<128xf32> to vector<128x1xf32>
    %114 = vector.broadcast %113 : vector<128x1xf32> to vector<128x128xf32>
    %115 = arith.subf %111, %114 : vector<128x128xf32>
    %116 = math.exp %115 : vector<128x128xf32>
    %cst_32 = arith.constant dense<0.000000e+00> : vector<128xf32>
    %117 = vector.multi_reduction <add>, %116, %cst_32 [1] : vector<128x128xf32> to vector<128xf32>
    %118 = vector.shape_cast %117 : vector<128xf32> to vector<128x1xf32>
    %119 = tpu.reciprocal %118 {approx = true} : vector<128x1xf32> -> vector<128x1xf32>
    %120 = arith.truncf %116 : vector<128x128xf32> to vector<128x128xbf16>
    %cst_33 = arith.constant dense<0.000000e+00> : vector<128x64xf32>
    %121 = tpu.matmul %120, %108, %cst_33 {dimension_numbers = #tpu.dot_dimension_numbers<[1], [0], [0], [1], [0, 0, 1, 1], [], []>} : vector<128x128xbf16>, vector<128x64xbf16>, vector<128x64xf32> -> vector<128x64xf32>
    %122 = vector.broadcast %119 : vector<128x1xf32> to vector<128x64xf32>
    %123 = arith.mulf %121, %122 : vector<128x64xf32>
    %124 = arith.truncf %123 : vector<128x64xf32> to vector<128x64xbf16>
    %c0_34 = arith.constant 0 : index
    %c256 = arith.constant 256 : index
    %125 = vector.load %arg6[%c0_34, %c256] : memref<128x384xbf16, #tpu.memory_space<vmem>>, vector<128x64xbf16>
    tpu.vector_store %arg6[%c0_34, %c256], %124 {strides = array<i32>} : memref<128x384xbf16, #tpu.memory_space<vmem>>, vector<128x64xbf16>,
    %126 = vector.extract_strided_slice %5 {offsets = [0, 320], sizes = [128, 64], strides = [1, 1]} : vector<128x384xf32> to vector<128x64xf32>
    %127 = arith.truncf %126 : vector<128x64xf32> to vector<128x64xbf16>
    %128 = vector.extract_strided_slice %6 {offsets = [0, 320], sizes = [128, 64], strides = [1, 1]} : vector<128x384xf32> to vector<128x64xf32>
    %129 = arith.truncf %128 : vector<128x64xf32> to vector<128x64xbf16>
    %130 = vector.extract_strided_slice %7 {offsets = [0, 320], sizes = [128, 64], strides = [1, 1]} : vector<128x384xf32> to vector<128x64xf32>
    %131 = arith.truncf %130 : vector<128x64xf32> to vector<128x64xbf16>
    %cst_35 = arith.constant dense<0.000000e+00> : vector<128x128xf32>
    %132 = tpu.matmul %127, %129, %cst_35 {dimension_numbers = #tpu.dot_dimension_numbers<[1], [1], [0], [0], [0, 0, 1, 0], [], []>} : vector<128x64xbf16>, vector<128x64xbf16>, vector<128x128xf32> -> vector<128x128xf32>
    %cst_36 = arith.constant 0xFF800000 : f32
    %133 = vector.broadcast %cst_36 : f32 to vector<128x128xf32>
    %134 = arith.select %10, %132, %133 : vector<128x128xi1>, vector<128x128xf32>
    %cst_37 = arith.constant dense<0xFF800000> : vector<128xf32>
    %135 = vector.multi_reduction <maximumf>, %134, %cst_37 [1] : vector<128x128xf32> to vector<128xf32>
    %136 = vector.shape_cast %135 : vector<128xf32> to vector<128x1xf32>
    %137 = vector.broadcast %136 : vector<128x1xf32> to vector<128x128xf32>
    %138 = arith.subf %134, %137 : vector<128x128xf32>
    %139 = math.exp %138 : vector<128x128xf32>
    %cst_38 = arith.constant dense<0.000000e+00> : vector<128xf32>
    %140 = vector.multi_reduction <add>, %139, %cst_38 [1] : vector<128x128xf32> to vector<128xf32>
    %141 = vector.shape_cast %140 : vector<128xf32> to vector<128x1xf32>
    %142 = tpu.reciprocal %141 {approx = true} : vector<128x1xf32> -> vector<128x1xf32>
    %143 = arith.truncf %139 : vector<128x128xf32> to vector<128x128xbf16>
    %cst_39 = arith.constant dense<0.000000e+00> : vector<128x64xf32>
    %144 = tpu.matmul %143, %131, %cst_39 {dimension_numbers = #tpu.dot_dimension_numbers<[1], [0], [0], [1], [0, 0, 1, 1], [], []>} : vector<128x128xbf16>, vector<128x64xbf16>, vector<128x64xf32> -> vector<128x64xf32>
    %145 = vector.broadcast %142 : vector<128x1xf32> to vector<128x64xf32>
    %146 = arith.mulf %144, %145 : vector<128x64xf32>
    %147 = arith.truncf %146 : vector<128x64xf32> to vector<128x64xbf16>
    %c0_40 = arith.constant 0 : index
    %c320 = arith.constant 320 : index
    %148 = vector.load %arg6[%c0_40, %c320] : memref<128x384xbf16, #tpu.memory_space<vmem>>, vector<128x64xbf16>
    tpu.vector_store %arg6[%c0_40, %c320], %147 {strides = array<i32>} : memref<128x384xbf16, #tpu.memory_space<vmem>>, vector<128x64xbf16>,
    %c0_41 = arith.constant 0 : index
    %c0_42 = arith.constant 0 : index
    %149 = vector.load %arg6[%c0_41, %c0_42] : memref<128x384xbf16, #tpu.memory_space<vmem>>, vector<128x384xbf16>
    %c0_43 = arith.constant 0 : index
    %c0_44 = arith.constant 0 : index
    %150 = vector.load %arg3[%c0_43, %c0_44] : memref<384x384xbf16, #tpu.memory_space<vmem>>, vector<384x384xbf16>
    %cst_45 = arith.constant dense<0.000000e+00> : vector<128x384xf32>
    %151 = tpu.matmul %149, %150, %cst_45 {dimension_numbers = #tpu.dot_dimension_numbers<[1], [0], [0], [1], [0, 0, 1, 1], [], []>} : vector<128x384xbf16>, vector<384x384xbf16>, vector<128x384xf32> -> vector<128x384xf32>
    %c0_46 = arith.constant 0 : index
    %c0_47 = arith.constant 0 : index
    %152 = vector.load %arg4[%c0_46, %c0_47] : memref<1x384xf32, #tpu.memory_space<vmem>>, vector<1x384xf32>
    %153 = vector.broadcast %152 : vector<1x384xf32> to vector<128x384xf32>
    %154 = arith.addf %151, %153 : vector<128x384xf32>
    %c0_48 = arith.constant 0 : index
    %c0_49 = arith.constant 0 : index
    %c0_50 = arith.constant 0 : index
    %155 = vector.load %arg5[%c0_48, %c0_49, %c0_50] : memref<1x128x384xf32, #tpu.memory_space<vmem>>, vector<1x128x384xf32>
    %156 = vector.shape_cast %155 : vector<1x128x384xf32> to vector<128x384xf32>
    %157 = vector.shape_cast %154 : vector<128x384xf32> to vector<1x128x384xf32>
    tpu.vector_store %arg5[%c0_48, %c0_49, %c0_50], %157 {strides = array<i32>} : memref<1x128x384xf32, #tpu.memory_space<vmem>>, vector<1x128x384xf32>,
    return
  }
  func.func @transform_0(%arg0: i32) -> (i32, i32, i32) {
    %c0_i32 = arith.constant 0 : i32
    %c0_i32_0 = arith.constant 0 : i32
    %c0_i32_1 = arith.constant 0 : i32
    return %arg0, %c0_i32, %c0_i32_0 : i32, i32, i32
  }
  func.func @transform_1(%arg0: i32) -> (i32, i32) {
    %c0_i32 = arith.constant 0 : i32
    %c0_i32_0 = arith.constant 0 : i32
    %c0_i32_1 = arith.constant 0 : i32
    return %c0_i32, %c0_i32_0 : i32, i32
  }
  func.func @transform_2(%arg0: i32) -> (i32, i32) {
    %c0_i32 = arith.constant 0 : i32
    %c0_i32_0 = arith.constant 0 : i32
    %c0_i32_1 = arith.constant 0 : i32
    return %c0_i32, %c0_i32_0 : i32, i32
  }
  func.func @transform_3(%arg0: i32) -> (i32, i32) {
    %c0_i32 = arith.constant 0 : i32
    %c0_i32_0 = arith.constant 0 : i32
    %c0_i32_1 = arith.constant 0 : i32
    return %c0_i32, %c0_i32_0 : i32, i32
  }
  func.func @transform_4(%arg0: i32) -> (i32, i32, i32) {
    %c0_i32 = arith.constant 0 : i32
    %c0_i32_0 = arith.constant 0 : i32
    %c0_i32_1 = arith.constant 0 : i32
    return %arg0, %c0_i32, %c0_i32_0 : i32, i32, i32
  }
}

</mosaic_0001>

<bundles_post_ra>
// kernel: tpu_custom_call.1
= control target key start
LH: loop header
LB: loop body
LE: loop exit
PB: predicated region body
PF: predicated region fallthrough
CT: control target
= control target key end

     0   :  { %9 = vsyncpa [#allocation4], 0  ;;  %s12306_s0 = inlined_call_operand.hbm [shape: f32[4,128,384], index: 0, kind: input, shape index: {}]   ;;  %s12307_s1 = inlined_call_operand.hbm [shape: bf16[384,1152], index: 1, kind: input, shape index: {}]   ;;  %s12308_s2 = inlined_call_operand.hbm [shape: bf16[384,384], index: 2, kind: input, shape index: {}]   ;;  %s12309_s3 = inlined_call_operand.vmem [shape: f32[1,384], index: 3, kind: input, shape index: {}]   ;;  %s12310_s4 = inlined_call_operand.hbm [shape: f32[4,128,384], index: 4, kind: output, shape index: {}]  }
   0x1   :  { %11 = vsyncpa [#allocation4 + $0x1], 0 }
   0x2   :  { %12 = vsyncpa [#allocation7], 0 }
   0x3   :  { %13 = vsyncpa [#allocation5], 0 }
   0x4   :  { %15 = vsyncpa [#allocation5 + $0x1], 0  ;;  %s9346_s15 = smov 0   ;;  %s9348_s16 = smov 0  }
   0x5   :  { %s9350_s17 = smov 0   ;;  %s9352_s18 = smov 0  }
   0x6 LB: > { %s9367_s19 = sadd.s32 4294967295, %s9305_s18   ;;  %s6856_s20 = sadd.s32 4294967294, %s9305_s18   ;;  %s9305_s18 = sphi %s9352_s18, %s13026_s18   ;;  %s9301_s17 = sphi %s9350_s17, %s13025_s17   ;;  %s9297_s16 = sphi %s9348_s16, %s13024_s16   ;;  %s9293_s15 = sphi %s9346_s15, %s13023_s15  }
   0x7   : > { %p41_p0 = scmp.ne.s32.totalorder %s9297_s16, %s9293_s15  ;;  %p12311_p1 = scmp.eq.s32.totalorder %s9367_s19, 0 }
   0x8   : > { %p134_p3 = scmp.eq.s32.totalorder %s6856_s20, 3  ;;  %p6857_p5 = scmp.ge.s32.totalorder %s9305_s18, 1 }
   0x9   : > { %p9376_p4 = por %p12311_p1, %p41_p0  ;;  %p141_p7 = scmp.lt.s32.totalorder %s9305_s18, 5 }
   0xa   : > { %p9381_p6 = por %p134_p3, %p41_p0  ;;  %s9307_s24 = smov [#allocation6]  }
   0xb   : > { %s12457_s21 = scalar_select %p9376_p4, 1, 0 }
   0xc   : > { %s12458_s22 = scalar_select %p9381_p6, 1, 0 }
   0xd   : > { %p9386_p8 = pnand %p6857_p5, %p141_p7  ;;  %s153_s25 = sshll.u32 %s9307_s24, 4  ;;  %s154_s25 = int_to_ptr.vmem [resolvable:$true] %s153_s25 }
   0xe   : > { %s9308_s27 = smov [#allocation8]   ;;  %s9149_s5 = scalar_lea.hbm %s12307_s1, 27648 }
   0xf   : > { %s12459_s23 = scalar_select %p9386_p8, 1, 0 }
  0x10   : > { %p8276_p9 = pneg %p9386_p8  ;;  %s166_s28 = sshll.u32 %s9308_s27, 4  ;;  %s9398_s28 = int_to_ptr.vmem [resolvable:$true] %s166_s28 }
  0x11   : > { %p9150_p11 = scmp.ne.s32.totalorder %s12307_s1, %s9149_s5  ;;  %p9156_p3 = scmp.lt.u32.totalorder %s9149_s5, %s12307_s1 }
  0x12   : > { %p9394_p10 = pnand %p8276_p9, %p12311_p1 }
  0x14   : > { %p9151_p12 = pneg %p9394_p10 }
  0x16   : > { %p9152_p13 = pnand %p9151_p12, %p9150_p11 }
  0x18   : > { %p9153_p0 = pneg %p9152_p13 }
  0x1a   : > { %p9158_p5 = pnand %p9156_p3, %p9153_p0 }
  0x1c   : > { %9161 = shalt.err (!%p9158_p5)
}
  0x1d   : > { %s9162_s10 = scalar_lea.vmem %s154_s25, 27648  ;;  %p9170_p2 = scmp.lt.s32.totalorder %s154_s25, %s154_s25 }
  0x1e   : > { %p9163_p7 = scmp.ne.s32.totalorder %s154_s25, %s9162_s10  ;;  %p9171_p6 = scmp.lt.s32.totalorder %s9162_s10, %s9162_s10 }
  0x20   : > { %p9165_p9 = pnand %p9163_p7, %p9151_p12  ;;  %p9172_p4 = por %p9171_p6, %p9170_p2 }
  0x22   : > { %p9166_p1 = pneg %p9165_p9 }
  0x24   : > { %p9173_p8 = pnand %p9172_p4, %p9166_p1 }
  0x26   : > { %9176 = shalt.err (!%p9173_p8)
}
  0x27   : > { %s9309_s11 = smov 576   ;;  %s9310_s12 = smov 36  }
  0x28   : > { %8279 = dma.hbm_to_vmem [thread:$0]  (!%p9394_p10), %s12307_s1, 27648, %s154_s25, [#allocation7], %s9309_s11, %s9309_s11, %s9310_s12  }
  0x29   : > { %s9177_s27 = scalar_lea.hbm %s12308_s2, 9216 }
  0x2a   : > { %p9178_p11 = scmp.ne.s32.totalorder %s12308_s2, %s9177_s27  ;;  %p9184_p4 = scmp.lt.u32.totalorder %s9177_s27, %s12308_s2 }
  0x2c   : > { %p9180_p1 = pnand %p9178_p11, %p9151_p12 }
  0x2e   : > { %p9181_p2 = pneg %p9180_p1 }
  0x30   : > { %p9186_p6 = pnand %p9184_p4, %p9181_p2 }
  0x32   : > { %9189 = shalt.err (!%p9186_p6)
}
  0x33   : > { %s9190_s25 = scalar_lea.vmem %s9398_s28, 9216  ;;  %p9198_p3 = scmp.lt.s32.totalorder %s9398_s28, %s9398_s28 }
  0x34   : > { %p9191_p8 = scmp.ne.s32.totalorder %s9398_s28, %s9190_s25  ;;  %p9199_p5 = scmp.lt.s32.totalorder %s9190_s25, %s9190_s25 }
  0x36   : > { %p9193_p13 = pnand %p9191_p8, %p9151_p12  ;;  %p9200_p7 = por %p9199_p5, %p9198_p3 }
  0x38   : > { %p9194_p0 = pneg %p9193_p13 }
  0x3a   : > { %p9201_p9 = pnand %p9200_p7, %p9194_p0 }
  0x3c   : > { %9204 = shalt.err (!%p9201_p9)
}
  0x3d   : > { %s9311_s7 = smov 192   ;;  %s9312_s8 = smov 12  }
  0x3e   : > { %8282 = dma.hbm_to_vmem [thread:$0]  (!%p9394_p10), %s12308_s2, 9216, %s9398_s28, [#allocation7], %s9311_s7, %s9311_s7, %s9312_s8  }
  0x3f   : > { %s9448_s11 = sadd.s32 1, %s9305_s18   ;;  %s28_s13 = sadd.s32 1, %s9301_s17 }
  0x40   : > { %s25_s12 = ssub.s32 %s9305_s18, %s9448_s11  ;;  %p35_p11 = scmp.ne.s32.totalorder %s9301_s17, %s9297_s16 }
  0x41   : > { %p26_p12 = scmp.eq.s32.totalorder %s25_s12, 0  ;;  %p36_p1 = scmp.eq.s32.totalorder %s9305_s18, 0 }
  0x42   : > { %p12461_p4 = scmp.eq.s32.totalorder %s9367_s19, 3  ;;  %p8293_p8 = scmp.lt.s32.totalorder %s9305_s18, 4 }
  0x43   : > { %s9457_s14 = scalar_select %p26_p12, %s9301_s17, %s28_s13  }
  0x44   : > { %p37_p2 = por %p36_p1, %p35_p11  ;;  %p9461_p6 = por %p12461_p4, %p35_p11 }
  0x45   : > { %s183_s26 = sand.u32 1, %s9301_s17   ;;  %s8261_s28 = smul.u32 6144, %s9305_s18 }
  0x46   : > { %s8260_s24 = smul.u32 384, %s183_s26  ;;  %p9468_p10 = pnand %p8293_p8, %p37_p2 }
  0x47   : > { %s9475_s5 = scalar_lea.hbm %s12306_s0, %s8261_s28  ;;  %s9479_s7 = scalar_lea.sflag [#allocation4], %s183_s26 }
  0x48   : > { %s187_s6 = scalar_lea.vmem [#allocation3], %s8260_s24  ;;  %s9205_s8 = scalar_lea.hbm %s9475_s5, 6144 }
  0x49   : > { %s194_s25 = sshll.u32 %s187_s6, 4  ;;  %p9206_p13 = scmp.ne.s32.totalorder %s9475_s5, %s9205_s8  ;;  %s9477_s25 = int_to_ptr.vmem [resolvable:$true] %s194_s25 }
  0x4a   : > { %p9207_p0 = pneg %p9468_p10  ;;  %s9210_s12 = scalar_lea.hbm %s12306_s0, 24576 }
  0x4b   : > { %p9211_p7 = scmp.lt.u32.totalorder %s9475_s5, %s12306_s0  ;;  %p9212_p9 = scmp.lt.u32.totalorder %s9210_s12, %s9205_s8 }
  0x4c   : > { %p9208_p3 = pnand %p9207_p0, %p9206_p13  ;;  %p9214_p11 = scmp.lt.u32.totalorder %s9205_s8, %s9475_s5 }
  0x4d   : > { %p9213_p12 = por %p9212_p9, %p9211_p7 }
  0x4e   : > { %p9209_p5 = pneg %p9208_p3 }
  0x4f   : > { %p9215_p1 = por %p9214_p11, %p9213_p12 }
  0x51   : > { %p9216_p2 = pnand %p9215_p1, %p9209_p5 }
  0x53   : > { %9219 = shalt.err (!%p9216_p2)
}
  0x54   : > { %s9220_s26 = scalar_lea.vmem %s9477_s25, 6144  ;;  %s9313_s24 = smov [#allocation3]  }
  0x55   : > { %p9221_p4 = scmp.ne.s32.totalorder %s9477_s25, %s9220_s26  ;;  %s9225_s29 = sshll.u32 %s9313_s24, 4  ;;  %s9226_s29 = int_to_ptr.vmem [resolvable:$false] %s9225_s29 }
  0x56   : > { %s9227_s30 = scalar_lea.vmem %s9226_s29, 12288  ;;  %p9228_p3 = scmp.lt.s32.totalorder %s9477_s25, %s9226_s29 }
  0x57   : > { %p9223_p8 = pnand %p9221_p4, %p9207_p0  ;;  %p9229_p7 = scmp.lt.s32.totalorder %s9227_s30, %s9220_s26 }
  0x59   : > { %p9224_p13 = pneg %p9223_p8  ;;  %p9230_p9 = por %p9229_p7, %p9228_p3 }
  0x5b   : > { %p9231_p12 = pnand %p9230_p9, %p9224_p13 }
  0x5d   : > { %9234 = shalt.err (!%p9231_p12)
}
  0x5e   : > { %s9314_s6 = smov 384   ;;  %s9315_s8 = smov 24  }
  0x5f   : > { %8286 = dma.hbm_to_vmem [thread:$0]  (!%p9468_p10), %s9475_s5, 6144, %s9477_s25, %s9479_s7, %s9314_s6, %s9314_s6, %s9315_s8  }
  0x60   : > { %p12464_p0 = scmp.ne.s32.totalorder %s12459_s23, 0 }
  0x62   : > { %206 = sbr.rel (%p12464_p0) target bundleno = 4015 (0xfaf), region = 36 }
  0x69   : > { %s9510_s9 = sand.u32 1, %s9297_s16   ;;  %p12465_p5 = scmp.ne.s32.totalorder %s12457_s21, 0 }
  0x6a   : > { %s8262_s10 = smul.u32 384, %s9510_s9  ;;  %s209_s12 = scalar_lea.sflag [#allocation4], %s9510_s9 }
  0x6c   : > { %s9516_s13 = scalar_lea.vmem [#allocation3], %s8262_s10 }
  0x6d   : > { %9280 = dma.done.wait (%p12465_p5), %s209_s12, 6144  }
  0x6e   : > { %9282 = vsyncadd (%p12465_p5), %s209_s12, 4294961152  ;;  %p12466_p10 = scmp.eq.s32.totalorder %s9367_s19, 0 }
  0x70   : > { %9284 = dma.done.wait (%p12466_p10), [#allocation7], 36864   ;;  %p12467_p11 = pmov %p12466_p10 }
  0x71   : > { %v12314_v0 = vmov 0   ;;  %v8341_v1 = vld [vmem:[#allocation6 + $0x4] ss:$36 sps:$4 sm:$0xff]   ;;  %v8347_v5 = vld [vmem:[#allocation6 + $0x4c] ss:$36 sps:$4 sm:$0xff]   ;;  %v257_v46 = vld [vmem:[%s9516_s13 + $0x58] sm:$0xff] }
  0x72   : > { %9286 = vsyncadd (%p12467_p11), [#allocation7], 4294930432  ;;  %1807 = vmatprep.mubr.bf16.mxu1 %v12314_v0  ;;  %v8343_v2 = vld [vmem:[#allocation6 + $0x484] ss:$36 sps:$4 sm:$0xff]   ;;  %1662 = vmatprep.subr.bf16.mxu0 %v8341_v1  ;;  %v8349_v6 = vld [vmem:[#allocation6 + $0x4cc] ss:$36 sps:$4 sm:$0xff]  }
  0x73   : > { %v8345_v3 = vld [vmem:[#allocation6] ss:$36 sps:$4 sm:$0xff]   ;;  %1775 = vmatprep.subr.bf16.mxu1 %v8343_v2  ;;  %v8351_v7 = vld [vmem:[#allocation6 + $0x48] ss:$36 sps:$4 sm:$0xff]   ;;  %v8353_v9 = vld [vmem:[#allocation6 + $0x94] ss:$36 sps:$4 sm:$0xff]  }
  0x74   : > { %v8346_v4 = vld [vmem:[#allocation6 + $0x480] ss:$36 sps:$4 sm:$0xff]   ;;  %1663 = vmatpush1.bf16.msra.mxu0 %v8345_v3  ;;  %v8352_v8 = vld [vmem:[#allocation6 + $0x4c8] ss:$36 sps:$4 sm:$0xff]   ;;  %v8355_v10 = vld [vmem:[#allocation6 + $0x514] ss:$36 sps:$4 sm:$0xff]  }
  0x75   : > { %1776 = vmatpush1.bf16.msra.mxu1 %v8346_v4  ;;  %1664 = vmatprep.subr.bf16.mxu0 %v8347_v5  ;;  %v8357_v11 = vld [vmem:[#allocation6 + $0x90] ss:$36 sps:$4 sm:$0xff]   ;;  %v8359_v13 = vld [vmem:[#allocation6 + $0xdc] ss:$36 sps:$4 sm:$0xff]   ;;  %v8365_v17 = vld [vmem:[#allocation6 + $0x124] ss:$36 sps:$4 sm:$0xff]  }
  0x76   : > { %1777 = vmatprep.subr.bf16.mxu1 %v8349_v6  ;;  %v8358_v12 = vld [vmem:[#allocation6 + $0x510] ss:$36 sps:$4 sm:$0xff]   ;;  %v8361_v14 = vld [vmem:[#allocation6 + $0x55c] ss:$36 sps:$4 sm:$0xff]   ;;  %v8367_v18 = vld [vmem:[#allocation6 + $0x5a4] ss:$36 sps:$4 sm:$0xff]  }
  0x77   : > { %v8363_v15 = vld [vmem:[#allocation6 + $0xd8] ss:$36 sps:$4 sm:$0xff]   ;;  %v8369_v19 = vld [vmem:[#allocation6 + $0x120] ss:$36 sps:$4 sm:$0xff]   ;;  %v8371_v21 = vld [vmem:[#allocation6 + $0x16c] ss:$36 sps:$4 sm:$0xff]  }
  0x78   : > { %1665 = vmatpush1.bf16.msra.mxu0 %v8351_v7  ;;  %v8364_v16 = vld [vmem:[#allocation6 + $0x558] ss:$36 sps:$4 sm:$0xff]   ;;  %v8370_v20 = vld [vmem:[#allocation6 + $0x5a0] ss:$36 sps:$4 sm:$0xff]   ;;  %v8373_v22 = vld [vmem:[#allocation6 + $0x5ec] ss:$36 sps:$4 sm:$0xff]  }
  0x79   : > { %1778 = vmatpush1.bf16.msra.mxu1 %v8352_v8  ;;  %1666 = vmatprep.subr.bf16.mxu0 %v8353_v9  ;;  %v8375_v23 = vld [vmem:[#allocation6 + $0x168] ss:$36 sps:$4 sm:$0xff]   ;;  %v8377_v25 = vld [vmem:[#allocation6 + $0x1b4] ss:$36 sps:$4 sm:$0xff]   ;;  %v8383_v29 = vld [vmem:[#allocation6 + $0x1fc] ss:$36 sps:$4 sm:$0xff]  }
  0x7a   : > { %1779 = vmatprep.subr.bf16.mxu1 %v8355_v10  ;;  %v8376_v24 = vld [vmem:[#allocation6 + $0x5e8] ss:$36 sps:$4 sm:$0xff]   ;;  %v8379_v26 = vld [vmem:[#allocation6 + $0x634] ss:$36 sps:$4 sm:$0xff]   ;;  %v8385_v30 = vld [vmem:[#allocation6 + $0x67c] ss:$36 sps:$4 sm:$0xff]  }
  0x7b   : > { %v8381_v27 = vld [vmem:[#allocation6 + $0x1b0] ss:$36 sps:$4 sm:$0xff]   ;;  %v8387_v31 = vld [vmem:[#allocation6 + $0x1f8] ss:$36 sps:$4 sm:$0xff]   ;;  %v8389_v33 = vld [vmem:[#allocation6 + $0x244] ss:$36 sps:$4 sm:$0xff]  }
  0x7c   : > { %1667 = vmatpush1.bf16.msra.mxu0 %v8357_v11  ;;  %v8382_v28 = vld [vmem:[#allocation6 + $0x630] ss:$36 sps:$4 sm:$0xff]   ;;  %v8388_v32 = vld [vmem:[#allocation6 + $0x678] ss:$36 sps:$4 sm:$0xff]   ;;  %v251_v35 = vld [vmem:[%s9516_s13 + $0x28] sm:$0xff]  ;;  %vm12358_vm0 = vcmask 523264  }
  0x7d   : > { %1780 = vmatpush1.bf16.msra.mxu1 %v8358_v12  ;;  %1668 = vmatprep.subr.bf16.mxu0 %v8359_v13  ;;  %v248_v34 = vld [vmem:[%s9516_s13 + $0x10] sm:$0xff]  ;;  %v8391_v38 = vld [vmem:[#allocation6 + $0x8] ss:$36 sps:$4 sm:$0xff]   ;;  %v8394_v39 = vld [vmem:[#allocation6 + $0x240] ss:$36 sps:$4 sm:$0xff]   ;;  %s9317_s21 = smov 64  }
  0x7e   : > { %1781 = vmatprep.subr.bf16.mxu1 %v8361_v14  ;;  %v8393_v36 = vld [vmem:[#allocation6 + $0xc] ss:$36 sps:$4 sm:$0xff]   ;;  %v9529_v37 = vpack.c.bf16 %v251_v35, %v248_v34  ;;  %v8399_v41 = vld [vmem:[#allocation6 + $0x54] ss:$36 sps:$4 sm:$0xff]   ;;  %v254_v45 = vld [vmem:[%s9516_s13 + $0x40] sm:$0xff]  ;;  %s12137_s5 = scalar_lea.vmem [#allocation9], %s8262_s10 }
  0x7f   : > { %v8395_v40 = vld [vmem:[#allocation6 + $0x28c] ss:$36 sps:$4 sm:$0xff]   ;;  %v8401_v44 = vld [vmem:[#allocation6 + $0x2d4] ss:$36 sps:$4 sm:$0xff]   ;;  %v8405_v47 = vld [vmem:[#allocation6 + $0x9c] ss:$36 sps:$4 sm:$0xff]   ;;  %v9535_v48 = vpack.c.bf16 %v257_v46, %v254_v45 }
  0x80   : > { %1669 = vmatpush1.bf16.msra.mxu0 %v8363_v15  ;;  %v8397_v42 = vld [vmem:[#allocation6 + $0x50] ss:$36 sps:$4 sm:$0xff]   ;;  %v8400_v43 = vld [vmem:[#allocation6 + $0x288] ss:$36 sps:$4 sm:$0xff]   ;;  %v8403_v49 = vld [vmem:[#allocation6 + $0x98] ss:$36 sps:$4 sm:$0xff]  }
  0x81   : > { %1782 = vmatpush1.bf16.msra.mxu1 %v8364_v16  ;;  %1670 = vmatprep.subr.bf16.mxu0 %v8365_v17  ;;  %v8406_v50 = vld [vmem:[#allocation6 + $0x2d0] ss:$36 sps:$4 sm:$0xff]   ;;  %v8407_v51 = vld [vmem:[#allocation6 + $0x31c] ss:$36 sps:$4 sm:$0xff]   ;;  %v8411_v52 = vld [vmem:[#allocation6 + $0xe4] ss:$36 sps:$4 sm:$0xff]  }
  0x82   : > { %1783 = vmatprep.subr.bf16.mxu1 %v8367_v18  ;;  %v8409_v53 = vld [vmem:[#allocation6 + $0xe0] ss:$36 sps:$4 sm:$0xff]   ;;  %v8412_v54 = vld [vmem:[#allocation6 + $0x318] ss:$36 sps:$4 sm:$0xff]   ;;  %v260_v56 = vld [vmem:[%s9516_s13 + $0x70] sm:$0xff]  ;;  %s8263_s25 = smul.u32 6144, %s9367_s19 }
  0x83   : > { %v8413_v55 = vld [vmem:[#allocation6 + $0x364] ss:$36 sps:$4 sm:$0xff]   ;;  %v8417_v58 = vld [vmem:[#allocation6 + $0x12c] ss:$36 sps:$4 sm:$0xff]   ;;  %v8423_v3 = vld [vmem:[#allocation6 + $0x174] ss:$36 sps:$4 sm:$0xff]  }
  0x84   : > { %1671 = vmatpush1.bf16.msra.mxu0 %v8369_v19  ;;  %v263_v57 = vld [vmem:[%s9516_s13 + $0x88] sm:$0xff]  ;;  %v250_v60 = vld [vmem:[%s9516_s13 + $0x20] sm:$0xff]  ;;  %v8421_v4 = vld [vmem:[#allocation6 + $0x170] ss:$36 sps:$4 sm:$0xff]   ;;  %s6764_s7 = sshll.u32 %s12137_s5, 4  ;;  %s12258_s24 = scalar_lea.hbm %s12310_s4, %s8263_s25  ;;  %s12260_s7 = int_to_ptr.vmem [resolvable:$true] %s6764_s7 }
  0x85   : > { %1784 = vmatpush1.bf16.msra.mxu1 %v8370_v20  ;;  %1672 = vmatprep.subr.bf16.mxu0 %v8371_v21  ;;  %v247_v59 = vld [vmem:[%s9516_s13 + $0x8] sm:$0xff]  ;;  %v9545_v62 = vpack.c.bf16 %v263_v57, %v260_v56  ;;  %v8418_v1 = vld [vmem:[#allocation6 + $0x360] ss:$36 sps:$4 sm:$0xff]   ;;  %v269_v7 = vld [vmem:[%s9516_s13 + $0xb8] sm:$0xff]  ;;  %s6751_s19 = scalar_lea.sflag [#allocation5], %s9510_s9  ;;  %s9235_s29 = scalar_lea.vmem %s12260_s7, 6144 }
  0x86   : > { %1785 = vmatprep.subr.bf16.mxu1 %v8373_v22  ;;  %v9543_v61 = vpack.c.bf16 %v250_v60, %v247_v59  ;;  %v8415_v63 = vld [vmem:[#allocation6 + $0x128] ss:$36 sps:$4 sm:$0xff]   ;;  %v266_v6 = vld [vmem:[%s9516_s13 + $0xa0] sm:$0xff]  ;;  %v8425_v8 = vld [vmem:[#allocation6 + $0x3f4] ss:$36 sps:$4 sm:$0xff]   ;;  %p9236_p1 = scmp.ne.s32.totalorder %s12260_s7, %s9235_s29  ;;  %s9318_s30 = smov [#allocation9]  }
  0x87   : > { %v8419_v2 = vld [vmem:[#allocation6 + $0x3ac] ss:$36 sps:$4 sm:$0xff]   ;;  %v8429_v9 = vld [vmem:[#allocation6 + $0x1bc] ss:$36 sps:$4 sm:$0xff]   ;;  %v9552_v10 = vpack.c.bf16 %v269_v7, %v266_v6  ;;  %v8435_v14 = vld [vmem:[#allocation6 + $0x204] ss:$36 sps:$4 sm:$0xff]  }
  0x88   : > { %1673 = vmatpush1.bf16.msra.mxu0 %v8375_v23  ;;  %1694 = vmatprep.mubr.bf16.mxu0 %v9543_v61  ;;  %v8424_v5 = vld [vmem:[#allocation6 + $0x3a8] ss:$36 sps:$4 sm:$0xff]   ;;  %v8427_v11 = vld [vmem:[#allocation6 + $0x1b8] ss:$36 sps:$4 sm:$0xff]   ;;  %v8430_v12 = vld [vmem:[#allocation6 + $0x3f0] ss:$36 sps:$4 sm:$0xff]   ;;  %p9237_p2 = pnand %p9236_p1, %p9461_p6 }
  0x89   : > { %1786 = vmatpush1.bf16.msra.mxu1 %v8376_v24  ;;  %1674 = vmatprep.subr.bf16.mxu0 %v8377_v25  ;;  %v8431_v13 = vld [vmem:[#allocation6 + $0x43c] ss:$36 sps:$4 sm:$0xff]   ;;  %v272_v19 = vld [vmem:[%s9516_s13 + $0xd0] sm:$0xff]  ;;  %v275_v20 = vld [vmem:[%s9516_s13 + $0xe8] sm:$0xff]  ;;  %s9239_s6 = sshll.u32 %s9318_s30, 4  ;;  %s9240_s6 = int_to_ptr.vmem [resolvable:$false] %s9239_s6 }
  0x8a   : > { %1787 = vmatprep.subr.bf16.mxu1 %v8379_v26  ;;  %v8433_v15 = vld [vmem:[#allocation6 + $0x200] ss:$36 sps:$4 sm:$0xff]   ;;  %v8436_v16 = vld [vmem:[#allocation6 + $0x438] ss:$36 sps:$4 sm:$0xff]   ;;  %v8439_v21 = vld [vmem:[#allocation6 + $0x24c] ss:$36 sps:$4 sm:$0xff]   ;;  %v9563_v25 = vpack.c.bf16 %v275_v20, %v272_v19  ;;  %p9238_p4 = pneg %p9237_p2  ;;  %p9242_p8 = scmp.lt.s32.totalorder %s12260_s7, %s9240_s6 }
  0x8b   : > { %v246_v17 = vld [vmem:[%s9516_s13] sm:$0xff]  ;;  %v249_v18 = vld [vmem:[%s9516_s13 + $0x18] sm:$0xff]  ;;  %v256_v26 = vld [vmem:[%s9516_s13 + $0x50] sm:$0xff]  ;;  %s9241_s8 = scalar_lea.vmem %s9240_s6, 12288 }
  0x8c   : > { %1675 = vmatpush1.bf16.msra.mxu0 %v8381_v27  ;;  %v8442_v22 = vld [vmem:[#allocation6 + $0x14] ss:$36 sps:$4 sm:$0xff]   ;;  %v9561_v24 = vpack.c.bf16 %v249_v18, %v246_v17  ;;  %v8437_v27 = vld [vmem:[#allocation6 + $0x248] ss:$36 sps:$4 sm:$0xff]   ;;  %v262_v46 = vld [vmem:[%s9516_s13 + $0x80] sm:$0xff]  ;;  %p9243_p13 = scmp.lt.s32.totalorder %s9241_s8, %s9235_s29 }
  0x8d   : > { %1788 = vmatpush1.bf16.msra.mxu1 %v8382_v28  ;;  %1676 = vmatprep.subr.bf16.mxu0 %v8383_v29  ;;  %v253_v23 = vld [vmem:[%s9516_s13 + $0x38] sm:$0xff]  ;;  %v8440_v28 = vld [vmem:[#allocation6 + $0x10] ss:$36 sps:$4 sm:$0xff]   ;;  %v255_v35 = vld [vmem:[%s9516_s13 + $0x48] sm:$0xff] }
  0x8e   : > { %1789 = vmatprep.subr.bf16.mxu1 %v8385_v30  ;;  %v8445_v29 = vld [vmem:[#allocation6 + $0x294] ss:$36 sps:$4 sm:$0xff]   ;;  %v8448_v30 = vld [vmem:[#allocation6 + $0x5c] ss:$36 sps:$4 sm:$0xff]   ;;  %v259_v45 = vld [vmem:[%s9516_s13 + $0x68] sm:$0xff]  ;;  %p9244_p3 = por %p9243_p13, %p9242_p8 }
  0x8f   : > { %v252_v34 = vld [vmem:[%s9516_s13 + $0x30] sm:$0xff]  ;;  %v287_v56 = vld [vmem:[%s9516_s13 + $0x148] sm:$0xff]  ;;  %v8470_v7 = vld [vmem:[#allocation6 + $0x178] ss:$36 sps:$4 sm:$0xff]  }
  0x90   : > { %1677 = vmatpush1.bf16.msra.mxu0 %v8387_v31  ;;  %v8443_v31 = vld [vmem:[#allocation6 + $0x290] ss:$36 sps:$4 sm:$0xff]   ;;  %v8476_v17 = vld [vmem:[#allocation6 + $0x1c0] ss:$36 sps:$4 sm:$0xff]   ;;  %v271_v20 = vld [vmem:[%s9516_s13 + $0xc8] sm:$0xff]  ;;  %p9245_p7 = pnand %p9244_p3, %p9238_p4 }
  0x91   : > { %1790 = vmatpush1.bf16.msra.mxu1 %v8388_v32  ;;  %1678 = vmatprep.subr.bf16.mxu0 %v8389_v33  ;;  %v9566_v32 = vpack.c.bf16 %v256_v26, %v253_v23  ;;  %v8446_v33 = vld [vmem:[#allocation6 + $0x58] ss:$36 sps:$4 sm:$0xff]   ;;  %v8463_v57 = vld [vmem:[#allocation6 + $0x36c] ss:$36 sps:$4 sm:$0xff]   ;;  %v8479_v26 = vld [vmem:[#allocation6 + $0x440] ss:$36 sps:$4 sm:$0xff]  }
  0x92   : > { %1888 = vmatprep.subr.bf16.mxu1 %v8393_v36  ;;  %v278_v36 = vld [vmem:[%s9516_s13 + $0x100] sm:$0xff]  ;;  %v8467_v6 = vld [vmem:[#allocation6 + $0x3b0] ss:$36 sps:$4 sm:$0xff]  }
  0x93   : > { %v8484_v23 = vld [vmem:[#allocation6 + $0x20c] ss:$36 sps:$4 sm:$0xff]  }
  0x94   : > { %1808 = vmatmul.mubr.bf16.vlgmr.msra.gmra.mrb[0].mxu1 %v9529_v37  ;;  %1679 = vmatpush1.bf16.msra.mxu0 %v8394_v39  ;;  %v8451_v39 = vld [vmem:[#allocation6 + $0x2dc] ss:$36 sps:$4 sm:$0xff]  }
  0x95   : > { %1889 = vmatpush1.bf16.msra.mxu1 %v8391_v38  ;;  %1680 = vmatprep.subr.bf16.mxu0 %v8395_v40  ;;  %v281_v38 = vld [vmem:[%s9516_s13 + $0x118] sm:$0xff]  ;;  %v8454_v40 = vld [vmem:[#allocation6 + $0xa4] ss:$36 sps:$4 sm:$0xff]  }
  0x96   : > { %1890 = vmatprep.subr.bf16.mxu1 %v8399_v41  ;;  %1817 = vmatprep.mubr.bf16.mxu1 %v12314_v0  ;;  %v8449_v41 = vld [vmem:[#allocation6 + $0x2d8] ss:$36 sps:$4 sm:$0xff]  }
  0x98   : > { %1681 = vmatpush1.bf16.msra.mxu0 %v8400_v43  ;;  %v9576_v43 = vpack.c.bf16 %v255_v35, %v252_v34  ;;  %v277_v34 = vld [vmem:[%s9516_s13 + $0xf8] sm:$0xff]  ;;  %v280_v35 = vld [vmem:[%s9516_s13 + $0x110] sm:$0xff] }
  0x99   : > { %1891 = vmatpush1.bf16.msra.mxu1 %v8397_v42  ;;  %1682 = vmatprep.subr.bf16.mxu0 %v8401_v44  ;;  %v8452_v42 = vld [vmem:[#allocation6 + $0xa0] ss:$36 sps:$4 sm:$0xff]   ;;  %v9578_v44 = vpack.c.bf16 %v281_v38, %v278_v36  ;;  %v8485_v38 = vld [vmem:[#allocation6 + $0x488] ss:$36 sps:$4 sm:$0xff]  }
  0x9a   : > { %1892 = vmatprep.subr.bf16.mxu1 %v8405_v47  ;;  %v8457_v47 = vld [vmem:[#allocation6 + $0x324] ss:$36 sps:$4 sm:$0xff]  }
  0x9c   : > { %1818 = vmatmul.mubr.bf16.gmra.mrb[4].mxu1 %v9535_v48  ;;  %1683 = vmatpush1.bf16.msra.mxu0 %v8406_v50  ;;  %v8455_v50 = vld [vmem:[#allocation6 + $0x320] ss:$36 sps:$4 sm:$0xff]  }
  0x9d   : > { %1893 = vmatpush1.bf16.msra.mxu1 %v8403_v49  ;;  %1684 = vmatprep.subr.bf16.mxu0 %v8407_v51  ;;  %v8460_v49 = vld [vmem:[#allocation6 + $0xec] ss:$36 sps:$4 sm:$0xff]  }
  0x9e   : > { %1894 = vmatprep.subr.bf16.mxu1 %v8411_v52  ;;  %1827 = vmatprep.mubr.bf16.mxu1 %v12314_v0  ;;  %v8458_v51 = vld [vmem:[#allocation6 + $0xe8] ss:$36 sps:$4 sm:$0xff]   ;;  %v9582_v52 = vpack.c.bf16 %v262_v46, %v259_v45  ;;  %v276_v45 = vld [vmem:[%s9516_s13 + $0xf0] sm:$0xff] }
  0x9f   : > { %v279_v46 = vld [vmem:[%s9516_s13 + $0x108] sm:$0xff] }
  0xa0   : > { %1685 = vmatpush1.bf16.msra.mxu0 %v8412_v54  ;;  %v261_v54 = vld [vmem:[%s9516_s13 + $0x78] sm:$0xff] }
  0xa1   : > { %1895 = vmatpush1.bf16.msra.mxu1 %v8409_v53  ;;  %1686 = vmatprep.subr.bf16.mxu0 %v8413_v55  ;;  %v258_v53 = vld [vmem:[%s9516_s13 + $0x60] sm:$0xff]  ;;  %v284_v55 = vld [vmem:[%s9516_s13 + $0x130] sm:$0xff] }
  0xa2   : > { %1896 = vmatprep.subr.bf16.mxu1 %v8417_v58  ;;  %v8466_v58 = vld [vmem:[#allocation6 + $0x134] ss:$36 sps:$4 sm:$0xff]   ;;  %v9592_v59 = vpack.c.bf16 %v261_v54, %v258_v53  ;;  %v9594_v60 = vpack.c.bf16 %v287_v56, %v284_v55  ;;  %v286_v53 = vld [vmem:[%s9516_s13 + $0x140] sm:$0xff]  ;;  %v9636_v55 = vpack.c.bf16 %v279_v46, %v276_v45 }
  0xa3   : > { %v8505_v54 = vld [vmem:[#allocation6 + $0x51c] ss:$36 sps:$4 sm:$0xff]  }
  0xa4   : > { %1828 = vmatmul.mubr.bf16.gmra.mrb[8].mxu1 %v9545_v62  ;;  %1687 = vmatpush1.bf16.msra.mxu0 %v8418_v1  ;;  %v268_v1 = vld [vmem:[%s9516_s13 + $0xb0] sm:$0xff]  ;;  %v8497_v56 = vld [vmem:[#allocation6 + $0x2e0] ss:$36 sps:$4 sm:$0xff]   ;;  %v8539_v46 = vld [vmem:[#allocation6 + $0x4d8] ss:$36 sps:$4 sm:$0xff]  }
  0xa5   : > { %1897 = vmatpush1.bf16.msra.mxu1 %v8415_v63  ;;  %1688 = vmatprep.subr.bf16.mxu0 %v8419_v2  ;;  %v265_v63 = vld [vmem:[%s9516_s13 + $0x98] sm:$0xff]  ;;  %v8461_v2 = vld [vmem:[#allocation6 + $0x368] ss:$36 sps:$4 sm:$0xff]  }
  0xa6   : > { %1898 = vmatprep.subr.bf16.mxu1 %v8423_v3  ;;  %1837 = vmatprep.mubr.bf16.mxu1 %v12314_v0  ;;  %v8464_v3 = vld [vmem:[#allocation6 + $0x130] ss:$36 sps:$4 sm:$0xff]   ;;  %v8538_v45 = vld [vmem:[#allocation6 + $0x1c] ss:$36 sps:$4 sm:$0xff]  }
  0xa8   : > { %1689 = vmatpush1.bf16.msra.mxu0 %v8424_v5  ;;  %v8472_v5 = vld [vmem:[#allocation6 + $0x17c] ss:$36 sps:$4 sm:$0xff]  }
  0xa9   : > { %1899 = vmatpush1.bf16.msra.mxu1 %v8421_v4  ;;  %1690 = vmatprep.subr.bf16.mxu0 %v8425_v8  ;;  %v8469_v4 = vld [vmem:[#allocation6 + $0x3b4] ss:$36 sps:$4 sm:$0xff]   ;;  %v9598_v8 = vpack.c.bf16 %v268_v1, %v265_v63  ;;  %v8500_v63 = vld [vmem:[#allocation6 + $0x328] ss:$36 sps:$4 sm:$0xff]   ;;  %v282_v1 = vld [vmem:[%s9516_s13 + $0x120] sm:$0xff] }
  0xaa   : > { %1900 = vmatprep.subr.bf16.mxu1 %v8429_v9  ;;  %v264_v9 = vld [vmem:[%s9516_s13 + $0x90] sm:$0xff] }
  0xac   : > { %1838 = vmatmul.mubr.bf16.gmra.mrb[12].mxu1 %v9552_v10  ;;  %1691 = vmatpush1.bf16.msra.mxu0 %v8430_v12  ;;  %v290_v12 = vld [vmem:[%s9516_s13 + $0x160] sm:$0xff] }
  0xad   : > { %1901 = vmatpush1.bf16.msra.mxu1 %v8427_v11  ;;  %1692 = vmatprep.subr.bf16.mxu0 %v8431_v13  ;;  %v267_v11 = vld [vmem:[%s9516_s13 + $0xa8] sm:$0xff]  ;;  %v293_v13 = vld [vmem:[%s9516_s13 + $0x178] sm:$0xff] }
  0xae   : > { %1902 = vmatprep.subr.bf16.mxu1 %v8435_v14  ;;  %1847 = vmatprep.mubr.bf16.mxu1 %v12314_v0  ;;  %v8475_v14 = vld [vmem:[#allocation6 + $0x3fc] ss:$36 sps:$4 sm:$0xff]   ;;  %v9608_v18 = vpack.c.bf16 %v267_v11, %v264_v9  ;;  %v9610_v19 = vpack.c.bf16 %v293_v13, %v290_v12  ;;  %v8506_v12 = vld [vmem:[#allocation6 + $0x370] ss:$36 sps:$4 sm:$0xff]  }
  0xaf   : > { %v8512_v9 = vld [vmem:[#allocation6 + $0x560] ss:$36 sps:$4 sm:$0xff]  }
  0xb0   : > { %1693 = vmatpush1.bf16.msra.mxu0 %v8436_v16  ;;  %v8473_v16 = vld [vmem:[#allocation6 + $0x3f8] ss:$36 sps:$4 sm:$0xff]  }
  0xb1   : > { %1903 = vmatpush1.bf16.msra.mxu1 %v8433_v15  ;;  %2114 = vmatprep.subr.bf16.mxu0 %v8442_v22  ;;  %v8478_v15 = vld [vmem:[#allocation6 + $0x1c4] ss:$36 sps:$4 sm:$0xff]  }
  0xb2   : > { %1904 = vmatprep.subr.bf16.mxu1 %v8439_v21  ;;  %v274_v21 = vld [vmem:[%s9516_s13 + $0xe0] sm:$0xff] }
  0xb3   : > { %1695 = vmatmul.mubr.bf16.vlgmr.msra.gmra.mrb[0].mxu0 %v9561_v24  ;;  %v8481_v22 = vld [vmem:[#allocation6 + $0x444] ss:$36 sps:$4 sm:$0xff]  }
  0xb4   : > { %1848 = vmatmul.mubr.bf16.gmra.mrb[16].mxu1 %v9563_v25  ;;  %2115 = vmatpush1.bf16.msra.mxu0 %v8440_v28  ;;  %v8482_v28 = vld [vmem:[#allocation6 + $0x208] ss:$36 sps:$4 sm:$0xff]  }
  0xb5   : > { %1905 = vmatpush1.bf16.msra.mxu1 %v8437_v27  ;;  %2116 = vmatprep.subr.bf16.mxu0 %v8448_v30  ;;  %v9614_v27 = vpack.c.bf16 %v274_v21, %v271_v20  ;;  %v273_v30 = vld [vmem:[%s9516_s13 + $0xd8] sm:$0xff]  ;;  %v291_v20 = vld [vmem:[%s9516_s13 + $0x168] sm:$0xff] }
  0xb6   : > { %1906 = vmatprep.subr.bf16.mxu1 %v8445_v29  ;;  %1704 = vmatprep.mubr.bf16.mxu0 %v9566_v32  ;;  %v270_v29 = vld [vmem:[%s9516_s13 + $0xc0] sm:$0xff]  ;;  %v8521_v21 = vld [vmem:[#allocation6 + $0x5a8] ss:$36 sps:$4 sm:$0xff]  }
  0xb7   : > { %1857 = vmatprep.mubr.bf16.mxu1 %v12314_v0  ;;  %v9624_v36 = vpack.c.bf16 %v273_v30, %v270_v29  ;;  %v8520_v29 = vld [vmem:[#allocation6 + $0x44c] ss:$36 sps:$4 sm:$0xff]  }
  0xb8   : > { %2117 = vmatpush1.bf16.msra.mxu0 %v8446_v33  ;;  %v8490_v33 = vld [vmem:[#allocation6 + $0x254] ss:$36 sps:$4 sm:$0xff]  }
  0xb9   : > { %1907 = vmatpush1.bf16.msra.mxu1 %v8443_v31  ;;  %2118 = vmatprep.subr.bf16.mxu0 %v8454_v40  ;;  %v8487_v31 = vld [vmem:[#allocation6 + $0x48c] ss:$36 sps:$4 sm:$0xff]   ;;  %v8493_v40 = vld [vmem:[#allocation6 + $0x29c] ss:$36 sps:$4 sm:$0xff]  }
  0xba   : > { %1908 = vmatprep.subr.bf16.mxu1 %v8451_v39  ;;  %v8488_v39 = vld [vmem:[#allocation6 + $0x250] ss:$36 sps:$4 sm:$0xff]  }
  0xbb   : > { %1705 = vmatmul.mubr.bf16.gmra.mrb[4].mxu0 %v9576_v43  ;;  %v8524_v30 = vld [vmem:[#allocation6 + $0x5f0] ss:$36 sps:$4 sm:$0xff]  }
  0xbc   : > { %1858 = vmatmul.mubr.bf16.gmra.mrb[20].mxu1 %v9578_v44  ;;  %2119 = vmatpush1.bf16.msra.mxu0 %v8452_v42  ;;  %v8491_v42 = vld [vmem:[#allocation6 + $0x298] ss:$36 sps:$4 sm:$0xff]  }
  0xbd   : > { %1909 = vmatpush1.bf16.msra.mxu1 %v8449_v41  ;;  %2120 = vmatprep.subr.bf16.mxu0 %v8460_v49  ;;  %v9626_v41 = vpack.c.bf16 %v280_v35, %v277_v34  ;;  %v8496_v49 = vld [vmem:[#allocation6 + $0x4d4] ss:$36 sps:$4 sm:$0xff]  }
  0xbe   : > { %1910 = vmatprep.subr.bf16.mxu1 %v8457_v47  ;;  %1714 = vmatprep.mubr.bf16.mxu0 %v9582_v52  ;;  %v8494_v47 = vld [vmem:[#allocation6 + $0x4d0] ss:$36 sps:$4 sm:$0xff]   ;;  %v8527_v35 = vld [vmem:[#allocation6 + $0x638] ss:$36 sps:$4 sm:$0xff]  }
  0xbf   : > { %1867 = vmatprep.mubr.bf16.mxu1 %v12314_v0  ;;  %v8535_v34 = vld [vmem:[#allocation6 + $0x494] ss:$36 sps:$4 sm:$0xff]  }
  0xc0   : > { %2121 = vmatpush1.bf16.msra.mxu0 %v8458_v51  ;;  %v283_v51 = vld [vmem:[%s9516_s13 + $0x128] sm:$0xff] }
  0xc1   : > { %1911 = vmatpush1.bf16.msra.mxu1 %v8455_v50  ;;  %2122 = vmatprep.subr.bf16.mxu0 %v8466_v58  ;;  %v8499_v50 = vld [vmem:[#allocation6 + $0x2e4] ss:$36 sps:$4 sm:$0xff]   ;;  %v8502_v58 = vld [vmem:[#allocation6 + $0x32c] ss:$36 sps:$4 sm:$0xff]  }
  0xc2   : > { %1912 = vmatprep.subr.bf16.mxu1 %v8463_v57  ;;  %v9638_v57 = vpack.c.bf16 %v286_v53, %v283_v51  ;;  %v8551_v51 = vld [vmem:[#allocation6 + $0x568] ss:$36 sps:$4 sm:$0xff]   ;;  %v8559_v53 = vld [vmem:[#allocation6 + $0x5b4] ss:$36 sps:$4 sm:$0xff]  }
  0xc3   : > { %1715 = vmatmul.mubr.bf16.gmra.mrb[8].mxu0 %v9592_v59 }
  0xc4   : > { %1868 = vmatmul.mubr.bf16.gmra.mrb[24].mxu1 %v9594_v60  ;;  %2123 = vmatpush1.bf16.msra.mxu0 %v8464_v3  ;;  %v8503_v3 = vld [vmem:[#allocation6 + $0x518] ss:$36 sps:$4 sm:$0xff]  }
  0xc5   : > { %1913 = vmatpush1.bf16.msra.mxu1 %v8461_v2  ;;  %2124 = vmatprep.subr.bf16.mxu0 %v8472_v5  ;;  %v285_v2 = vld [vmem:[%s9516_s13 + $0x138] sm:$0xff]  ;;  %v8514_v5 = vld [vmem:[#allocation6 + $0x564] ss:$36 sps:$4 sm:$0xff]  }
  0xc6   : > { %1914 = vmatprep.subr.bf16.mxu1 %v8469_v4  ;;  %1724 = vmatprep.mubr.bf16.mxu0 %v9598_v8  ;;  %v8508_v4 = vld [vmem:[#allocation6 + $0x374] ss:$36 sps:$4 sm:$0xff]   ;;  %v9648_v11 = vpack.c.bf16 %v285_v2, %v282_v1  ;;  %v8569_v1 = vld [vmem:[#allocation6 + $0x640] ss:$36 sps:$4 sm:$0xff]   ;;  %v8577_v2 = vld [vmem:[#allocation6 + $0x68c] ss:$36 sps:$4 sm:$0xff]  }
  0xc7   : > { %1877 = vmatprep.mubr.bf16.mxu1 %v12314_v0 }
  0xc8   : > { %2125 = vmatpush1.bf16.msra.mxu0 %v8470_v7  ;;  %v292_v7 = vld [vmem:[%s9516_s13 + $0x170] sm:$0xff] }
  0xc9   : > { %1915 = vmatpush1.bf16.msra.mxu1 %v8467_v6  ;;  %2126 = vmatprep.subr.bf16.mxu0 %v8478_v15  ;;  %v289_v6 = vld [vmem:[%s9516_s13 + $0x158] sm:$0xff] }
  0xca   : > { %1916 = vmatprep.subr.bf16.mxu1 %v8475_v14  ;;  %v9650_v13 = vpack.c.bf16 %v292_v7, %v289_v6  ;;  %v8511_v14 = vld [vmem:[#allocation6 + $0x3bc] ss:$36 sps:$4 sm:$0xff]   ;;  %v8544_v6 = vld [vmem:[#allocation6 + $0x64] ss:$36 sps:$4 sm:$0xff]  }
  0xcb   : > { %1725 = vmatmul.mubr.bf16.gmra.mrb[12].mxu0 %v9608_v18  ;;  %v8509_v15 = vld [vmem:[#allocation6 + $0x3b8] ss:$36 sps:$4 sm:$0xff]   ;;  %v8542_v7 = vld [vmem:[#allocation6 + $0x60] ss:$36 sps:$4 sm:$0xff]  }
  0xcc   : > { %1878 = vmatmul.mubr.bf16.gmra.mrb[28].mxu1 %v9610_v19  ;;  %2127 = vmatpush1.bf16.msra.mxu0 %v8476_v17  ;;  %v8523_v17 = vld [vmem:[#allocation6 + $0x5ac] ss:$36 sps:$4 sm:$0xff]  }
  0xcd   : > { %1917 = vmatpush1.bf16.msra.mxu1 %v8473_v16  ;;  %2128 = vmatprep.subr.bf16.mxu0 %v8484_v23  ;;  %v288_v16 = vld [vmem:[%s9516_s13 + $0x150] sm:$0xff]  ;;  %v8517_v23 = vld [vmem:[#allocation6 + $0x404] ss:$36 sps:$4 sm:$0xff]  }
  0xce   : > { %1918 = vmatprep.subr.bf16.mxu1 %v8481_v22  ;;  %1734 = vmatprep.mubr.bf16.mxu0 %v9614_v27  ;;  %v8526_v22 = vld [vmem:[#allocation6 + $0x5f4] ss:$36 sps:$4 sm:$0xff]  }
  0xcf   : > { %1920 = vmatprep.mubr.bf16.mxu1 %v9543_v61 }
  0xd0   : > { %2129 = vmatpush1.bf16.msra.mxu0 %v8482_v28  ;;  %v8515_v28 = vld [vmem:[#allocation6 + $0x400] ss:$36 sps:$4 sm:$0xff]  }
  0xd1   : > { %1919 = vmatpush1.bf16.msra.mxu1 %v8479_v26  ;;  %2130 = vmatprep.subr.bf16.mxu0 %v8490_v33  ;;  %v9658_v26 = vpack.c.bf16 %v291_v20, %v288_v16  ;;  %v8518_v33 = vld [vmem:[#allocation6 + $0x448] ss:$36 sps:$4 sm:$0xff]   ;;  %v8562_v16 = vld [vmem:[#allocation6 + $0x13c] ss:$36 sps:$4 sm:$0xff]  }
  0xd2   : > { %2001 = vmatprep.subr.bf16.mxu1 %v8487_v31  ;;  %v8529_v31 = vld [vmem:[#allocation6 + $0x63c] ss:$36 sps:$4 sm:$0xff]   ;;  %v8568_v20 = vld [vmem:[#allocation6 + $0x184] ss:$36 sps:$4 sm:$0xff]  }
  0xd3   : > { %1735 = vmatmul.mubr.bf16.gmra.mrb[16].mxu0 %v9624_v36 }
  0xd4   : > { %1921 = vmatmul.mubr.bf16.vlgmr.msra.gmra.mrb[32].mxu1 %v9561_v24  ;;  %2131 = vmatpush1.bf16.msra.mxu0 %v8488_v39  ;;  %v8533_v39 = vld [vmem:[#allocation6 + $0x490] ss:$36 sps:$4 sm:$0xff]  }
  0xd5   : > { %2002 = vmatpush1.bf16.msra.mxu1 %v8485_v38  ;;  %2132 = vmatprep.subr.bf16.mxu0 %v8493_v40  ;;  %v8532_v38 = vld [vmem:[#allocation6 + $0x684] ss:$36 sps:$4 sm:$0xff]  }
  0xd6   : > { %1744 = vmatprep.mubr.bf16.mxu0 %v9626_v41  ;;  %1930 = vmatprep.mubr.bf16.mxu1 %v9566_v32  ;;  %v8530_v40 = vld [vmem:[#allocation6 + $0x680] ss:$36 sps:$4 sm:$0xff]  }
  0xd7   : > { %2003 = vmatprep.subr.bf16.mxu1 %v8496_v49  ;;  %v8545_v49 = vld [vmem:[#allocation6 + $0x520] ss:$36 sps:$4 sm:$0xff]  }
  0xd8   : > { %2133 = vmatpush1.bf16.msra.mxu0 %v8491_v42  ;;  %v8541_v42 = vld [vmem:[#allocation6 + $0x4dc] ss:$36 sps:$4 sm:$0xff]  }
  0xd9   : > { %2004 = vmatpush1.bf16.msra.mxu1 %v8494_v47  ;;  %2134 = vmatprep.subr.bf16.mxu0 %v8499_v50  ;;  %v8547_v47 = vld [vmem:[#allocation6 + $0x524] ss:$36 sps:$4 sm:$0xff]   ;;  %v8553_v50 = vld [vmem:[#allocation6 + $0x56c] ss:$36 sps:$4 sm:$0xff]  }
  0xda   : > { %2005 = vmatprep.subr.bf16.mxu1 %v8505_v54  ;;  %v8557_v54 = vld [vmem:[#allocation6 + $0x5b0] ss:$36 sps:$4 sm:$0xff]  }
  0xdb   : > { %1745 = vmatmul.mubr.bf16.gmra.mrb[20].mxu0 %v9636_v55 }
  0xdc   : > { %1931 = vmatmul.mubr.bf16.gmra.mrb[36].mxu1 %v9576_v43  ;;  %2135 = vmatpush1.bf16.msra.mxu0 %v8497_v56  ;;  %v8565_v56 = vld [vmem:[#allocation6 + $0x5fc] ss:$36 sps:$4 sm:$0xff]  }
  0xdd   : > { %1754 = vmatprep.mubr.bf16.mxu0 %v9638_v57  ;;  %2136 = vmatprep.subr.bf16.mxu0 %v8502_v58  ;;  %v8563_v58 = vld [vmem:[#allocation6 + $0x5f8] ss:$36 sps:$4 sm:$0xff]  }
  0xde   : > { %1940 = vmatprep.mubr.bf16.mxu1 %v9582_v52  ;;  %2006 = vmatpush1.bf16.msra.mxu1 %v8503_v3  ;;  %v8575_v3 = vld [vmem:[#allocation6 + $0x688] ss:$36 sps:$4 sm:$0xff]  }
  0xdf   : > { %2007 = vmatprep.subr.bf16.mxu1 %v8514_v5  ;;  %v8536_v5 = vld [vmem:[#allocation6 + $0x18] ss:$36 sps:$4 sm:$0xff]  }
  0xe0   : > { %2137 = vmatpush1.bf16.msra.mxu0 %v8500_v63  ;;  %v8571_v63 = vld [vmem:[#allocation6 + $0x644] ss:$36 sps:$4 sm:$0xff]  }
  0xe1   : > { %2138 = vmatprep.subr.bf16.mxu0 %v8508_v4  ;;  %v8605_v4 = vld [vmem:[#allocation6 + $0x260] ss:$36 sps:$4 sm:$0xff]  }
  0xe2   : > { %2008 = vmatpush1.bf16.msra.mxu1 %v8512_v9  ;;  %v8550_v9 = vld [vmem:[#allocation6 + $0xac] ss:$36 sps:$4 sm:$0xff]  }
  0xe3   : > { %1755 = vmatmul.mubr.bf16.gmra.mrb[24].mxu0 %v9648_v11  ;;  %2009 = vmatprep.subr.bf16.mxu1 %v8523_v17  ;;  %v8560_v17 = vld [vmem:[#allocation6 + $0x138] ss:$36 sps:$4 sm:$0xff]  }
  0xe4   : > { %1941 = vmatmul.mubr.bf16.gmra.mrb[40].mxu1 %v9592_v59  ;;  %2139 = vmatpush1.bf16.msra.mxu0 %v8506_v12  ;;  %v8548_v12 = vld [vmem:[#allocation6 + $0xa8] ss:$36 sps:$4 sm:$0xff]  }
  0xe5   : > { %1764 = vmatprep.mubr.bf16.mxu0 %v9650_v13  ;;  %2140 = vmatprep.subr.bf16.mxu0 %v8511_v14  ;;  %v8556_v14 = vld [vmem:[#allocation6 + $0xf4] ss:$36 sps:$4 sm:$0xff]  }
  0xe6   : > { %1950 = vmatprep.mubr.bf16.mxu1 %v9598_v8  ;;  %2010 = vmatpush1.bf16.msra.mxu1 %v8521_v21  ;;  %v8566_v21 = vld [vmem:[#allocation6 + $0x180] ss:$36 sps:$4 sm:$0xff]  }
  0xe7   : > { %2011 = vmatprep.subr.bf16.mxu1 %v8526_v22  ;;  %v8574_v22 = vld [vmem:[#allocation6 + $0x1cc] ss:$36 sps:$4 sm:$0xff]  }
  0xe8   : > { %2141 = vmatpush1.bf16.msra.mxu0 %v8509_v15  ;;  %v8554_v15 = vld [vmem:[#allocation6 + $0xf0] ss:$36 sps:$4 sm:$0xff]  }
  0xe9   : > { %2142 = vmatprep.subr.bf16.mxu0 %v8517_v23  ;;  %v8572_v23 = vld [vmem:[#allocation6 + $0x1c8] ss:$36 sps:$4 sm:$0xff]  }
  0xea   : > { %2012 = vmatpush1.bf16.msra.mxu1 %v8524_v30  ;;  %v8583_v30 = vld [vmem:[#allocation6 + $0x25c] ss:$36 sps:$4 sm:$0xff]  }
  0xeb   : > { %1765 = vmatmul.mubr.bf16.gmra.mrb[28].mxu0 %v9658_v26  ;;  %2013 = vmatprep.subr.bf16.mxu1 %v8529_v31  ;;  %v8581_v31 = vld [vmem:[#allocation6 + $0x258] ss:$36 sps:$4 sm:$0xff]  }
  0xec   : > { %1951 = vmatmul.mubr.bf16.gmra.mrb[44].mxu1 %v9608_v18  ;;  %2143 = vmatpush1.bf16.msra.mxu0 %v8515_v28  ;;  %v8580_v28 = vld [vmem:[#allocation6 + $0x214] ss:$36 sps:$4 sm:$0xff]  }
  0xed   : > { %1960 = vmatprep.mubr.bf16.mxu1 %v9614_v27  ;;  %2144 = vmatprep.subr.bf16.mxu0 %v8520_v29  ;;  %v8578_v29 = vld [vmem:[#allocation6 + $0x210] ss:$36 sps:$4 sm:$0xff]  }
  0xee   : > { %2146 = vmatprep.mubr.bf16.mxu0 %v9543_v61  ;;  %2014 = vmatpush1.bf16.msra.mxu1 %v8527_v35  ;;  %v8607_v35 = vld [vmem:[#allocation6 + $0x2a8] ss:$36 sps:$4 sm:$0xff]  }
  0xef   : > { %2015 = vmatprep.subr.bf16.mxu1 %v8532_v38  ;;  %v8584_v38 = vld [vmem:[#allocation6 + $0x2a0] ss:$36 sps:$4 sm:$0xff]  }
  0xf0   : > { %2145 = vmatpush1.bf16.msra.mxu0 %v8518_v33  ;;  %v8586_v33 = vld [vmem:[#allocation6 + $0x2a4] ss:$36 sps:$4 sm:$0xff]  }
  0xf1   : > { %2227 = vmatprep.subr.bf16.mxu0 %v8535_v34  ;;  %v8606_v34 = vld [vmem:[#allocation6 + $0x20] ss:$36 sps:$4 sm:$0xff]  }
  0xf2   : > { %2016 = vmatpush1.bf16.msra.mxu1 %v8530_v40  ;;  %v8608_v40 = vld [vmem:[#allocation6 + $0x68] ss:$36 sps:$4 sm:$0xff]  }
  0xf3   : > { %2147 = vmatmul.mubr.bf16.vlgmr.msra.gmra.mrb[32].mxu0 %v9561_v24  ;;  %2340 = vmatprep.subr.bf16.mxu1 %v8538_v45  ;;  %v8592_v45 = vld [vmem:[#allocation6 + $0x334] ss:$36 sps:$4 sm:$0xff]  }
  0xf4   : > { %1961 = vmatmul.mubr.bf16.gmra.mrb[48].mxu1 %v9624_v36  ;;  %2156 = vmatprep.mubr.bf16.mxu0 %v9566_v32 }
  0xf5   : > { %1970 = vmatprep.mubr.bf16.mxu1 %v9626_v41  ;;  %2228 = vmatpush1.bf16.msra.mxu0 %v8533_v39  ;;  %v8589_v39 = vld [vmem:[#allocation6 + $0x2ec] ss:$36 sps:$4 sm:$0xff]  }
  0xf6   : > { %2229 = vmatprep.subr.bf16.mxu0 %v8541_v42  ;;  %v8587_v42 = vld [vmem:[#allocation6 + $0x2e8] ss:$36 sps:$4 sm:$0xff]  }
  0xf9   : > { %2230 = vmatpush1.bf16.msra.mxu0 %v8539_v46  ;;  %v8609_v46 = vld [vmem:[#allocation6 + $0x2f0] ss:$36 sps:$4 sm:$0xff]  }
  0xfa   : > { %2231 = vmatprep.subr.bf16.mxu0 %v8547_v47  ;;  %v8610_v47 = vld [vmem:[#allocation6 + $0xb0] ss:$36 sps:$4 sm:$0xff]  }
  0xfb   : > { %2157 = vmatmul.mubr.bf16.gmra.mrb[36].mxu0 %v9576_v43 }
  0xfc   : > { %1971 = vmatmul.mubr.bf16.gmra.mrb[52].mxu1 %v9636_v55  ;;  %2166 = vmatprep.mubr.bf16.mxu0 %v9582_v52 }
  0xfd   : > { %1980 = vmatprep.mubr.bf16.mxu1 %v9638_v57  ;;  %2232 = vmatpush1.bf16.msra.mxu0 %v8545_v49  ;;  %v8590_v49 = vld [vmem:[#allocation6 + $0x330] ss:$36 sps:$4 sm:$0xff]  }
  0xfe   : > { %2233 = vmatprep.subr.bf16.mxu0 %v8553_v50  ;;  %v8611_v50 = vld [vmem:[#allocation6 + $0x338] ss:$36 sps:$4 sm:$0xff]  }
 0x101   : > { %2234 = vmatpush1.bf16.msra.mxu0 %v8551_v51  ;;  %v8595_v51 = vld [vmem:[#allocation6 + $0x37c] ss:$36 sps:$4 sm:$0xff]  }
 0x102   : > { %2235 = vmatprep.subr.bf16.mxu0 %v8559_v53  ;;  %v8593_v53 = vld [vmem:[#allocation6 + $0x378] ss:$36 sps:$4 sm:$0xff]  }
 0x103   : > { %2167 = vmatmul.mubr.bf16.gmra.mrb[40].mxu0 %v9592_v59 }
 0x104   : > { %1981 = vmatmul.mubr.bf16.gmra.mrb[56].mxu1 %v9648_v11  ;;  %2176 = vmatprep.mubr.bf16.mxu0 %v9598_v8 }
 0x105   : > { %1990 = vmatprep.mubr.bf16.mxu1 %v9650_v13  ;;  %2236 = vmatpush1.bf16.msra.mxu0 %v8557_v54  ;;  %v8598_v54 = vld [vmem:[#allocation6 + $0x3c4] ss:$36 sps:$4 sm:$0xff]  }
 0x106   : > { %2237 = vmatprep.subr.bf16.mxu0 %v8565_v56  ;;  %v8612_v56 = vld [vmem:[#allocation6 + $0xf8] ss:$36 sps:$4 sm:$0xff]  }
 0x109   : > { %2238 = vmatpush1.bf16.msra.mxu0 %v8563_v58  ;;  %v8613_v58 = vld [vmem:[#allocation6 + $0x380] ss:$36 sps:$4 sm:$0xff]  }
 0x10a   : > { %2239 = vmatprep.subr.bf16.mxu0 %v8571_v63  ;;  %v8596_v63 = vld [vmem:[#allocation6 + $0x3c0] ss:$36 sps:$4 sm:$0xff]  }
 0x10b   : > { %2177 = vmatmul.mubr.bf16.gmra.mrb[44].mxu0 %v9608_v18 }
 0x10c   : > { %1991 = vmatmul.mubr.bf16.gmra.mrb[60].mxu1 %v9658_v26  ;;  %2186 = vmatprep.mubr.bf16.mxu0 %v9614_v27 }
 0x10d   : > { %2033 = vmatprep.mubr.bf16.mxu1 %v12314_v0  ;;  %2240 = vmatpush1.bf16.msra.mxu0 %v8569_v1  ;;  %v8601_v1 = vld [vmem:[#allocation6 + $0x40c] ss:$36 sps:$4 sm:$0xff]  }
 0x10e   : > { %2241 = vmatprep.subr.bf16.mxu0 %v8577_v2  ;;  %v8614_v2 = vld [vmem:[#allocation6 + $0x140] ss:$36 sps:$4 sm:$0xff]  }
 0x111   : > { %2242 = vmatpush1.bf16.msra.mxu0 %v8575_v3  ;;  %v8599_v3 = vld [vmem:[#allocation6 + $0x408] ss:$36 sps:$4 sm:$0xff]  }
 0x112   : > { %7204 = vmatprep.subr.bf16.mxu0 %v8605_v4  ;;  %v8604_v4 = vld [vmem:[#allocation6 + $0x454] ss:$36 sps:$4 sm:$0xff]  }
 0x113   : > { %2187 = vmatmul.mubr.bf16.gmra.mrb[48].mxu0 %v9624_v36 }
 0x114   : > { %2034 = vmatmul.mubr.bf16.vlgmr.msra.gmra.mrb[32].mxu1 %v9529_v37  ;;  %2196 = vmatprep.mubr.bf16.mxu0 %v9626_v41 }
 0x115   : > { %2341 = vmatpush1.bf16.msra.mxu1 %v8536_v5  ;;  %2043 = vmatprep.mubr.bf16.mxu1 %v12314_v0  ;;  %v8615_v5 = vld [vmem:[#allocation6 + $0x3c8] ss:$36 sps:$4 sm:$0xff]  }
 0x116   : > { %2342 = vmatprep.subr.bf16.mxu1 %v8544_v6  ;;  %v8616_v6 = vld [vmem:[#allocation6 + $0x188] ss:$36 sps:$4 sm:$0xff]  }
 0x119   : > { %2343 = vmatpush1.bf16.msra.mxu1 %v8542_v7  ;;  %v8602_v7 = vld [vmem:[#allocation6 + $0x450] ss:$36 sps:$4 sm:$0xff]  }
 0x11a   : > { %2344 = vmatprep.subr.bf16.mxu1 %v8550_v9  ;;  %v8617_v9 = vld [vmem:[#allocation6 + $0x410] ss:$36 sps:$4 sm:$0xff]  }
 0x11b   : > { %2197 = vmatmul.mubr.bf16.gmra.mrb[52].mxu0 %v9636_v55 }
 0x11c   : > { %2044 = vmatmul.mubr.bf16.gmra.mrb[36].mxu1 %v9535_v48  ;;  %2206 = vmatprep.mubr.bf16.mxu0 %v9638_v57 }
 0x11d   : > { %2345 = vmatpush1.bf16.msra.mxu1 %v8548_v12  ;;  %2053 = vmatprep.mubr.bf16.mxu1 %v12314_v0  ;;  %v8623_v12 = vld [vmem:[#allocation6 + $0x49c] ss:$36 sps:$4 sm:$0xff]  }
 0x11e   : > { %2346 = vmatprep.subr.bf16.mxu1 %v8556_v14  ;;  %v8618_v14 = vld [vmem:[#allocation6 + $0x1d0] ss:$36 sps:$4 sm:$0xff]  }
 0x121   : > { %2347 = vmatpush1.bf16.msra.mxu1 %v8554_v15  ;;  %v8621_v15 = vld [vmem:[#allocation6 + $0x498] ss:$36 sps:$4 sm:$0xff]  }
 0x122   : > { %2348 = vmatprep.subr.bf16.mxu1 %v8562_v16  ;;  %v8619_v16 = vld [vmem:[#allocation6 + $0x458] ss:$36 sps:$4 sm:$0xff]  }
 0x123   : > { %2207 = vmatmul.mubr.bf16.gmra.mrb[56].mxu0 %v9648_v11 }
 0x124   : > { %2054 = vmatmul.mubr.bf16.gmra.mrb[40].mxu1 %v9545_v62  ;;  %2216 = vmatprep.mubr.bf16.mxu0 %v9650_v13 }
 0x125   : > { %2349 = vmatpush1.bf16.msra.mxu1 %v8560_v17  ;;  %2063 = vmatprep.mubr.bf16.mxu1 %v12314_v0  ;;  %v8626_v17 = vld [vmem:[#allocation6 + $0x4e4] ss:$36 sps:$4 sm:$0xff]  }
 0x126   : > { %2350 = vmatprep.subr.bf16.mxu1 %v8568_v20  ;;  %v8620_v20 = vld [vmem:[#allocation6 + $0x218] ss:$36 sps:$4 sm:$0xff]  }
 0x129   : > { %2351 = vmatpush1.bf16.msra.mxu1 %v8566_v21  ;;  %v8624_v21 = vld [vmem:[#allocation6 + $0x4e0] ss:$36 sps:$4 sm:$0xff]  }
 0x12a   : > { %2352 = vmatprep.subr.bf16.mxu1 %v8574_v22  ;;  %v8629_v22 = vld [vmem:[#allocation6 + $0x52c] ss:$36 sps:$4 sm:$0xff]  }
 0x12b   : > { %2217 = vmatmul.mubr.bf16.gmra.mrb[60].mxu0 %v9658_v26 }
 0x12c   : > { %2064 = vmatmul.mubr.bf16.gmra.mrb[44].mxu1 %v9552_v10  ;;  %2259 = vmatprep.mubr.bf16.mxu0 %v12314_v0 }
 0x12d   : > { %2353 = vmatpush1.bf16.msra.mxu1 %v8572_v23  ;;  %2073 = vmatprep.mubr.bf16.mxu1 %v12314_v0  ;;  %v8627_v23 = vld [vmem:[#allocation6 + $0x528] ss:$36 sps:$4 sm:$0xff]  }
 0x12e   : > { %2354 = vmatprep.subr.bf16.mxu1 %v8580_v28  ;;  %v8632_v28 = vld [vmem:[#allocation6 + $0x574] ss:$36 sps:$4 sm:$0xff]  }
 0x131   : > { %2355 = vmatpush1.bf16.msra.mxu1 %v8578_v29  ;;  %v8630_v29 = vld [vmem:[#allocation6 + $0x570] ss:$36 sps:$4 sm:$0xff]  }
 0x132   : > { %2356 = vmatprep.subr.bf16.mxu1 %v8583_v30  ;;  %v8635_v30 = vld [vmem:[#allocation6 + $0x5bc] ss:$36 sps:$4 sm:$0xff]  }
 0x133   : > { %2260 = vmatmul.mubr.bf16.vlgmr.msra.gmra.mrb[32].mxu0 %v9529_v37 }
 0x134   : > { %2074 = vmatmul.mubr.bf16.gmra.mrb[48].mxu1 %v9563_v25  ;;  %2269 = vmatprep.mubr.bf16.mxu0 %v12314_v0 }
 0x135   : > { %2357 = vmatpush1.bf16.msra.mxu1 %v8581_v31  ;;  %2083 = vmatprep.mubr.bf16.mxu1 %v12314_v0  ;;  %v8633_v31 = vld [vmem:[#allocation6 + $0x5b8] ss:$36 sps:$4 sm:$0xff]  }
 0x136   : > { %2358 = vmatprep.subr.bf16.mxu1 %v8586_v33  ;;  %7205 = vmatpush3.bf16.msra.mxu0 %v8606_v34  ;;  %v8638_v33 = vld [vmem:[#allocation6 + $0x604] ss:$36 sps:$4 sm:$0xff]  }
 0x137   : > { %7206 = vmatprep.subr.bf16.mxu0 %v8607_v35  ;;  %v8636_v34 = vld [vmem:[#allocation6 + $0x600] ss:$36 sps:$4 sm:$0xff]  }
 0x139   : > { %2359 = vmatpush1.bf16.msra.mxu1 %v8584_v38  ;;  %v8641_v38 = vld [vmem:[#allocation6 + $0x64c] ss:$36 sps:$4 sm:$0xff]  }
 0x13a   : > { %2360 = vmatprep.subr.bf16.mxu1 %v8589_v39  ;;  %7207 = vmatpush3.bf16.msra.mxu0 %v8608_v40 }
 0x13b   : > { %2270 = vmatmul.mubr.bf16.gmra.mrb[36].mxu0 %v9535_v48  ;;  %7208 = vmatprep.subr.bf16.mxu0 %v8609_v46  ;;  %v8644_v46 = vld [vmem:[#allocation6 + $0x694] ss:$36 sps:$4 sm:$0xff]  }
 0x13c   : > { %2084 = vmatmul.mubr.bf16.gmra.mrb[52].mxu1 %v9578_v44  ;;  %2279 = vmatprep.mubr.bf16.mxu0 %v12314_v0 }
 0x13d   : > { %2361 = vmatpush1.bf16.msra.mxu1 %v8587_v42  ;;  %2093 = vmatprep.mubr.bf16.mxu1 %v12314_v0 }
 0x13e   : > { %2362 = vmatprep.subr.bf16.mxu1 %v8592_v45  ;;  %7209 = vmatpush3.bf16.msra.mxu0 %v8610_v47  ;;  %v8639_v45 = vld [vmem:[#allocation6 + $0x648] ss:$36 sps:$4 sm:$0xff]   ;;  %v8642_v47 = vld [vmem:[#allocation6 + $0x690] ss:$36 sps:$4 sm:$0xff]  }
 0x13f   : > { %7210 = vmatprep.subr.bf16.mxu0 %v8611_v50  ;;  %v8645_v50 = vld [vmem:[#allocation6 + $0x4a0] ss:$36 sps:$4 sm:$0xff]  }
 0x141   : > { %2363 = vmatpush1.bf16.msra.mxu1 %v8590_v49 }
 0x142   : > { %2364 = vmatprep.subr.bf16.mxu1 %v8595_v51  ;;  %7211 = vmatpush3.bf16.msra.mxu0 %v8612_v56 }
 0x143   : > { %2280 = vmatmul.mubr.bf16.gmra.mrb[40].mxu0 %v9545_v62  ;;  %7212 = vmatprep.subr.bf16.mxu0 %v8613_v58 }
 0x144   : > { %2094 = vmatmul.mubr.bf16.gmra.mrb[56].mxu1 %v9594_v60  ;;  %2289 = vmatprep.mubr.bf16.mxu0 %v12314_v0 }
 0x145   : > { %2365 = vmatpush1.bf16.msra.mxu1 %v8593_v53  ;;  %2103 = vmatprep.mubr.bf16.mxu1 %v12314_v0 }
 0x146   : > { %2366 = vmatprep.subr.bf16.mxu1 %v8598_v54  ;;  %7213 = vmatpush3.bf16.msra.mxu0 %v8614_v2 }
 0x147   : > { %7214 = vmatprep.subr.bf16.mxu0 %v8615_v5 }
 0x149   : > { %2367 = vmatpush1.bf16.msra.mxu1 %v8596_v63 }
 0x14a   : > { %2368 = vmatprep.subr.bf16.mxu1 %v8601_v1  ;;  %7215 = vmatpush3.bf16.msra.mxu0 %v8616_v6 }
 0x14b   : > { %2290 = vmatmul.mubr.bf16.gmra.mrb[44].mxu0 %v9552_v10  ;;  %7216 = vmatprep.subr.bf16.mxu0 %v8617_v9 }
 0x14c   : > { %2104 = vmatmul.mubr.bf16.gmra.mrb[60].mxu1 %v9610_v19  ;;  %2299 = vmatprep.mubr.bf16.mxu0 %v12314_v0 }
 0x14d   : > { %2369 = vmatpush1.bf16.msra.mxu1 %v8599_v3  ;;  %2372 = vmatprep.mubr.bf16.mxu1 %v9543_v61 }
 0x14e   : > { %2370 = vmatprep.subr.bf16.mxu1 %v8604_v4  ;;  %7217 = vmatpush3.bf16.msra.mxu0 %v8618_v14 }
 0x14f   : > { %7218 = vmatprep.subr.bf16.mxu0 %v8619_v16 }
 0x151   : > { %2371 = vmatpush1.bf16.msra.mxu1 %v8602_v7 }
 0x152   : > { %2453 = vmatprep.subr.bf16.mxu1 %v8623_v12  ;;  %7219 = vmatpush3.bf16.msra.mxu0 %v8620_v20 }
 0x153   : > { %2300 = vmatmul.mubr.bf16.gmra.mrb[48].mxu0 %v9563_v25 }
 0x154   : > { %2373 = vmatmul.mubr.bf16.vlgmr.msra.gmra.mrb[64].mxu1 %v9561_v24  ;;  %2309 = vmatprep.mubr.bf16.mxu0 %v12314_v0 }
 0x155   : > { %2382 = vmatprep.mubr.bf16.mxu1 %v9566_v32  ;;  %2454 = vmatpush1.bf16.msra.mxu1 %v8621_v15 }
 0x156   : > { %2455 = vmatprep.subr.bf16.mxu1 %v8626_v17 }
 0x159   : > { %2456 = vmatpush1.bf16.msra.mxu1 %v8624_v21 }
 0x15a   : > { %2457 = vmatprep.subr.bf16.mxu1 %v8629_v22 }
 0x15b   : > { %2310 = vmatmul.mubr.bf16.gmra.mrb[52].mxu0 %v9578_v44 }
 0x15c   : > { %2383 = vmatmul.mubr.bf16.gmra.mrb[68].mxu1 %v9576_v43  ;;  %2319 = vmatprep.mubr.bf16.mxu0 %v12314_v0 }
 0x15d   : > { %2392 = vmatprep.mubr.bf16.mxu1 %v9582_v52  ;;  %2458 = vmatpush1.bf16.msra.mxu1 %v8627_v23 }
 0x15e   : > { %2459 = vmatprep.subr.bf16.mxu1 %v8632_v28 }
 0x161   : > { %2460 = vmatpush1.bf16.msra.mxu1 %v8630_v29 }
 0x162   : > { %2461 = vmatprep.subr.bf16.mxu1 %v8635_v30 }
 0x163   : > { %2320 = vmatmul.mubr.bf16.gmra.mrb[56].mxu0 %v9594_v60 }
 0x164   : > { %2393 = vmatmul.mubr.bf16.gmra.mrb[72].mxu1 %v9592_v59  ;;  %2329 = vmatprep.mubr.bf16.mxu0 %v12314_v0 }
 0x165   : > { %2402 = vmatprep.mubr.bf16.mxu1 %v9598_v8  ;;  %2462 = vmatpush1.bf16.msra.mxu1 %v8633_v31 }
 0x166   : > { %2463 = vmatprep.subr.bf16.mxu1 %v8638_v33 }
 0x167   : > { %v1809_v35 = vpop.f32.mrb[0].mxu1 }
 0x168   : > { %v1811_v39 = vpop.f32.mrb[1].mxu1 }
 0x169   : > { %v1813_v40 = vpop.f32.mrb[2].mxu1  ;;  %2464 = vmatpush1.bf16.msra.mxu1 %v8636_v34 }
 0x16a   : > { %v1815_v42 = vpop.f32.mrb[3].mxu1  ;;  %2465 = vmatprep.subr.bf16.mxu1 %v8641_v38 }
 0x16b   : > { %2330 = vmatmul.mubr.bf16.gmra.mrb[60].mxu0 %v9610_v19 }
 0x16c   : > { %2403 = vmatmul.mubr.bf16.gmra.mrb[76].mxu1 %v9608_v18  ;;  %2598 = vmatprep.mubr.bf16.mxu0 %v9543_v61 }
 0x16d   : > { %2412 = vmatprep.mubr.bf16.mxu1 %v9614_v27  ;;  %2466 = vmatpush1.bf16.msra.mxu1 %v8639_v45 }
 0x16e   : > { %2467 = vmatprep.subr.bf16.mxu1 %v8644_v46 }
 0x16f   : > { %v1819_v49 = vpop.f32.mrb[4].mxu1 }
 0x170   : > { %v1821_v51 = vpop.f32.mrb[5].mxu1 }
 0x171   : > { %v1823_v53 = vpop.f32.mrb[6].mxu1  ;;  %2468 = vmatpush1.bf16.msra.mxu1 %v8642_v47 }
 0x172   : > { %v1825_v54 = vpop.f32.mrb[7].mxu1  ;;  %7556 = vmatprep.subr.bf16.mxu1 %v8645_v50 }
 0x173   : > { %2599 = vmatmul.mubr.bf16.vlgmr.msra.gmra.mrb[64].mxu0 %v9561_v24 }
 0x174   : > { %2413 = vmatmul.mubr.bf16.gmra.mrb[80].mxu1 %v9624_v36  ;;  %2606 = vmatprep.mubr.bf16.mxu0 %v9566_v32 }
 0x175   : > { %2422 = vmatprep.mubr.bf16.mxu1 %v9626_v41 }
 0x177   : > { %v1829_v56 = vpop.f32.mrb[8].mxu1 }
 0x178   : > { %v1831_v61 = vpop.f32.mrb[9].mxu1 }
 0x179   : > { %v1833_v58 = vpop.f32.mrb[10].mxu1 }
 0x17a   : > { %v9732_v63 = vpop.f32.mrb[11].mxu1 }
 0x17b   : > { %2607 = vmatmul.mubr.bf16.gmra.mrb[68].mxu0 %v9576_v43 }
 0x17c   : > { %2423 = vmatmul.mubr.bf16.gmra.mrb[84].mxu1 %v9636_v55  ;;  %2614 = vmatprep.mubr.bf16.mxu0 %v9582_v52 }
 0x17d   : > { %2432 = vmatprep.mubr.bf16.mxu1 %v9638_v57 }
 0x17f   : > { %v9738_v1 = vpop.f32.mrb[12].mxu1 }
 0x180   : > { %v9740_v24 = vpop.f32.mrb[13].mxu1 }
 0x181   : > { %v9742_v2 = vpop.f32.mrb[14].mxu1 }
 0x182   : > { %v9744_v32 = vpop.f32.mrb[15].mxu1 }
 0x183   : > { %2615 = vmatmul.mubr.bf16.gmra.mrb[72].mxu0 %v9592_v59 }
 0x184   : > { %2433 = vmatmul.mubr.bf16.gmra.mrb[88].mxu1 %v9648_v11  ;;  %2622 = vmatprep.mubr.bf16.mxu0 %v9598_v8 }
 0x185   : > { %2442 = vmatprep.mubr.bf16.mxu1 %v9650_v13 }
 0x186   : > { %v1696_v43 = vpop.f32.mrb[0].mxu0 }
 0x187   : > { %v9750_v3 = vpop.f32.mrb[16].mxu1  ;;  %v1810_v52 = vadd.f32 %v1809_v35, %v1696_v43  ;;  %v1698_v4 = vpop.f32.mrb[1].mxu0  ;;  %v8646_v35 = vld [vmem:[#allocation6 + $0x4e8] ss:$36 sps:$4 sm:$0xff]  }
 0x188   : > { %v9752_v5 = vpop.f32.mrb[17].mxu1  ;;  %v1812_v6 = vadd.f32 %v1811_v39, %v1698_v4  ;;  %v1700_v7 = vpop.f32.mrb[2].mxu0 }
 0x189   : > { %v9754_v9 = vpop.f32.mrb[18].mxu1  ;;  %v1814_v12 = vadd.f32 %v1813_v40, %v1700_v7  ;;  %v1702_v14 = vpop.f32.mrb[3].mxu0 }
 0x18a   : > { %v9756_v15 = vpop.f32.mrb[19].mxu1  ;;  %v1816_v59 = vadd.f32 %v1815_v42, %v1702_v14  ;;  %v8647_v42 = vld [vmem:[#allocation6 + $0x530] ss:$36 sps:$4 sm:$0xff]  }
 0x18b   : > { %v9758_v16 = vpack.c.bf16 %v1814_v12, %v1810_v52  ;;  %2623 = vmatmul.mubr.bf16.gmra.mrb[76].mxu0 %v9608_v18 }
 0x18c   : > { %2443 = vmatmul.mubr.bf16.gmra.mrb[92].mxu1 %v9658_v26  ;;  %v9762_v8 = vpack.c.bf16 %v1816_v59, %v1812_v6  ;;  %2630 = vmatprep.mubr.bf16.mxu0 %v9614_v27 }
 0x18d   : > { %2485 = vmatprep.mubr.bf16.mxu1 %v12314_v0 }
 0x18e   : > { %12468 = vst [vmem:[#allocation13_spill] sm:$0xff] %v9762_v8  ;;  %v1706_v17 = vpop.f32.mrb[4].mxu0 }
 0x18f   : > { %v9766_v20 = vpop.f32.mrb[20].mxu1  ;;  %v1820_v21 = vadd.f32 %v1819_v49, %v1706_v17  ;;  %v1708_v22 = vpop.f32.mrb[5].mxu0 }
 0x190   : > { %v9768_v23 = vpop.f32.mrb[21].mxu1  ;;  %v1822_v28 = vadd.f32 %v1821_v51, %v1708_v22  ;;  %v1710_v29 = vpop.f32.mrb[6].mxu0  ;;  %v8650_v22 = vld [vmem:[#allocation6 + $0x608] ss:$36 sps:$4 sm:$0xff]  }
 0x191   : > { %v9770_v30 = vpop.f32.mrb[22].mxu1  ;;  %v1824_v31 = vadd.f32 %v1823_v53, %v1710_v29  ;;  %v1712_v33 = vpop.f32.mrb[7].mxu0 }
 0x192   : > { %v9772_v18 = vpop.f32.mrb[23].mxu1  ;;  %v1826_v34 = vadd.f32 %v1825_v54, %v1712_v33 }
 0x193   : > { %v9774_v38 = vpack.c.bf16 %v1824_v31, %v1820_v21  ;;  %2631 = vmatmul.mubr.bf16.gmra.mrb[80].mxu0 %v9624_v36 }
 0x194   : > { %2486 = vmatmul.mubr.bf16.vlgmr.msra.gmra.mrb[64].mxu1 %v9529_v37  ;;  %v9778_v27 = vpack.c.bf16 %v1826_v34, %v1822_v28  ;;  %2638 = vmatprep.mubr.bf16.mxu0 %v9626_v41 }
 0x195   : > { %2495 = vmatprep.mubr.bf16.mxu1 %v12314_v0  ;;  %7557 = vmatpush3.bf16.msra.mxu1 %v8645_v50  ;;  %v8648_v50 = vld [vmem:[#allocation6 + $0x578] ss:$36 sps:$4 sm:$0xff]  }
 0x196   : > { %12469 = vst [vmem:[#allocation14_spill] sm:$0xff] %v9778_v27  ;;  %v1716_v39 = vpop.f32.mrb[8].mxu0  ;;  %7558 = vmatprep.subr.bf16.mxu1 %v8646_v35 }
 0x197   : > { %v9782_v40 = vpop.f32.mrb[24].mxu1  ;;  %v1830_v45 = vadd.f32 %v1829_v56, %v1716_v39  ;;  %v1718_v46 = vpop.f32.mrb[9].mxu0  ;;  %v8652_v39 = vld [vmem:[#allocation6 + $0x698] ss:$36 sps:$4 sm:$0xff]  }
 0x198   : > { %v9784_v47 = vpop.f32.mrb[25].mxu1  ;;  %v1832_v49 = vadd.f32 %v1831_v61, %v1718_v46  ;;  %v1720_v51 = vpop.f32.mrb[10].mxu0 }
 0x199   : > { %v9786_v53 = vpop.f32.mrb[26].mxu1  ;;  %v1834_v36 = vadd.f32 %v1833_v58, %v1720_v51  ;;  %v1722_v54 = vpop.f32.mrb[11].mxu0  ;;  %7559 = vmatpush3.bf16.msra.mxu1 %v8646_v35 }
 0x19a   : > { %v9788_v43 = vpop.f32.mrb[27].mxu1  ;;  %v1836_v41 = vadd.f32 %v9732_v63, %v1722_v54  ;;  %7560 = vmatprep.subr.bf16.mxu1 %v8647_v42  ;;  %v8649_v63 = vld [vmem:[#allocation6 + $0x5c0] ss:$36 sps:$4 sm:$0xff]  }
 0x19b   : > { %v9791_v52 = vpack.c.bf16 %v1834_v36, %v1830_v45  ;;  %2639 = vmatmul.mubr.bf16.gmra.mrb[84].mxu0 %v9636_v55 }
 0x19c   : > { %2496 = vmatmul.mubr.bf16.gmra.mrb[68].mxu1 %v9535_v48  ;;  %v9795_v56 = vpack.c.bf16 %v1836_v41, %v1832_v49  ;;  %2646 = vmatprep.mubr.bf16.mxu0 %v9638_v57 }
 0x19d   : > { %2505 = vmatprep.mubr.bf16.mxu1 %v12314_v0  ;;  %7561 = vmatpush3.bf16.msra.mxu1 %v8647_v42 }
 0x19e   : > { %12470 = vst [vmem:[#allocation15_spill] sm:$0xff] %v9795_v56  ;;  %v1726_v61 = vpop.f32.mrb[12].mxu0  ;;  %7562 = vmatprep.subr.bf16.mxu1 %v8648_v50 }
 0x19f   : > { %v9799_v58 = vpop.f32.mrb[28].mxu1  ;;  %v1840_v4 = vadd.f32 %v9738_v1, %v1726_v61  ;;  %v1728_v6 = vpop.f32.mrb[13].mxu0 }
 0x1a0   : > { %v9802_v7 = vpop.f32.mrb[29].mxu1  ;;  %v1842_v12 = vadd.f32 %v9740_v24, %v1728_v6  ;;  %v1730_v55 = vpop.f32.mrb[14].mxu0 }
 0x1a1   : > { %v9805_v14 = vpop.f32.mrb[30].mxu1  ;;  %v1844_v59 = vadd.f32 %v9742_v2, %v1730_v55  ;;  %v1732_v17 = vpop.f32.mrb[15].mxu0  ;;  %7563 = vmatpush3.bf16.msra.mxu1 %v8648_v50  ;;  %v8651_v2 = vld [vmem:[#allocation6 + $0x650] ss:$36 sps:$4 sm:$0xff]  }
 0x1a2   : > { %v9808_v57 = vpop.f32.mrb[31].mxu1  ;;  %v1846_v21 = vadd.f32 %v9744_v32, %v1732_v17  ;;  %7564 = vmatprep.subr.bf16.mxu1 %v8649_v63 }
 0x1a3   : > { %v9811_v28 = vpack.c.bf16 %v1844_v59, %v1840_v4  ;;  %2647 = vmatmul.mubr.bf16.gmra.mrb[88].mxu0 %v9648_v11 }
 0x1a4   : > { %2506 = vmatmul.mubr.bf16.gmra.mrb[72].mxu1 %v9545_v62  ;;  %v9815_v1 = vpack.c.bf16 %v1846_v21, %v1842_v12  ;;  %2654 = vmatprep.mubr.bf16.mxu0 %v9650_v13 }
 0x1a5   : > { %2515 = vmatprep.mubr.bf16.mxu1 %v12314_v0  ;;  %7565 = vmatpush3.bf16.msra.mxu1 %v8649_v63 }
 0x1a6   : > { %12471 = vst [vmem:[#allocation16_spill] sm:$0xff] %v9815_v1  ;;  %v1736_v24 = vpop.f32.mrb[16].mxu0  ;;  %7566 = vmatprep.subr.bf16.mxu1 %v8650_v22 }
 0x1a7   : > { %v1850_v32 = vadd.f32 %v9750_v3, %v1736_v24  ;;  %v1738_v29 = vpop.f32.mrb[17].mxu0 }
 0x1a8   : > { %v1852_v31 = vadd.f32 %v9752_v5, %v1738_v29  ;;  %v1740_v33 = vpop.f32.mrb[18].mxu0 }
 0x1a9   : > { %v1854_v34 = vadd.f32 %v9754_v9, %v1740_v33  ;;  %v1742_v35 = vpop.f32.mrb[19].mxu0  ;;  %7567 = vmatpush3.bf16.msra.mxu1 %v8650_v22 }
 0x1aa   : > { %v1856_v11 = vadd.f32 %v9756_v15, %v1742_v35  ;;  %7568 = vmatprep.subr.bf16.mxu1 %v8651_v2 }
 0x1ab   : > { %v9823_v13 = vpack.c.bf16 %v1854_v34, %v1850_v32  ;;  %2655 = vmatmul.mubr.bf16.gmra.mrb[92].mxu0 %v9658_v26 }
 0x1ac   : > { %2516 = vmatmul.mubr.bf16.gmra.mrb[76].mxu1 %v9552_v10  ;;  %v9827_v3 = vpack.c.bf16 %v1856_v11, %v1852_v31  ;;  %7604 = vmatprep.mubr.msk.bf16.mxu0 %vm12358_vm0, %v9758_v16 }
 0x1ad   : > { %2525 = vmatprep.mubr.bf16.mxu1 %v12314_v0  ;;  %7569 = vmatpush3.bf16.msra.mxu1 %v8651_v2 }
 0x1ae   : > { %12472 = vst [vmem:[#allocation17_spill] sm:$0xff] %v9827_v3  ;;  %v1746_v5 = vpop.f32.mrb[20].mxu0  ;;  %7570 = vmatprep.subr.bf16.mxu1 %v8652_v39 }
 0x1af   : > { %v1860_v9 = vadd.f32 %v9766_v20, %v1746_v5  ;;  %v1748_v15 = vpop.f32.mrb[21].mxu0 }
 0x1b0   : > { %v1862_v42 = vadd.f32 %v9768_v23, %v1748_v15  ;;  %v1750_v45 = vpop.f32.mrb[22].mxu0 }
 0x1b1   : > { %v1864_v46 = vadd.f32 %v9770_v30, %v1750_v45  ;;  %v1752_v49 = vpop.f32.mrb[23].mxu0  ;;  %7571 = vmatpush3.bf16.msra.mxu1 %v8652_v39 }
 0x1b2   : > { %v1866_v26 = vadd.f32 %v9772_v18, %v1752_v49 }
 0x1b3   : > { %v9836_v51 = vpack.c.bf16 %v1864_v46, %v1860_v9 }
 0x1b4   : > { %2526 = vmatmul.mubr.bf16.gmra.mrb[80].mxu1 %v9563_v25  ;;  %v9839_v36 = vpack.c.bf16 %v1866_v26, %v1862_v42 }
 0x1b5   : > { %2535 = vmatprep.mubr.bf16.mxu1 %v12314_v0 }
 0x1b6   : > { %12473 = vst [vmem:[#allocation18_spill] sm:$0xff] %v9839_v36  ;;  %v1756_v54 = vpop.f32.mrb[24].mxu0 }
 0x1b7   : > { %v1870_v20 = vadd.f32 %v9782_v40, %v1756_v54  ;;  %v1758_v41 = vpop.f32.mrb[25].mxu0 }
 0x1b8   : > { %v1872_v23 = vadd.f32 %v9784_v47, %v1758_v41  ;;  %v1760_v50 = vpop.f32.mrb[26].mxu0 }
 0x1b9   : > { %v1874_v30 = vadd.f32 %v9786_v53, %v1760_v50  ;;  %v1762_v61 = vpop.f32.mrb[27].mxu0 }
 0x1ba   : > { %v1876_v18 = vadd.f32 %v9788_v43, %v1762_v61 }
 0x1bb   : > { %v9846_v63 = vpack.c.bf16 %v1874_v30, %v1870_v20 }
 0x1bc   : > { %2536 = vmatmul.mubr.bf16.gmra.mrb[84].mxu1 %v9578_v44  ;;  %v9849_v4 = vpack.c.bf16 %v1876_v18, %v1872_v23 }
 0x1bd   : > { %2545 = vmatprep.mubr.bf16.mxu1 %v12314_v0 }
 0x1be   : > { %12474 = vst [vmem:[#allocation19_spill] sm:$0xff] %v9849_v4  ;;  %v1766_v6 = vpop.f32.mrb[28].mxu0 }
 0x1bf   : > { %v1880_v40 = vadd.f32 %v9799_v58, %v1766_v6  ;;  %v1768_v12 = vpop.f32.mrb[29].mxu0 }
 0x1c0   : > { %v1882_v47 = vadd.f32 %v9802_v7, %v1768_v12  ;;  %v1770_v55 = vpop.f32.mrb[30].mxu0 }
 0x1c1   : > { %v1884_v53 = vadd.f32 %v9805_v14, %v1770_v55  ;;  %v1772_v59 = vpop.f32.mrb[31].mxu0 }
 0x1c2   : > { %v1886_v43 = vadd.f32 %v9808_v57, %v1772_v59 }
 0x1c3   : > { %v9856_v17 = vpack.c.bf16 %v1884_v53, %v1880_v40 }
 0x1c4   : > { %2546 = vmatmul.mubr.bf16.gmra.mrb[88].mxu1 %v9594_v60  ;;  %v9859_v21 = vpack.c.bf16 %v1886_v43, %v1882_v47 }
 0x1c5   : > { %2555 = vmatprep.mubr.bf16.mxu1 %v12314_v0 }
 0x1c6   : > { %12475 = vst [vmem:[#allocation20_spill] sm:$0xff] %v9859_v21 }
 0x1cc   : > { %2556 = vmatmul.mubr.bf16.gmra.mrb[92].mxu1 %v9610_v19 }
 0x1cd   : > { %7572 = vmatprep.mubr.bf16.mxu1 %v9529_v37 }
 0x1d4   : > { %7573 = vmatmul.mubr.bf16.vlgmr.msra.gmra.mrb[96].mxu1 %v9535_v48 }
 0x1d5   : > { %7576 = vmatprep.mubr.bf16.mxu1 %v9545_v62 }
 0x1dc   : > { %7577 = vmatmul.mubr.bf16.gmra.mrb[100].mxu1 %v9552_v10 }
 0x1dd   : > { %7580 = vmatprep.mubr.bf16.mxu1 %v9563_v25 }
 0x1e4   : > { %7581 = vmatmul.mubr.bf16.gmra.mrb[104].mxu1 %v9578_v44 }
 0x1e5   : > { %7584 = vmatprep.mubr.bf16.mxu1 %v9594_v60 }
 0x1e7   : > { %v2035_v58 = vpop.f32.mrb[32].mxu1 }
 0x1e8   : > { %v2037_v7 = vpop.f32.mrb[33].mxu1 }
 0x1e9   : > { %v2039_v14 = vpop.f32.mrb[34].mxu1 }
 0x1ea   : > { %v9870_v57 = vpack.c.bf16 %v2039_v14, %v2035_v58  ;;  %v2041_v22 = vpop.f32.mrb[35].mxu1 }
 0x1eb   : > { %v2803_v24 = vpack.c.bf16 %v2041_v22, %v2037_v7 }
 0x1ec   : > { %12476 = vst [vmem:[#allocation21_spill] sm:$0xff] %v9870_v57  ;;  %7585 = vmatmul.mubr.bf16.gmra.mrb[108].mxu1 %v9610_v19 }
 0x1ed   : > { %3278 = vrot.lane.b32.xlu0 %v2803_v24, %s9317_s21  ;;  %8212 = vmatprep.subr.msk.bf16.mxu0 %vm12358_vm0, %v2803_v24  ;;  %v2845_v37 = vsel %vm12358_vm0, %v2803_v24, 0 }
 0x1ee   : > { %7589 = vmatpush3.bf16.xpose.msra.mxu0 %v2845_v37 }
 0x1ef   : > { %v2045_v48 = vpop.f32.mrb[36].mxu1 }
 0x1f0   : > { %v2047_v62 = vpop.f32.mrb[37].mxu1 }
 0x1f1   : > { %v2049_v10 = vpop.f32.mrb[38].mxu1 }
 0x1f2   : > { %v9876_v25 = vpack.c.bf16 %v2049_v10, %v2045_v48  ;;  %v2051_v44 = vpop.f32.mrb[39].mxu1 }
 0x1f3   : > { %v2804_v60 = vpack.c.bf16 %v2051_v44, %v2047_v62 }
 0x1f4   : > { %12477 = vst [vmem:[#allocation22_spill] sm:$0xff] %v9876_v25 }
 0x1f5   : > { %3280 = vrot.lane.b32.xlu1 %v2804_v60, %s9317_s21  ;;  %8213 = vmatprep.subr.msk.bf16.mxu0 %vm12358_vm0, %v2804_v60  ;;  %v2848_v19 = vsel %vm12358_vm0, %v2804_v60, 0 }
 0x1f6   : > { %7591 = vmatpush3.bf16.xpose.msra.mxu0 %v2848_v19 }
 0x1f7   : > { %v2055_v2 = vpop.f32.mrb[40].mxu1 }
 0x1f8   : > { %v2057_v32 = vpop.f32.mrb[41].mxu1 }
 0x1f9   : > { %v2059_v29 = vpop.f32.mrb[42].mxu1 }
 0x1fa   : > { %v9881_v31 = vpack.c.bf16 %v2059_v29, %v2055_v2  ;;  %v2061_v33 = vpop.f32.mrb[43].mxu1 }
 0x1fb   : > { %v2805_v34 = vpack.c.bf16 %v2061_v33, %v2057_v32 }
 0x1fc   : > { %12478 = vst [vmem:[#allocation23_spill] sm:$0xff] %v9881_v31 }
 0x1fd   : > { %3282 = vrot.lane.b32.xlu0 %v2805_v34, %s9317_s21  ;;  %8214 = vmatprep.subr.msk.bf16.mxu0 %vm12358_vm0, %v2805_v34  ;;  %v2851_v35 = vsel %vm12358_vm0, %v2805_v34, 0 }
 0x1fe   : > { %7593 = vmatpush3.bf16.xpose.msra.mxu0 %v2851_v35 }
 0x1ff   : > { %v2065_v11 = vpop.f32.mrb[44].mxu1 }
 0x200   : > { %v2067_v39 = vpop.f32.mrb[45].mxu1 }
 0x201   : > { %v2069_v5 = vpop.f32.mrb[46].mxu1 }
 0x202   : > { %v9886_v9 = vpack.c.bf16 %v2069_v5, %v2065_v11  ;;  %v2071_v15 = vpop.f32.mrb[47].mxu1 }
 0x203   : > { %v9888_v42 = vpack.c.bf16 %v2071_v15, %v2067_v39 }
 0x204   : > { %12479 = vst [vmem:[#allocation24_spill] sm:$0xff] %v9886_v9 }
 0x205   : > { %8215 = vmatprep.subr.msk.bf16.mxu0 %vm12358_vm0, %v9888_v42  ;;  %v2854_v45 = vsel %vm12358_vm0, %v9888_v42, 0 }
 0x206   : > { %7595 = vmatpush3.bf16.xpose.msra.mxu0 %v2854_v45  ;;  %v2261_v49 = vpop.f32.mrb[32].mxu0 }
 0x207   : > { %v2075_v46 = vpop.f32.mrb[48].mxu1  ;;  %v2263_v54 = vpop.f32.mrb[33].mxu0 }
 0x208   : > { %v2077_v26 = vpop.f32.mrb[49].mxu1  ;;  %v2265_v41 = vpop.f32.mrb[34].mxu0 }
 0x209   : > { %v2079_v20 = vpop.f32.mrb[50].mxu1  ;;  %v9896_v30 = vpack.c.bf16 %v2265_v41, %v2261_v49  ;;  %v2267_v61 = vpop.f32.mrb[35].mxu0 }
 0x20a   : > { %v9894_v23 = vpack.c.bf16 %v2079_v20, %v2075_v46  ;;  %v2081_v50 = vpop.f32.mrb[51].mxu1  ;;  %v9900_v6 = vpack.c.bf16 %v2267_v61, %v2263_v54 }
 0x20b   : > { %12481 = vst [vmem:[#allocation26_spill] sm:$0xff] %v9896_v30  ;;  %v9898_v18 = vpack.c.bf16 %v2081_v50, %v2077_v26  ;;  %v12542_v30 = vmov 0 }
 0x20c   : > { %12480 = vst [vmem:[#allocation25_spill] sm:$0xff] %v9894_v23  ;;  %12482 = vst [vmem:[#allocation27_spill] sm:$0xff] %v9900_v6 }
 0x20d   : > { %8216 = vmatprep.subr.msk.bf16.mxu0 %vm12358_vm0, %v9898_v18  ;;  %v2857_v40 = vsel %vm12358_vm0, %v9898_v18, 0 }
 0x20e   : > { %7597 = vmatpush3.bf16.xpose.msra.mxu0 %v2857_v40  ;;  %v2271_v47 = vpop.f32.mrb[36].mxu0 }
 0x20f   : > { %v2085_v12 = vpop.f32.mrb[52].mxu1  ;;  %v2273_v53 = vpop.f32.mrb[37].mxu0 }
 0x210   : > { %v2087_v55 = vpop.f32.mrb[53].mxu1  ;;  %v2275_v43 = vpop.f32.mrb[38].mxu0 }
 0x211   : > { %v2089_v59 = vpop.f32.mrb[54].mxu1  ;;  %v9908_v14 = vpack.c.bf16 %v2275_v43, %v2271_v47  ;;  %v2277_v22 = vpop.f32.mrb[39].mxu0 }
 0x212   : > { %v9906_v58 = vpack.c.bf16 %v2089_v59, %v2085_v12  ;;  %v2091_v7 = vpop.f32.mrb[55].mxu1  ;;  %v9912_v37 = vpack.c.bf16 %v2277_v22, %v2273_v53 }
 0x213   : > { %12484 = vst [vmem:[#allocation29_spill] sm:$0xff] %v9908_v14  ;;  %v9910_v24 = vpack.c.bf16 %v2091_v7, %v2087_v55 }
 0x214   : > { %12483 = vst [vmem:[#allocation28_spill] sm:$0xff] %v9906_v58  ;;  %12485 = vst [vmem:[#allocation30_spill] sm:$0xff] %v9912_v37 }
 0x215   : > { %8217 = vmatprep.subr.msk.bf16.mxu0 %vm12358_vm0, %v9910_v24  ;;  %v2860_v48 = vsel %vm12358_vm0, %v9910_v24, 0 }
 0x216   : > { %7599 = vmatpush3.bf16.xpose.msra.mxu0 %v2860_v48  ;;  %v2281_v10 = vpop.f32.mrb[40].mxu0 }
 0x217   : > { %v2095_v62 = vpop.f32.mrb[56].mxu1  ;;  %v2283_v60 = vpop.f32.mrb[41].mxu0 }
 0x218   : > { %v2097_v44 = vpop.f32.mrb[57].mxu1  ;;  %v2285_v2 = vpop.f32.mrb[42].mxu0 }
 0x219   : > { %v2099_v19 = vpop.f32.mrb[58].mxu1  ;;  %v9920_v33 = vpack.c.bf16 %v2285_v2, %v2281_v10  ;;  %v2287_v34 = vpop.f32.mrb[43].mxu0 }
 0x21a   : > { %v9918_v32 = vpack.c.bf16 %v2099_v19, %v2095_v62  ;;  %v2101_v29 = vpop.f32.mrb[59].mxu1  ;;  %v9924_v11 = vpack.c.bf16 %v2287_v34, %v2283_v60 }
 0x21b   : > { %12487 = vst [vmem:[#allocation32_spill] sm:$0xff] %v9920_v33  ;;  %v9922_v35 = vpack.c.bf16 %v2101_v29, %v2097_v44  ;;  %v12539_v33 = vmov 0 }
 0x21c   : > { %12486 = vst [vmem:[#allocation31_spill] sm:$0xff] %v9918_v32  ;;  %12488 = vst [vmem:[#allocation33_spill] sm:$0xff] %v9924_v11 }
 0x21d   : > { %8218 = vmatprep.subr.msk.bf16.mxu0 %vm12358_vm0, %v9922_v35  ;;  %v2863_v39 = vsel %vm12358_vm0, %v9922_v35, 0 }
 0x21e   : > { %7601 = vmatpush3.bf16.xpose.msra.mxu0 %v2863_v39  ;;  %v2291_v15 = vpop.f32.mrb[44].mxu0 }
 0x21f   : > { %v2105_v5 = vpop.f32.mrb[60].mxu1  ;;  %v2293_v46 = vpop.f32.mrb[45].mxu0 }
 0x220   : > { %v2107_v45 = vpop.f32.mrb[61].mxu1  ;;  %v2295_v26 = vpop.f32.mrb[46].mxu0 }
 0x221   : > { %v2109_v49 = vpop.f32.mrb[62].mxu1  ;;  %v9932_v41 = vpack.c.bf16 %v2295_v26, %v2291_v15  ;;  %v2297_v50 = vpop.f32.mrb[47].mxu0 }
 0x222   : > { %v9930_v54 = vpack.c.bf16 %v2109_v49, %v2105_v5  ;;  %v2111_v20 = vpop.f32.mrb[63].mxu1  ;;  %v9936_v40 = vpack.c.bf16 %v2297_v50, %v2293_v46 }
 0x223   : > { %12490 = vst [vmem:[#allocation35_spill] sm:$0xff] %v9932_v41  ;;  %v9934_v61 = vpack.c.bf16 %v2111_v20, %v2107_v45 }
 0x224   : > { %12489 = vst [vmem:[#allocation34_spill] sm:$0xff] %v9930_v54  ;;  %12491 = vst [vmem:[#allocation36_spill] sm:$0xff] %v9936_v40 }
 0x225   : > { %8219 = vmatprep.subr.msk.bf16.mxu0 %vm12358_vm0, %v9934_v61  ;;  %v2866_v12 = vsel %vm12358_vm0, %v9934_v61, 0 }
 0x226   : > { %7603 = vmatpush3.bf16.xpose.msra.mxu0 %v2866_v12  ;;  %v2301_v47 = vpop.f32.mrb[48].mxu0 }
 0x227   : > { %v2303_v55 = vpop.f32.mrb[49].mxu0 }
 0x228   : > { %v2305_v53 = vpop.f32.mrb[50].mxu0 }
 0x229   : > { %v9942_v59 = vpack.c.bf16 %v2305_v53, %v2301_v47  ;;  %v2307_v43 = vpop.f32.mrb[51].mxu0 }
 0x22a   : > { %v9944_v7 = vpack.c.bf16 %v2307_v43, %v2303_v55 }
 0x22b   : > { %12492 = vst [vmem:[#allocation37_spill] sm:$0xff] %v9942_v59 }
 0x22c   : > { %12493 = vst [vmem:[#allocation38_spill] sm:$0xff] %v9944_v7 }
 0x22d   : > { %7605 = vmatmul.mubr.msk.bf16.vlgmr.msra.gmra.mrb[96].mxu0 %vm12358_vm0, %v9774_v38 }
 0x22e   : > { %7608 = vmatprep.mubr.msk.bf16.mxu0 %vm12358_vm0, %v9791_v52  ;;  %v2311_v22 = vpop.f32.mrb[52].mxu0 }
 0x22f   : > { %v2313_v48 = vpop.f32.mrb[53].mxu0 }
 0x230   : > { %v2315_v62 = vpop.f32.mrb[54].mxu0 }
 0x231   : > { %v9950_v10 = vpack.c.bf16 %v2315_v62, %v2311_v22  ;;  %v2317_v44 = vpop.f32.mrb[55].mxu0 }
 0x232   : > { %v9952_v60 = vpack.c.bf16 %v2317_v44, %v2313_v48 }
 0x233   : > { %12494 = vst [vmem:[#allocation39_spill] sm:$0xff] %v9950_v10 }
 0x234   : > { %12495 = vst [vmem:[#allocation40_spill] sm:$0xff] %v9952_v60 }
 0x235   : > { %7609 = vmatmul.mubr.msk.bf16.gmra.mrb[100].mxu0 %vm12358_vm0, %v9811_v28 }
 0x236   : > { %7612 = vmatprep.mubr.msk.bf16.mxu0 %vm12358_vm0, %v9823_v13  ;;  %v2321_v19 = vpop.f32.mrb[56].mxu0 }
 0x237   : > { %v2323_v2 = vpop.f32.mrb[57].mxu0 }
 0x238   : > { %v2325_v29 = vpop.f32.mrb[58].mxu0 }
 0x239   : > { %v9958_v34 = vpack.c.bf16 %v2325_v29, %v2321_v19  ;;  %v2327_v39 = vpop.f32.mrb[59].mxu0 }
 0x23a   : > { %v9960_v5 = vpack.c.bf16 %v2327_v39, %v2323_v2 }
 0x23b   : > { %12496 = vst [vmem:[#allocation41_spill] sm:$0xff] %v9958_v34 }
 0x23c   : > { %12497 = vst [vmem:[#allocation42_spill] sm:$0xff] %v9960_v5 }
 0x23d   : > { %7613 = vmatmul.mubr.msk.bf16.gmra.mrb[104].mxu0 %vm12358_vm0, %v9836_v51 }
 0x23e   : > { %7616 = vmatprep.mubr.msk.bf16.mxu0 %vm12358_vm0, %v9846_v63  ;;  %v2331_v15 = vpop.f32.mrb[60].mxu0 }
 0x23f   : > { %v2333_v45 = vpop.f32.mrb[61].mxu0 }
 0x240   : > { %v2335_v46 = vpop.f32.mrb[62].mxu0 }
 0x241   : > { %v9966_v49 = vpack.c.bf16 %v2335_v46, %v2331_v15  ;;  %v2337_v26 = vpop.f32.mrb[63].mxu0 }
 0x242   : > { %v9968_v20 = vpack.c.bf16 %v2337_v26, %v2333_v45 }
 0x243   : > { %12498 = vst [vmem:[#allocation43_spill] sm:$0xff] %v9966_v49 }
 0x244   : > { %12499 = vst [vmem:[#allocation44_spill] sm:$0xff] %v9968_v20 }
 0x245   : > { %7617 = vmatmul.mubr.msk.bf16.gmra.mrb[108].mxu0 %vm12358_vm0, %v9856_v17 }
 0x246   : > { %v7220_v50 = vpop.f32.mrb[64].mxu0 }
 0x247   : > { %v7221_v12 = vpop.f32.mrb[65].mxu0 }
 0x248   : > { %v9972_v47 = vadd.f32 %v7221_v12, %v7220_v50  ;;  %v7223_v55 = vpop.f32.mrb[66].mxu0 }
 0x249   : > { %v7224_v53 = vpop.f32.mrb[67].mxu0 }
 0x24a   : > { %v9974_v43 = vadd.f32 %v7224_v53, %v7223_v55 }
 0x24e   : > { %v7226_v22 = vpop.f32.mrb[68].mxu0 }
 0x24f   : > { %v7227_v48 = vpop.f32.mrb[69].mxu0 }
 0x250   : > { %v9976_v62 = vadd.f32 %v7227_v48, %v7226_v22  ;;  %v7229_v44 = vpop.f32.mrb[70].mxu0 }
 0x251   : > { %v7230_v19 = vpop.f32.mrb[71].mxu0 }
 0x252   : > { %v9978_v2 = vadd.f32 %v7230_v19, %v7229_v44 }
 0x256   : > { %v7232_v29 = vpop.f32.mrb[72].mxu0 }
 0x257   : > { %v7233_v39 = vpop.f32.mrb[73].mxu0 }
 0x258   : > { %v9980_v15 = vadd.f32 %v7233_v39, %v7232_v29  ;;  %v7235_v45 = vpop.f32.mrb[74].mxu0 }
 0x259   : > { %v7236_v46 = vpop.f32.mrb[75].mxu0 }
 0x25a   : > { %v9982_v26 = vadd.f32 %v7236_v46, %v7235_v45 }
 0x25e   : > { %v7238_v50 = vpop.f32.mrb[76].mxu0 }
 0x25f   : > { %v7239_v12 = vpop.f32.mrb[77].mxu0  ;;  %v10051_v56 = vpop.permute.xlu0 %3278 }
 0x260   : > { %v9984_v55 = vadd.f32 %v7239_v12, %v7238_v50  ;;  %v7241_v53 = vpop.f32.mrb[78].mxu0 }
 0x261   : > { %v7242_v0 = vpop.f32.mrb[79].mxu0 }
 0x262   : > { %v9986_v22 = vadd.f32 %v7242_v0, %v7241_v53 }
 0x266   : > { %v7244_v44 = vpop.f32.mrb[80].mxu0 }
 0x267   : > { %v2487_v48 = vpop.f32.mrb[64].mxu1  ;;  %v7245_v23 = vpop.f32.mrb[81].mxu0 }
 0x268   : > { %v2489_v32 = vpop.f32.mrb[65].mxu1  ;;  %v9990_v39 = vadd.f32 %v7245_v23, %v7244_v44  ;;  %v7247_v45 = vpop.f32.mrb[82].mxu0 }
 0x269   : > { %v2491_v19 = vpop.f32.mrb[66].mxu1  ;;  %v7248_v57 = vpop.f32.mrb[83].mxu0 }
 0x26a   : > { %v9988_v31 = vpack.c.bf16 %v2491_v19, %v2487_v48  ;;  %v2493_v29 = vpop.f32.mrb[67].mxu1  ;;  %v9995_v50 = vadd.f32 %v7248_v57, %v7247_v45 }
 0x26b   : > { %v9992_v46 = vpack.c.bf16 %v2493_v29, %v2489_v32 }
 0x26c   : > { %7620 = vmatprep.subr.bf16.mxu1 %v9988_v31 }
 0x26d   : > { %7621 = vmatpush3.bf16.msra.mxu1 %v9988_v31 }
 0x26e   : > { %v7250_v53 = vpop.f32.mrb[84].mxu0 }
 0x26f   : > { %v2497_v0 = vpop.f32.mrb[68].mxu1  ;;  %v7251_v5 = vpop.f32.mrb[85].mxu0 }
 0x270   : > { %v2499_v12 = vpop.f32.mrb[69].mxu1  ;;  %v10000_v23 = vadd.f32 %v7251_v5, %v7250_v53  ;;  %v7253_v44 = vpop.f32.mrb[86].mxu0 }
 0x271   : > { %v2501_v20 = vpop.f32.mrb[70].mxu1  ;;  %v7254_v29 = vpop.f32.mrb[87].mxu0 }
 0x272   : > { %v9998_v48 = vpack.c.bf16 %v2501_v20, %v2497_v0  ;;  %v2503_v19 = vpop.f32.mrb[71].mxu1  ;;  %v10005_v57 = vadd.f32 %v7254_v29, %v7253_v44 }
 0x273   : > { %v10002_v32 = vpack.c.bf16 %v2503_v19, %v2499_v12 }
 0x274   : > { %7622 = vmatprep.subr.bf16.mxu1 %v9998_v48 }
 0x275   : > { %7623 = vmatpush3.bf16.msra.mxu1 %v9998_v48 }
 0x276   : > { %v7256_v7 = vpop.f32.mrb[88].mxu0 }
 0x277   : > { %v2507_v45 = vpop.f32.mrb[72].mxu1  ;;  %v7257_v11 = vpop.f32.mrb[89].mxu0 }
 0x278   : > { %v2509_v54 = vpop.f32.mrb[73].mxu1  ;;  %v10008_v20 = vadd.f32 %v7257_v11, %v7256_v7  ;;  %v7259_v0 = vpop.f32.mrb[90].mxu0 }
 0x279   : > { %v2511_v58 = vpop.f32.mrb[74].mxu1  ;;  %v7260_v12 = vpop.f32.mrb[91].mxu0 }
 0x27a   : > { %v10010_v5 = vpack.c.bf16 %v2511_v58, %v2507_v45  ;;  %v2513_v53 = vpop.f32.mrb[75].mxu1  ;;  %v10014_v6 = vadd.f32 %v7260_v12, %v7259_v0 }
 0x27b   : > { %v10012_v19 = vpack.c.bf16 %v2513_v53, %v2509_v54 }
 0x27c   : > { %7624 = vmatprep.subr.bf16.mxu1 %v10010_v5 }
 0x27d   : > { %7625 = vmatpush3.bf16.msra.mxu1 %v10010_v5 }
 0x27e   : > { %v7262_v29 = vpop.f32.mrb[92].mxu0 }
 0x27f   : > { %v2517_v44 = vpop.f32.mrb[76].mxu1  ;;  %v7263_v25 = vpop.f32.mrb[93].mxu0 }
 0x280   : > { %v2519_v9 = vpop.f32.mrb[77].mxu1  ;;  %v10018_v11 = vadd.f32 %v7263_v25, %v7262_v29  ;;  %v7265_v7 = vpop.f32.mrb[94].mxu0 }
 0x281   : > { %v2521_v60 = vpop.f32.mrb[78].mxu1  ;;  %v7266_v40 = vpop.f32.mrb[95].mxu0 }
 0x282   : > { %v10020_v58 = vpack.c.bf16 %v2521_v60, %v2517_v44  ;;  %v2523_v45 = vpop.f32.mrb[79].mxu1  ;;  %v10024_v0 = vadd.f32 %v7266_v40, %v7265_v7 }
 0x283   : > { %v10022_v54 = vpack.c.bf16 %v2523_v45, %v2519_v9 }
 0x284   : > { %7626 = vmatprep.subr.bf16.mxu1 %v10020_v58 }
 0x285   : > { %7627 = vmatpush3.bf16.msra.mxu1 %v10020_v58 }
 0x287   : > { %v2527_v53 = vpop.f32.mrb[80].mxu1 }
 0x288   : > { %v2529_v12 = vpop.f32.mrb[81].mxu1 }
 0x289   : > { %v2531_v37 = vpop.f32.mrb[82].mxu1 }
 0x28a   : > { %v10028_v21 = vpack.c.bf16 %v2531_v37, %v2527_v53  ;;  %v2533_v25 = vpop.f32.mrb[83].mxu1 }
 0x28b   : > { %v10030_v29 = vpack.c.bf16 %v2533_v25, %v2529_v12 }
 0x28c   : > { %7628 = vmatprep.subr.bf16.mxu1 %v10028_v21 }
 0x28d   : > { %7629 = vmatpush3.bf16.msra.mxu1 %v10028_v21 }
 0x28f   : > { %v2537_v9 = vpop.f32.mrb[84].mxu1 }
 0x290   : > { %v2539_v60 = vpop.f32.mrb[85].mxu1 }
 0x291   : > { %v2541_v40 = vpop.f32.mrb[86].mxu1 }
 0x292   : > { %v10034_v44 = vpack.c.bf16 %v2541_v40, %v2537_v9  ;;  %v2543_v7 = vpop.f32.mrb[87].mxu1 }
 0x293   : > { %v10036_v45 = vpack.c.bf16 %v2543_v7, %v2539_v60 }
 0x294   : > { %7630 = vmatprep.subr.bf16.mxu1 %v10034_v44 }
 0x295   : > { %7631 = vmatpush3.bf16.msra.mxu1 %v10034_v44 }
 0x297   : > { %v2547_v37 = vpop.f32.mrb[88].mxu1 }
 0x298   : > { %v2549_v53 = vpop.f32.mrb[89].mxu1 }
 0x299   : > { %v2551_v12 = vpop.f32.mrb[90].mxu1 }
 0x29a   : > { %v10040_v25 = vpack.c.bf16 %v2551_v12, %v2547_v37  ;;  %v2553_v4 = vpop.f32.mrb[91].mxu1 }
 0x29b   : > { %v10042_v36 = vpack.c.bf16 %v2553_v4, %v2549_v53 }
 0x29c   : > { %7632 = vmatprep.subr.bf16.mxu1 %v10040_v25 }
 0x29d   : > { %7633 = vmatpush3.bf16.msra.mxu1 %v10040_v25 }
 0x29f   : > { %v2557_v9 = vpop.f32.mrb[92].mxu1 }
 0x2a0   : > { %v2559_v40 = vpop.f32.mrb[93].mxu1 }
 0x2a1   : > { %v2561_v60 = vpop.f32.mrb[94].mxu1 }
 0x2a2   : > { %v10046_v7 = vpack.c.bf16 %v2561_v60, %v2557_v9  ;;  %v2563_v3 = vpop.f32.mrb[95].mxu1 }
 0x2a3   : > { %v10048_v1 = vpack.c.bf16 %v2563_v3, %v2559_v40 }
 0x2a4   : > { %7634 = vmatprep.subr.bf16.mxu1 %v10046_v7 }
 0x2a5   : > { %7635 = vmatpush3.bf16.msra.mxu1 %v10046_v7 }
 0x2a6   : > { %8220 = vmatprep.subr.msk.bf16.mxu1 %vm12358_vm0, %v10051_v56 }
 0x2a7   : > { %v7574_v4 = vpop.f32.mrb[96].mxu1 }
 0x2a8   : > { %v2697_v37 = vpop.f32.mrb[97].mxu1  ;;  %v2706_v53 = vadd.f32 %v7574_v4, %v9976_v62 }
 0x2a9   : > { %v2698_v12 = vadd.f32 %v9972_v47, %v2697_v37  ;;  %v7575_v9 = vpop.f32.mrb[98].mxu1 }
 0x2aa   : > { %v2700_v60 = vpop.f32.mrb[99].mxu1  ;;  %v2709_v3 = vadd.f32 %v7575_v9, %v9978_v2 }
 0x2ab   : > { %v2701_v40 = vadd.f32 %v9974_v43, %v2700_v60 }
 0x2ac   : > { %v10060_v27 = vpack.c.bf16 %v2709_v3, %v2706_v53 }
 0x2ad   : > { %v10062_v8 = vpack.c.bf16 %v2701_v40, %v2698_v12 }
 0x2ae   : > { %12500 = vst [vmem:[#allocation45_spill] sm:$0xff] %v10060_v27  ;;  %v12533_v27 = vmov 0 }
 0x2af   : > { %12501 = vst [vmem:[#allocation46_spill] sm:$0xff] %v10062_v8  ;;  %v7578_v49 = vpop.f32.mrb[100].mxu1  ;;  %v12536_v8 = vmov 0 }
 0x2b0   : > { %v2713_v34 = vpop.f32.mrb[101].mxu1  ;;  %v2722_v10 = vadd.f32 %v7578_v49, %v9984_v55 }
 0x2b1   : > { %v2714_v59 = vadd.f32 %v9980_v15, %v2713_v34  ;;  %v7579_v41 = vpop.f32.mrb[102].mxu1 }
 0x2b2   : > { %v2716_v62 = vpop.f32.mrb[103].mxu1  ;;  %v2725_v47 = vadd.f32 %v7579_v41, %v9986_v22 }
 0x2b3   : > { %v2717_v4 = vadd.f32 %v9982_v26, %v2716_v62 }
 0x2b4   : > { %v10068_v37 = vpack.c.bf16 %v2725_v47, %v2722_v10 }
 0x2b5   : > { %v10070_v2 = vpack.c.bf16 %v2717_v4, %v2714_v59 }
 0x2b6   : > { %12502 = vst [vmem:[#allocation47_spill] sm:$0xff] %v10068_v37  ;;  %v12527_v37 = vmov 0 }
 0x2b7   : > { %12503 = vst [vmem:[#allocation48_spill] sm:$0xff] %v10070_v2  ;;  %v7582_v43 = vpop.f32.mrb[104].mxu1  ;;  %v12530_v2 = vmov 0 }
 0x2b8   : > { %v2729_v53 = vpop.f32.mrb[105].mxu1  ;;  %v2738_v12 = vadd.f32 %v7582_v43, %v10000_v23 }
 0x2b9   : > { %v2730_v9 = vadd.f32 %v9990_v39, %v2729_v53  ;;  %v7583_v60 = vpop.f32.mrb[106].mxu1 }
 0x2ba   : > { %v2732_v49 = vpop.f32.mrb[107].mxu1  ;;  %v2741_v34 = vadd.f32 %v7583_v60, %v10005_v57 }
 0x2bb   : > { %v2733_v15 = vadd.f32 %v9995_v50, %v2732_v49  ;;  %v2760_v50 = vlaneseq }
 0x2bc   : > { %v10076_v55 = vpack.c.bf16 %v2741_v34, %v2738_v12  ;;  %v12515_v34 = vmov 0 }
 0x2bd   : > { %v10078_v41 = vpack.c.bf16 %v2733_v15, %v2730_v9  ;;  %v10088_v47 = vshrl.u32 %v2760_v50, 7  ;;  %v10091_v43 = vand.u32 127, %v2760_v50 }
 0x2be   : > { %12504 = vst [vmem:[#allocation49_spill] sm:$0xff] %v10076_v55 }
 0x2bf   : > { %12505 = vst [vmem:[#allocation50_spill] sm:$0xff] %v10078_v41  ;;  %v7586_v10 = vpop.f32.mrb[108].mxu1  ;;  %12508 = vst [vmem:[#allocation53_spill] sm:$0xff] %v10088_v47  ;;  %v2763_v4 = vadd.s32 16, %v10088_v47  ;;  %vm10101_vm2 = vcmp.le.s32.totalorder %v10091_v43, %v10088_v47  ;;  %v2768_v55 = vadd.s32 56, %v10088_v47  ;;  %v2769_v41 = vadd.s32 64, %v10088_v47 }
 0x2c0   : > { %v2745_v26 = vpop.f32.mrb[109].mxu1  ;;  %v2754_v59 = vadd.f32 %v7586_v10, %v10018_v11  ;;  %v2764_v11 = vadd.s32 24, %v10088_v47  ;;  %v12518_v10 = vmov 0 }
 0x2c1   : > { %v2746_v22 = vadd.f32 %v10008_v20, %v2745_v26  ;;  %v7587_v3 = vpop.f32.mrb[110].mxu1  ;;  %vm10094_vm1 = vcmp.le.s32.totalorder %v10091_v43, %v2763_v4  ;;  %v12509_v20 = vmov 0  ;;  %vm10164_vm7 = vcmp.le.s32.totalorder %v10091_v43, %v2768_v55 }
 0x2c2   : > { %v2748_v23 = vpop.f32.mrb[111].mxu1  ;;  %v2757_v39 = vadd.f32 %v7587_v3, %v10024_v0  ;;  %v12510_v20 = vsel %vm10094_vm1, 4294967295, %v12509_v20  ;;  %v2762_v0 = vadd.s32 8, %v10088_v47  ;;  %vm10116_vm3 = vcmp.le.s32.totalorder %v10091_v43, %v2764_v11 }
 0x2c3   : > { %v2749_v40 = vadd.f32 %v10014_v6, %v2748_v23  ;;  %12511 = vst [vmem:[#allocation54_spill] sm:$0xff] %v12510_v20  ;;  %v12512_v6 = vmov 0  ;;  %v12516_v34 = vsel %vm10116_vm3, 4294967295, %v12515_v34  ;;  %v12528_v37 = vsel %vm10164_vm7, 4294967295, %v12527_v37 }
 0x2c4   : > { %v10084_v62 = vpack.c.bf16 %v2757_v39, %v2754_v59  ;;  %v12513_v6 = vsel %vm10101_vm2, 4294967295, %v12512_v6  ;;  %12517 = vst [vmem:[#allocation56_spill] sm:$0xff] %v12516_v34  ;;  %vm10122_vm4 = vcmp.le.s32.totalorder %v10091_v43, %v2762_v0  ;;  %12529 = vst [vmem:[#allocation60_spill] sm:$0xff] %v12528_v37  ;;  %vm10171_vm8 = vcmp.le.s32.totalorder %v10091_v43, %v2769_v41 }
 0x2c5   : > { %v10086_v57 = vpack.c.bf16 %v2749_v40, %v2746_v22  ;;  %12514 = vst [vmem:[#allocation55_spill] sm:$0xff] %v12513_v6  ;;  %v12519_v10 = vsel %vm10122_vm4, 4294967295, %v12518_v10  ;;  %v12531_v2 = vsel %vm10171_vm8, 4294967295, %v12530_v2  ;;  %v2771_v41 = vadd.s32 80, %v10088_v47 }
 0x2c6   : > { %12506 = vst [vmem:[#allocation51_spill] sm:$0xff] %v10084_v62  ;;  %12520 = vst [vmem:[#allocation57_spill] sm:$0xff] %v12519_v10  ;;  %v2767_v62 = vadd.s32 48, %v10088_v47 }
 0x2c7   : > { %12507 = vst [vmem:[#allocation52_spill] sm:$0xff] %v10086_v57  ;;  %v12521_v57 = vmov 0  ;;  %12532 = vst [vmem:[#allocation61_spill] sm:$0xff] %v12531_v2  ;;  %vm10208_vm11 = vcmp.le.s32.totalorder %v10091_v43, %v2771_v41  ;;  %v12545_v41 = vmov 0 }
 0x2c8   : > { %vm10149_vm6 = vcmp.le.s32.totalorder %v10091_v43, %v2767_v62  ;;  %v2766_v62 = vadd.s32 40, %v10088_v47  ;;  %v12540_v33 = vsel %vm10208_vm11, 4294967295, %v12539_v33 }
 0x2c9   : > { %12541 = vst [vmem:[#allocation64_spill] sm:$0xff] %v12540_v33 }
 0x2ca   : > { %vm10186_vm9 = vcmp.le.s32.totalorder %v10091_v43, %v2766_v62 }
 0x2cb   : > { %v12534_v27 = vsel %vm10186_vm9, 4294967295, %v12533_v27 }
 0x2cc   : > { %12535 = vst [vmem:[#allocation62_spill] sm:$0xff] %v12534_v27 }
 0x300   : > { %v7606_v53 = vpop.f32.mrb[96].mxu0 }
 0x301   : > { %v2902_v12 = vpop.f32.mrb[97].mxu0  ;;  %v10108_v9 = vsel %vm10094_vm1, %v7606_v53, -inf }
 0x302   : > { %2985 = vmax.xlane.f32.xlu1 %v10108_v9  ;;  %v7607_v60 = vpop.f32.mrb[98].mxu0  ;;  %v10113_v49 = vsel %vm10101_vm2, %v2902_v12, -inf }
 0x303   : > { %2981 = vmax.xlane.f32.xlu0 %v10113_v49  ;;  %v2905_v15 = vpop.f32.mrb[99].mxu0  ;;  %v10128_v26 = vsel %vm10116_vm3, %v7607_v60, -inf }
 0x304   : > { %v10133_v59 = vsel %vm10122_vm4, %v2905_v15, -inf  ;;  %v2765_v15 = vadd.s32 32, %v10088_v47 }
 0x306   : > { %2987 = vmax.xlane.f32.xlu1 %v10128_v26  ;;  %vm10143_vm5 = vcmp.le.s32.totalorder %v10091_v43, %v2765_v15 }
 0x307   : > { %2983 = vmax.xlane.f32.xlu0 %v10133_v59  ;;  %v12522_v57 = vsel %vm10143_vm5, 4294967295, %v12521_v57 }
 0x308   : > { %v7610_v22 = vpop.f32.mrb[100].mxu0  ;;  %12523 = vst [vmem:[#allocation58_spill] sm:$0xff] %v12522_v57 }
 0x309   : > { %v2918_v3 = vpop.f32.mrb[101].mxu0  ;;  %v10161_v15 = vsel %vm10149_vm6, %v7610_v22, -inf }
 0x30a   : > { %v7611_v23 = vpop.f32.mrb[102].mxu0 }
 0x30b   : > { %v2921_v39 = vpop.f32.mrb[103].mxu0  ;;  %v10178_v22 = vsel %vm10164_vm7, %v7611_v23, -inf  ;;  %v2775_v23 = vadd.s32 112, %v10088_v47 }
 0x30d   : > { %vm10215_vm12 = vcmp.le.s32.totalorder %v10091_v43, %v2775_v23  ;;  %v2773_v23 = vadd.s32 96, %v10088_v47 }
 0x30e   : > { %v12543_v30 = vsel %vm10215_vm12, 4294967295, %v12542_v30 }
 0x30f   : > { %12544 = vst [vmem:[#allocation65_spill] sm:$0xff] %v12543_v30  ;;  %vm10241_vm14 = vcmp.le.s32.totalorder %v10091_v43, %v2773_v23  ;;  %v12551_v30 = vmov 0 }
 0x310   : > { %v7614_v40 = vpop.f32.mrb[104].mxu0 }
 0x311   : > { %v2934_v50 = vpop.f32.mrb[105].mxu0 }
 0x312   : > { %v7615_v4 = vpop.f32.mrb[106].mxu0  ;;  %v10183_v55 = vsel %vm10171_vm8, %v2934_v50, -inf  ;;  %v10200_v50 = vsel %vm10186_vm9, %v2921_v39, -inf  ;;  %v10221_v39 = vsel %vm10208_vm11, %v7614_v40, -inf  ;;  %v12548_v40 = vmov 0 }
 0x313   : > { %v2937_v11 = vpop.f32.mrb[107].mxu0  ;;  %v12549_v40 = vsel %vm10241_vm14, 4294967295, %v12548_v40 }
 0x314   : > { %12550 = vst [vmem:[#allocation67_spill] sm:$0xff] %v12549_v40  ;;  %v12554_v40 = vmov 0 }
 0x317   : > { %3284 = vrot.lane.b32.xlu1 %v9888_v42, %s9317_s21  ;;  %v12524_v42 = vmov 0 }
 0x318   : > { %v7618_v0 = vpop.f32.mrb[108].mxu0  ;;  %v12525_v42 = vsel %vm10149_vm6, 4294967295, %v12524_v42 }
 0x319   : > { %v2950_v53 = vpop.f32.mrb[109].mxu0  ;;  %12526 = vst [vmem:[#allocation59_spill] sm:$0xff] %v12525_v42 }
 0x31a   : > { %v7619_v12 = vpop.f32.mrb[110].mxu0 }
 0x31b   : > { %v2953_v60 = vpop.f32.mrb[111].mxu0 }
 0x31d   : > { %3286 = vrot.lane.b32.xlu0 %v9898_v18, %s9317_s21  ;;  %v10156_v18 = vsel %vm10143_vm5, %v2918_v3, -inf  ;;  %v2770_v3 = vadd.s32 72, %v10088_v47 }
 0x31f   : > { %vm10193_vm10 = vcmp.le.s32.totalorder %v10091_v43, %v2770_v3  ;;  %v2772_v3 = vadd.s32 88, %v10088_v47 }
 0x320   : > { %v12537_v8 = vsel %vm10193_vm10, 4294967295, %v12536_v8  ;;  %v10205_v62 = vsel %vm10193_vm10, %v2937_v11, -inf  ;;  %v10226_v11 = vsel %vm10215_vm12, %v7618_v0, -inf  ;;  %v2776_v0 = vadd.s32 120, %v10088_v47 }
 0x321   : > { %12538 = vst [vmem:[#allocation63_spill] sm:$0xff] %v12537_v8  ;;  %vm10229_vm13 = vcmp.le.s32.totalorder %v10091_v43, %v2772_v3  ;;  %v10248_v3 = vsel %vm10241_vm14, %v2950_v53, -inf  ;;  %vm12561_vm12 = vcmask 523264  }
 0x322   : > { %v12546_v41 = vsel %vm10229_vm13, 4294967295, %v12545_v41  ;;  %v10237_v14 = vsel %vm10229_vm13, %v7615_v4, -inf  ;;  %vm10252_vm15 = vcmp.le.s32.totalorder %v10091_v43, %v2776_v0  ;;  %v2774_v4 = vadd.s32 104, %v10088_v47  ;;  %vm12562_vm14 = vmmov %vm12561_vm12 }
 0x323   : > { %12547 = vst [vmem:[#allocation66_spill] sm:$0xff] %v12546_v41  ;;  %v12552_v30 = vsel %vm10252_vm15, 4294967295, %v12551_v30  ;;  %v10259_v23 = vsel %vm10252_vm15, %v7619_v12, -inf  ;;  %vm12563_vm11 = vmmov %vm12561_vm12 }
 0x324   : > { %12553 = vst [vmem:[#allocation68_spill] sm:$0xff] %v12552_v30  ;;  %vm10263_vm0 = vcmp.le.s32.totalorder %v10091_v43, %v2774_v4  ;;  %vm12564_vm8 = vmmov %vm12563_vm11 }
 0x325   : > { %v12555_v40 = vsel %vm10263_vm0, 4294967295, %v12554_v40  ;;  %v10269_v53 = vsel %vm10263_vm0, %v2953_v60, -inf  ;;  %vm12565_vm15 = vmmov %vm12564_vm8 }
 0x326   : > { %12556 = vst [vmem:[#allocation69_spill] sm:$0xff] %v12555_v40  ;;  %vm12566_vm7 = vmmov %vm12564_vm8 }
 0x327   : > { %vm12567_vm0 = vmmov %vm12566_vm7 }
 0x328   : > { %vm12568_vm6 = vmmov %vm12567_vm0 }
 0x33b   : > { %2989 = vmax.xlane.f32.xlu1 %v10156_v18 }
 0x33c   : > { %2993 = vmax.xlane.f32.xlu0 %v10161_v15 }
 0x33f   : > { %2995 = vmax.xlane.f32.xlu1 %v10178_v22 }
 0x340   : > { %2997 = vmax.xlane.f32.xlu0 %v10183_v55 }
 0x343   : > { %2991 = vmax.xlane.f32.xlu1 %v10200_v50 }
 0x344   : > { %2999 = vmax.xlane.f32.xlu0 %v10205_v62 }
 0x347   : > { %3001 = vmax.xlane.f32.xlu1 %v10221_v39 }
 0x348   : > { %3009 = vmax.xlane.f32.xlu0 %v10226_v11 }
 0x34b   : > { %3003 = vmax.xlane.f32.xlu1 %v10237_v14 }
 0x34f   : > { %3005 = vmax.xlane.f32.xlu1 %v10248_v3 }
 0x353   : > { %3011 = vmax.xlane.f32.xlu1 %v10259_v23 }
 0x357   : > { %3007 = vmax.xlane.f32.xlu1 %v10269_v53 }
 0x35e   : > { %3290 = vrot.lane.b32.xlu0 %v9922_v35, %s9317_s21 }
 0x362   : > { %3292 = vrot.lane.b32.xlu0 %v9934_v61, %s9317_s21 }
 0x366   : > { %3254 = vrot.lane.b32.xlu0 %v9758_v16, %s9317_s21  ;;  %v3281_v16 = vpop.permute.xlu1 %3280 }
 0x368   : > { %3288 = vrot.lane.b32.xlu1 %v9910_v24, %s9317_s21 }
 0x36a   : > { %3258 = vrot.lane.b32.xlu0 %v9791_v52, %s9317_s21 }
 0x36c   : > { %3256 = vrot.lane.b32.xlu1 %v9774_v38, %s9317_s21  ;;  %v3283_v38 = vpop.permute.xlu0 %3282 }
 0x36d   : > { %v3325_v12 = vsel %vm12565_vm15, %v3283_v38, 0  ;;  %vm12587_vm15 = vmmov %vm12567_vm0 }
 0x36e   : > { %3262 = vrot.lane.b32.xlu0 %v9823_v13, %s9317_s21 }
 0x370   : > { %3260 = vrot.lane.b32.xlu1 %v9811_v28, %s9317_s21 }
 0x372   : > { %3266 = vrot.lane.b32.xlu0 %v9846_v63, %s9317_s21 }
 0x374   : > { %3264 = vrot.lane.b32.xlu1 %v9836_v51, %s9317_s21 }
 0x376   : > { %3599 = vrot.lane.b32.xlu0 %v9988_v31, %s9317_s21 }
 0x378   : > { %3268 = vrot.lane.b32.xlu1 %v9856_v17, %s9317_s21 }
 0x37a   : > { %3603 = vrot.lane.b32.xlu0 %v10010_v5, %s9317_s21 }
 0x37c   : > { %3601 = vrot.lane.b32.xlu1 %v9998_v48, %s9317_s21 }
 0x380   : > { %3605 = vrot.lane.b32.xlu1 %v10020_v58, %s9317_s21 }
 0x384   : > { %3607 = vrot.lane.b32.xlu1 %v10028_v21, %s9317_s21 }
 0x388   : > { %3609 = vrot.lane.b32.xlu1 %v10034_v44, %s9317_s21 }
 0x38f   : > { %v2986_v52 = vpop.xlane.xlu1 %2985 }
 0x390   : > { %v2982_v28 = vpop.xlane.xlu0 %2981  ;;  %v3015_v51 = vsub.f32 %v10108_v9, %v2986_v52 }
 0x391   : > { %v3013_v13 = vsub.f32 %v10113_v49, %v2982_v28 }
 0x392   : > { %v3033_v61 = vmul.f32 1.442695, %v3015_v51 }
 0x393   : > { %v3029_v63 = vmul.f32 1.442695, %v3013_v13  ;;  %v2988_v17 = vpop.xlane.xlu1 %2987 }
 0x394   : > { %v3016_v31 = vsub.f32 %v10128_v26, %v2988_v17  ;;  %v2984_v24 = vpop.xlane.xlu0 %2983  ;;  %v3319_v26 = vsel %vm12561_vm12, %v10051_v56, 0  ;;  %vm12569_vm12 = vmmov %vm12567_vm0 }
 0x395   : > { %v3014_v35 = vsub.f32 %v10133_v59, %v2984_v24  ;;  %8749 = vpow2.f32 %v3029_v63  ;;  %v3322_v59 = vsel %vm12563_vm11, %v3281_v16, 0  ;;  %vm12584_vm11 = vmmov %vm12567_vm0 }
 0x396   : > { %v3035_v21 = vmul.f32 1.442695, %v3016_v31 }
 0x397   : > { %v3031_v48 = vmul.f32 1.442695, %v3014_v35  ;;  %v3285_v60 = vpop.permute.xlu1 %3284 }
 0x398   : > { %8751 = vpow2.f32 %v3035_v21  ;;  %v3328_v0 = vsel %vm12567_vm0, %v3285_v60, 0  ;;  %v3287_v4 = vpop.permute.xlu0 %3286 }
 0x399   : > { %8753 = vpow2.f32 %v3031_v48  ;;  %v3331_v56 = vsel %vm12569_vm12, %v3287_v4, 0  ;;  %vm12588_vm12 = vmmov %vm12567_vm0 }
 0x39a   : > { %8755 = vpow2.f32 %v3033_v61 }
 0x39f   : > { %v10310_v5 = vpop.eup %8749 }
 0x3a0   : > { %12557 = vst [vmem:[#allocation70_spill] sm:$0xff] %v10310_v5 }
 0x3a2   : > { %v10312_v58 = vpop.eup %8751 }
 0x3a3   : > { %12558 = vst [vmem:[#allocation71_spill] sm:$0xff] %v10312_v58  ;;  %v10314_v44 = vpop.eup %8753 }
 0x3a4   : > { %12559 = vst [vmem:[#allocation72_spill] sm:$0xff] %v10314_v44  ;;  %v10316_v43 = vpop.eup %8755  ;;  %v3109_v9 = vpack.c.bf16 %v10314_v44, %v10310_v5 }
 0x3a5   : > { %12560 = vst [vmem:[#allocation73_spill] sm:$0xff] %v10316_v43  ;;  %v3110_v49 = vpack.c.bf16 %v10312_v58, %v10316_v43 }
 0x3a6   : > { %7636 = vmatprep.mubr.bf16.mxu1 %v3109_v9 }
 0x3a7   : > { %7637 = vmatmul.mubr.bf16.vlgmr.msra.gmra.mrb[112].mxu1 %v3110_v49 }
 0x3a8   : > { %7653 = vmatpush3.bf16.xpose.msra.mxu1 %v3319_v26 }
 0x3a9   : > { %8221 = vmatprep.subr.msk.bf16.mxu1 %vm12562_vm14, %v3281_v16  ;;  %vm12586_vm14 = vmmov %vm12567_vm0 }
 0x3b0   : > { %7655 = vmatpush3.bf16.xpose.msra.mxu1 %v3322_v59 }
 0x3b1   : > { %8222 = vmatprep.subr.msk.bf16.mxu1 %vm12564_vm8, %v3283_v38  ;;  %vm12581_vm8 = vmmov %vm12567_vm0 }
 0x3b8   : > { %7657 = vmatpush3.bf16.xpose.msra.mxu1 %v3325_v12 }
 0x3b9   : > { %8223 = vmatprep.subr.msk.bf16.mxu1 %vm12566_vm7, %v3285_v60  ;;  %vm12579_vm7 = vmmov %vm12567_vm0 }
 0x3c0   : > { %7659 = vmatpush3.bf16.xpose.msra.mxu1 %v3328_v0 }
 0x3c1   : > { %8224 = vmatprep.subr.msk.bf16.mxu1 %vm12568_vm6, %v3287_v4  ;;  %vm12578_vm6 = vmmov %vm12567_vm0 }
 0x3c8   : > { %7661 = vmatpush3.bf16.xpose.msra.mxu1 %v3331_v56  ;;  %v2990_v52 = vpop.xlane.xlu1 %2989 }
 0x3c9   : > { %v3017_v16 = vsub.f32 %v10156_v18, %v2990_v52  ;;  %v2994_v28 = vpop.xlane.xlu0 %2993 }
 0x3ca   : > { %v3019_v13 = vsub.f32 %v10161_v15, %v2994_v28 }
 0x3cb   : > { %v3037_v51 = vmul.f32 1.442695, %v3017_v16 }
 0x3cc   : > { %v2996_v38 = vpop.xlane.xlu1 %2995  ;;  %v3041_v31 = vmul.f32 1.442695, %v3019_v13 }
 0x3cd   : > { %v3020_v63 = vsub.f32 %v10178_v22, %v2996_v38  ;;  %v2998_v17 = vpop.xlane.xlu0 %2997  ;;  %8757 = vpow2.f32 %v3037_v51 }
 0x3ce   : > { %v3021_v24 = vsub.f32 %v10183_v55, %v2998_v17  ;;  %8759 = vpow2.f32 %v3041_v31 }
 0x3cf   : > { %v3043_v35 = vmul.f32 1.442695, %v3020_v63 }
 0x3d0   : > { %v3045_v61 = vmul.f32 1.442695, %v3021_v24  ;;  %v2992_v21 = vpop.xlane.xlu1 %2991 }
 0x3d1   : > { %v3018_v48 = vsub.f32 %v10200_v50, %v2992_v21  ;;  %v3000_v9 = vpop.xlane.xlu0 %2999  ;;  %8761 = vpow2.f32 %v3043_v35 }
 0x3d2   : > { %v3022_v18 = vsub.f32 %v10205_v62, %v3000_v9  ;;  %8763 = vpow2.f32 %v3045_v61 }
 0x3d3   : > { %v3039_v15 = vmul.f32 1.442695, %v3018_v48 }
 0x3d4   : > { %v3047_v49 = vmul.f32 1.442695, %v3022_v18  ;;  %v3002_v26 = vpop.xlane.xlu1 %3001 }
 0x3d5   : > { %8765 = vpow2.f32 %v3039_v15  ;;  %v3023_v22 = vsub.f32 %v10221_v39, %v3002_v26  ;;  %v3010_v59 = vpop.xlane.xlu0 %3009 }
 0x3d6   : > { %8767 = vpow2.f32 %v3047_v49  ;;  %v3027_v35 = vsub.f32 %v10226_v11, %v3010_v59 }
 0x3d7   : > { %v3049_v55 = vmul.f32 1.442695, %v3023_v22  ;;  %v10340_v50 = vpop.eup %8757 }
 0x3d8   : > { %v3004_v12 = vpop.xlane.xlu1 %3003  ;;  %12570 = vst [vmem:[#allocation74_spill] sm:$0xff] %v10340_v50  ;;  %v10342_v56 = vpop.eup %8759 }
 0x3d9   : > { %v3024_v60 = vsub.f32 %v10237_v14, %v3004_v12  ;;  %v3291_v0 = vpop.permute.xlu0 %3290  ;;  %12571 = vst [vmem:[#allocation75_spill] sm:$0xff] %v10342_v56  ;;  %8769 = vpow2.f32 %v3049_v55 }
 0x3db   : > { %v3051_v4 = vmul.f32 1.442695, %v3024_v60  ;;  %v10344_v52 = vpop.eup %8761 }
 0x3dc   : > { %v3006_v62 = vpop.xlane.xlu1 %3005  ;;  %12572 = vst [vmem:[#allocation76_spill] sm:$0xff] %v10344_v52  ;;  %v10346_v28 = vpop.eup %8763  ;;  %v3112_v31 = vpack.c.bf16 %v10344_v52, %v10342_v56 }
 0x3dd   : > { %8771 = vpow2.f32 %v3051_v4  ;;  %v3293_v16 = vpop.permute.xlu0 %3292  ;;  %12573 = vst [vmem:[#allocation77_spill] sm:$0xff] %v10346_v28  ;;  %v3025_v13 = vsub.f32 %v10248_v3, %v3006_v62  ;;  %v3337_v62 = vsel %vm12581_vm8, %v3291_v0, 0  ;;  %vm12591_vm8 = vmmov %vm12567_vm0 }
 0x3df   : > { %v10348_v39 = vpop.eup %8765  ;;  %v3053_v61 = vmul.f32 1.442695, %v3025_v13 }
 0x3e0   : > { %12574 = vst [vmem:[#allocation78_spill] sm:$0xff] %v10348_v39  ;;  %v10351_v38 = vpop.eup %8767  ;;  %v3012_v14 = vpop.xlane.xlu1 %3011  ;;  %v3111_v51 = vpack.c.bf16 %v10348_v39, %v10340_v50 }
 0x3e1   : > { %12575 = vst [vmem:[#allocation79_spill] sm:$0xff] %v10351_v38  ;;  %v3028_v63 = vsub.f32 %v10259_v23, %v3012_v14  ;;  %v3255_v17 = vpop.permute.xlu0 %3254  ;;  %v3113_v24 = vpack.c.bf16 %v10351_v38, %v10346_v28  ;;  %v3057_v23 = vmul.f32 1.442695, %v3027_v35  ;;  %8773 = vpow2.f32 %v3053_v61 }
 0x3e2   : > { %7640 = vmatprep.mubr.bf16.mxu1 %v3111_v51  ;;  %v3340_v35 = vsel %vm12587_vm15, %v3293_v16, 0  ;;  %vm12610_vm15 = vnez %v12525_v42 }
 0x3e3   : > { %7641 = vmatmul.mubr.bf16.gmra.mrb[116].mxu1 %v3112_v31  ;;  %v3059_v3 = vmul.f32 1.442695, %v3028_v63  ;;  %v10362_v18 = vpop.eup %8769 }
 0x3e4   : > { %7644 = vmatprep.mubr.bf16.mxu1 %v3113_v24  ;;  %v3008_v21 = vpop.xlane.xlu1 %3007  ;;  %12576 = vst [vmem:[#allocation80_spill] sm:$0xff] %v10362_v18 }
 0x3e5   : > { %v3026_v48 = vsub.f32 %v10269_v53, %v3008_v21  ;;  %v3259_v9 = vpop.permute.xlu0 %3258  ;;  %8775 = vpow2.f32 %v3059_v3 }
 0x3e7   : > { %v10364_v15 = vpop.eup %8771  ;;  %v3055_v49 = vmul.f32 1.442695, %v3026_v48 }
 0x3e8   : > { %12577 = vst [vmem:[#allocation81_spill] sm:$0xff] %v10364_v15  ;;  %v3289_v26 = vpop.permute.xlu1 %3288  ;;  %v3114_v11 = vpack.c.bf16 %v10364_v15, %v10362_v18 }
 0x3e9   : > { %8777 = vpow2.f32 %v3055_v49  ;;  %v3263_v22 = vpop.permute.xlu0 %3262  ;;  %8225 = vmatprep.subr.msk.bf16.mxu1 %vm12567_vm0, %v3289_v26  ;;  %v3334_v59 = vsel %vm12578_vm6, %v3289_v26, 0  ;;  %vm12589_vm6 = vmmov %vm12567_vm0 }
 0x3ea   : > { %8779 = vpow2.f32 %v3057_v23  ;;  %7663 = vmatpush3.bf16.xpose.msra.mxu1 %v3334_v59 }
 0x3eb   : > { %7645 = vmatmul.mubr.bf16.gmra.mrb[120].mxu1 %v3114_v11  ;;  %8226 = vmatprep.subr.msk.bf16.mxu1 %vm12579_vm7, %v3291_v0  ;;  %v10371_v60 = vpop.eup %8773  ;;  %vm12590_vm7 = vmmov %vm12567_vm0 }
 0x3ec   : > { %v3257_v53 = vpop.permute.xlu1 %3256  ;;  %12580 = vst [vmem:[#allocation82_spill] sm:$0xff] %v10371_v60 }
 0x3ed   : > { %v3267_v55 = vpop.permute.xlu0 %3266 }
 0x3ef   : > { %v10374_v13 = vpop.eup %8775 }
 0x3f0   : > { %v3261_v12 = vpop.permute.xlu1 %3260  ;;  %12582 = vst [vmem:[#allocation83_spill] sm:$0xff] %v10374_v13 }
 0x3f1   : > { %v3600_v4 = vpop.permute.xlu0 %3599 }
 0x3f2   : > { %7665 = vmatpush3.bf16.xpose.msra.mxu1 %v3337_v62  ;;  %7684 = vmatprep.subr.bf16.mxu0 %v3600_v4 }
 0x3f3   : > { %v10376_v14 = vpop.eup %8777  ;;  %8227 = vmatprep.subr.msk.bf16.mxu1 %vm12584_vm11, %v3293_v16  ;;  %7685 = vmatpush3.bf16.msra.mxu0 %v3600_v4  ;;  %vm12592_vm11 = vmmov %vm12567_vm0 }
 0x3f4   : > { %12583 = vst [vmem:[#allocation84_spill] sm:$0xff] %v10376_v14  ;;  %v10379_v51 = vpop.eup %8779  ;;  %v3265_v63 = vpop.permute.xlu1 %3264  ;;  %v3115_v31 = vpack.c.bf16 %v10376_v14, %v10371_v60 }
 0x3f5   : > { %12585 = vst [vmem:[#allocation85_spill] sm:$0xff] %v10379_v51  ;;  %v3116_v24 = vpack.c.bf16 %v10374_v13, %v10379_v51  ;;  %v3604_v3 = vpop.permute.xlu0 %3603 }
 0x3f6   : > { %7648 = vmatprep.mubr.bf16.mxu1 %v3115_v31 }
 0x3f7   : > { %7649 = vmatmul.mubr.bf16.gmra.mrb[124].mxu1 %v3116_v24 }
 0x3f8   : > { %7668 = vmatprep.mubr.msk.bf16.mxu1 %vm12586_vm14, %v3255_v17  ;;  %v3269_v0 = vpop.permute.xlu1 %3268  ;;  %vm12593_vm14 = vmmov %vm12567_vm0 }
 0x3fa   : > { %7667 = vmatpush3.bf16.xpose.msra.mxu1 %v3340_v35 }
 0x3fb   : > { %7748 = vmatprep.subr.bf16.mxu1 %v9992_v46 }
 0x3fc   : > { %v3602_v61 = vpop.permute.xlu1 %3601 }
 0x3fd   : > { %7686 = vmatprep.subr.bf16.mxu0 %v3602_v61 }
 0x3fe   : > { %7687 = vmatpush3.bf16.msra.mxu0 %v3602_v61 }
 0x3ff   : > { %7688 = vmatprep.subr.bf16.mxu0 %v3604_v3 }
 0x400   : > { %v3606_v21 = vpop.permute.xlu1 %3605 }
 0x401   : > { %7669 = vmatmul.mubr.msk.bf16.vlgmr.msra.gmra.mrb[128].mxu1 %vm12588_vm12, %v3257_v53  ;;  %vm12611_vm12 = vnez %v12555_v40 }
 0x402   : > { %7672 = vmatprep.mubr.msk.bf16.mxu1 %vm12567_vm0, %v3259_v9  ;;  %7689 = vmatpush3.bf16.msra.mxu0 %v3604_v3  ;;  %vm12612_vm0 = vnez %v12528_v37 }
 0x403   : > { %7749 = vmatpush3.bf16.msra.mxu1 %v9992_v46  ;;  %7690 = vmatprep.subr.bf16.mxu0 %v3606_v21 }
 0x404   : > { %7750 = vmatprep.subr.bf16.mxu1 %v10002_v32  ;;  %v3608_v16 = vpop.permute.xlu1 %3607 }
 0x406   : > { %7691 = vmatpush3.bf16.msra.mxu0 %v3606_v21 }
 0x407   : > { %7751 = vmatpush3.bf16.msra.mxu1 %v10002_v32  ;;  %7692 = vmatprep.subr.bf16.mxu0 %v3608_v16 }
 0x408   : > { %7752 = vmatprep.subr.bf16.mxu1 %v10012_v19  ;;  %v3610_v17 = vpop.permute.xlu1 %3609 }
 0x409   : > { %7673 = vmatmul.mubr.msk.bf16.gmra.mrb[132].mxu1 %vm12589_vm6, %v3261_v12  ;;  %vm12613_vm6 = vnez %v12552_v30 }
 0x40a   : > { %7676 = vmatprep.mubr.msk.bf16.mxu1 %vm12590_vm7, %v3263_v22  ;;  %7693 = vmatpush3.bf16.msra.mxu0 %v3608_v16  ;;  %vm12614_vm7 = vnez %v12531_v2 }
 0x40b   : > { %7753 = vmatpush3.bf16.msra.mxu1 %v10012_v19  ;;  %7694 = vmatprep.subr.bf16.mxu0 %v3610_v17 }
 0x40c   : > { %7754 = vmatprep.subr.bf16.mxu1 %v10022_v54 }
 0x40e   : > { %7695 = vmatpush3.bf16.msra.mxu0 %v3610_v17 }
 0x40f   : > { %7755 = vmatpush3.bf16.msra.mxu1 %v10022_v54 }
 0x410   : > { %7756 = vmatprep.subr.bf16.mxu1 %v10030_v29 }
 0x411   : > { %7677 = vmatmul.mubr.msk.bf16.gmra.mrb[136].mxu1 %vm12591_vm8, %v3265_v63  ;;  %vm12615_vm8 = vnez %v12540_v33 }
 0x412   : > { %7680 = vmatprep.mubr.msk.bf16.mxu1 %vm12592_vm11, %v3267_v55 }
 0x413   : > { %7757 = vmatpush3.bf16.msra.mxu1 %v10030_v29 }
 0x414   : > { %7758 = vmatprep.subr.bf16.mxu1 %v10036_v45 }
 0x417   : > { %7759 = vmatpush3.bf16.msra.mxu1 %v10036_v45 }
 0x418   : > { %7760 = vmatprep.subr.bf16.mxu1 %v10042_v36 }
 0x419   : > { %7681 = vmatmul.mubr.msk.bf16.gmra.mrb[140].mxu1 %vm12593_vm14, %v3269_v0 }
 0x41b   : > { %7761 = vmatpush3.bf16.msra.mxu1 %v10042_v36 }
 0x41c   : > { %7762 = vmatprep.subr.bf16.mxu1 %v10048_v1 }
 0x41f   : > { %7763 = vmatpush3.bf16.msra.mxu1 %v10048_v1 }
 0x47a   : > { %v10410_v48 = vpop.f32.mrb[112].mxu1 }
 0x47b   : > { %12594 = vst [vmem:[#allocation86_spill] sm:$0xff] %v10410_v48  ;;  %v10412_v9 = vpop.f32.mrb[113].mxu1 }
 0x47c   : > { %12595 = vst [vmem:[#allocation87_spill] sm:$0xff] %v10412_v9  ;;  %v10414_v23 = vpop.f32.mrb[114].mxu1 }
 0x47d   : > { %12596 = vst [vmem:[#allocation88_spill] sm:$0xff] %v10414_v23  ;;  %v10416_v49 = vpop.f32.mrb[115].mxu1 }
 0x47e   : > { %12597 = vst [vmem:[#allocation89_spill] sm:$0xff] %v10416_v49 }
 0x4b6   : > { %v10418_v26 = vpop.f32.mrb[116].mxu1 }
 0x4b7   : > { %12598 = vst [vmem:[#allocation90_spill] sm:$0xff] %v10418_v26  ;;  %v10420_v11 = vpop.f32.mrb[117].mxu1  ;;  %v12622_v26 = vld [vmem:[#allocation32_spill] sm:$0xff] }
 0x4b8   : > { %12599 = vst [vmem:[#allocation91_spill] sm:$0xff] %v10420_v11  ;;  %v10422_v22 = vpop.f32.mrb[118].mxu1 }
 0x4b9   : > { %12600 = vst [vmem:[#allocation92_spill] sm:$0xff] %v10422_v22  ;;  %v10424_v59 = vpop.f32.mrb[119].mxu1 }
 0x4ba   : > { %12601 = vst [vmem:[#allocation93_spill] sm:$0xff] %v10424_v59 }
 0x4be   : > { %v10426_v53 = vpop.f32.mrb[120].mxu1 }
 0x4bf   : > { %12602 = vst [vmem:[#allocation94_spill] sm:$0xff] %v10426_v53  ;;  %v10428_v55 = vpop.f32.mrb[121].mxu1 }
 0x4c0   : > { %12603 = vst [vmem:[#allocation95_spill] sm:$0xff] %v10428_v55  ;;  %v10430_v12 = vpop.f32.mrb[122].mxu1 }
 0x4c1   : > { %12604 = vst [vmem:[#allocation96_spill] sm:$0xff] %v10430_v12  ;;  %v10432_v4 = vpop.f32.mrb[123].mxu1 }
 0x4c2   : > { %12605 = vst [vmem:[#allocation97_spill] sm:$0xff] %v10432_v4 }
 0x4ca   : > { %v10434_v62 = vpop.f32.mrb[124].mxu1 }
 0x4cb   : > { %12606 = vst [vmem:[#allocation98_spill] sm:$0xff] %v10434_v62  ;;  %v10436_v63 = vpop.f32.mrb[125].mxu1 }
 0x4cc   : > { %12607 = vst [vmem:[#allocation99_spill] sm:$0xff] %v10436_v63  ;;  %v10438_v31 = vpop.f32.mrb[126].mxu1 }
 0x4cd   : > { %12608 = vst [vmem:[#allocation100_spill] sm:$0xff] %v10438_v31  ;;  %v10440_v24 = vpop.f32.mrb[127].mxu1 }
 0x4ce   : > { %12609 = vst [vmem:[#allocation101_spill] sm:$0xff] %v10440_v24 }
 0x4d4   : > { %v7670_v0 = vpop.f32.mrb[128].mxu1 }
 0x4d5   : > { %v3376_v35 = vpop.f32.mrb[129].mxu1  ;;  %v3441_v61 = vsel %vm10094_vm1, %v7670_v0, -inf }
 0x4d6   : > { %3459 = vmax.xlane.f32.xlu0 %v3441_v61  ;;  %v7671_v3 = vpop.f32.mrb[130].mxu1  ;;  %v3439_v17 = vsel %vm10101_vm2, %v3376_v35, -inf }
 0x4d7   : > { %v3379_v21 = vpop.f32.mrb[131].mxu1  ;;  %v3442_v62 = vsel %vm10116_vm3, %v7671_v3, -inf }
 0x4d8   : > { %v3440_v16 = vsel %vm10122_vm4, %v3379_v21, -inf }
 0x4d9   : > { %3457 = vmax.xlane.f32.xlu1 %v3440_v16 }
 0x4da   : > { %3455 = vmax.xlane.f32.xlu0 %v3439_v17 }
 0x4dc   : > { %v7674_v47 = vpop.f32.mrb[132].mxu1 }
 0x4dd   : > { %v3392_v31 = vpop.f32.mrb[133].mxu1 }
 0x4de   : > { %3461 = vmax.xlane.f32.xlu0 %v3442_v62  ;;  %v7675_v24 = vpop.f32.mrb[134].mxu1 }
 0x4df   : > { %v3395_v63 = vpop.f32.mrb[135].mxu1 }
 0x4e0   : > { %v10456_v3 = vsel %vm10186_vm9, %v3395_v63, -inf  ;;  %v10476_v63 = vsel %vm12610_vm15, %v7674_v47, -inf }
 0x4e4   : > { %v7678_v0 = vpop.f32.mrb[136].mxu1 }
 0x4e5   : > { %v3408_v12 = vpop.f32.mrb[137].mxu1 }
 0x4e6   : > { %v7679_v53 = vpop.f32.mrb[138].mxu1  ;;  %v10496_v47 = vsel %vm12614_vm7, %v3408_v12, -inf  ;;  %v12620_v12 = vld [vmem:[#allocation29_spill] sm:$0xff] }
 0x4e7   : > { %v3411_v13 = vpop.f32.mrb[139].mxu1 }
 0x4e8   : > { %v10461_v55 = vsel %vm10193_vm10, %v3411_v13, -inf }
 0x4ea   : > { %3613 = vrot.lane.b32.xlu1 %v10046_v7, %s9317_s21  ;;  %v10466_v7 = vsel %vm10143_vm5, %v3392_v31, -inf  ;;  %v10486_v31 = vsel %vm12612_vm0, %v7675_v24, -inf  ;;  %v12616_v24 = vld [vmem:[#allocation67_spill] sm:$0xff] }
 0x4eb   : > { %vm12617_vm11 = vnez %v12616_v24 }
 0x4ec   : > { %v7682_v21 = vpop.f32.mrb[140].mxu1 }
 0x4ed   : > { %v3424_v51 = vpop.f32.mrb[141].mxu1 }
 0x4ee   : > { %v7683_v4 = vpop.f32.mrb[142].mxu1  ;;  %v10506_v14 = vsel %vm12617_vm11, %v3424_v51, -inf }
 0x4ef   : > { %v3427_v35 = vpop.f32.mrb[143].mxu1 }
 0x4f0   : > { %v10481_v13 = vsel %vm12611_vm12, %v3427_v35, -inf  ;;  %v10501_v35 = vsel %vm12615_vm8, %v7678_v0, -inf  ;;  %v12621_v0 = vld [vmem:[#allocation26_spill] sm:$0xff]  ;;  %vm12624_vm12 = vcmask 523264  }
 0x4f4   : > { %3611 = vrot.lane.b32.xlu0 %v10040_v25, %s9317_s21  ;;  %v10471_v25 = vsel %vm10229_vm13, %v7679_v53, -inf  ;;  %v10491_v53 = vsel %vm12613_vm6, %v7683_v4, -inf  ;;  %v12618_v4 = vld [vmem:[#allocation65_spill] sm:$0xff]  ;;  %vm12626_vm6 = vmmov %vm12624_vm12 }
 0x4f5   : > { %vm12619_vm14 = vnez %v12618_v4  ;;  %vm12627_vm11 = vmmov %vm12626_vm6 }
 0x4f6   : > { %v10511_v60 = vsel %vm12619_vm14, %v7682_v21, -inf  ;;  %vm12629_vm13 = vmmov %vm12626_vm6 }
 0x4f7   : > { %vm12630_vm8 = vmmov %vm12626_vm6 }
 0x4f8   : > { %vm12632_vm14 = vmmov %vm12626_vm6 }
 0x4f9   : > { %vm12665_vm9 = vmmov %vm12626_vm6 }
 0x50e   : > { %3465 = vmax.xlane.f32.xlu1 %v10456_v3 }
 0x512   : > { %3473 = vmax.xlane.f32.xlu1 %v10461_v55 }
 0x513   : > { %3463 = vmax.xlane.f32.xlu0 %v10466_v7 }
 0x516   : > { %3477 = vmax.xlane.f32.xlu1 %v10471_v25 }
 0x517   : > { %3467 = vmax.xlane.f32.xlu0 %v10476_v63 }
 0x51a   : > { %3481 = vmax.xlane.f32.xlu1 %v10481_v13 }
 0x51b   : > { %3469 = vmax.xlane.f32.xlu0 %v10486_v31 }
 0x51e   : > { %3485 = vmax.xlane.f32.xlu1 %v10491_v53 }
 0x51f   : > { %3471 = vmax.xlane.f32.xlu0 %v10496_v47 }
 0x523   : > { %3475 = vmax.xlane.f32.xlu0 %v10501_v35 }
 0x527   : > { %3479 = vmax.xlane.f32.xlu0 %v10506_v14 }
 0x52b   : > { %3483 = vmax.xlane.f32.xlu0 %v10511_v60 }
 0x52f   : > { %4269 = vrot.lane.b32.xlu1 %v12620_v12, %s9317_s21 }
 0x541   : > { %4267 = vrot.lane.b32.xlu0 %v12621_v0, %s9317_s21 }
 0x545   : > { %4271 = vrot.lane.b32.xlu0 %v12622_v26, %s9317_s21 }
 0x563   : > { %v3460_v22 = vpop.xlane.xlu0 %3459 }
 0x564   : > { %v3489_v15 = vsub.f32 %v3441_v61, %v3460_v22 }
 0x566   : > { %v3458_v51 = vpop.xlane.xlu1 %3457  ;;  %v3507_v23 = vmul.f32 1.442695, %v3489_v15 }
 0x567   : > { %v3488_v11 = vsub.f32 %v3440_v16, %v3458_v51  ;;  %v3456_v59 = vpop.xlane.xlu0 %3455  ;;  %v12636_v16 = vld [vmem:[#allocation39_spill] sm:$0xff] }
 0x568   : > { %v3487_v18 = vsub.f32 %v3439_v17, %v3456_v59 }
 0x569   : > { %v3505_v48 = vmul.f32 1.442695, %v3488_v11  ;;  %v12633_v11 = vld [vmem:[#allocation37_spill] sm:$0xff] }
 0x56a   : > { %v3503_v21 = vmul.f32 1.442695, %v3487_v18  ;;  %v3614_v56 = vpop.permute.xlu1 %3613 }
 0x56b   : > { %8781 = vpow2.f32 %v3505_v48  ;;  %v3462_v9 = vpop.xlane.xlu0 %3461 }
 0x56c   : > { %8783 = vpow2.f32 %v3503_v21  ;;  %v3490_v49 = vsub.f32 %v3442_v62, %v3462_v9  ;;  %v3840_v9 = vsel %vm12630_vm8, %v12622_v26, 0  ;;  %vm12638_vm8 = vmmov %vm12626_vm6 }
 0x56d   : > { %8785 = vpow2.f32 %v3507_v23  ;;  %v12631_v23 = vld [vmem:[#allocation35_spill] sm:$0xff] }
 0x56e   : > { %v3509_v38 = vmul.f32 1.442695, %v3490_v49  ;;  %v3843_v49 = vsel %vm12626_vm6, %v12631_v23, 0 }
 0x56f   : > { %v3612_v28 = vpop.permute.xlu0 %3611 }
 0x570   : > { %8787 = vpow2.f32 %v3509_v38  ;;  %7696 = vmatprep.subr.bf16.mxu0 %v3612_v28 }
 0x571   : > { %7697 = vmatpush3.bf16.msra.mxu0 %v3612_v28 }
 0x572   : > { %7698 = vmatprep.subr.bf16.mxu0 %v3614_v56 }
 0x575   : > { %v10520_v50 = vpop.eup %8781  ;;  %7699 = vmatpush3.bf16.msra.mxu0 %v3614_v56  ;;  %v3834_v56 = vsel %vm12626_vm6, %v12621_v0, 0 }
 0x576   : > { %v10522_v22 = vpop.eup %8783  ;;  %8228 = vmatprep.subr.msk.bf16.mxu0 %vm12624_vm12, %v12621_v0  ;;  %vm12628_vm12 = vmmov %vm12626_vm6 }
 0x577   : > { %12623 = vst [vmem:[#allocation29_spill] sm:$0xff] %v10522_v22  ;;  %v3583_v18 = vpack.c.bf16 %v10520_v50, %v10522_v22  ;;  %v10528_v15 = vpop.eup %8785  ;;  %v3837_v38 = vsel %vm12628_vm12, %v12620_v12, 0  ;;  %vm12635_vm12 = vmmov %vm12626_vm6 }
 0x578   : > { %12625 = vst [vmem:[#allocation26_spill] sm:$0xff] %v10528_v15  ;;  %v3846_v61 = vsel %vm12635_vm12, %v12633_v11, 0  ;;  %vm12644_vm12 = vmmov %vm12626_vm6 }
 0x579   : > { %7700 = vmatprep.mubr.bf16.mxu0 %v3583_v18 }
 0x57a   : > { %v10530_v48 = vpop.eup %8787 }
 0x57b   : > { %v3584_v28 = vpack.c.bf16 %v10530_v48, %v10528_v15 }
 0x57d   : > { %7701 = vmatmul.mubr.bf16.vlgmr.msra.gmra.mrb[112].mxu0 %v3584_v28 }
 0x57e   : > { %7717 = vmatpush3.bf16.xpose.msra.mxu0 %v3834_v56  ;;  %v12639_v56 = vld [vmem:[#allocation41_spill] sm:$0xff] }
 0x57f   : > { %8229 = vmatprep.subr.msk.bf16.mxu0 %vm12627_vm11, %v12620_v12  ;;  %vm12634_vm11 = vmmov %vm12626_vm6 }
 0x586   : > { %7719 = vmatpush3.bf16.xpose.msra.mxu0 %v3837_v38 }
 0x587   : > { %8230 = vmatprep.subr.msk.bf16.mxu0 %vm12629_vm13, %v12622_v26  ;;  %vm12637_vm13 = vmmov %vm12626_vm6 }
 0x58e   : > { %7721 = vmatpush3.bf16.xpose.msra.mxu0 %v3840_v9 }
 0x58f   : > { %8231 = vmatprep.subr.msk.bf16.mxu0 %vm12632_vm14, %v12631_v23  ;;  %vm12640_vm14 = vmmov %vm12626_vm6 }
 0x596   : > { %7723 = vmatpush3.bf16.xpose.msra.mxu0 %v3843_v49 }
 0x597   : > { %8232 = vmatprep.subr.msk.bf16.mxu0 %vm12634_vm11, %v12633_v11  ;;  %vm12643_vm11 = vmmov %vm12626_vm6 }
 0x59b   : > { %v3466_v59 = vpop.xlane.xlu1 %3465 }
 0x59c   : > { %v3492_v62 = vsub.f32 %v10456_v3, %v3466_v59  ;;  %v3849_v3 = vsel %vm12638_vm8, %v12636_v16, 0  ;;  %vm12654_vm8 = vmmov %vm12626_vm6 }
 0x59e   : > { %7725 = vmatpush3.bf16.xpose.msra.mxu0 %v3846_v61  ;;  %v3513_v17 = vmul.f32 1.442695, %v3492_v62 }
 0x59f   : > { %8233 = vmatprep.subr.msk.bf16.mxu0 %vm12637_vm13, %v12636_v16  ;;  %v3474_v26 = vpop.xlane.xlu1 %3473  ;;  %vm12647_vm13 = vmmov %vm12626_vm6 }
 0x5a0   : > { %v3464_v12 = vpop.xlane.xlu0 %3463  ;;  %8789 = vpow2.f32 %v3513_v17  ;;  %v3496_v38 = vsub.f32 %v10461_v55, %v3474_v26 }
 0x5a1   : > { %v3491_v0 = vsub.f32 %v10466_v7, %v3464_v12 }
 0x5a2   : > { %v3521_v61 = vmul.f32 1.442695, %v3496_v38 }
 0x5a3   : > { %v3511_v51 = vmul.f32 1.442695, %v3491_v0  ;;  %v3478_v18 = vpop.xlane.xlu1 %3477  ;;  %v3852_v0 = vsel %vm12626_vm6, %v12639_v56, 0 }
 0x5a4   : > { %v3468_v21 = vpop.xlane.xlu0 %3467  ;;  %v3498_v17 = vsub.f32 %v10471_v25, %v3478_v18 }
 0x5a5   : > { %8791 = vpow2.f32 %v3511_v51  ;;  %v3493_v28 = vsub.f32 %v10476_v63, %v3468_v21 }
 0x5a6   : > { %7727 = vmatpush3.bf16.xpose.msra.mxu0 %v3849_v3  ;;  %v3525_v21 = vmul.f32 1.442695, %v3498_v17 }
 0x5a7   : > { %8234 = vmatprep.subr.msk.bf16.mxu0 %vm12640_vm14, %v12639_v56  ;;  %v3515_v9 = vmul.f32 1.442695, %v3493_v28  ;;  %v3482_v59 = vpop.xlane.xlu1 %3481  ;;  %vm12656_vm14 = vmmov %vm12626_vm6 }
 0x5a8   : > { %v3470_v49 = vpop.xlane.xlu0 %3469  ;;  %v3500_v25 = vsub.f32 %v10481_v13, %v3482_v59 }
 0x5a9   : > { %v3494_v7 = vsub.f32 %v10486_v31, %v3470_v49  ;;  %8793 = vpow2.f32 %v3515_v9  ;;  %v12642_v31 = vld [vmem:[#allocation43_spill] sm:$0xff] }
 0x5aa   : > { %v10567_v51 = vpop.eup %8789  ;;  %v3529_v9 = vmul.f32 1.442695, %v3500_v25  ;;  %v3855_v13 = vsel %vm12644_vm12, %v12642_v31, 0  ;;  %vm12661_vm12 = vmmov %vm12626_vm6 }
 0x5ab   : > { %v3517_v62 = vmul.f32 1.442695, %v3494_v7  ;;  %v3486_v28 = vpop.xlane.xlu1 %3485 }
 0x5ac   : > { %v3472_v63 = vpop.xlane.xlu0 %3471  ;;  %v3502_v49 = vsub.f32 %v10491_v53, %v3486_v28 }
 0x5ad   : > { %8795 = vpow2.f32 %v3517_v62  ;;  %v3495_v12 = vsub.f32 %v10496_v47, %v3472_v63 }
 0x5ae   : > { %7729 = vmatpush3.bf16.xpose.msra.mxu0 %v3852_v0  ;;  %8797 = vpow2.f32 %v3521_v61 }
 0x5af   : > { %v10569_v55 = vpop.eup %8791  ;;  %v3519_v26 = vmul.f32 1.442695, %v3495_v12  ;;  %8235 = vmatprep.subr.msk.bf16.mxu0 %vm12643_vm11, %v12642_v31  ;;  %vm12659_vm11 = vmmov %vm12626_vm6 }
 0x5b0   : > { %12641 = vst [vmem:[#allocation32_spill] sm:$0xff] %v10569_v55  ;;  %v3476_v18 = vpop.xlane.xlu0 %3475  ;;  %v3585_v47 = vpack.c.bf16 %v10567_v51, %v10569_v55 }
 0x5b1   : > { %8799 = vpow2.f32 %v3519_v26  ;;  %v3497_v3 = vsub.f32 %v10501_v35, %v3476_v18  ;;  %v3533_v35 = vmul.f32 1.442695, %v3502_v49 }
 0x5b2   : > { %7704 = vmatprep.mubr.bf16.mxu0 %v3585_v47  ;;  %8801 = vpow2.f32 %v3525_v21 }
 0x5b3   : > { %v3523_v38 = vmul.f32 1.442695, %v3497_v3  ;;  %v10581_v59 = vpop.eup %8793 }
 0x5b4   : > { %v3480_v7 = vpop.xlane.xlu0 %3479  ;;  %12645 = vst [vmem:[#allocation35_spill] sm:$0xff] %v10581_v59 }
 0x5b5   : > { %8803 = vpow2.f32 %v3523_v38  ;;  %v3499_v62 = vsub.f32 %v10506_v14, %v3480_v7 }
 0x5b6   : > { %7731 = vmatpush3.bf16.xpose.msra.mxu0 %v3855_v13  ;;  %8805 = vpow2.f32 %v3529_v9  ;;  %v12655_v13 = vld [vmem:[#allocation14_spill] sm:$0xff] }
 0x5b7   : > { %v10583_v61 = vpop.eup %8795  ;;  %v3527_v17 = vmul.f32 1.442695, %v3499_v62  ;;  %v12653_v62 = vld [vmem:[#allocation13_spill] sm:$0xff] }
 0x5b8   : > { %v3484_v63 = vpop.xlane.xlu0 %3483  ;;  %v3586_v12 = vpack.c.bf16 %v10583_v61, %v10581_v59  ;;  %v10588_v0 = vpop.eup %8797 }
 0x5b9   : > { %8807 = vpow2.f32 %v3527_v17  ;;  %v3501_v53 = vsub.f32 %v10511_v60, %v3484_v63  ;;  %v12657_v17 = vld [vmem:[#allocation15_spill] sm:$0xff]  ;;  %v12660_v63 = vld [vmem:[#allocation17_spill] sm:$0xff] }
 0x5ba   : > { %7705 = vmatmul.mubr.bf16.gmra.mrb[116].mxu0 %v3586_v12  ;;  %8809 = vpow2.f32 %v3533_v35  ;;  %v12658_v35 = vld [vmem:[#allocation16_spill] sm:$0xff]  ;;  %v12662_v12 = vld [vmem:[#allocation18_spill] sm:$0xff] }
 0x5bb   : > { %v10590_v14 = vpop.eup %8799  ;;  %v3531_v26 = vmul.f32 1.442695, %v3501_v53  ;;  %v12664_v53 = vld [vmem:[#allocation19_spill] sm:$0xff] }
 0x5bc   : > { %12646 = vst [vmem:[#allocation37_spill] sm:$0xff] %v10590_v14  ;;  %v10592_v21 = vpop.permute.xlu0 %4267  ;;  %v3587_v25 = vpack.c.bf16 %v10588_v0, %v10590_v14  ;;  %v10598_v18 = vpop.eup %8801 }
 0x5bd   : > { %8811 = vpow2.f32 %v3531_v26  ;;  %8236 = vmatprep.subr.msk.bf16.mxu1 %vm12647_vm13, %v10592_v21  ;;  %vm12663_vm13 = vmmov %vm12626_vm6  ;;  %v12666_v26 = vld [vmem:[#allocation20_spill] sm:$0xff] }
 0x5be   : > { %7708 = vmatprep.mubr.bf16.mxu0 %v3587_v25 }
 0x5bf   : > { %v10600_v60 = vpop.eup %8803 }
 0x5c0   : > { %12648 = vst [vmem:[#allocation39_spill] sm:$0xff] %v10600_v60  ;;  %v3588_v47 = vpack.c.bf16 %v10598_v18, %v10600_v60  ;;  %v10604_v28 = vpop.eup %8805 }
 0x5c1   : > { %12649 = vst [vmem:[#allocation41_spill] sm:$0xff] %v10604_v28 }
 0x5c2   : > { %7709 = vmatmul.mubr.bf16.gmra.mrb[120].mxu0 %v3588_v47 }
 0x5c3   : > { %v10606_v3 = vpop.eup %8807 }
 0x5c4   : > { %12650 = vst [vmem:[#allocation43_spill] sm:$0xff] %v10606_v3  ;;  %v3589_v38 = vpack.c.bf16 %v10604_v28, %v10606_v3  ;;  %v10610_v9 = vpop.eup %8809 }
 0x5c5   : > { %12651 = vst [vmem:[#allocation102_spill] sm:$0xff] %v10610_v9 }
 0x5c6   : > { %7712 = vmatprep.mubr.bf16.mxu0 %v3589_v38 }
 0x5c7   : > { %v10612_v49 = vpop.eup %8811 }
 0x5c8   : > { %12652 = vst [vmem:[#allocation103_spill] sm:$0xff] %v10612_v49  ;;  %v3590_v7 = vpack.c.bf16 %v10610_v9, %v10612_v49 }
 0x5ca   : > { %7713 = vmatmul.mubr.bf16.gmra.mrb[124].mxu0 %v3590_v7 }
 0x5cb   : > { %7732 = vmatprep.mubr.msk.bf16.mxu0 %vm12654_vm8, %v12653_v62  ;;  %vm12667_vm8 = vmmov %vm12626_vm6 }
 0x5d2   : > { %7733 = vmatmul.mubr.msk.bf16.vlgmr.msra.gmra.mrb[128].mxu0 %vm12656_vm14, %v12655_v13  ;;  %vm12685_vm14 = vnez %v12618_v4 }
 0x5d3   : > { %7736 = vmatprep.mubr.msk.bf16.mxu0 %vm12626_vm6, %v12657_v17  ;;  %vm12686_vm6 = vnez %v12540_v33 }
 0x5da   : > { %7737 = vmatmul.mubr.msk.bf16.gmra.mrb[132].mxu0 %vm12659_vm11, %v12658_v35  ;;  %vm12687_vm11 = vnez %v12546_v41 }
 0x5db   : > { %7740 = vmatprep.mubr.msk.bf16.mxu0 %vm12661_vm12, %v12660_v63  ;;  %vm12688_vm12 = vnez %v12616_v24 }
 0x5e2   : > { %7741 = vmatmul.mubr.msk.bf16.gmra.mrb[136].mxu0 %vm12663_vm13, %v12662_v12  ;;  %vm12689_vm13 = vnez %v12552_v30 }
 0x5e3   : > { %7744 = vmatprep.mubr.msk.bf16.mxu0 %vm12665_vm9, %v12664_v53  ;;  %vm12684_vm9 = vnez %v12534_v27 }
 0x5ea   : > { %7745 = vmatmul.mubr.msk.bf16.gmra.mrb[140].mxu0 %vm12667_vm8, %v12666_v26  ;;  %vm12690_vm8 = vnez %v12555_v40 }
 0x650   : > { %v10632_v25 = vpop.f32.mrb[112].mxu0 }
 0x651   : > { %12668 = vst [vmem:[#allocation13_spill] sm:$0xff] %v10632_v25  ;;  %v10634_v47 = vpop.f32.mrb[113].mxu0 }
 0x652   : > { %12669 = vst [vmem:[#allocation14_spill] sm:$0xff] %v10634_v47  ;;  %v10636_v38 = vpop.f32.mrb[114].mxu0 }
 0x653   : > { %12670 = vst [vmem:[#allocation15_spill] sm:$0xff] %v10636_v38  ;;  %v10638_v7 = vpop.f32.mrb[115].mxu0 }
 0x654   : > { %12671 = vst [vmem:[#allocation16_spill] sm:$0xff] %v10638_v7 }
 0x68d   : > { %v10640_v43 = vpop.f32.mrb[116].mxu0 }
 0x68e   : > { %12672 = vst [vmem:[#allocation17_spill] sm:$0xff] %v10640_v43  ;;  %v10642_v5 = vpop.f32.mrb[117].mxu0 }
 0x68f   : > { %12673 = vst [vmem:[#allocation18_spill] sm:$0xff] %v10642_v5  ;;  %v10644_v49 = vpop.f32.mrb[118].mxu0 }
 0x690   : > { %12674 = vst [vmem:[#allocation19_spill] sm:$0xff] %v10644_v49  ;;  %v10646_v3 = vpop.f32.mrb[119].mxu0 }
 0x691   : > { %12675 = vst [vmem:[#allocation20_spill] sm:$0xff] %v10646_v3 }
 0x695   : > { %v10648_v60 = vpop.f32.mrb[120].mxu0 }
 0x696   : > { %12676 = vst [vmem:[#allocation104_spill] sm:$0xff] %v10648_v60  ;;  %v10650_v14 = vpop.f32.mrb[121].mxu0 }
 0x697   : > { %12677 = vst [vmem:[#allocation105_spill] sm:$0xff] %v10650_v14  ;;  %v10652_v52 = vpop.f32.mrb[122].mxu0 }
 0x698   : > { %12678 = vst [vmem:[#allocation106_spill] sm:$0xff] %v10652_v52  ;;  %v10654_v25 = vpop.f32.mrb[123].mxu0 }
 0x699   : > { %12679 = vst [vmem:[#allocation107_spill] sm:$0xff] %v10654_v25 }
 0x69d   : > { %v10656_v47 = vpop.f32.mrb[124].mxu0 }
 0x69e   : > { %12680 = vst [vmem:[#allocation108_spill] sm:$0xff] %v10656_v47  ;;  %v10658_v38 = vpop.f32.mrb[125].mxu0 }
 0x69f   : > { %12681 = vst [vmem:[#allocation109_spill] sm:$0xff] %v10658_v38  ;;  %v10660_v7 = vpop.f32.mrb[126].mxu0 }
 0x6a0   : > { %12682 = vst [vmem:[#allocation110_spill] sm:$0xff] %v10660_v7  ;;  %v10662_v43 = vpop.f32.mrb[127].mxu0 }
 0x6a1   : > { %12683 = vst [vmem:[#allocation111_spill] sm:$0xff] %v10662_v43 }
 0x6a5   : > { %v7734_v5 = vpop.f32.mrb[128].mxu0 }
 0x6a6   : > { %v3891_v49 = vpop.f32.mrb[129].mxu0  ;;  %v10666_v3 = vsel %vm10094_vm1, %v7734_v5, -inf }
 0x6a7   : > { %3974 = vmax.xlane.f32.xlu0 %v10666_v3  ;;  %v7735_v60 = vpop.f32.mrb[130].mxu0  ;;  %v10676_v7 = vsel %vm10101_vm2, %v3891_v49, -inf }
 0x6a8   : > { %v3894_v52 = vpop.f32.mrb[131].mxu0  ;;  %v10671_v25 = vsel %vm10116_vm3, %v7735_v60, -inf }
 0x6a9   : > { %3976 = vmax.xlane.f32.xlu1 %v10671_v25  ;;  %v10681_v5 = vsel %vm10122_vm4, %v3894_v52, -inf }
 0x6ab   : > { %3970 = vmax.xlane.f32.xlu0 %v10676_v7 }
 0x6ad   : > { %3972 = vmax.xlane.f32.xlu1 %v10681_v5  ;;  %v7738_v47 = vpop.f32.mrb[132].mxu0 }
 0x6ae   : > { %v3907_v43 = vpop.f32.mrb[133].mxu0  ;;  %v10690_v52 = vsel %vm12610_vm15, %v7738_v47, -inf }
 0x6af   : > { %v7739_v38 = vpop.f32.mrb[134].mxu0  ;;  %v10695_v15 = vsel %vm10143_vm5, %v3907_v43, -inf }
 0x6b0   : > { %v3910_v14 = vpop.f32.mrb[135].mxu0 }
 0x6b1   : > { %v10715_v43 = vsel %vm12684_vm9, %v3910_v14, -inf }
 0x6b5   : > { %v7742_v60 = vpop.f32.mrb[136].mxu0 }
 0x6b6   : > { %v3923_v39 = vpop.f32.mrb[137].mxu0 }
 0x6b7   : > { %v7743_v59 = vpop.f32.mrb[138].mxu0 }
 0x6b8   : > { %v3926_v58 = vpop.f32.mrb[139].mxu0 }
 0x6b9   : > { %v10710_v47 = vsel %vm10193_vm10, %v3926_v58, -inf  ;;  %v10730_v58 = vsel %vm12687_vm11, %v7743_v59, -inf }
 0x6bd   : > { %v7746_v44 = vpop.f32.mrb[140].mxu0 }
 0x6be   : > { %4273 = vrot.lane.b32.xlu1 %v12631_v23, %s9317_s21  ;;  %v3939_v49 = vpop.f32.mrb[141].mxu0  ;;  %v10700_v23 = vsel %vm12614_vm7, %v3923_v39, -inf  ;;  %v10720_v39 = vsel %vm12685_vm14, %v7746_v44, -inf  ;;  %vm12695_vm14 = vcmask 523264  }
 0x6bf   : > { %v7747_v55 = vpop.f32.mrb[142].mxu0  ;;  %v10735_v14 = vsel %vm12688_vm12, %v3939_v49, -inf  ;;  %vm12696_vm12 = vmmov %vm12695_vm14 }
 0x6c0   : > { %v3942_v9 = vpop.f32.mrb[143].mxu0  ;;  %v10740_v44 = vsel %vm12689_vm13, %v7747_v55, -inf }
 0x6c1   : > { %4275 = vrot.lane.b32.xlu0 %v12633_v11, %s9317_s21  ;;  %v10705_v11 = vsel %vm12612_vm0, %v7739_v38, -inf  ;;  %v10725_v38 = vsel %vm12686_vm6, %v7742_v60, -inf  ;;  %v10745_v60 = vsel %vm12690_vm8, %v3942_v9, -inf  ;;  %vm12697_vm6 = vmmov %vm12696_vm12 }
 0x6c2   : > { %vm12698_vm7 = vmmov %vm12697_vm6 }
 0x6c3   : > { %vm12699_vm13 = vmmov %vm12697_vm6 }
 0x6c4   : > { %vm12700_vm0 = vmmov %vm12697_vm6 }
 0x6c5   : > { %vm12701_vm8 = vmmov %vm12700_vm0 }
 0x6c6   : > { %vm12702_vm15 = vmmov %vm12700_vm0 }
 0x6e0   : > { %3982 = vmax.xlane.f32.xlu0 %v10690_v52 }
 0x6e2   : > { %3978 = vmax.xlane.f32.xlu1 %v10695_v15 }
 0x6e4   : > { %3986 = vmax.xlane.f32.xlu0 %v10700_v23 }
 0x6e6   : > { %3984 = vmax.xlane.f32.xlu1 %v10705_v11 }
 0x6e8   : > { %3988 = vmax.xlane.f32.xlu0 %v10710_v47 }
 0x6ea   : > { %3980 = vmax.xlane.f32.xlu1 %v10715_v43 }
 0x6ec   : > { %3998 = vmax.xlane.f32.xlu0 %v10720_v39 }
 0x6ee   : > { %3990 = vmax.xlane.f32.xlu1 %v10725_v38 }
 0x6f2   : > { %3992 = vmax.xlane.f32.xlu1 %v10730_v58 }
 0x6f6   : > { %3994 = vmax.xlane.f32.xlu1 %v10735_v14 }
 0x6fa   : > { %4000 = vmax.xlane.f32.xlu1 %v10740_v44 }
 0x6fe   : > { %3996 = vmax.xlane.f32.xlu1 %v10745_v60 }
 0x702   : > { %4279 = vrot.lane.b32.xlu0 %v12639_v56, %s9317_s21 }
 0x706   : > { %4281 = vrot.lane.b32.xlu0 %v12642_v31, %s9317_s21 }
 0x70a   : > { %4243 = vrot.lane.b32.xlu0 %v12653_v62, %s9317_s21 }
 0x70e   : > { %4247 = vrot.lane.b32.xlu0 %v12657_v17, %s9317_s21 }
 0x70f   : > { %4277 = vrot.lane.b32.xlu1 %v12636_v16, %s9317_s21  ;;  %v4270_v16 = vpop.permute.xlu1 %4269 }
 0x712   : > { %4251 = vrot.lane.b32.xlu0 %v12660_v63, %s9317_s21 }
 0x713   : > { %4245 = vrot.lane.b32.xlu1 %v12655_v13, %s9317_s21 }
 0x716   : > { %4255 = vrot.lane.b32.xlu0 %v12664_v53, %s9317_s21 }
 0x717   : > { %4249 = vrot.lane.b32.xlu1 %v12658_v35, %s9317_s21 }
 0x71a   : > { %4588 = vrot.lane.b32.xlu0 %v9992_v46, %s9317_s21  ;;  %v4272_v46 = vpop.permute.xlu0 %4271 }
 0x71b   : > { %4253 = vrot.lane.b32.xlu1 %v12662_v12, %s9317_s21 }
 0x71e   : > { %4592 = vrot.lane.b32.xlu0 %v10012_v19, %s9317_s21 }
 0x71f   : > { %4257 = vrot.lane.b32.xlu1 %v12666_v26, %s9317_s21  ;;  %v4308_v26 = vsel %vm12695_vm14, %v10592_v21, 0  ;;  %vm12703_vm14 = vmmov %vm12700_vm0 }
 0x723   : > { %4590 = vrot.lane.b32.xlu1 %v10002_v32, %s9317_s21 }
 0x727   : > { %4594 = vrot.lane.b32.xlu1 %v10022_v54, %s9317_s21 }
 0x72b   : > { %4596 = vrot.lane.b32.xlu1 %v10030_v29, %s9317_s21 }
 0x72f   : > { %4598 = vrot.lane.b32.xlu1 %v10036_v45, %s9317_s21 }
 0x734   : > { %v3975_v56 = vpop.xlane.xlu0 %3974 }
 0x735   : > { %v4004_v31 = vsub.f32 %v10666_v3, %v3975_v56 }
 0x736   : > { %v3977_v55 = vpop.xlane.xlu1 %3976 }
 0x737   : > { %v4005_v19 = vsub.f32 %v10671_v25, %v3977_v55  ;;  %v4022_v29 = vmul.f32 1.442695, %v4004_v31  ;;  %v4311_v25 = vsel %vm12697_vm6, %v4270_v16, 0  ;;  %vm12715_vm6 = vmmov %vm12700_vm0 }
 0x738   : > { %v3971_v59 = vpop.xlane.xlu0 %3970 }
 0x739   : > { %v4024_v9 = vmul.f32 1.442695, %v4005_v19  ;;  %v4002_v32 = vsub.f32 %v10676_v7, %v3971_v59  ;;  %v4314_v7 = vsel %vm12699_vm13, %v4272_v46, 0  ;;  %vm12720_vm13 = vmmov %vm12700_vm0 }
 0x73a   : > { %v3973_v62 = vpop.xlane.xlu1 %3972 }
 0x73b   : > { %v4018_v54 = vmul.f32 1.442695, %v4002_v32  ;;  %v4003_v13 = vsub.f32 %v10681_v5, %v3973_v62  ;;  %8813 = vpow2.f32 %v4024_v9 }
 0x73c   : > { %v4276_v56 = vpop.permute.xlu0 %4275 }
 0x73d   : > { %v4020_v17 = vmul.f32 1.442695, %v4003_v13  ;;  %8815 = vpow2.f32 %v4018_v54  ;;  %v4320_v55 = vsel %vm12703_vm14, %v4276_v56, 0  ;;  %vm12723_vm14 = vmmov %vm12700_vm0 }
 0x73e   : > { %v4274_v5 = vpop.permute.xlu1 %4273 }
 0x73f   : > { %8817 = vpow2.f32 %v4020_v17  ;;  %v4317_v49 = vsel %vm12701_vm8, %v4274_v5, 0  ;;  %vm12721_vm8 = vmmov %vm12700_vm0 }
 0x740   : > { %8819 = vpow2.f32 %v4022_v29 }
 0x745   : > { %v10786_v45 = vpop.eup %8813 }
 0x746   : > { %12691 = vst [vmem:[#allocation112_spill] sm:$0xff] %v10786_v45 }
 0x747   : > { %v10788_v35 = vpop.eup %8815 }
 0x748   : > { %12692 = vst [vmem:[#allocation113_spill] sm:$0xff] %v10788_v35 }
 0x749   : > { %v10790_v63 = vpop.eup %8817 }
 0x74a   : > { %12693 = vst [vmem:[#allocation114_spill] sm:$0xff] %v10790_v63  ;;  %v10792_v3 = vpop.eup %8819  ;;  %v4098_v12 = vpack.c.bf16 %v10790_v63, %v10788_v35  ;;  %v12771_v35 = vld [vmem:[#allocation44_spill] sm:$0xff] }
 0x74b   : > { %12694 = vst [vmem:[#allocation115_spill] sm:$0xff] %v10792_v3  ;;  %v4099_v53 = vpack.c.bf16 %v10786_v45, %v10792_v3  ;;  %v12770_v3 = vld [vmem:[#allocation42_spill] sm:$0xff] }
 0x74c   : > { %7764 = vmatprep.mubr.bf16.mxu1 %v4098_v12 }
 0x74d   : > { %7765 = vmatmul.mubr.bf16.vlgmr.msra.gmra.mrb[144].mxu1 %v4099_v53 }
 0x74e   : > { %7781 = vmatpush3.bf16.xpose.msra.mxu1 %v4308_v26 }
 0x74f   : > { %8237 = vmatprep.subr.msk.bf16.mxu1 %vm12696_vm12, %v4270_v16  ;;  %vm12718_vm12 = vmmov %vm12700_vm0 }
 0x756   : > { %7783 = vmatpush3.bf16.xpose.msra.mxu1 %v4311_v25 }
 0x757   : > { %8238 = vmatprep.subr.msk.bf16.mxu1 %vm12698_vm7, %v4272_v46  ;;  %vm12713_vm7 = vmmov %vm12700_vm0 }
 0x75e   : > { %7785 = vmatpush3.bf16.xpose.msra.mxu1 %v4314_v7 }
 0x75f   : > { %8239 = vmatprep.subr.msk.bf16.mxu1 %vm12700_vm0, %v4274_v5 }
 0x766   : > { %7787 = vmatpush3.bf16.xpose.msra.mxu1 %v4317_v49 }
 0x767   : > { %8240 = vmatprep.subr.msk.bf16.mxu1 %vm12702_vm15, %v4276_v56  ;;  %vm12712_vm15 = vmmov %vm12700_vm0 }
 0x76d   : > { %v3983_v21 = vpop.xlane.xlu0 %3982 }
 0x76e   : > { %7789 = vmatpush3.bf16.xpose.msra.mxu1 %v4320_v55  ;;  %v4008_v9 = vsub.f32 %v10690_v52, %v3983_v21 }
 0x76f   : > { %v3979_v16 = vpop.xlane.xlu1 %3978 }
 0x770   : > { %v4006_v19 = vsub.f32 %v10695_v15, %v3979_v16  ;;  %v4030_v26 = vmul.f32 1.442695, %v4008_v9 }
 0x771   : > { %v3987_v31 = vpop.xlane.xlu0 %3986 }
 0x772   : > { %v4026_v32 = vmul.f32 1.442695, %v4006_v19  ;;  %v4010_v54 = vsub.f32 %v10700_v23, %v3987_v31 }
 0x773   : > { %v3985_v59 = vpop.xlane.xlu1 %3984 }
 0x774   : > { %v4009_v46 = vsub.f32 %v10705_v11, %v3985_v59  ;;  %8821 = vpow2.f32 %v4026_v32  ;;  %v4034_v25 = vmul.f32 1.442695, %v4010_v54 }
 0x775   : > { %v3989_v62 = vpop.xlane.xlu0 %3988 }
 0x776   : > { %v4032_v13 = vmul.f32 1.442695, %v4009_v46  ;;  %v4011_v29 = vsub.f32 %v10710_v47, %v3989_v62 }
 0x777   : > { %v3981_v17 = vpop.xlane.xlu1 %3980 }
 0x778   : > { %v4036_v12 = vmul.f32 1.442695, %v4011_v29  ;;  %v4007_v53 = vsub.f32 %v10715_v43, %v3981_v17  ;;  %8823 = vpow2.f32 %v4032_v13 }
 0x779   : > { %v3999_v15 = vpop.xlane.xlu0 %3998 }
 0x77a   : > { %v4028_v7 = vmul.f32 1.442695, %v4007_v53  ;;  %8825 = vpow2.f32 %v4036_v12  ;;  %v4016_v13 = vsub.f32 %v10720_v39, %v3999_v15 }
 0x77b   : > { %v3991_v11 = vpop.xlane.xlu1 %3990 }
 0x77c   : > { %8827 = vpow2.f32 %v4028_v7  ;;  %v4012_v52 = vsub.f32 %v10725_v38, %v3991_v11 }
 0x77d   : > { %8829 = vpow2.f32 %v4030_v26  ;;  %v4280_v23 = vpop.permute.xlu0 %4279 }
 0x77e   : > { %8831 = vpow2.f32 %v4034_v25  ;;  %v4038_v5 = vmul.f32 1.442695, %v4012_v52  ;;  %v10818_v21 = vpop.eup %8821 }
 0x77f   : > { %v3993_v47 = vpop.xlane.xlu1 %3992  ;;  %12704 = vst [vmem:[#allocation116_spill] sm:$0xff] %v10818_v21 }
 0x780   : > { %v4013_v49 = vsub.f32 %v10730_v58, %v3993_v47  ;;  %8833 = vpow2.f32 %v4038_v5 }
 0x781   : > { %v10816_v56 = vpop.permute.xlu0 %4281 }
 0x782   : > { %v4040_v43 = vmul.f32 1.442695, %v4013_v49  ;;  %v10820_v16 = vpop.eup %8823 }
 0x783   : > { %v3995_v55 = vpop.xlane.xlu1 %3994  ;;  %12705 = vst [vmem:[#allocation117_spill] sm:$0xff] %v10820_v16 }
 0x784   : > { %8835 = vpow2.f32 %v4040_v43  ;;  %v10822_v19 = vpop.eup %8825  ;;  %v4014_v59 = vsub.f32 %v10735_v14, %v3995_v55 }
 0x785   : > { %12706 = vst [vmem:[#allocation118_spill] sm:$0xff] %v10822_v19  ;;  %v4244_v38 = vpop.permute.xlu0 %4243 }
 0x786   : > { %v10824_v31 = vpop.eup %8827  ;;  %v4042_v17 = vmul.f32 1.442695, %v4014_v59  ;;  %v4326_v59 = vsel %vm12715_vm6, %v4280_v23, 0  ;;  %vm12730_vm6 = vmmov %vm12700_vm0 }
 0x787   : > { %12707 = vst [vmem:[#allocation119_spill] sm:$0xff] %v10824_v31  ;;  %v10827_v46 = vpop.eup %8829  ;;  %v4001_v58 = vpop.xlane.xlu1 %4000  ;;  %v4100_v9 = vpack.c.bf16 %v10824_v31, %v10818_v21  ;;  %v12769_v21 = vld [vmem:[#allocation38_spill] sm:$0xff]  ;;  %v12774_v31 = vld [vmem:[#allocation25_spill] sm:$0xff] }
 0x788   : > { %12708 = vst [vmem:[#allocation120_spill] sm:$0xff] %v10827_v46  ;;  %v10831_v32 = vpop.eup %8831  ;;  %v4017_v62 = vsub.f32 %v10740_v44, %v4001_v58  ;;  %v4101_v54 = vpack.c.bf16 %v10820_v16, %v10827_v46  ;;  %v4046_v44 = vmul.f32 1.442695, %v4016_v13  ;;  %8837 = vpow2.f32 %v4042_v17  ;;  %v12768_v46 = vld [vmem:[#allocation34_spill] sm:$0xff]  ;;  %v12772_v16 = vld [vmem:[#allocation21_spill] sm:$0xff] }
 0x789   : > { %12709 = vst [vmem:[#allocation121_spill] sm:$0xff] %v10831_v32  ;;  %7768 = vmatprep.mubr.bf16.mxu1 %v4100_v9  ;;  %v4248_v29 = vpop.permute.xlu0 %4247  ;;  %v4102_v14 = vpack.c.bf16 %v10822_v19, %v10831_v32  ;;  %v4329_v17 = vsel %vm12721_vm8, %v10816_v56, 0  ;;  %vm12752_vm8 = vnez %v12525_v42  ;;  %v12766_v32 = vld [vmem:[#allocation28_spill] sm:$0xff]  ;;  %v12767_v19 = vld [vmem:[#allocation33_spill] sm:$0xff] }
 0x78a   : > { %7769 = vmatmul.mubr.bf16.gmra.mrb[148].mxu1 %v4101_v54  ;;  %v4048_v12 = vmul.f32 1.442695, %v4017_v62  ;;  %v10840_v25 = vpop.eup %8833 }
 0x78b   : > { %7772 = vmatprep.mubr.bf16.mxu1 %v4102_v14  ;;  %v3997_v53 = vpop.xlane.xlu1 %3996  ;;  %12710 = vst [vmem:[#allocation122_spill] sm:$0xff] %v10840_v25 }
 0x78c   : > { %v4015_v26 = vsub.f32 %v10745_v60, %v3997_v53  ;;  %8839 = vpow2.f32 %v4048_v12  ;;  %v12722_v12 = vld [vmem:[#allocation46_spill] sm:$0xff] }
 0x78d   : > { %v4252_v7 = vpop.permute.xlu0 %4251 }
 0x78e   : > { %v10842_v11 = vpop.eup %8835  ;;  %v4044_v39 = vmul.f32 1.442695, %v4015_v26 }
 0x78f   : > { %12711 = vst [vmem:[#allocation123_spill] sm:$0xff] %v10842_v11  ;;  %v4278_v15 = vpop.permute.xlu1 %4277  ;;  %v4103_v52 = vpack.c.bf16 %v10842_v11, %v10840_v25 }
 0x790   : > { %8841 = vpow2.f32 %v4044_v39  ;;  %8241 = vmatprep.subr.msk.bf16.mxu1 %vm12712_vm15, %v4278_v15  ;;  %v4323_v5 = vsel %vm12700_vm0, %v4278_v15, 0  ;;  %vm12724_vm15 = vmmov %vm12700_vm0  ;;  %v12726_v39 = vld [vmem:[#allocation48_spill] sm:$0xff] }
 0x791   : > { %8843 = vpow2.f32 %v4046_v44  ;;  %v4256_v60 = vpop.permute.xlu0 %4255  ;;  %7791 = vmatpush3.bf16.xpose.msra.mxu1 %v4323_v5  ;;  %v12732_v5 = vld [vmem:[#allocation49_spill] sm:$0xff] }
 0x792   : > { %7773 = vmatmul.mubr.bf16.gmra.mrb[152].mxu1 %v4103_v52  ;;  %8242 = vmatprep.subr.msk.bf16.mxu1 %vm12713_vm7, %v4280_v23  ;;  %v10849_v55 = vpop.eup %8837  ;;  %vm12727_vm7 = vmmov %vm12700_vm0  ;;  %v12729_v52 = vld [vmem:[#allocation50_spill] sm:$0xff] }
 0x793   : > { %v4246_v47 = vpop.permute.xlu1 %4245  ;;  %12714 = vst [vmem:[#allocation124_spill] sm:$0xff] %v10849_v55 }
 0x795   : > { %v4589_v49 = vpop.permute.xlu0 %4588 }
 0x796   : > { %7812 = vmatprep.subr.bf16.mxu0 %v4589_v49  ;;  %v10852_v58 = vpop.eup %8839 }
 0x797   : > { %7813 = vmatpush3.bf16.msra.mxu0 %v4589_v49  ;;  %v4250_v43 = vpop.permute.xlu1 %4249  ;;  %12716 = vst [vmem:[#allocation125_spill] sm:$0xff] %v10852_v58 }
 0x799   : > { %7793 = vmatpush3.bf16.xpose.msra.mxu1 %v4326_v59  ;;  %v4593_v26 = vpop.permute.xlu0 %4592 }
 0x79a   : > { %v10854_v9 = vpop.eup %8841  ;;  %8243 = vmatprep.subr.msk.bf16.mxu1 %vm12718_vm12, %v10816_v56  ;;  %vm12731_vm12 = vmmov %vm12700_vm0 }
 0x79b   : > { %12717 = vst [vmem:[#allocation126_spill] sm:$0xff] %v10854_v9  ;;  %v10858_v62 = vpop.eup %8843  ;;  %v4254_v54 = vpop.permute.xlu1 %4253  ;;  %v4104_v13 = vpack.c.bf16 %v10854_v9, %v10849_v55 }
 0x79c   : > { %12719 = vst [vmem:[#allocation127_spill] sm:$0xff] %v10858_v62  ;;  %v4105_v14 = vpack.c.bf16 %v10852_v58, %v10858_v62 }
 0x79d   : > { %7776 = vmatprep.mubr.bf16.mxu1 %v4104_v13 }
 0x79e   : > { %7777 = vmatmul.mubr.bf16.gmra.mrb[156].mxu1 %v4105_v14 }
 0x79f   : > { %7796 = vmatprep.mubr.msk.bf16.mxu1 %vm12720_vm13, %v4244_v38  ;;  %v4258_v23 = vpop.permute.xlu1 %4257  ;;  %v12725_v38 = vld [vmem:[#allocation45_spill] sm:$0xff]  ;;  %vm12734_vm13 = vmmov %vm12700_vm0 }
 0x7a1   : > { %7795 = vmatpush3.bf16.xpose.msra.mxu1 %v4329_v17 }
 0x7a2   : > { %7876 = vmatprep.subr.bf16.mxu1 %v12722_v12 }
 0x7a3   : > { %v4591_v53 = vpop.permute.xlu1 %4590 }
 0x7a4   : > { %7814 = vmatprep.subr.bf16.mxu0 %v4591_v53 }
 0x7a5   : > { %7815 = vmatpush3.bf16.msra.mxu0 %v4591_v53 }
 0x7a6   : > { %7816 = vmatprep.subr.bf16.mxu0 %v4593_v26 }
 0x7a7   : > { %v4595_v44 = vpop.permute.xlu1 %4594 }
 0x7a8   : > { %7797 = vmatmul.mubr.msk.bf16.vlgmr.msra.gmra.mrb[160].mxu1 %vm12723_vm14, %v4246_v47  ;;  %v12735_v47 = vld [vmem:[#allocation51_spill] sm:$0xff]  ;;  %vm12753_vm14 = vnez %v12555_v40 }
 0x7a9   : > { %7800 = vmatprep.mubr.msk.bf16.mxu1 %vm12724_vm15, %v4248_v29  ;;  %7817 = vmatpush3.bf16.msra.mxu0 %v4593_v26  ;;  %v12728_v29 = vld [vmem:[#allocation47_spill] sm:$0xff]  ;;  %vm12754_vm15 = vnez %v12528_v37 }
 0x7aa   : > { %7877 = vmatpush3.bf16.msra.mxu1 %v12722_v12  ;;  %7818 = vmatprep.subr.bf16.mxu0 %v4595_v44 }
 0x7ab   : > { %7878 = vmatprep.subr.bf16.mxu1 %v12725_v38  ;;  %v4597_v56 = vpop.permute.xlu1 %4596 }
 0x7ad   : > { %7819 = vmatpush3.bf16.msra.mxu0 %v4595_v44 }
 0x7ae   : > { %7879 = vmatpush3.bf16.msra.mxu1 %v12725_v38  ;;  %7820 = vmatprep.subr.bf16.mxu0 %v4597_v56 }
 0x7af   : > { %7880 = vmatprep.subr.bf16.mxu1 %v12726_v39  ;;  %v4599_v15 = vpop.permute.xlu1 %4598 }
 0x7b0   : > { %7801 = vmatmul.mubr.msk.bf16.gmra.mrb[164].mxu1 %vm12700_vm0, %v4250_v43  ;;  %vm12755_vm0 = vnez %v12552_v30 }
 0x7b1   : > { %7804 = vmatprep.mubr.msk.bf16.mxu1 %vm12727_vm7, %v4252_v7  ;;  %7821 = vmatpush3.bf16.msra.mxu0 %v4597_v56  ;;  %v12733_v7 = vld [vmem:[#allocation52_spill] sm:$0xff]  ;;  %vm12756_vm7 = vnez %v12531_v2 }
 0x7b2   : > { %7881 = vmatpush3.bf16.msra.mxu1 %v12726_v39  ;;  %7822 = vmatprep.subr.bf16.mxu0 %v4599_v15 }
 0x7b3   : > { %7882 = vmatprep.subr.bf16.mxu1 %v12728_v29 }
 0x7b5   : > { %7823 = vmatpush3.bf16.msra.mxu0 %v4599_v15 }
 0x7b6   : > { %7883 = vmatpush3.bf16.msra.mxu1 %v12728_v29 }
 0x7b7   : > { %7884 = vmatprep.subr.bf16.mxu1 %v12729_v52 }
 0x7b8   : > { %7805 = vmatmul.mubr.msk.bf16.gmra.mrb[168].mxu1 %vm12730_vm6, %v4254_v54  ;;  %vm12757_vm6 = vnez %v12540_v33 }
 0x7b9   : > { %7808 = vmatprep.mubr.msk.bf16.mxu1 %vm12731_vm12, %v4256_v60  ;;  %vm12758_vm12 = vnez %v12616_v24 }
 0x7ba   : > { %7885 = vmatpush3.bf16.msra.mxu1 %v12729_v52 }
 0x7bb   : > { %7886 = vmatprep.subr.bf16.mxu1 %v12732_v5 }
 0x7be   : > { %7887 = vmatpush3.bf16.msra.mxu1 %v12732_v5 }
 0x7bf   : > { %7888 = vmatprep.subr.bf16.mxu1 %v12733_v7 }
 0x7c0   : > { %7809 = vmatmul.mubr.msk.bf16.gmra.mrb[172].mxu1 %vm12734_vm13, %v4258_v23  ;;  %vm12759_vm13 = vnez %v12618_v4  ;;  %v12773_v4 = vld [vmem:[#allocation23_spill] sm:$0xff] }
 0x7c2   : > { %7889 = vmatpush3.bf16.msra.mxu1 %v12733_v7 }
 0x7c3   : > { %7890 = vmatprep.subr.bf16.mxu1 %v12735_v47 }
 0x7c6   : > { %7891 = vmatpush3.bf16.msra.mxu1 %v12735_v47 }
 0x820   : > { %v10890_v49 = vpop.f32.mrb[144].mxu1 }
 0x821   : > { %12736 = vst [vmem:[#allocation46_spill] sm:$0xff] %v10890_v49  ;;  %v10892_v43 = vpop.f32.mrb[145].mxu1 }
 0x822   : > { %12737 = vst [vmem:[#allocation45_spill] sm:$0xff] %v10892_v43  ;;  %v10894_v60 = vpop.f32.mrb[146].mxu1  ;;  %v12762_v43 = vld [vmem:[#allocation40_spill] sm:$0xff] }
 0x823   : > { %12738 = vst [vmem:[#allocation48_spill] sm:$0xff] %v10894_v60  ;;  %v10896_v59 = vpop.f32.mrb[147].mxu1 }
 0x824   : > { %12739 = vst [vmem:[#allocation47_spill] sm:$0xff] %v10896_v59  ;;  %v12764_v59 = vld [vmem:[#allocation24_spill] sm:$0xff] }
 0x85d   : > { %v10898_v54 = vpop.f32.mrb[148].mxu1 }
 0x85e   : > { %12740 = vst [vmem:[#allocation50_spill] sm:$0xff] %v10898_v54  ;;  %v10900_v13 = vpop.f32.mrb[149].mxu1 }
 0x85f   : > { %12741 = vst [vmem:[#allocation49_spill] sm:$0xff] %v10900_v13  ;;  %v10902_v14 = vpop.f32.mrb[150].mxu1 }
 0x860   : > { %12742 = vst [vmem:[#allocation52_spill] sm:$0xff] %v10902_v14  ;;  %v10904_v23 = vpop.f32.mrb[151].mxu1 }
 0x861   : > { %12743 = vst [vmem:[#allocation51_spill] sm:$0xff] %v10904_v23 }
 0x865   : > { %v10906_v17 = vpop.f32.mrb[152].mxu1 }
 0x866   : > { %12744 = vst [vmem:[#allocation128_spill] sm:$0xff] %v10906_v17  ;;  %v10908_v53 = vpop.f32.mrb[153].mxu1 }
 0x867   : > { %12745 = vst [vmem:[#allocation129_spill] sm:$0xff] %v10908_v53  ;;  %v10910_v26 = vpop.f32.mrb[154].mxu1 }
 0x868   : > { %12746 = vst [vmem:[#allocation130_spill] sm:$0xff] %v10910_v26  ;;  %v10912_v44 = vpop.f32.mrb[155].mxu1 }
 0x869   : > { %12747 = vst [vmem:[#allocation131_spill] sm:$0xff] %v10912_v44 }
 0x871   : > { %v10914_v56 = vpop.f32.mrb[156].mxu1 }
 0x872   : > { %12748 = vst [vmem:[#allocation132_spill] sm:$0xff] %v10914_v56  ;;  %v10916_v15 = vpop.f32.mrb[157].mxu1 }
 0x873   : > { %12749 = vst [vmem:[#allocation133_spill] sm:$0xff] %v10916_v15  ;;  %v10918_v62 = vpop.f32.mrb[158].mxu1 }
 0x874   : > { %12750 = vst [vmem:[#allocation134_spill] sm:$0xff] %v10918_v62  ;;  %v10920_v58 = vpop.f32.mrb[159].mxu1 }
 0x875   : > { %12751 = vst [vmem:[#allocation135_spill] sm:$0xff] %v10920_v58 }
 0x87b   : > { %v7798_v55 = vpop.f32.mrb[160].mxu1 }
 0x87c   : > { %v4365_v9 = vpop.f32.mrb[161].mxu1  ;;  %v10924_v54 = vsel %vm10094_vm1, %v7798_v55, -inf }
 0x87d   : > { %4448 = vmax.xlane.f32.xlu0 %v10924_v54  ;;  %v7799_v17 = vpop.f32.mrb[162].mxu1  ;;  %v10934_v56 = vsel %vm10101_vm2, %v4365_v9, -inf }
 0x87e   : > { %v4368_v26 = vpop.f32.mrb[163].mxu1  ;;  %v10939_v55 = vsel %vm10116_vm3, %v7799_v17, -inf }
 0x87f   : > { %v10929_v53 = vsel %vm10122_vm4, %v4368_v26, -inf }
 0x880   : > { %4446 = vmax.xlane.f32.xlu1 %v10929_v53 }
 0x881   : > { %4444 = vmax.xlane.f32.xlu0 %v10934_v56 }
 0x883   : > { %v7802_v62 = vpop.f32.mrb[164].mxu1 }
 0x884   : > { %v4381_v15 = vpop.f32.mrb[165].mxu1 }
 0x885   : > { %4450 = vmax.xlane.f32.xlu0 %v10939_v55  ;;  %v7803_v58 = vpop.f32.mrb[166].mxu1 }
 0x886   : > { %v4384_v44 = vpop.f32.mrb[167].mxu1 }
 0x887   : > { %v10948_v17 = vsel %vm12684_vm9, %v4384_v44, -inf  ;;  %v10967_v44 = vsel %vm12752_vm8, %v7802_v62, -inf }
 0x88b   : > { %v7806_v26 = vpop.f32.mrb[168].mxu1 }
 0x88c   : > { %v4397_v14 = vpop.f32.mrb[169].mxu1 }
 0x88d   : > { %v7807_v25 = vpop.f32.mrb[170].mxu1  ;;  %v10987_v62 = vsel %vm12756_vm7, %v4397_v14, -inf  ;;  %v12760_v14 = vld [vmem:[#allocation30_spill] sm:$0xff] }
 0x88e   : > { %v4400_v13 = vpop.f32.mrb[171].mxu1 }
 0x88f   : > { %v10953_v60 = vsel %vm10193_vm10, %v4400_v13, -inf }
 0x891   : > { %4602 = vrot.lane.b32.xlu1 %v10048_v1, %s9317_s21  ;;  %v10957_v1 = vsel %vm10143_vm5, %v4381_v15, -inf  ;;  %v10977_v15 = vsel %vm12754_vm15, %v7803_v58, -inf  ;;  %v10993_v58 = vsel %vm12757_vm6, %v7806_v26, -inf  ;;  %v12761_v26 = vld [vmem:[#allocation36_spill] sm:$0xff] }
 0x893   : > { %v7810_v9 = vpop.f32.mrb[172].mxu1 }
 0x894   : > { %v4413_v23 = vpop.f32.mrb[173].mxu1 }
 0x895   : > { %v7811_v11 = vpop.f32.mrb[174].mxu1 }
 0x896   : > { %v4416_v49 = vpop.f32.mrb[175].mxu1 }
 0x897   : > { %v10973_v13 = vsel %vm12753_vm14, %v4416_v49, -inf  ;;  %v10998_v49 = vsel %vm12758_vm12, %v4413_v23, -inf  ;;  %v12763_v23 = vld [vmem:[#allocation22_spill] sm:$0xff] }
 0x89b   : > { %4600 = vrot.lane.b32.xlu0 %v10042_v36, %s9317_s21  ;;  %v10963_v36 = vsel %vm12687_vm11, %v7807_v25, -inf  ;;  %v10983_v25 = vsel %vm12755_vm0, %v7811_v11, -inf  ;;  %v11003_v11 = vsel %vm12759_vm13, %v7810_v9, -inf  ;;  %v12765_v9 = vld [vmem:[#allocation27_spill] sm:$0xff]  ;;  %vm12776_vm13 = vcmask 523264  }
 0x89c   : > { %vm12777_vm10 = vmmov %vm12776_vm13 }
 0x89d   : > { %vm12778_vm7 = vmmov %vm12777_vm10 }
 0x89e   : > { %vm12780_vm8 = vmmov %vm12778_vm7 }
 0x89f   : > { %vm12781_vm14 = vmmov %vm12778_vm7 }
 0x8a0   : > { %vm12783_vm0 = vmmov %vm12778_vm7 }
 0x8b5   : > { %4454 = vmax.xlane.f32.xlu1 %v10948_v17 }
 0x8b9   : > { %4462 = vmax.xlane.f32.xlu1 %v10953_v60 }
 0x8ba   : > { %4452 = vmax.xlane.f32.xlu0 %v10957_v1 }
 0x8bd   : > { %4466 = vmax.xlane.f32.xlu1 %v10963_v36 }
 0x8be   : > { %4456 = vmax.xlane.f32.xlu0 %v10967_v44 }
 0x8c1   : > { %4470 = vmax.xlane.f32.xlu1 %v10973_v13 }
 0x8c2   : > { %4458 = vmax.xlane.f32.xlu0 %v10977_v15 }
 0x8c5   : > { %4474 = vmax.xlane.f32.xlu1 %v10983_v25 }
 0x8c6   : > { %4460 = vmax.xlane.f32.xlu0 %v10987_v62 }
 0x8ca   : > { %4464 = vmax.xlane.f32.xlu0 %v10993_v58 }
 0x8ce   : > { %4468 = vmax.xlane.f32.xlu0 %v10998_v49 }
 0x8d2   : > { %4472 = vmax.xlane.f32.xlu0 %v11003_v11 }
 0x8d6   : > { %5257 = vrot.lane.b32.xlu1 %v12760_v14, %s9317_s21 }
 0x8da   : > { %5261 = vrot.lane.b32.xlu1 %v12761_v26, %s9317_s21 }
 0x8de   : > { %5265 = vrot.lane.b32.xlu1 %v12762_v43, %s9317_s21 }
 0x8e2   : > { %5233 = vrot.lane.b32.xlu1 %v12763_v23, %s9317_s21 }
 0x8e6   : > { %5237 = vrot.lane.b32.xlu1 %v12764_v59, %s9317_s21 }
 0x8e8   : > { %5255 = vrot.lane.b32.xlu0 %v12765_v9, %s9317_s21 }
 0x8ea   : > { %5241 = vrot.lane.b32.xlu1 %v12766_v32, %s9317_s21 }
 0x8ec   : > { %5259 = vrot.lane.b32.xlu0 %v12767_v19, %s9317_s21 }
 0x8ee   : > { %5245 = vrot.lane.b32.xlu1 %v12768_v46, %s9317_s21 }
 0x8f0   : > { %5263 = vrot.lane.b32.xlu0 %v12769_v21, %s9317_s21 }
 0x8f2   : > { %5578 = vrot.lane.b32.xlu1 %v12725_v38, %s9317_s21  ;;  %v12775_v38 = vld [vmem:[#allocation31_spill] sm:$0xff] }
 0x8f4   : > { %5267 = vrot.lane.b32.xlu0 %v12770_v3, %s9317_s21 }
 0x8f6   : > { %5586 = vrot.lane.b32.xlu1 %v12732_v5, %s9317_s21 }
 0x8f8   : > { %5269 = vrot.lane.b32.xlu0 %v12771_v35, %s9317_s21 }
 0x8fc   : > { %5231 = vrot.lane.b32.xlu0 %v12772_v16, %s9317_s21 }
 0x900   : > { %5235 = vrot.lane.b32.xlu0 %v12773_v4, %s9317_s21 }
 0x904   : > { %5239 = vrot.lane.b32.xlu0 %v12774_v31, %s9317_s21 }
 0x908   : > { %5243 = vrot.lane.b32.xlu0 %v12775_v38, %s9317_s21 }
 0x90a   : > { %v4449_v8 = vpop.xlane.xlu0 %4448 }
 0x90b   : > { %v4478_v2 = vsub.f32 %v10924_v54, %v4449_v8 }
 0x90c   : > { %5576 = vrot.lane.b32.xlu0 %v12722_v12, %s9317_s21 }
 0x90d   : > { %v4447_v5 = vpop.xlane.xlu1 %4446  ;;  %v4496_v40 = vmul.f32 1.442695, %v4478_v2 }
 0x90e   : > { %v4477_v45 = vsub.f32 %v10929_v53, %v4447_v5  ;;  %v4445_v42 = vpop.xlane.xlu0 %4444 }
 0x90f   : > { %v4476_v63 = vsub.f32 %v10934_v56, %v4445_v42 }
 0x910   : > { %v4494_v28 = vmul.f32 1.442695, %v4477_v45  ;;  %5580 = vrot.lane.b32.xlu0 %v12726_v39, %s9317_s21  ;;  %v4822_v45 = vsel %vm12777_vm10, %v12765_v9, 0  ;;  %vm12782_vm10 = vmmov %vm12778_vm7  ;;  %v4831_v39 = vsel %vm12783_vm0, %v12761_v26, 0 }
 0x911   : > { %v4492_v22 = vmul.f32 1.442695, %v4476_v63  ;;  %v4603_v42 = vpop.permute.xlu1 %4602 }
 0x912   : > { %8845 = vpow2.f32 %v4494_v28  ;;  %v4451_v30 = vpop.xlane.xlu0 %4450 }
 0x913   : > { %8847 = vpow2.f32 %v4492_v22  ;;  %v4479_v24 = vsub.f32 %v10939_v55, %v4451_v30 }
 0x914   : > { %5582 = vrot.lane.b32.xlu0 %v12728_v29, %s9317_s21  ;;  %8849 = vpow2.f32 %v4496_v40 }
 0x915   : > { %v4498_v8 = vmul.f32 1.442695, %v4479_v24 }
 0x916   : > { %v4601_v12 = vpop.permute.xlu0 %4600 }
 0x917   : > { %8851 = vpow2.f32 %v4498_v8  ;;  %7824 = vmatprep.subr.bf16.mxu0 %v4601_v12 }
 0x918   : > { %5584 = vrot.lane.b32.xlu0 %v12729_v52, %s9317_s21  ;;  %7825 = vmatpush3.bf16.msra.mxu0 %v4601_v12 }
 0x919   : > { %7826 = vmatprep.subr.bf16.mxu0 %v4603_v42 }
 0x91c   : > { %v8846_v2 = vpop.eup %8845  ;;  %5588 = vrot.lane.b32.xlu0 %v12733_v7, %s9317_s21  ;;  %7827 = vmatpush3.bf16.msra.mxu0 %v4603_v42 }
 0x91d   : > { %v11056_v30 = vpop.eup %8847  ;;  %4526 = vadd.xlane.f32.xlu1 %v8846_v2  ;;  %8244 = vmatprep.subr.msk.bf16.mxu0 %vm12776_vm13, %v12765_v9  ;;  %vm12779_vm13 = vmmov %vm12778_vm7 }
 0x91e   : > { %v4572_v40 = vpack.c.bf16 %v8846_v2, %v11056_v30  ;;  %v11061_v24 = vpop.eup %8849  ;;  %v4825_v63 = vsel %vm12779_vm13, %v12760_v14, 0  ;;  %vm12785_vm13 = vmmov %vm12783_vm0 }
 0x91f   : > { %v4834_v52 = vsel %vm12785_vm13, %v12769_v21, 0  ;;  %vm12790_vm13 = vmmov %vm12783_vm0 }
 0x920   : > { %7828 = vmatprep.mubr.bf16.mxu0 %v4572_v40 }
 0x921   : > { %v8852_v22 = vpop.eup %8851  ;;  %3537 = vadd.xlane.f32.xlu1 %v10520_v50  ;;  %v4828_v50 = vsel %vm12781_vm14, %v12767_v19, 0  ;;  %vm12787_vm14 = vmmov %vm12783_vm0 }
 0x922   : > { %v4573_v28 = vpack.c.bf16 %v8852_v22, %v11061_v24 }
 0x924   : > { %7829 = vmatmul.mubr.bf16.vlgmr.msra.gmra.mrb[144].mxu0 %v4573_v28 }
 0x925   : > { %4530 = vadd.xlane.f32.xlu1 %v8852_v22  ;;  %7845 = vmatpush3.bf16.xpose.msra.mxu0 %v4822_v45 }
 0x926   : > { %8245 = vmatprep.subr.msk.bf16.mxu0 %vm12778_vm7, %v12760_v14  ;;  %vm12784_vm7 = vmmov %vm12783_vm0 }
 0x929   : > { %3541 = vadd.xlane.f32.xlu1 %v10530_v48 }
 0x92d   : > { %7847 = vmatpush3.bf16.xpose.msra.mxu0 %v4825_v63 }
 0x92e   : > { %8246 = vmatprep.subr.msk.bf16.mxu0 %vm12780_vm8, %v12767_v19  ;;  %vm12786_vm8 = vmmov %vm12783_vm0 }
 0x935   : > { %7849 = vmatpush3.bf16.xpose.msra.mxu0 %v4828_v50 }
 0x936   : > { %8247 = vmatprep.subr.msk.bf16.mxu0 %vm12782_vm10, %v12761_v26  ;;  %vm12788_vm10 = vmmov %vm12783_vm0 }
 0x937   : > { %v4840_v22 = vsel %vm12788_vm10, %v12770_v3, 0  ;;  %vm12793_vm10 = vmmov %vm12783_vm0 }
 0x93d   : > { %7851 = vmatpush3.bf16.xpose.msra.mxu0 %v4831_v39 }
 0x93e   : > { %8248 = vmatprep.subr.msk.bf16.mxu0 %vm12784_vm7, %v12769_v21  ;;  %vm12789_vm7 = vmmov %vm12783_vm0 }
 0x942   : > { %v4455_v48 = vpop.xlane.xlu1 %4454 }
 0x943   : > { %v4481_v29 = vsub.f32 %v10948_v17, %v4455_v48  ;;  %v4837_v17 = vsel %vm12787_vm14, %v12762_v43, 0  ;;  %vm12792_vm14 = vmmov %vm12783_vm0 }
 0x945   : > { %v4502_v7 = vmul.f32 1.442695, %v4481_v29  ;;  %7853 = vmatpush3.bf16.xpose.msra.mxu0 %v4834_v52 }
 0x946   : > { %8249 = vmatprep.subr.msk.bf16.mxu0 %vm12786_vm8, %v12762_v43  ;;  %v4463_v19 = vpop.xlane.xlu1 %4462  ;;  %vm12791_vm8 = vmmov %vm12783_vm0 }
 0x947   : > { %8853 = vpow2.f32 %v4502_v7  ;;  %v4453_v54 = vpop.xlane.xlu0 %4452  ;;  %v4485_v21 = vsub.f32 %v10953_v60, %v4463_v19 }
 0x948   : > { %v4480_v53 = vsub.f32 %v10957_v1, %v4453_v54 }
 0x949   : > { %v4510_v2 = vmul.f32 1.442695, %v4485_v21 }
 0x94a   : > { %v4500_v56 = vmul.f32 1.442695, %v4480_v53  ;;  %v4467_v14 = vpop.xlane.xlu1 %4466 }
 0x94b   : > { %v4457_v55 = vpop.xlane.xlu0 %4456 }
 0x94c   : > { %8855 = vpow2.f32 %v4500_v56  ;;  %v4482_v26 = vsub.f32 %v10967_v44, %v4457_v55  ;;  %v4487_v44 = vsub.f32 %v10963_v36, %v4467_v14 }
 0x94d   : > { %7855 = vmatpush3.bf16.xpose.msra.mxu0 %v4837_v17 }
 0x94e   : > { %8250 = vmatprep.subr.msk.bf16.mxu0 %vm12783_vm0, %v12770_v3  ;;  %v4504_v9 = vmul.f32 1.442695, %v4482_v26  ;;  %v4471_v12 = vpop.xlane.xlu1 %4470 }
 0x94f   : > { %v4459_v5 = vpop.xlane.xlu0 %4458  ;;  %v4489_v36 = vsub.f32 %v10973_v13, %v4471_v12  ;;  %v4843_v13 = vsel %vm12790_vm13, %v12771_v35, 0  ;;  %vm12797_vm13 = vmmov %vm12783_vm0 }
 0x950   : > { %v4483_v8 = vsub.f32 %v10977_v15, %v4459_v5  ;;  %8857 = vpow2.f32 %v4504_v9  ;;  %v4514_v15 = vmul.f32 1.442695, %v4487_v44 }
 0x951   : > { %v8854_v1 = vpop.eup %8853  ;;  %v4518_v39 = vmul.f32 1.442695, %v4489_v36 }
 0x952   : > { %v4506_v42 = vmul.f32 1.442695, %v4483_v8  ;;  %4534 = vadd.xlane.f32.xlu1 %v8854_v1 }
 0x953   : > { %v4461_v40 = vpop.xlane.xlu0 %4460 }
 0x954   : > { %8859 = vpow2.f32 %v4506_v42  ;;  %v4484_v43 = vsub.f32 %v10987_v62, %v4461_v40  ;;  %v4475_v62 = vpop.xlane.xlu1 %4474 }
 0x955   : > { %7857 = vmatpush3.bf16.xpose.msra.mxu0 %v4840_v22  ;;  %8861 = vpow2.f32 %v4510_v2  ;;  %v4491_v48 = vsub.f32 %v10983_v25, %v4475_v62 }
 0x956   : > { %v11099_v60 = vpop.eup %8855  ;;  %v4508_v28 = vmul.f32 1.442695, %v4484_v43  ;;  %8251 = vmatprep.subr.msk.bf16.mxu0 %vm12789_vm7, %v12771_v35  ;;  %3545 = vadd.xlane.f32.xlu1 %v10567_v51  ;;  %vm12796_vm7 = vmmov %vm12783_vm0 }
 0x957   : > { %v4465_v45 = vpop.xlane.xlu0 %4464  ;;  %v4574_v63 = vpack.c.bf16 %v8854_v1, %v11099_v60 }
 0x958   : > { %8863 = vpow2.f32 %v4508_v28  ;;  %v4486_v3 = vsub.f32 %v10993_v58, %v4465_v45  ;;  %v4522_v58 = vmul.f32 1.442695, %v4491_v48  ;;  %v11114_v56 = vpop.permute.xlu1 %5257 }
 0x959   : > { %7832 = vmatprep.mubr.bf16.mxu0 %v4574_v63  ;;  %8865 = vpow2.f32 %v4514_v15 }
 0x95a   : > { %v4512_v50 = vmul.f32 1.442695, %v4486_v3  ;;  %v11111_v52 = vpop.eup %8857 }
 0x95b   : > { %v4469_v29 = vpop.xlane.xlu0 %4468 }
 0x95c   : > { %8867 = vpow2.f32 %v4512_v50  ;;  %v4488_v51 = vsub.f32 %v10998_v49, %v4469_v29  ;;  %v11131_v21 = vpop.permute.xlu1 %5261 }
 0x95d   : > { %7859 = vmatpush3.bf16.xpose.msra.mxu0 %v4843_v13  ;;  %8869 = vpow2.f32 %v4518_v39 }
 0x95e   : > { %v8860_v7 = vpop.eup %8859  ;;  %v4516_v19 = vmul.f32 1.442695, %v4488_v51 }
 0x95f   : > { %v4473_v54 = vpop.xlane.xlu0 %4472  ;;  %4538 = vadd.xlane.f32.xlu1 %v8860_v7  ;;  %v4575_v53 = vpack.c.bf16 %v8860_v7, %v11111_v52  ;;  %v11117_v49 = vpop.eup %8861 }
 0x960   : > { %8871 = vpow2.f32 %v4516_v19  ;;  %v4490_v25 = vsub.f32 %v11003_v11, %v4473_v54  ;;  %v11145_v2 = vpop.permute.xlu1 %5265 }
 0x961   : > { %7833 = vmatmul.mubr.bf16.gmra.mrb[148].mxu0 %v4575_v53  ;;  %8873 = vpow2.f32 %v4522_v58 }
 0x962   : > { %v11119_v35 = vpop.eup %8863  ;;  %v4520_v55 = vmul.f32 1.442695, %v4490_v25 }
 0x963   : > { %v11121_v14 = vpop.permute.xlu0 %5255  ;;  %v4576_v26 = vpack.c.bf16 %v11117_v49, %v11119_v35  ;;  %v11127_v17 = vpop.eup %8865 }
 0x964   : > { %8875 = vpow2.f32 %v4520_v55  ;;  %8252 = vmatprep.subr.msk.bf16.mxu1 %vm12791_vm8, %v11121_v14  ;;  %v11155_v28 = vpop.permute.xlu1 %5233  ;;  %vm12800_vm8 = vmmov %vm12783_vm0 }
 0x965   : > { %7836 = vmatprep.mubr.bf16.mxu0 %v4576_v26 }
 0x966   : > { %v11129_v11 = vpop.eup %8867 }
 0x967   : > { %v11133_v9 = vpop.permute.xlu0 %5259  ;;  %v4577_v5 = vpack.c.bf16 %v11127_v17, %v11129_v11  ;;  %v11137_v8 = vpop.eup %8869 }
 0x968   : > { %v11163_v45 = vpop.permute.xlu1 %5237 }
 0x969   : > { %7837 = vmatmul.mubr.bf16.gmra.mrb[152].mxu0 %v4577_v5 }
 0x96a   : > { %v11139_v1 = vpop.eup %8871 }
 0x96b   : > { %v11141_v12 = vpop.permute.xlu0 %5263  ;;  %v4578_v42 = vpack.c.bf16 %v11137_v8, %v11139_v1  ;;  %v11147_v44 = vpop.eup %8873 }
 0x96c   : > { %v11171_v62 = vpop.permute.xlu1 %5241 }
 0x96d   : > { %7840 = vmatprep.mubr.bf16.mxu0 %v4578_v42  ;;  %12794 = vst [vmem:[#allocation30_spill] sm:$0xff] %v11171_v62 }
 0x96e   : > { %v11149_v40 = vpop.eup %8875 }
 0x96f   : > { %v11151_v43 = vpop.permute.xlu0 %5267  ;;  %v4579_v22 = vpack.c.bf16 %v11147_v44, %v11149_v40 }
 0x970   : > { %v11181_v50 = vpop.permute.xlu1 %5245 }
 0x971   : > { %7841 = vmatmul.mubr.bf16.gmra.mrb[156].mxu0 %v4579_v22  ;;  %12799 = vst [vmem:[#allocation22_spill] sm:$0xff] %v11181_v50 }
 0x972   : > { %7860 = vmatprep.mubr.msk.bf16.mxu0 %vm12792_vm14, %v12772_v16  ;;  %vm12801_vm14 = vmmov %vm12783_vm0 }
 0x973   : > { %v11159_v15 = vpop.permute.xlu0 %5269 }
 0x977   : > { %v11161_v36 = vpop.permute.xlu0 %5231 }
 0x979   : > { %7861 = vmatmul.mubr.msk.bf16.vlgmr.msra.gmra.mrb[160].mxu0 %vm12783_vm0, %v12763_v23 }
 0x97a   : > { %7864 = vmatprep.mubr.msk.bf16.mxu0 %vm12793_vm10, %v12773_v4  ;;  %v5579_v4 = vpop.permute.xlu1 %5578 }
 0x97b   : > { %v11169_v63 = vpop.permute.xlu0 %5235 }
 0x97e   : > { %v5587_v48 = vpop.permute.xlu1 %5586 }
 0x97f   : > { %v11173_v3 = vpop.permute.xlu0 %5239 }
 0x980   : > { %12795 = vst [vmem:[#allocation36_spill] sm:$0xff] %v11173_v3 }
 0x981   : > { %7865 = vmatmul.mubr.msk.bf16.gmra.mrb[164].mxu0 %vm12796_vm7, %v12764_v59 }
 0x982   : > { %7868 = vmatprep.mubr.msk.bf16.mxu0 %vm12797_vm13, %v12774_v31 }
 0x983   : > { %v11179_v16 = vpop.permute.xlu0 %5243 }
 0x984   : > { %12798 = vst [vmem:[#allocation40_spill] sm:$0xff] %v11179_v16 }
 0x987   : > { %v5577_v23 = vpop.permute.xlu0 %5576 }
 0x988   : > { %7940 = vmatprep.subr.bf16.mxu0 %v5577_v23 }
 0x989   : > { %7869 = vmatmul.mubr.msk.bf16.gmra.mrb[168].mxu0 %vm12800_vm8, %v12766_v32 }
 0x98a   : > { %7941 = vmatpush3.bf16.msra.mxu0 %v5577_v23  ;;  %7872 = vmatprep.mubr.msk.bf16.mxu0 %vm12801_vm14, %v12775_v38 }
 0x98b   : > { %7942 = vmatprep.subr.bf16.mxu0 %v5579_v4  ;;  %v5581_v39 = vpop.permute.xlu0 %5580 }
 0x98e   : > { %7943 = vmatpush3.bf16.msra.mxu0 %v5579_v4 }
 0x98f   : > { %7944 = vmatprep.subr.bf16.mxu0 %v5581_v39  ;;  %v5583_v59 = vpop.permute.xlu0 %5582 }
 0x991   : > { %7873 = vmatmul.mubr.msk.bf16.gmra.mrb[172].mxu0 %vm12783_vm0, %v12768_v46 }
 0x992   : > { %7945 = vmatpush3.bf16.msra.mxu0 %v5581_v39 }
 0x993   : > { %7946 = vmatprep.subr.bf16.mxu0 %v5583_v59  ;;  %v5585_v31 = vpop.permute.xlu0 %5584 }
 0x996   : > { %7947 = vmatpush3.bf16.msra.mxu0 %v5583_v59 }
 0x997   : > { %7948 = vmatprep.subr.bf16.mxu0 %v5585_v31  ;;  %v5589_v32 = vpop.permute.xlu0 %5588 }
 0x99a   : > { %7949 = vmatpush3.bf16.msra.mxu0 %v5585_v31 }
 0x99b   : > { %7950 = vmatprep.subr.bf16.mxu0 %v5587_v48 }
 0x99e   : > { %7951 = vmatpush3.bf16.msra.mxu0 %v5587_v48 }
 0x99f   : > { %7952 = vmatprep.subr.bf16.mxu0 %v5589_v32 }
 0x9a2   : > { %7953 = vmatpush3.bf16.msra.mxu0 %v5589_v32 }
 0x9f7   : > { %v11189_v38 = vpop.f32.mrb[144].mxu0 }
 0x9f8   : > { %v11191_v29 = vpop.f32.mrb[145].mxu0 }
 0x9f9   : > { %v11193_v51 = vpop.f32.mrb[146].mxu0 }
 0x9fa   : > { %v11195_v13 = vpop.f32.mrb[147].mxu0 }
 0xa34   : > { %v11197_v46 = vpop.f32.mrb[148].mxu0 }
 0xa35   : > { %v11199_v7 = vpop.f32.mrb[149].mxu0 }
 0xa36   : > { %v11201_v19 = vpop.f32.mrb[150].mxu0 }
 0xa37   : > { %v11203_v58 = vpop.f32.mrb[151].mxu0 }
 0xa3c   : > { %v11205_v54 = vpop.f32.mrb[152].mxu0 }
 0xa3d   : > { %v11207_v53 = vpop.f32.mrb[153].mxu0 }
 0xa3e   : > { %v11209_v25 = vpop.f32.mrb[154].mxu0 }
 0xa3f   : > { %v11211_v55 = vpop.f32.mrb[155].mxu0 }
 0xa44   : > { %v11213_v26 = vpop.f32.mrb[156].mxu0 }
 0xa45   : > { %12802 = vst [vmem:[#allocation24_spill] sm:$0xff] %v11213_v26  ;;  %v11215_v5 = vpop.f32.mrb[157].mxu0 }
 0xa46   : > { %v11217_v42 = vpop.f32.mrb[158].mxu0 }
 0xa47   : > { %12803 = vst [vmem:[#allocation27_spill] sm:$0xff] %v11217_v42  ;;  %v11219_v22 = vpop.f32.mrb[159].mxu0 }
 0xa4c   : > { %v7862_v23 = vpop.f32.mrb[160].mxu0 }
 0xa4d   : > { %v11223_v4 = vsel %vm10094_vm1, %v7862_v23, -inf  ;;  %v4879_v39 = vpop.f32.mrb[161].mxu0 }
 0xa4e   : > { %4962 = vmax.xlane.f32.xlu0 %v11223_v4  ;;  %v7863_v59 = vpop.f32.mrb[162].mxu0  ;;  %v11233_v32 = vsel %vm10101_vm2, %v4879_v39, -inf }
 0xa4f   : > { %v11228_v31 = vsel %vm10116_vm3, %v7863_v59, -inf  ;;  %v4882_v48 = vpop.f32.mrb[163].mxu0 }
 0xa50   : > { %4964 = vmax.xlane.f32.xlu1 %v11228_v31  ;;  %v11238_v23 = vsel %vm10122_vm4, %v4882_v48, -inf }
 0xa52   : > { %4958 = vmax.xlane.f32.xlu0 %v11233_v32 }
 0xa54   : > { %4960 = vmax.xlane.f32.xlu1 %v11238_v23  ;;  %v7866_v20 = vpop.f32.mrb[164].mxu0 }
 0xa55   : > { %v4895_v50 = vpop.f32.mrb[165].mxu0 }
 0xa56   : > { %v11243_v59 = vsel %vm10143_vm5, %v4895_v50, -inf  ;;  %v7867_v34 = vpop.f32.mrb[166].mxu0 }
 0xa57   : > { %v4898_v16 = vpop.f32.mrb[167].mxu0  ;;  %v11248_v39 = vsel %vm12754_vm15, %v7867_v34, -inf }
 0xa58   : > { %4966 = vmax.xlane.f32.xlu1 %v11243_v59  ;;  %v11253_v62 = vsel %vm12684_vm9, %v4898_v16, -inf }
 0xa5c   : > { %4972 = vmax.xlane.f32.xlu1 %v11248_v39  ;;  %v7870_v48 = vpop.f32.mrb[168].mxu0 }
 0xa5d   : > { %v4911_v10 = vpop.f32.mrb[169].mxu0  ;;  %v11258_v50 = vsel %vm12757_vm6, %v7870_v48, -inf }
 0xa5e   : > { %v7871_v6 = vpop.f32.mrb[170].mxu0 }
 0xa5f   : > { %v4914_v57 = vpop.f32.mrb[171].mxu0  ;;  %v11263_v26 = vsel %vm12687_vm11, %v7871_v6, -inf }
 0xa60   : > { %4968 = vmax.xlane.f32.xlu1 %v11253_v62 }
 0xa64   : > { %4978 = vmax.xlane.f32.xlu1 %v11258_v50  ;;  %v7874_v34 = vpop.f32.mrb[172].mxu0 }
 0xa65   : > { %v4927_v37 = vpop.f32.mrb[173].mxu0 }
 0xa66   : > { %v7875_v42 = vpop.f32.mrb[174].mxu0  ;;  %v11276_v16 = vsel %vm12758_vm12, %v4927_v37, -inf  ;;  %v12810_v37 = vld [vmem:[#allocation41_spill] sm:$0xff] }
 0xa67   : > { %v4930_v3 = vpop.f32.mrb[175].mxu0 }
 0xa68   : > { %5590 = vrot.lane.b32.xlu0 %v12735_v47, %s9317_s21  ;;  %4980 = vmax.xlane.f32.xlu1 %v11263_v26  ;;  %v12805_v47 = vld [vmem:[#allocation68_spill] sm:$0xff] }
 0xa69   : > { %vm12806_vm10 = vnez %v12805_v47  ;;  %v12836_v47 = vld [vmem:[#allocation70_spill] sm:$0xff] }
 0xa6a   : > { %v11281_v48 = vsel %vm12806_vm10, %v7875_v42, -inf  ;;  %v12816_v42 = vld [vmem:[#allocation59_spill] sm:$0xff] }
 0xa6b   : > { %vm12817_vm13 = vnez %v12816_v42  ;;  %v12838_v42 = vld [vmem:[#allocation73_spill] sm:$0xff] }
 0xa6c   : > { %3549 = vadd.xlane.f32.xlu1 %v10583_v61  ;;  %v12807_v61 = vld [vmem:[#allocation69_spill] sm:$0xff] }
 0xa6d   : > { %vm12808_vm7 = vnez %v12807_v61  ;;  %v12835_v61 = vld [vmem:[#allocation113_spill] sm:$0xff] }
 0xa70   : > { %4542 = vadd.xlane.f32.xlu1 %v11117_v49  ;;  %v12811_v49 = vld [vmem:[#allocation26_spill] sm:$0xff] }
 0xa74   : > { %3553 = vadd.xlane.f32.xlu1 %v10588_v0  ;;  %v11287_v0 = vsel %vm12808_vm7, %v4930_v3, -inf  ;;  %v12815_v3 = vld [vmem:[#allocation72_spill] sm:$0xff]  ;;  %vm12843_vm7 = vcmask 523264  }
 0xa75   : > { %vm12844_vm10 = vmmov %vm12843_vm7 }
 0xa76   : > { %vm12845_vm12 = vmmov %vm12843_vm7 }
 0xa78   : > { %4546 = vadd.xlane.f32.xlu1 %v11127_v17  ;;  %v12813_v17 = vld [vmem:[#allocation32_spill] sm:$0xff] }
 0xa7c   : > { %3557 = vadd.xlane.f32.xlu1 %v10598_v18  ;;  %v12809_v18 = vld [vmem:[#allocation29_spill] sm:$0xff] }
 0xa80   : > { %4550 = vadd.xlane.f32.xlu1 %v11137_v8  ;;  %v12814_v8 = vld [vmem:[#allocation114_spill] sm:$0xff] }
 0xa84   : > { %4982 = vmax.xlane.f32.xlu1 %v11276_v16 }
 0xa87   : > { %4524 = vadd.xlane.f32.xlu0 %v11056_v30  ;;  %v12812_v30 = vld [vmem:[#allocation102_spill] sm:$0xff] }
 0xa88   : > { %4988 = vmax.xlane.f32.xlu1 %v11281_v48 }
 0xa8b   : > { %3535 = vadd.xlane.f32.xlu0 %v12809_v18  ;;  %v12818_v18 = vld [vmem:[#allocation112_spill] sm:$0xff] }
 0xa8c   : > { %4984 = vmax.xlane.f32.xlu1 %v11287_v0 }
 0xa8f   : > { %4528 = vadd.xlane.f32.xlu0 %v11061_v24  ;;  %v11303_v24 = vsel %vm12817_vm13, %v7866_v20, -inf  ;;  %v12824_v20 = vld [vmem:[#allocation119_spill] sm:$0xff] }
 0xa90   : > { %3561 = vadd.xlane.f32.xlu1 %v12810_v37  ;;  %v12821_v37 = vld [vmem:[#allocation71_spill] sm:$0xff] }
 0xa93   : > { %3539 = vadd.xlane.f32.xlu0 %v12811_v49  ;;  %v12822_v49 = vld [vmem:[#allocation63_spill] sm:$0xff] }
 0xa94   : > { %4554 = vadd.xlane.f32.xlu1 %v11147_v44  ;;  %v12819_v44 = vld [vmem:[#allocation61_spill] sm:$0xff]  ;;  %vm12823_vm14 = vnez %v12822_v49  ;;  %v12837_v49 = vld [vmem:[#allocation115_spill] sm:$0xff] }
 0xa95   : > { %vm12820_vm8 = vnez %v12819_v44 }
 0xa97   : > { %4532 = vadd.xlane.f32.xlu0 %v11099_v60  ;;  %v11309_v60 = vsel %vm12820_vm8, %v4911_v10, -inf }
 0xa98   : > { %3565 = vadd.xlane.f32.xlu1 %v12812_v30  ;;  %v12825_v30 = vld [vmem:[#allocation35_spill] sm:$0xff] }
 0xa9b   : > { %3543 = vadd.xlane.f32.xlu0 %v12813_v17  ;;  %v12826_v17 = vld [vmem:[#allocation78_spill] sm:$0xff] }
 0xa9c   : > { %4052 = vadd.xlane.f32.xlu1 %v12814_v8  ;;  %v12827_v8 = vld [vmem:[#allocation65_spill] sm:$0xff] }
 0xa9d   : > { %vm12828_vm0 = vnez %v12827_v8 }
 0xa9e   : > { %v11323_v10 = vsel %vm12828_vm0, %v7874_v34, -inf  ;;  %vm12846_vm0 = vmmov %vm12843_vm7 }
 0xa9f   : > { %4536 = vadd.xlane.f32.xlu0 %v11111_v52  ;;  %v11315_v52 = vsel %vm12823_vm14, %v4914_v57, -inf  ;;  %v12830_v57 = vld [vmem:[#allocation76_spill] sm:$0xff] }
 0xaa0   : > { %3063 = vadd.xlane.f32.xlu1 %v12815_v3  ;;  %v12829_v3 = vld [vmem:[#allocation117_spill] sm:$0xff] }
 0xaa3   : > { %4970 = vmax.xlane.f32.xlu0 %v11303_v24 }
 0xaa4   : > { %4056 = vadd.xlane.f32.xlu1 %v12818_v18  ;;  %v11329_v18 = vpop.xlane.xlu1 %4526 }
 0xaa7   : > { %4974 = vmax.xlane.f32.xlu0 %v11309_v60 }
 0xaa8   : > { %3067 = vadd.xlane.f32.xlu1 %v12821_v37  ;;  %v12831_v37 = vld [vmem:[#allocation37_spill] sm:$0xff] }
 0xaab   : > { %4976 = vmax.xlane.f32.xlu0 %v11315_v52 }
 0xaac   : > { %4060 = vadd.xlane.f32.xlu1 %v12824_v20  ;;  %v11332_v20 = vpop.xlane.xlu1 %3537 }
 0xaaf   : > { %3547 = vadd.xlane.f32.xlu0 %v12825_v30  ;;  %v12832_v30 = vld [vmem:[#allocation39_spill] sm:$0xff] }
 0xab0   : > { %3071 = vadd.xlane.f32.xlu1 %v12826_v17  ;;  %v11336_v34 = vpop.xlane.xlu1 %4530 }
 0xab3   : > { %4986 = vmax.xlane.f32.xlu0 %v11323_v10 }
 0xab4   : > { %4064 = vadd.xlane.f32.xlu1 %v12829_v3  ;;  %v11339_v17 = vpop.xlane.xlu1 %3541  ;;  %v12833_v3 = vld [vmem:[#allocation43_spill] sm:$0xff] }
 0xab7   : > { %4540 = vadd.xlane.f32.xlu0 %v11119_v35 }
 0xab8   : > { %3075 = vadd.xlane.f32.xlu1 %v12830_v57  ;;  %v11342_v35 = vpop.xlane.xlu1 %4534  ;;  %v12834_v57 = vld [vmem:[#allocation103_spill] sm:$0xff] }
 0xabb   : > { %3551 = vadd.xlane.f32.xlu0 %v12831_v37 }
 0xabc   : > { %v11346_v37 = vpop.xlane.xlu1 %3545 }
 0xabf   : > { %4544 = vadd.xlane.f32.xlu0 %v11129_v11 }
 0xac0   : > { %v11349_v11 = vpop.xlane.xlu1 %4538 }
 0xac3   : > { %3555 = vadd.xlane.f32.xlu0 %v12832_v30 }
 0xac7   : > { %4548 = vadd.xlane.f32.xlu0 %v11139_v1 }
 0xacb   : > { %3559 = vadd.xlane.f32.xlu0 %v12833_v3 }
 0xacf   : > { %4552 = vadd.xlane.f32.xlu0 %v11149_v40 }
 0xad3   : > { %3563 = vadd.xlane.f32.xlu0 %v12834_v57 }
 0xad7   : > { %4050 = vadd.xlane.f32.xlu0 %v12835_v61 }
 0xadb   : > { %v4963_v30 = vpop.xlane.xlu0 %4962  ;;  %3061 = vadd.xlane.f32.xlu0 %v12836_v47 }
 0xadc   : > { %v4992_v3 = vsub.f32 %v11223_v4, %v4963_v30 }
 0xadd   : > { %v4965_v1 = vpop.xlane.xlu1 %4964 }
 0xade   : > { %v4993_v6 = vsub.f32 %v11228_v31, %v4965_v1  ;;  %v5010_v27 = vmul.f32 1.442695, %v4992_v3  ;;  %v12839_v31 = vld [vmem:[#allocation116_spill] sm:$0xff] }
 0xadf   : > { %v4959_v8 = vpop.xlane.xlu0 %4958  ;;  %4054 = vadd.xlane.f32.xlu0 %v12837_v49  ;;  %v12840_v49 = vld [vmem:[#allocation74_spill] sm:$0xff] }
 0xae0   : > { %v5012_v40 = vmul.f32 1.442695, %v4993_v6  ;;  %v4990_v57 = vsub.f32 %v11233_v32, %v4959_v8 }
 0xae1   : > { %v4961_v41 = vpop.xlane.xlu1 %4960 }
 0xae2   : > { %v5006_v44 = vmul.f32 1.442695, %v4990_v57  ;;  %v4991_v61 = vsub.f32 %v11238_v23, %v4961_v41  ;;  %8877 = vpow2.f32 %v5012_v40  ;;  %v12842_v40 = vld [vmem:[#allocation75_spill] sm:$0xff]  ;;  %v5296_v57 = vsel %vm12843_vm7, %v11121_v14, 0  ;;  %vm12848_vm7 = vmmov %vm12846_vm0 }
 0xae3   : > { %v5591_v33 = vpop.permute.xlu0 %5590  ;;  %3065 = vadd.xlane.f32.xlu0 %v12838_v42 }
 0xae4   : > { %v5008_v47 = vmul.f32 1.442695, %v4991_v61  ;;  %7954 = vmatprep.subr.bf16.mxu0 %v5591_v33  ;;  %8879 = vpow2.f32 %v5006_v44 }
 0xae5   : > { %7955 = vmatpush3.bf16.msra.mxu0 %v5591_v33  ;;  %v4967_v4 = vpop.xlane.xlu1 %4966  ;;  %v12841_v33 = vld [vmem:[#allocation120_spill] sm:$0xff] }
 0xae6   : > { %8881 = vpow2.f32 %v5008_v47  ;;  %v4994_v32 = vsub.f32 %v11243_v59, %v4967_v4 }
 0xae7   : > { %8883 = vpow2.f32 %v5010_v27  ;;  %4058 = vadd.xlane.f32.xlu0 %v12839_v31  ;;  %v5299_v31 = vsel %vm12845_vm12, %v11114_v56, 0  ;;  %vm12849_vm12 = vmmov %vm12846_vm0 }
 0xae8   : > { %v5014_v41 = vmul.f32 1.442695, %v4994_v32 }
 0xae9   : > { %v11360_v6 = vpop.xlane.xlu1 %4972 }
 0xaea   : > { %8885 = vpow2.f32 %v5014_v41 }
 0xaeb   : > { %3069 = vadd.xlane.f32.xlu0 %v12840_v49 }
 0xaec   : > { %v11363_v8 = vpop.eup %8877 }
 0xaed   : > { %v4969_v23 = vpop.xlane.xlu1 %4968 }
 0xaee   : > { %v4995_v42 = vsub.f32 %v11253_v62, %v4969_v23  ;;  %v11366_v30 = vpop.eup %8879  ;;  %v5305_v23 = vsel %vm12849_vm12, %v11131_v21, 0  ;;  %vm12852_vm12 = vmmov %vm12846_vm0 }
 0xaef   : > { %4062 = vadd.xlane.f32.xlu0 %v12841_v33 }
 0xaf0   : > { %v11369_v44 = vpop.eup %8881  ;;  %v5016_v27 = vmul.f32 1.442695, %v4995_v42 }
 0xaf1   : > { %v11371_v1 = vpop.eup %8883  ;;  %v5086_v59 = vpack.c.bf16 %v11369_v44, %v11366_v30  ;;  %v11378_v62 = vpop.xlane.xlu1 %4978 }
 0xaf2   : > { %8887 = vpow2.f32 %v5016_v27  ;;  %v5087_v3 = vpack.c.bf16 %v11363_v8, %v11371_v1 }
 0xaf3   : > { %3073 = vadd.xlane.f32.xlu0 %v12842_v40  ;;  %7892 = vmatprep.mubr.bf16.mxu1 %v5086_v59  ;;  %8889 = vrcp.f32 %v11329_v18  ;;  %v5311_v18 = vsel %vm12852_vm12, %v11145_v2, 0  ;;  %vm12857_vm12 = vmmov %vm12846_vm0 }
 0xaf4   : > { %7893 = vmatmul.mubr.bf16.vlgmr.msra.gmra.mrb[176].mxu1 %v5087_v3  ;;  %v11386_v47 = vpop.eup %8885 }
 0xaf5   : > { %7909 = vmatpush3.bf16.xpose.msra.mxu1 %v5296_v57  ;;  %v11384_v61 = vpop.xlane.xlu1 %4980 }
 0xaf6   : > { %8253 = vmatprep.subr.msk.bf16.mxu1 %vm12844_vm10, %v11114_v56  ;;  %vm12847_vm10 = vmmov %vm12846_vm0 }
 0xaf7   : > { %v5302_v49 = vsel %vm12847_vm10, %v11133_v9, 0  ;;  %vm12850_vm10 = vmmov %vm12846_vm0 }
 0xaf8   : > { %v5308_v33 = vsel %vm12850_vm10, %v11141_v12, 0  ;;  %vm12853_vm10 = vmmov %vm12846_vm0 }
 0xaf9   : > { %v11396_v14 = vpop.xlane.xlu1 %3549 }
 0xafc   : > { %v11388_v4 = vpop.eup %8887 }
 0xafd   : > { %7911 = vmatpush3.bf16.xpose.msra.mxu1 %v5299_v31  ;;  %v5088_v32 = vpack.c.bf16 %v11388_v4, %v11386_v47  ;;  %v11400_v41 = vpop.xlane.xlu1 %4542 }
 0xafe   : > { %8254 = vmatprep.subr.msk.bf16.mxu1 %vm12846_vm0, %v11133_v9 }
 0xaff   : > { %7896 = vmatprep.mubr.bf16.mxu1 %v5088_v32 }
 0xb01   : > { %v11404_v56 = vpop.xlane.xlu1 %3553 }
 0xb05   : > { %7913 = vmatpush3.bf16.xpose.msra.mxu1 %v5302_v49  ;;  %v11410_v42 = vpop.xlane.xlu1 %4546 }
 0xb06   : > { %8255 = vmatprep.subr.msk.bf16.mxu1 %vm12848_vm7, %v11131_v21  ;;  %vm12851_vm7 = vmmov %vm12846_vm0 }
 0xb09   : > { %v11418_v21 = vpop.xlane.xlu1 %3557 }
 0xb0d   : > { %7915 = vmatpush3.bf16.xpose.msra.mxu1 %v5305_v23  ;;  %v11423_v3 = vpop.xlane.xlu1 %4550 }
 0xb0e   : > { %8256 = vmatprep.subr.msk.bf16.mxu1 %vm12846_vm0, %v11141_v12  ;;  %v8890_v12 = vpop.eup %8889 }
 0xb11   : > { %v11431_v49 = vpop.xlane.xlu1 %4982 }
 0xb14   : > { %v4525_v9 = vpop.xlane.xlu0 %4524 }
 0xb15   : > { %8891 = vrcp.f32 %v4525_v9  ;;  %7917 = vmatpush3.bf16.xpose.msra.mxu1 %v5308_v33  ;;  %v5314_v9 = vsel %vm12853_vm10, %v11151_v43, 0  ;;  %vm12873_vm10 = vmmov %vm12846_vm0 }
 0xb16   : > { %8257 = vmatprep.subr.msk.bf16.mxu1 %vm12851_vm7, %v11145_v2  ;;  %8893 = vrcp.f32 %v11332_v20  ;;  %v4710_v20 = vmul.f32 %v8890_v12, %v11195_v13  ;;  %v12855_v13 = vld [vmem:[#allocation16_spill] sm:$0xff]  ;;  %vm12856_vm7 = vmmov %vm12846_vm0 }
 0xb18   : > { %v3536_v27 = vpop.xlane.xlu0 %3535 }
 0xb19   : > { %8895 = vrcp.f32 %v3536_v27 }
 0xb1a   : > { %8897 = vrcp.f32 %v11336_v34 }
 0xb1c   : > { %v4529_v59 = vpop.xlane.xlu0 %4528 }
 0xb1d   : > { %8899 = vrcp.f32 %v4529_v59  ;;  %7919 = vmatpush3.bf16.xpose.msra.mxu1 %v5311_v18 }
 0xb1e   : > { %8258 = vmatprep.subr.msk.bf16.mxu1 %vm12846_vm0, %v11151_v43  ;;  %8901 = vrcp.f32 %v11339_v17  ;;  %v12854_v17 = vld [vmem:[#allocation14_spill] sm:$0xff] }
 0xb1f   : > { %v8892_v40 = vpop.eup %8891 }
 0xb20   : > { %v3540_v57 = vpop.xlane.xlu0 %3539  ;;  %v4709_v34 = vmul.f32 %v8892_v40, %v11191_v29  ;;  %v8894_v31 = vpop.eup %8893 }
 0xb21   : > { %8903 = vrcp.f32 %v3540_v57  ;;  %v3721_v27 = vmul.f32 %v8894_v31, %v12855_v13  ;;  %v5317_v31 = vsel %vm12857_vm12, %v11159_v15, 0  ;;  %vm12877_vm12 = vmmov %vm12846_vm0 }
 0xb22   : > { %v4725_v32 = vpack.c.bf16 %v4710_v20, %v4709_v34  ;;  %8905 = vrcp.f32 %v11342_v35  ;;  %v4989_v20 = vpop.xlane.xlu1 %4988 }
 0xb23   : > { %v8896_v2 = vpop.eup %8895 }
 0xb24   : > { %v4533_v23 = vpop.xlane.xlu0 %4532  ;;  %4741 = vrot.lane.b32.xlu0 %v4725_v32, %s9317_s21  ;;  %v3720_v33 = vmul.f32 %v8896_v2, %v12854_v17  ;;  %v8898_v29 = vpop.eup %8897  ;;  %v12858_v32 = vld [vmem:[#allocation13_spill] sm:$0xff] }
 0xb25   : > { %8907 = vrcp.f32 %v4533_v23  ;;  %7921 = vmatpush3.bf16.xpose.msra.mxu1 %v5314_v9  ;;  %v11442_v18 = vmul.f32 %v8898_v29, %v11193_v51  ;;  %v4997_v51 = vsub.f32 %v11248_v39, %v11360_v6  ;;  %v5000_v39 = vsub.f32 %v11258_v50, %v11378_v62 }
 0xb26   : > { %8259 = vmatprep.subr.msk.bf16.mxu1 %vm12856_vm7, %v11159_v15  ;;  %v3736_v59 = vpack.c.bf16 %v3721_v27, %v3720_v33  ;;  %8909 = vrcp.f32 %v11346_v37  ;;  %v4985_v6 = vpop.xlane.xlu1 %4984  ;;  %vm12874_vm7 = vmmov %vm12846_vm0 }
 0xb27   : > { %v8900_v35 = vpop.eup %8899  ;;  %v5026_v50 = vmul.f32 1.442695, %v5000_v39 }
 0xb28   : > { %v3544_v12 = vpop.xlane.xlu0 %3543  ;;  %3752 = vrot.lane.b32.xlu1 %v3736_v59, %s9317_s21  ;;  %v11446_v43 = vmul.f32 %v8900_v35, %v11189_v38  ;;  %v8902_v40 = vpop.eup %8901  ;;  %v12859_v38 = vld [vmem:[#allocation15_spill] sm:$0xff]  ;;  %v5001_v59 = vsub.f32 %v11263_v26, %v11384_v61 }
 0xb29   : > { %8911 = vrcp.f32 %v3544_v12  ;;  %v11459_v23 = vmul.f32 %v8902_v40, %v12859_v38  ;;  %v5003_v40 = vsub.f32 %v11287_v0, %v4985_v6  ;;  %v5002_v0 = vsub.f32 %v11276_v16, %v11431_v49 }
 0xb2a   : > { %v4726_v57 = vpack.c.bf16 %v11442_v18, %v11446_v43  ;;  %8913 = vrcp.f32 %v11349_v11  ;;  %v5020_v11 = vmul.f32 1.442695, %v4997_v51  ;;  %v12890_v18 = vld [vmem:[#allocation45_spill] sm:$0xff] }
 0xb2b   : > { %v8904_v34 = vpop.eup %8903 }
 0xb2c   : > { %v4537_v37 = vpop.xlane.xlu0 %4536  ;;  %v11456_v2 = vmul.f32 %v8904_v34, %v12858_v32  ;;  %v8906_v9 = vpop.eup %8905  ;;  %v5028_v32 = vmul.f32 1.442695, %v5001_v59 }
 0xb2d   : > { %8915 = vrcp.f32 %v4537_v37  ;;  %7923 = vmatpush3.bf16.xpose.msra.mxu1 %v5317_v31  ;;  %v11464_v15 = vmul.f32 %v8906_v9, %v11203_v58  ;;  %v12860_v31 = vld [vmem:[#allocation18_spill] sm:$0xff]  ;;  %v5032_v9 = vmul.f32 1.442695, %v5003_v40 }
 0xb2e   : > { %v3737_v17 = vpack.c.bf16 %v11459_v23, %v11456_v2  ;;  %8917 = vpow2.f32 %v5020_v11 }
 0xb2f   : > { %v8908_v33 = vpop.eup %8907 }
 0xb30   : > { %v4971_v13 = vpop.xlane.xlu0 %4970  ;;  %v11469_v27 = vmul.f32 %v8908_v33, %v11199_v7  ;;  %v8910_v29 = vpop.eup %8909  ;;  %v12861_v7 = vld [vmem:[#allocation20_spill] sm:$0xff] }
 0xb31   : > { %v4996_v35 = vsub.f32 %v11303_v24, %v4971_v13  ;;  %v11481_v37 = vmul.f32 %v8910_v29, %v12861_v7  ;;  %v5030_v29 = vmul.f32 1.442695, %v5002_v0 }
 0xb32   : > { %v4727_v12 = vpack.c.bf16 %v11464_v15, %v11469_v27  ;;  %v8667_v15 = vld [vmem:[#allocation8 + $0x170] ss:$12 sps:$4 sm:$0xff]  }
 0xb33   : > { %v8912_v58 = vpop.eup %8911  ;;  %v5018_v34 = vmul.f32 1.442695, %v4996_v35  ;;  %v11503_v35 = vpop.xlane.xlu1 %3561  ;;  %v8668_v27 = vld [vmem:[#allocation8 + $0xb0] ss:$12 sps:$4 sm:$0xff]  }
 0xb34   : > { %v4975_v62 = vpop.xlane.xlu0 %4974  ;;  %v11478_v51 = vmul.f32 %v8912_v58, %v12860_v31  ;;  %v8914_v24 = vpop.eup %8913 }
 0xb35   : > { %8919 = vpow2.f32 %v5018_v34  ;;  %v4998_v26 = vsub.f32 %v11309_v60, %v4975_v62  ;;  %v11489_v33 = vmul.f32 %v8914_v24, %v11201_v19  ;;  %v5005_v19 = vsub.f32 %v11281_v48, %v4989_v20  ;;  %v12864_v24 = vld [vmem:[#allocation77_spill] sm:$0xff] }
 0xb36   : > { %v3738_v61 = vpack.c.bf16 %v11481_v37, %v11478_v51  ;;  %8921 = vpow2.f32 %v5026_v50  ;;  %v12862_v50 = vld [vmem:[#allocation118_spill] sm:$0xff] }
 0xb37   : > { %v8916_v38 = vpop.eup %8915  ;;  %v5022_v11 = vmul.f32 1.442695, %v4998_v26  ;;  %8923 = vpow2.f32 %v5028_v32  ;;  %v4555_v26 = vpop.xlane.xlu1 %4554 }
 0xb38   : > { %v4977_v39 = vpop.xlane.xlu0 %4976  ;;  %v11492_v6 = vmul.f32 %v8916_v38, %v11197_v46  ;;  %8925 = vrcp.f32 %v11396_v14  ;;  %v11499_v59 = vpop.eup %8917 }
 0xb39   : > { %v4999_v60 = vsub.f32 %v11315_v52, %v4977_v39  ;;  %8927 = vpow2.f32 %v5032_v9  ;;  %v5036_v52 = vmul.f32 1.442695, %v5005_v19  ;;  %v12865_v39 = vld [vmem:[#allocation17_spill] sm:$0xff] }
 0xb3a   : > { %v4728_v13 = vpack.c.bf16 %v11489_v33, %v11492_v6  ;;  %8929 = vpow2.f32 %v5022_v11  ;;  %v12924_v6 = vld [vmem:[#allocation131_spill] sm:$0xff] }
 0xb3b   : > { %v5024_v16 = vmul.f32 1.442695, %v4999_v60 }
 0xb3c   : > { %v3548_v49 = vpop.xlane.xlu0 %3547 }
 0xb3d   : > { %8931 = vpow2.f32 %v5024_v16 }
 0xb3e   : > { %8933 = vrcp.f32 %v3548_v49  ;;  %v3566_v49 = vpop.xlane.xlu1 %3565 }
 0xb3f   : > { %v11501_v46 = vpop.eup %8919  ;;  %8935 = vpow2.f32 %v5030_v29  ;;  %v12866_v29 = vld [vmem:[#allocation19_spill] sm:$0xff] }
 0xb40   : > { %v4987_v14 = vpop.xlane.xlu0 %4986  ;;  %v5089_v58 = vpack.c.bf16 %v11499_v59, %v11501_v46  ;;  %v11508_v34 = vpop.eup %8921  ;;  %8937 = vrcp.f32 %v11400_v41 }
 0xb41   : > { %v5004_v40 = vsub.f32 %v11323_v10, %v4987_v14  ;;  %v11510_v48 = vpop.eup %8923  ;;  %8939 = vpow2.f32 %v5036_v52  ;;  %v12867_v14 = vld [vmem:[#allocation121_spill] sm:$0xff] }
 0xb42   : > { %7897 = vmatmul.mubr.bf16.gmra.mrb[180].mxu1 %v5089_v58  ;;  %v8926_v62 = vpop.eup %8925  ;;  %v5091_v11 = vpack.c.bf16 %v11510_v48, %v11508_v34 }
 0xb43   : > { %v5034_v20 = vmul.f32 1.442695, %v5004_v40  ;;  %4068 = vadd.xlane.f32.xlu0 %v12862_v50  ;;  %v11514_v7 = vpop.eup %8927  ;;  %v11532_v16 = vmul.f32 %v8926_v62, %v12866_v29  ;;  %v12871_v29 = vld [vmem:[#allocation105_spill] sm:$0xff] }
 0xb44   : > { %v4541_v31 = vpop.xlane.xlu0 %4540  ;;  %12863 = vst [vmem:[#allocation28_spill] sm:$0xff] %v11514_v7  ;;  %v11516_v32 = vpop.eup %8929 }
 0xb45   : > { %8941 = vpow2.f32 %v5034_v20 }
 0xb46   : > { %8943 = vrcp.f32 %v4541_v31 }
 0xb47   : > { %v11518_v10 = vpop.eup %8931  ;;  %8945 = vrcp.f32 %v11404_v56  ;;  %3077 = vadd.xlane.f32.xlu0 %v12864_v24 }
 0xb48   : > { %v8934_v41 = vpop.eup %8933  ;;  %v3552_v38 = vpop.xlane.xlu0 %3551  ;;  %v5090_v0 = vpack.c.bf16 %v11518_v10, %v11516_v32 }
 0xb49   : > { %v11524_v9 = vpop.eup %8935  ;;  %8947 = vrcp.f32 %v3552_v38  ;;  %v11529_v60 = vmul.f32 %v8934_v41, %v12865_v39 }
 0xb4a   : > { %7900 = vmatprep.mubr.bf16.mxu1 %v5090_v0  ;;  %v5092_v56 = vpack.c.bf16 %v11514_v7, %v11524_v9  ;;  %8949 = vrcp.f32 %v11410_v42  ;;  %v8938_v58 = vpop.eup %8937  ;;  %v12870_v42 = vld [vmem:[#allocation79_spill] sm:$0xff]  ;;  %v4053_v0 = vpop.xlane.xlu1 %4052  ;;  %v12973_v7 = vld [vmem:[#allocation101_spill] sm:$0xff] }
 0xb4b   : > { %7901 = vmatmul.mubr.bf16.gmra.mrb[184].mxu1 %v5091_v11  ;;  %v11540_v40 = vpop.eup %8939  ;;  %v11552_v38 = vmul.f32 %v8938_v58, %v11211_v55 }
 0xb4c   : > { %v4545_v52 = vpop.xlane.xlu0 %4544  ;;  %4066 = vadd.xlane.f32.xlu1 %v12867_v14  ;;  %7904 = vmatprep.mubr.bf16.mxu1 %v5092_v56  ;;  %12868 = vst [vmem:[#allocation33_spill] sm:$0xff] %v11540_v40 }
 0xb4d   : > { %8951 = vrcp.f32 %v4545_v52 }
 0xb4e   : > { %8953 = vrcp.f32 %v11418_v21  ;;  %v3064_v58 = vpop.xlane.xlu1 %3063 }
 0xb4f   : > { %v11542_v20 = vpop.eup %8941 }
 0xb50   : > { %12869 = vst [vmem:[#allocation34_spill] sm:$0xff] %v11542_v20  ;;  %v8944_v50 = vpop.eup %8943  ;;  %v3556_v62 = vpop.xlane.xlu0 %3555  ;;  %3079 = vadd.xlane.f32.xlu1 %v12870_v42  ;;  %v5093_v31 = vpack.c.bf16 %v11540_v40, %v11542_v20 }
 0xb51   : > { %v8946_v24 = vpop.eup %8945  ;;  %8955 = vrcp.f32 %v3556_v62  ;;  %v11549_v41 = vmul.f32 %v8944_v50, %v11207_v53  ;;  %v12872_v53 = vld [vmem:[#allocation107_spill] sm:$0xff] }
 0xb52   : > { %8957 = vrcp.f32 %v11423_v3  ;;  %v11563_v52 = vmul.f32 %v8946_v24, %v12872_v53 }
 0xb53   : > { %v8948_v11 = vpop.eup %8947  ;;  %7905 = vmatmul.mubr.bf16.gmra.mrb[188].mxu1 %v5093_v31 }
 0xb54   : > { %v4549_v39 = vpop.xlane.xlu0 %4548  ;;  %7924 = vmatprep.mubr.msk.bf16.mxu1 %vm12846_vm0, %v11161_v36  ;;  %v11560_v56 = vmul.f32 %v8948_v11, %v12871_v29  ;;  %v8950_v55 = vpop.eup %8949 }
 0xb55   : > { %8959 = vrcp.f32 %v4549_v39  ;;  %v11572_v36 = vmul.f32 %v8950_v55, %v11209_v25  ;;  %v12876_v39 = vld [vmem:[#allocation106_spill] sm:$0xff] }
 0xb56   : > { %8961 = vrcp.f32 %v11503_v35  ;;  %v12875_v35 = vld [vmem:[#allocation104_spill] sm:$0xff] }
 0xb57   : > { %v8952_v3 = vpop.eup %8951 }
 0xb58   : > { %v3560_v50 = vpop.xlane.xlu0 %3559  ;;  %v11569_v62 = vmul.f32 %v8952_v3, %v11205_v54  ;;  %v8954_v42 = vpop.eup %8953 }
 0xb59   : > { %8963 = vrcp.f32 %v3560_v50  ;;  %v11584_v25 = vmul.f32 %v8954_v42, %v12876_v39  ;;  %v12882_v39 = vld [vmem:[#allocation27_spill] sm:$0xff] }
 0xb5a   : > { %8965 = vrcp.f32 %v4555_v26  ;;  %v4057_v26 = vpop.xlane.xlu1 %4056 }
 0xb5b   : > { %v8956_v24 = vpop.eup %8955  ;;  %7925 = vmatmul.mubr.msk.bf16.vlgmr.msra.gmra.mrb[192].mxu1 %vm12873_vm10, %v11155_v28  ;;  %vm12884_vm10 = vmmov %vm12846_vm0  ;;  %v12894_v28 = vld [vmem:[#allocation87_spill] sm:$0xff] }
 0xb5c   : > { %v4553_v11 = vpop.xlane.xlu0 %4552  ;;  %7928 = vmatprep.mubr.msk.bf16.mxu1 %vm12874_vm7, %v11169_v63  ;;  %v11581_v54 = vmul.f32 %v8956_v24, %v12875_v35  ;;  %v8958_v29 = vpop.eup %8957  ;;  %v12880_v24 = vld [vmem:[#allocation111_spill] sm:$0xff]  ;;  %vm12886_vm7 = vmmov %vm12846_vm0 }
 0xb5d   : > { %8967 = vrcp.f32 %v4553_v11  ;;  %4743 = vrot.lane.b32.xlu0 %v4726_v57, %s9317_s21  ;;  %v11596_v3 = vmul.f32 %v8958_v29, %v11219_v22  ;;  %v12879_v22 = vld [vmem:[#allocation109_spill] sm:$0xff] }
 0xb5e   : > { %8969 = vrcp.f32 %v3566_v49  ;;  %v12878_v49 = vld [vmem:[#allocation36_spill] sm:$0xff] }
 0xb5f   : > { %v8960_v53 = vpop.eup %8959 }
 0xb60   : > { %v3564_v63 = vpop.xlane.xlu0 %3563  ;;  %v11593_v55 = vmul.f32 %v8960_v53, %v11215_v5  ;;  %v8962_v50 = vpop.eup %8961 }
 0xb61   : > { %8971 = vrcp.f32 %v3564_v63  ;;  %3754 = vrot.lane.b32.xlu1 %v3737_v17, %s9317_s21  ;;  %v3068_v5 = vpop.xlane.xlu1 %3067  ;;  %v11612_v11 = vmul.f32 %v8962_v50, %v12880_v24 }
 0xb62   : > { %8973 = vrcp.f32 %v4053_v0 }
 0xb63   : > { %v8964_v43 = vpop.eup %8963  ;;  %7929 = vmatmul.mubr.msk.bf16.gmra.mrb[196].mxu1 %vm12877_vm12, %v11163_v45  ;;  %v12881_v45 = vld [vmem:[#allocation24_spill] sm:$0xff]  ;;  %vm12892_vm12 = vmmov %vm12846_vm0 }
 0xb64   : > { %v4051_v57 = vpop.xlane.xlu0 %4050  ;;  %7932 = vmatprep.mubr.msk.bf16.mxu1 %vm12846_vm0, %v12878_v49  ;;  %v11609_v42 = vmul.f32 %v8964_v43, %v12879_v22  ;;  %v8966_v2 = vpop.eup %8965  ;;  %v12887_v22 = vld [vmem:[#allocation108_spill] sm:$0xff] }
 0xb65   : > { %8975 = vrcp.f32 %v4051_v57  ;;  %v11620_v29 = vmul.f32 %v8966_v2, %v12882_v39  ;;  %v4061_v63 = vpop.xlane.xlu1 %4060  ;;  %v12883_v57 = vld [vmem:[#allocation30_spill] sm:$0xff] }
 0xb66   : > { %8977 = vrcp.f32 %v3064_v58  ;;  %v12885_v58 = vld [vmem:[#allocation40_spill] sm:$0xff]  ;;  %v12888_v2 = vld [vmem:[#allocation110_spill] sm:$0xff] }
 0xb67   : > { %v8968_v17 = vpop.eup %8967 }
 0xb68   : > { %v3062_v0 = vpop.xlane.xlu0 %3061  ;;  %v11617_v35 = vmul.f32 %v8968_v17, %v12881_v45  ;;  %v8970_v53 = vpop.eup %8969 }
 0xb69   : > { %8979 = vrcp.f32 %v3062_v0  ;;  %v11632_v17 = vmul.f32 %v8970_v53, %v12888_v2  ;;  %v12891_v53 = vld [vmem:[#allocation22_spill] sm:$0xff] }
 0xb6a   : > { %8981 = vrcp.f32 %v4057_v26  ;;  %v12889_v26 = vld [vmem:[#allocation47_spill] sm:$0xff] }
 0xb6b   : > { %v8972_v43 = vpop.eup %8971  ;;  %7933 = vmatmul.mubr.msk.bf16.gmra.mrb[200].mxu1 %vm12884_vm10, %v12883_v57  ;;  %v3072_v57 = vpop.xlane.xlu1 %3071  ;;  %vm12897_vm10 = vmmov %vm12846_vm0 }
 0xb6c   : > { %v4055_v49 = vpop.xlane.xlu0 %4054  ;;  %7936 = vmatprep.mubr.msk.bf16.mxu1 %vm12886_vm7, %v12885_v58  ;;  %v11629_v24 = vmul.f32 %v8972_v43, %v12887_v22  ;;  %v8974_v0 = vpop.eup %8973  ;;  %vm12901_vm7 = vmmov %vm12846_vm0 }
 0xb6d   : > { %8983 = vrcp.f32 %v4055_v49  ;;  %v4204_v50 = vmul.f32 %v8974_v0, %v12889_v26  ;;  %v12893_v49 = vld [vmem:[#allocation89_spill] sm:$0xff] }
 0xb6e   : > { %8985 = vrcp.f32 %v3068_v5 }
 0xb6f   : > { %v8976_v39 = vpop.eup %8975  ;;  %v4065_v0 = vpop.xlane.xlu1 %4064 }
 0xb70   : > { %v4203_v23 = vmul.f32 %v8976_v39, %v12890_v18  ;;  %v3066_v31 = vpop.xlane.xlu0 %3065  ;;  %v8978_v58 = vpop.eup %8977 }
 0xb71   : > { %8987 = vrcp.f32 %v3066_v31  ;;  %v3215_v2 = vmul.f32 %v8978_v58, %v12893_v49  ;;  %v12895_v31 = vld [vmem:[#allocation48_spill] sm:$0xff]  ;;  %v8655_v49 = vld [vmem:[#allocation8 + $0xe0] ss:$12 sps:$4 sm:$0xff]  }
 0xb72   : > { %v4219_v43 = vpack.c.bf16 %v4204_v50, %v4203_v23  ;;  %8989 = vrcp.f32 %v4061_v63  ;;  %v12896_v50 = vld [vmem:[#allocation46_spill] sm:$0xff] }
 0xb73   : > { %v8980_v22 = vpop.eup %8979  ;;  %7937 = vmatmul.mubr.msk.bf16.gmra.mrb[204].mxu1 %vm12892_vm12, %v12891_v53  ;;  %vm12905_vm12 = vmmov %vm12846_vm0 }
 0xb74   : > { %v3214_v45 = vmul.f32 %v8980_v22, %v12894_v28  ;;  %v4059_v21 = vpop.xlane.xlu0 %4058  ;;  %4227 = vst.msk [vmem:[#allocation2 + $0x8] sm:$0xff] %vm12846_vm0, %v4219_v43  ;;  %v8982_v5 = vpop.eup %8981  ;;  %v8653_v22 = vld [vmem:[#allocation8 + $0xc8] ss:$12 sps:$4 sm:$0xff]  }
 0xb75   : > { %8991 = vrcp.f32 %v4059_v21  ;;  %v4206_v23 = vmul.f32 %v8982_v5, %v12895_v31  ;;  %v8654_v43 = vld [vmem:[#allocation8 + $0x8] ss:$12 sps:$4 sm:$0xff]   ;;  %v12898_v21 = vld [vmem:[#allocation88_spill] sm:$0xff]  ;;  %8004 = vmatprep.subr.bf16.mxu1 %v8653_v22  ;;  %v8656_v31 = vld [vmem:[#allocation8 + $0x20] ss:$12 sps:$4 sm:$0xff]  }
 0xb76   : > { %v3230_v18 = vpack.c.bf16 %v3215_v2, %v3214_v45  ;;  %8993 = vrcp.f32 %v3072_v57  ;;  %v3076_v45 = vpop.xlane.xlu1 %3075  ;;  %v12899_v2 = vld [vmem:[#allocation86_spill] sm:$0xff]  ;;  %v12900_v5 = vld [vmem:[#allocation123_spill] sm:$0xff]  ;;  %8012 = vmatpush3.bf16.msra.mxu1 %v8654_v43 }
 0xb77   : > { %v8984_v39 = vpop.eup %8983  ;;  %8005 = vmatprep.subr.bf16.mxu1 %v8655_v49  ;;  %v12907_v43 = vld [vmem:[#allocation91_spill] sm:$0xff] }
 0xb78   : > { %v4205_v63 = vmul.f32 %v8984_v39, %v12896_v50  ;;  %v3070_v26 = vpop.xlane.xlu0 %3069  ;;  %3238 = vst.msk [vmem:[#allocation2] sm:$0xff] %vm12897_vm10, %v3230_v18  ;;  %v8986_v53 = vpop.eup %8985  ;;  %vm12911_vm10 = vmmov %vm12846_vm0 }
 0xb79   : > { %8995 = vrcp.f32 %v3070_v26  ;;  %v3217_v14 = vmul.f32 %v8986_v53, %v12898_v21 }
 0xb7a   : > { %v4220_v58 = vpack.c.bf16 %v4206_v23, %v4205_v63  ;;  %8997 = vrcp.f32 %v4065_v0  ;;  %v12902_v23 = vld [vmem:[#allocation51_spill] sm:$0xff]  ;;  %v12903_v63 = vld [vmem:[#allocation49_spill] sm:$0xff]  ;;  %8013 = vmatpush3.bf16.msra.mxu1 %v8656_v31 }
 0xb7b   : > { %v8988_v28 = vpop.eup %8987 }
 0xb7c   : > { %v3216_v57 = vmul.f32 %v8988_v28, %v12899_v2  ;;  %v4063_v19 = vpop.xlane.xlu0 %4062  ;;  %4072 = vadd.xlane.f32.xlu0 %v12900_v5  ;;  %4228 = vst.msk [vmem:[#allocation2 + $0x20] sm:$0xff] %vm12901_vm7, %v4220_v58  ;;  %v8990_v39 = vpop.eup %8989  ;;  %v12904_v28 = vld [vmem:[#allocation80_spill] sm:$0xff]  ;;  %vm12915_vm7 = vmmov %vm12846_vm0 }
 0xb7d   : > { %8999 = vrcp.f32 %v4063_v19  ;;  %v4208_v50 = vmul.f32 %v8990_v39, %v12902_v23  ;;  %v12909_v39 = vld [vmem:[#allocation52_spill] sm:$0xff]  ;;  %v12910_v23 = vld [vmem:[#allocation50_spill] sm:$0xff] }
 0xb7e   : > { %v3231_v18 = vpack.c.bf16 %v3217_v14, %v3216_v57  ;;  %9001 = vrcp.f32 %v3076_v45  ;;  %v12906_v14 = vld [vmem:[#allocation93_spill] sm:$0xff]  ;;  %v12908_v45 = vld [vmem:[#allocation122_spill] sm:$0xff] }
 0xb7f   : > { %v8992_v0 = vpop.eup %8991 }
 0xb80   : > { %v4207_v26 = vmul.f32 %v8992_v0, %v12903_v63  ;;  %v3074_v53 = vpop.xlane.xlu0 %3073  ;;  %3081 = vadd.xlane.f32.xlu0 %v12904_v28  ;;  %3239 = vst.msk [vmem:[#allocation2 + $0x18] sm:$0xff] %vm12905_vm12, %v3231_v18  ;;  %v8994_v21 = vpop.eup %8993  ;;  %v8657_v63 = vld [vmem:[#allocation8 + $0xf8] ss:$12 sps:$4 sm:$0xff]   ;;  %vm12916_vm12 = vmmov %vm12846_vm0 }
 0xb81   : > { %9003 = vrcp.f32 %v3074_v53  ;;  %v3219_v22 = vmul.f32 %v8994_v21, %v12906_v14  ;;  %v8658_v28 = vld [vmem:[#allocation8 + $0x38] ss:$12 sps:$4 sm:$0xff]   ;;  %8006 = vmatprep.subr.bf16.mxu1 %v8657_v63 }
 0xb82   : > { %v4221_v19 = vpack.c.bf16 %v4208_v50, %v4207_v26  ;;  %v12912_v50 = vld [vmem:[#allocation81_spill] sm:$0xff]  ;;  %v12913_v21 = vld [vmem:[#allocation92_spill] sm:$0xff]  ;;  %8014 = vmatpush3.bf16.msra.mxu1 %v8658_v28  ;;  %v12923_v28 = vpack.c.bf16 %v11532_v16, %v11529_v60 }
 0xb83   : > { %v8996_v58 = vpop.eup %8995  ;;  %v12920_v63 = vld [vmem:[#allocation84_spill] sm:$0xff] }
 0xb84   : > { %v3218_v2 = vmul.f32 %v8996_v58, %v12907_v43  ;;  %4229 = vst.msk [vmem:[#allocation2 + $0x38] sm:$0xff] %vm12846_vm0, %v4221_v19  ;;  %v8998_v49 = vpop.eup %8997  ;;  %v12914_v58 = vld [vmem:[#allocation90_spill] sm:$0xff]  ;;  %vm3776_vm0 = vcmask 1048064  }
 0xb85   : > { %4070 = vadd.xlane.f32.xlu1 %v12908_v45  ;;  %v4210_v0 = vmul.f32 %v8998_v49, %v12909_v39  ;;  %v8661_v49 = vld [vmem:[#allocation8 + $0x128] ss:$12 sps:$4 sm:$0xff]   ;;  %v8664_v39 = vld [vmem:[#allocation8 + $0x80] ss:$12 sps:$4 sm:$0xff]  }
 0xb86   : > { %v3232_v57 = vpack.c.bf16 %v3219_v22, %v3218_v2  ;;  %v8659_v22 = vld [vmem:[#allocation8 + $0x110] ss:$12 sps:$4 sm:$0xff]   ;;  %v8662_v45 = vld [vmem:[#allocation8 + $0x68] ss:$12 sps:$4 sm:$0xff]  }
 0xb87   : > { %v9000_v5 = vpop.eup %8999  ;;  %v8660_v2 = vld [vmem:[#allocation8 + $0x50] ss:$12 sps:$4 sm:$0xff]   ;;  %8007 = vmatprep.subr.bf16.mxu1 %v8659_v22 }
 0xb88   : > { %v4209_v18 = vmul.f32 %v9000_v5, %v12910_v23  ;;  %3240 = vst.msk [vmem:[#allocation2 + $0x30] sm:$0xff] %vm12911_vm10, %v3232_v57  ;;  %v9002_v31 = vpop.eup %9001  ;;  %8015 = vmatpush3.bf16.msra.mxu1 %v8660_v2  ;;  %v8663_v5 = vld [vmem:[#allocation8 + $0x140] ss:$12 sps:$4 sm:$0xff]   ;;  %v8665_v23 = vld [vmem:[#allocation8 + $0x158] ss:$12 sps:$4 sm:$0xff]   ;;  %vm12928_vm10 = vmmov %vm12915_vm7 }
 0xb89   : > { %3083 = vadd.xlane.f32.xlu1 %v12912_v50  ;;  %v3221_v19 = vmul.f32 %v9002_v31, %v12913_v21  ;;  %8008 = vmatprep.subr.bf16.mxu1 %v8661_v49  ;;  %v12918_v31 = vld [vmem:[#allocation82_spill] sm:$0xff]  ;;  %v12919_v50 = vld [vmem:[#allocation124_spill] sm:$0xff]  ;;  %v12925_v2 = vld [vmem:[#allocation129_spill] sm:$0xff] }
 0xb8a   : > { %v4222_v26 = vpack.c.bf16 %v4210_v0, %v4209_v18  ;;  %v8666_v18 = vld [vmem:[#allocation8 + $0x98] ss:$12 sps:$4 sm:$0xff]  }
 0xb8b   : > { %v9004_v53 = vpop.eup %9003 }
 0xb8c   : > { %v3220_v14 = vmul.f32 %v9004_v53, %v12914_v58  ;;  %4230 = vst.msk [vmem:[#allocation2 + $0x50] sm:$0xff] %vm12915_vm7, %v4222_v26  ;;  %8016 = vmatpush3.bf16.msra.mxu1 %v8662_v45 }
 0xb8d   : > { %8009 = vmatprep.subr.bf16.mxu1 %v8663_v5 }
 0xb8e   : > { %v3233_v43 = vpack.c.bf16 %v3221_v19, %v3220_v14 }
 0xb90   : > { %3241 = vst.msk [vmem:[#allocation2 + $0x48] sm:$0xff] %vm12916_vm12, %v3233_v43  ;;  %8017 = vmatpush3.bf16.msra.mxu1 %v8664_v39  ;;  %v12927_v39 = vld [vmem:[#allocation97_spill] sm:$0xff]  ;;  %vm12946_vm12 = vmmov %vm12915_vm7 }
 0xb91   : > { %8010 = vmatprep.subr.bf16.mxu1 %v8665_v23 }
 0xb94   : > { %8018 = vmatpush3.bf16.msra.mxu1 %v8666_v18  ;;  %v12929_v18 = vld [vmem:[#allocation125_spill] sm:$0xff] }
 0xb95   : > { %8011 = vmatprep.subr.bf16.mxu1 %v8667_v15  ;;  %v12930_v15 = vld [vmem:[#allocation85_spill] sm:$0xff] }
 0xb96   : > { %v4742_v57 = vpop.permute.xlu0 %4741  ;;  %4745 = vrot.lane.b32.xlu0 %v4727_v12, %s9317_s21  ;;  %v12917_v12 = vld [vmem:[#allocation126_spill] sm:$0xff] }
 0xb97   : > { %4765 = vst.msk [vmem:[#allocation2 + $0x8] sm:$0xff] %vm3776_vm0, %v4742_v57  ;;  %v12926_v57 = vld [vmem:[#allocation95_spill] sm:$0xff] }
 0xb98   : > { %8019 = vmatpush3.bf16.msra.mxu1 %v8668_v27  ;;  %v12931_v27 = vld [vmem:[#allocation127_spill] sm:$0xff] }
 0xb9a   : > { %3756 = vrot.lane.b32.xlu1 %v3738_v61, %s9317_s21  ;;  %v3753_v0 = vpop.permute.xlu1 %3752 }
 0xb9b   : > { %3777 = vst.msk [vmem:[#allocation2] sm:$0xff] %vm3776_vm0, %v3753_v0 }
 0xbb5   : > { %4076 = vadd.xlane.f32.xlu0 %v12917_v12  ;;  %v12932_v12 = vld [vmem:[#allocation83_spill] sm:$0xff] }
 0xbb9   : > { %3085 = vadd.xlane.f32.xlu0 %v12918_v31 }
 0xbbe   : > { %4074 = vadd.xlane.f32.xlu1 %v12919_v50 }
 0xbc2   : > { %3087 = vadd.xlane.f32.xlu1 %v12920_v63 }
 0xbc7   : > { %v11680_v51 = vpop.f32.mrb[176].mxu1 }
 0xbc8   : > { %12921 = vst [vmem:[#allocation38_spill] sm:$0xff] %v11680_v51  ;;  %v11682_v37 = vpop.f32.mrb[177].mxu1  ;;  %v12972_v51 = vld [vmem:[#allocation99_spill] sm:$0xff] }
 0xbc9   : > { %v11684_v61 = vpop.f32.mrb[178].mxu1 }
 0xbca   : > { %12922 = vst [vmem:[#allocation42_spill] sm:$0xff] %v11684_v61  ;;  %v11686_v26 = vpop.f32.mrb[179].mxu1 }
 0xbcf   : > { %4747 = vrot.lane.b32.xlu0 %v4728_v13, %s9317_s21 }
 0xbd0   : > { %v4069_v53 = vpop.xlane.xlu0 %4068 }
 0xbd1   : > { %9005 = vrcp.f32 %v4069_v53 }
 0xbd3   : > { %3758 = vrot.lane.b32.xlu1 %v12923_v28, %s9317_s21 }
 0xbd4   : > { %v3078_v21 = vpop.xlane.xlu0 %3077 }
 0xbd8   : > { %v4744_v19 = vpop.permute.xlu0 %4743 }
 0xbd9   : > { %4766 = vst.msk [vmem:[#allocation2 + $0x20] sm:$0xff] %vm3776_vm0, %v4744_v19  ;;  %v4067_v58 = vpop.xlane.xlu1 %4066 }
 0xbda   : > { %9007 = vrcp.f32 %v4067_v58 }
 0xbdb   : > { %9009 = vrcp.f32 %v3078_v21  ;;  %v9006_v43 = vpop.eup %9005 }
 0xbdc   : > { %v4212_v13 = vmul.f32 %v9006_v43, %v12924_v6 }
 0xbdd   : > { %v3080_v14 = vpop.xlane.xlu1 %3079 }
 0xbde   : > { %9011 = vrcp.f32 %v3080_v14 }
 0xbe1   : > { %v3755_v22 = vpop.permute.xlu1 %3754 }
 0xbe2   : > { %3778 = vst.msk [vmem:[#allocation2 + $0x18] sm:$0xff] %vm3776_vm0, %v3755_v22 }
 0xbe4   : > { %v9008_v33 = vpop.eup %9007 }
 0xbe5   : > { %v4211_v60 = vmul.f32 %v9008_v33, %v12925_v2  ;;  %v9010_v16 = vpop.eup %9009 }
 0xbe6   : > { %v3222_v5 = vmul.f32 %v9010_v16, %v12926_v57 }
 0xbe7   : > { %v4223_v49 = vpack.c.bf16 %v4212_v13, %v4211_v60  ;;  %v12937_v13 = vld [vmem:[#allocation130_spill] sm:$0xff]  ;;  %v12938_v60 = vld [vmem:[#allocation128_spill] sm:$0xff] }
 0xbe8   : > { %v9012_v45 = vpop.eup %9011 }
 0xbe9   : > { %v3223_v0 = vmul.f32 %v9012_v45, %v12927_v39  ;;  %4231 = vst.msk [vmem:[#allocation2 + $0x68] sm:$0xff] %vm12928_vm10, %v4223_v49  ;;  %vm12948_vm10 = vmmov %vm12915_vm7 }
 0xbeb   : > { %v3234_v23 = vpack.c.bf16 %v3223_v0, %v3222_v5 }
 0xbed   : > { %3242 = vst.msk [vmem:[#allocation2 + $0x60] sm:$0xff] %vm12915_vm7, %v3234_v23 }
 0xbee   : > { %4080 = vadd.xlane.f32.xlu0 %v12929_v18  ;;  %v12943_v18 = vld [vmem:[#allocation94_spill] sm:$0xff] }
 0xbf2   : > { %3089 = vadd.xlane.f32.xlu0 %v12930_v15 }
 0xbf7   : > { %4078 = vadd.xlane.f32.xlu1 %v12931_v27  ;;  %v12944_v27 = vld [vmem:[#allocation96_spill] sm:$0xff] }
 0xbfb   : > { %3091 = vadd.xlane.f32.xlu1 %v12932_v12 }
 0xc09   : > { %v4073_v31 = vpop.xlane.xlu0 %4072 }
 0xc0a   : > { %9013 = vrcp.f32 %v4073_v31 }
 0xc0d   : > { %v3082_v50 = vpop.xlane.xlu0 %3081 }
 0xc11   : > { %v4746_v63 = vpop.permute.xlu0 %4745 }
 0xc12   : > { %4767 = vst.msk [vmem:[#allocation2 + $0x38] sm:$0xff] %vm3776_vm0, %v4746_v63  ;;  %v4071_v53 = vpop.xlane.xlu1 %4070 }
 0xc13   : > { %9015 = vrcp.f32 %v4071_v53 }
 0xc14   : > { %9017 = vrcp.f32 %v3082_v50  ;;  %v9014_v33 = vpop.eup %9013 }
 0xc15   : > { %v11709_v28 = vpop.f32.mrb[180].mxu1  ;;  %v4214_v2 = vmul.f32 %v9014_v33, %v12937_v13 }
 0xc16   : > { %12933 = vst [vmem:[#allocation44_spill] sm:$0xff] %v11709_v28  ;;  %v11711_v21 = vpop.f32.mrb[181].mxu1  ;;  %v3084_v19 = vpop.xlane.xlu1 %3083 }
 0xc17   : > { %12934 = vst [vmem:[#allocation21_spill] sm:$0xff] %v11711_v21  ;;  %9019 = vrcp.f32 %v3084_v19  ;;  %v11713_v58 = vpop.f32.mrb[182].mxu1 }
 0xc18   : > { %12935 = vst [vmem:[#allocation23_spill] sm:$0xff] %v11713_v58  ;;  %v11715_v14 = vpop.f32.mrb[183].mxu1 }
 0xc19   : > { %12936 = vst [vmem:[#allocation25_spill] sm:$0xff] %v11715_v14  ;;  %v11717_v22 = vld [vmem:[#allocation2 + $0x38] sm:$0xff] }
 0xc1a   : > { %6556 = vmatprep.mubr.bf16.mxu1 %v11717_v22  ;;  %v3757_v43 = vpop.permute.xlu1 %3756 }
 0xc1b   : > { %3779 = vst.msk [vmem:[#allocation2 + $0x30] sm:$0xff] %vm3776_vm0, %v3757_v43 }
 0xc1d   : > { %v9016_v6 = vpop.eup %9015 }
 0xc1e   : > { %v4213_v16 = vmul.f32 %v9016_v6, %v12938_v60  ;;  %v11723_v49 = vpop.f32.mrb[184].mxu1  ;;  %v9018_v45 = vpop.eup %9017 }
 0xc1f   : > { %12939 = vst [vmem:[#allocation31_spill] sm:$0xff] %v11723_v49  ;;  %v11725_v57 = vpop.f32.mrb[185].mxu1  ;;  %v3224_v15 = vmul.f32 %v9018_v45, %v12943_v18  ;;  %v12966_v49 = vld [vmem:[#allocation67_spill] sm:$0xff] }
 0xc20   : > { %12940 = vst [vmem:[#allocation29_spill] sm:$0xff] %v11725_v57  ;;  %v11727_v5 = vpop.f32.mrb[186].mxu1  ;;  %v4224_v39 = vpack.c.bf16 %v4214_v2, %v4213_v16  ;;  %v12964_v57 = vld [vmem:[#allocation65_spill] sm:$0xff] }
 0xc21   : > { %12941 = vst [vmem:[#allocation41_spill] sm:$0xff] %v11727_v5  ;;  %v9020_v0 = vpop.eup %9019  ;;  %v11729_v23 = vpop.f32.mrb[187].mxu1 }
 0xc22   : > { %12942 = vst [vmem:[#allocation26_spill] sm:$0xff] %v11729_v23  ;;  %v3225_v12 = vmul.f32 %v9020_v0, %v12944_v27  ;;  %v11733_v31 = vld [vmem:[#allocation2 + $0x30] sm:$0xff]  ;;  %4232 = vst.msk [vmem:[#allocation2 + $0x80] sm:$0xff] %vm12946_vm12, %v4224_v39 }
 0xc23   : > { %12945 = vst [vmem:[#allocation102_spill] sm:$0xff] %v11733_v31  ;;  %6557 = vmatmul.mubr.bf16.vlgmr.msra.gmra.mrb[208].mxu1 %v11733_v31 }
 0xc24   : > { %v3235_v50 = vpack.c.bf16 %v3225_v12, %v3224_v15 }
 0xc26   : > { %v11737_v63 = vpop.f32.mrb[188].mxu1  ;;  %3243 = vst.msk [vmem:[#allocation2 + $0x78] sm:$0xff] %vm12948_vm10, %v3235_v50 }
 0xc27   : > { %12947 = vst [vmem:[#allocation32_spill] sm:$0xff] %v11737_v63  ;;  %v11740_v53 = vpop.f32.mrb[189].mxu1 }
 0xc28   : > { %12949 = vst [vmem:[#allocation114_spill] sm:$0xff] %v11740_v53  ;;  %v11742_v19 = vpop.f32.mrb[190].mxu1 }
 0xc29   : > { %12950 = vst [vmem:[#allocation72_spill] sm:$0xff] %v11742_v19  ;;  %v11744_v43 = vpop.f32.mrb[191].mxu1 }
 0xc2a   : > { %12951 = vst [vmem:[#allocation112_spill] sm:$0xff] %v11744_v43 }
 0xc2e   : > { %v7926_v33 = vpop.f32.mrb[192].mxu1 }
 0xc2f   : > { %v11748_v13 = vsel %vm10094_vm1, %v7926_v33, -inf  ;;  %v5353_v2 = vpop.f32.mrb[193].mxu1  ;;  %vm12965_vm1 = vnez %v12964_v57 }
 0xc30   : > { %v11752_v16 = vsel %vm10101_vm2, %v5353_v2, -inf  ;;  %5436 = vmax.xlane.f32.xlu1 %v11748_v13  ;;  %v7927_v45 = vpop.f32.mrb[194].mxu1  ;;  %vm12967_vm2 = vnez %v12966_v49 }
 0xc31   : > { %5432 = vmax.xlane.f32.xlu0 %v11752_v16  ;;  %v5356_v39 = vpop.f32.mrb[195].mxu1  ;;  %v11758_v18 = vsel %vm10116_vm3, %v7927_v45, -inf  ;;  %vm12974_vm3 = vmmov %vm12915_vm7 }
 0xc32   : > { %v11763_v12 = vsel %vm10122_vm4, %v5356_v39, -inf  ;;  %vm12975_vm4 = vmmov %vm12974_vm3 }
 0xc33   : > { %vm13009_vm7 = vmmov %vm12974_vm3 }
 0xc34   : > { %5438 = vmax.xlane.f32.xlu1 %v11758_v18  ;;  %vm13012_vm12 = vmmov %vm12974_vm3 }
 0xc35   : > { %vm13015_vm10 = vmmov %vm12974_vm3 }
 0xc36   : > { %v7930_v15 = vpop.f32.mrb[196].mxu1 }
 0xc37   : > { %v5369_v50 = vpop.f32.mrb[197].mxu1  ;;  %v11773_v0 = vsel %vm12817_vm13, %v7930_v15, -inf  ;;  %vm12999_vm13 = vmmov %vm12974_vm3 }
 0xc38   : > { %v11767_v6 = vsel %vm10143_vm5, %v5369_v50, -inf  ;;  %5434 = vmax.xlane.f32.xlu1 %v11763_v12  ;;  %v7931_v2 = vpop.f32.mrb[198].mxu1 }
 0xc39   : > { %5440 = vmax.xlane.f32.xlu0 %v11767_v6  ;;  %v5372_v60 = vpop.f32.mrb[199].mxu1  ;;  %v11778_v19 = vsel %vm12754_vm15, %v7931_v2, -inf  ;;  %vm12987_vm15 = vmmov %vm12974_vm3 }
 0xc3a   : > { %v11788_v43 = vsel %vm12684_vm9, %v5372_v60, -inf }
 0xc3c   : > { %5444 = vmax.xlane.f32.xlu1 %v11773_v0 }
 0xc3e   : > { %v7934_v27 = vpop.f32.mrb[200].mxu1 }
 0xc3f   : > { %v11782_v50 = vsel %vm12757_vm6, %v7934_v27, -inf  ;;  %v5385_v63 = vpop.f32.mrb[201].mxu1  ;;  %vm12993_vm6 = vmmov %vm12974_vm3 }
 0xc40   : > { %5446 = vmax.xlane.f32.xlu1 %v11778_v19  ;;  %5452 = vmax.xlane.f32.xlu0 %v11782_v50  ;;  %v7935_v40 = vpop.f32.mrb[202].mxu1  ;;  %v11792_v2 = vsel %vm12820_vm8, %v5385_v63, -inf  ;;  %vm13003_vm8 = vmmov %vm12974_vm3 }
 0xc41   : > { %v5388_v45 = vpop.f32.mrb[203].mxu1  ;;  %v11798_v5 = vsel %vm12687_vm11, %v7935_v40, -inf  ;;  %vm12985_vm11 = vmmov %vm12974_vm3 }
 0xc42   : > { %v4077_v15 = vpop.xlane.xlu0 %4076  ;;  %v11802_v23 = vsel %vm12823_vm14, %v5388_v45, -inf  ;;  %vm13008_vm14 = vmmov %vm12974_vm3 }
 0xc43   : > { %9021 = vrcp.f32 %v4077_v15 }
 0xc44   : > { %5442 = vmax.xlane.f32.xlu1 %v11788_v43  ;;  %5448 = vmax.xlane.f32.xlu0 %v11792_v2 }
 0xc46   : > { %v3086_v27 = vpop.xlane.xlu0 %3085  ;;  %v7938_v39 = vpop.f32.mrb[204].mxu1 }
 0xc47   : > { %v5401_v20 = vpop.f32.mrb[205].mxu1  ;;  %v11808_v58 = vsel %vm12965_vm1, %v7938_v39, -inf  ;;  %vm13020_vm1 = vmmov %vm12974_vm3 }
 0xc48   : > { %5454 = vmax.xlane.f32.xlu0 %v11798_v5  ;;  %5450 = vmax.xlane.f32.xlu1 %v11802_v23  ;;  %v7939_v63 = vpop.f32.mrb[206].mxu1  ;;  %v11814_v45 = vsel %vm12967_vm2, %v5401_v20, -inf  ;;  %v12971_v20 = vpack.c.bf16 %v11563_v52, %v11560_v56  ;;  %v12976_v56 = vpack.c.bf16 %v11552_v38, %v11549_v41  ;;  %v8671_v52 = vld [vmem:[#allocation8 + $0x4] ss:$12 sps:$4 sm:$0xff]  }
 0xc49   : > { %v5404_v53 = vpop.f32.mrb[207].mxu1  ;;  %6282 = vmatprep.subr.bf16.mxu0 %v8671_v52 }
 0xc4a   : > { %v4748_v60 = vpop.permute.xlu0 %4747 }
 0xc4b   : > { %4768 = vst.msk [vmem:[#allocation2 + $0x50] sm:$0xff] %vm3776_vm0, %v4748_v60  ;;  %v4075_v40 = vpop.xlane.xlu1 %4074 }
 0xc4c   : > { %9023 = vrcp.f32 %v4075_v40  ;;  %5460 = vmax.xlane.f32.xlu0 %v11808_v58  ;;  %v12969_v40 = vld [vmem:[#allocation135_spill] sm:$0xff] }
 0xc4d   : > { %9025 = vrcp.f32 %v3086_v27  ;;  %v9022_v39 = vpop.eup %9021  ;;  %v12970_v27 = vld [vmem:[#allocation133_spill] sm:$0xff] }
 0xc4e   : > { %v4216_v28 = vmul.f32 %v9022_v39, %v12969_v40 }
 0xc4f   : > { %v3088_v33 = vpop.xlane.xlu1 %3087 }
 0xc50   : > { %9027 = vrcp.f32 %v3088_v33  ;;  %5456 = vmax.xlane.f32.xlu0 %v11814_v45 }
 0xc52   : > { %v11817_v15 = vld [vmem:[#allocation2 + $0x50] sm:$0xff] }
 0xc53   : > { %12968 = vst [vmem:[#allocation71_spill] sm:$0xff] %v11817_v15  ;;  %6564 = vmatprep.mubr.bf16.mxu1 %v11817_v15  ;;  %v3759_v57 = vpop.permute.xlu1 %3758 }
 0xc54   : > { %3780 = vst.msk [vmem:[#allocation2 + $0x48] sm:$0xff] %vm3776_vm0, %v3759_v57 }
 0xc56   : > { %v9024_v60 = vpop.eup %9023 }
 0xc57   : > { %v4215_v21 = vmul.f32 %v9024_v60, %v12970_v27  ;;  %v9026_v49 = vpop.eup %9025  ;;  %v12982_v60 = vld [vmem:[#allocation132_spill] sm:$0xff] }
 0xc58   : > { %v3226_v61 = vmul.f32 %v9026_v49, %v12972_v51 }
 0xc59   : > { %3760 = vrot.lane.b32.xlu1 %v12971_v20, %s9317_s21  ;;  %v4225_v33 = vpack.c.bf16 %v4216_v28, %v4215_v21  ;;  %v12983_v20 = vld [vmem:[#allocation98_spill] sm:$0xff] }
 0xc5a   : > { %v9028_v14 = vpop.eup %9027 }
 0xc5b   : > { %v3227_v15 = vmul.f32 %v9028_v14, %v12973_v7  ;;  %v11829_v31 = vld [vmem:[#allocation2 + $0x48] sm:$0xff]  ;;  %4233 = vst.msk [vmem:[#allocation2 + $0x98] sm:$0xff] %vm12974_vm3, %v4225_v33  ;;  %v12977_v7 = vld [vmem:[#allocation68_spill] sm:$0xff] }
 0xc5c   : > { %6565 = vmatmul.mubr.bf16.gmra.mrb[212].mxu1 %v11829_v31  ;;  %vm12978_vm5 = vnez %v12977_v7 }
 0xc5d   : > { %v3236_v57 = vpack.c.bf16 %v3227_v15, %v3226_v61  ;;  %v11841_v28 = vsel %vm12978_vm5, %v7939_v63, -inf  ;;  %v12979_v61 = vld [vmem:[#allocation69_spill] sm:$0xff]  ;;  %v12981_v63 = vld [vmem:[#allocation134_spill] sm:$0xff] }
 0xc5e   : > { %vm12980_vm9 = vnez %v12979_v61 }
 0xc5f   : > { %3244 = vst.msk [vmem:[#allocation2 + $0x90] sm:$0xff] %vm12975_vm4, %v3236_v57  ;;  %v11846_v21 = vsel %vm12980_vm9, %v5404_v53, -inf  ;;  %v12984_v57 = vld [vmem:[#allocation100_spill] sm:$0xff] }
 0xc66   : > { %4749 = vrot.lane.b32.xlu0 %v12976_v56, %s9317_s21 }
 0xc7b   : > { %v4081_v51 = vpop.xlane.xlu0 %4080 }
 0xc7c   : > { %9029 = vrcp.f32 %v4081_v51  ;;  %v12988_v51 = vpack.c.bf16 %v11572_v36, %v11569_v62 }
 0xc7d   : > { %5040 = vadd.xlane.f32.xlu1 %v11369_v44 }
 0xc7f   : > { %v3090_v14 = vpop.xlane.xlu0 %3089 }
 0xc81   : > { %5462 = vmax.xlane.f32.xlu1 %v11841_v28 }
 0xc84   : > { %v4079_v15 = vpop.xlane.xlu1 %4078 }
 0xc85   : > { %9031 = vrcp.f32 %v4079_v15  ;;  %5038 = vadd.xlane.f32.xlu0 %v11366_v30  ;;  %5458 = vmax.xlane.f32.xlu1 %v11846_v21  ;;  %v12986_v30 = vpack.c.bf16 %v11584_v25, %v11581_v54 }
 0xc86   : > { %9033 = vrcp.f32 %v3090_v14  ;;  %v9030_v41 = vpop.eup %9029 }
 0xc87   : > { %v4218_v39 = vmul.f32 %v9030_v41, %v12981_v63 }
 0xc88   : > { %v3092_v44 = vpop.xlane.xlu1 %3091 }
 0xc89   : > { %9035 = vrcp.f32 %v3092_v44 }
 0xc8f   : > { %v9032_v38 = vpop.eup %9031 }
 0xc90   : > { %v4217_v40 = vmul.f32 %v9032_v38, %v12982_v60  ;;  %v9034_v27 = vpop.eup %9033 }
 0xc91   : > { %v3228_v33 = vmul.f32 %v9034_v27, %v12983_v20 }
 0xc92   : > { %v4226_v49 = vpack.c.bf16 %v4218_v39, %v4217_v40  ;;  %v12990_v40 = vpack.c.bf16 %v11596_v3, %v11593_v55 }
 0xc93   : > { %v9036_v53 = vpop.eup %9035 }
 0xc94   : > { %v3229_v56 = vmul.f32 %v9036_v53, %v12984_v57  ;;  %4234 = vst.msk [vmem:[#allocation2 + $0xb0] sm:$0xff] %vm12985_vm11, %v4226_v49 }
 0xc96   : > { %3762 = vrot.lane.b32.xlu1 %v12986_v30, %s9317_s21  ;;  %v3237_v52 = vpack.c.bf16 %v3229_v56, %v3228_v33 }
 0xc98   : > { %3245 = vst.msk [vmem:[#allocation2 + $0xa8] sm:$0xff] %vm12987_vm15, %v3237_v52 }
 0xc9b   : > { %4751 = vrot.lane.b32.xlu0 %v12988_v51, %s9317_s21  ;;  %v8669_v51 = vld [vmem:[#allocation8] ss:$12 sps:$4 sm:$0xff]  }
 0xcba   : > { %5044 = vadd.xlane.f32.xlu0 %v11363_v8  ;;  %5042 = vadd.xlane.f32.xlu1 %v11371_v1 }
 0xcbd   : > { %v5437_v7 = vpop.xlane.xlu1 %5436 }
 0xcbe   : > { %v5433_v61 = vpop.xlane.xlu0 %5432  ;;  %v5466_v14 = vsub.f32 %v11748_v13, %v5437_v7  ;;  %v12989_v13 = vpack.c.bf16 %v11612_v11, %v11609_v42 }
 0xcbf   : > { %v5464_v15 = vsub.f32 %v11752_v16, %v5433_v61  ;;  %v8674_v61 = vld [vmem:[#allocation8 + $0x1c] ss:$12 sps:$4 sm:$0xff]  }
 0xcc0   : > { %v5484_v44 = vmul.f32 1.442695, %v5466_v14 }
 0xcc1   : > { %v5439_v54 = vpop.xlane.xlu1 %5438  ;;  %v5480_v38 = vmul.f32 1.442695, %v5464_v15 }
 0xcc2   : > { %v5467_v25 = vsub.f32 %v11758_v18, %v5439_v54  ;;  %9037 = vpow2.f32 %v5484_v44  ;;  %v8672_v44 = vld [vmem:[#allocation8 + $0x18] ss:$12 sps:$4 sm:$0xff]  }
 0xcc4   : > { %v5486_v41 = vmul.f32 1.442695, %v5467_v25 }
 0xcc5   : > { %v5435_v63 = vpop.xlane.xlu1 %5434 }
 0xcc6   : > { %v5465_v62 = vsub.f32 %v11763_v12, %v5435_v63  ;;  %9039 = vpow2.f32 %v5486_v41  ;;  %v5441_v1 = vpop.xlane.xlu0 %5440  ;;  %v8675_v63 = vld [vmem:[#allocation8 + $0x30] ss:$12 sps:$4 sm:$0xff]  }
 0xcc7   : > { %9041 = vpow2.f32 %v5480_v38  ;;  %v5468_v16 = vsub.f32 %v11767_v6, %v5441_v1 }
 0xcc8   : > { %v5482_v8 = vmul.f32 1.442695, %v5465_v62 }
 0xcc9   : > { %v5445_v36 = vpop.xlane.xlu1 %5444  ;;  %v5488_v49 = vmul.f32 1.442695, %v5468_v16 }
 0xcca   : > { %9043 = vpow2.f32 %v5482_v8  ;;  %v5470_v12 = vsub.f32 %v11773_v0, %v5445_v36 }
 0xccb   : > { %3764 = vrot.lane.b32.xlu1 %v12989_v13, %s9317_s21  ;;  %9045 = vpow2.f32 %v5488_v49 }
 0xccc   : > { %v11881_v27 = vpop.eup %9037  ;;  %v5492_v57 = vmul.f32 1.442695, %v5470_v12 }
 0xccd   : > { %v5453_v18 = vpop.xlane.xlu0 %5452  ;;  %v5447_v39 = vpop.xlane.xlu1 %5446 }
 0xcce   : > { %v5471_v60 = vsub.f32 %v11778_v19, %v5447_v39  ;;  %v5474_v14 = vsub.f32 %v11782_v50, %v5453_v18  ;;  %v8680_v50 = vld [vmem:[#allocation8 + $0x4c] ss:$12 sps:$4 sm:$0xff]   ;;  %v8678_v18 = vld [vmem:[#allocation8 + $0x48] ss:$12 sps:$4 sm:$0xff]  }
 0xcd0   : > { %4753 = vrot.lane.b32.xlu0 %v12990_v40, %s9317_s21  ;;  %v11883_v42 = vpop.eup %9039  ;;  %v5494_v11 = vmul.f32 1.442695, %v5471_v60  ;;  %v8683_v60 = vld [vmem:[#allocation8 + $0x64] ss:$12 sps:$4 sm:$0xff]  }
 0xcd1   : > { %v5449_v53 = vpop.xlane.xlu0 %5448  ;;  %v5443_v20 = vpop.xlane.xlu1 %5442  ;;  %v5561_v52 = vpack.c.bf16 %v11883_v42, %v11881_v27 }
 0xcd2   : > { %v5472_v6 = vsub.f32 %v11792_v2, %v5449_v53  ;;  %v5469_v33 = vsub.f32 %v11788_v43, %v5443_v20  ;;  %v11887_v19 = vpop.eup %9041  ;;  %9047 = vpow2.f32 %v5494_v11  ;;  %v8681_v53 = vld [vmem:[#allocation8 + $0x60] ss:$12 sps:$4 sm:$0xff]   ;;  %v8686_v20 = vld [vmem:[#allocation8 + $0x7c] ss:$12 sps:$4 sm:$0xff]  }
 0xcd4   : > { %v11889_v0 = vpop.eup %9043  ;;  %v5490_v56 = vmul.f32 1.442695, %v5469_v33  ;;  %v5496_v2 = vmul.f32 1.442695, %v5472_v6 }
 0xcd5   : > { %v5455_v55 = vpop.xlane.xlu0 %5454  ;;  %v5451_v3 = vpop.xlane.xlu1 %5450  ;;  %v5560_v30 = vpack.c.bf16 %v11889_v0, %v11887_v19 }
 0xcd6   : > { %v5475_v43 = vsub.f32 %v11798_v5, %v5455_v55  ;;  %v5473_v7 = vsub.f32 %v11802_v23, %v5451_v3  ;;  %9049 = vpow2.f32 %v5490_v56  ;;  %v8677_v5 = vld [vmem:[#allocation8 + $0x34] ss:$12 sps:$4 sm:$0xff]   ;;  %v5500_v23 = vmul.f32 1.442695, %v5474_v14  ;;  %v11903_v62 = vpop.eup %9045  ;;  %v8684_v56 = vld [vmem:[#allocation8 + $0x78] ss:$12 sps:$4 sm:$0xff]  }
 0xcd7   : > { %7956 = vmatprep.mubr.bf16.mxu0 %v5560_v30  ;;  %9051 = vpow2.f32 %v5492_v57  ;;  %v8689_v3 = vld [vmem:[#allocation8 + $0x94] ss:$12 sps:$4 sm:$0xff]   ;;  %v8687_v30 = vld [vmem:[#allocation8 + $0x90] ss:$12 sps:$4 sm:$0xff]  }
 0xcd8   : > { %v5498_v15 = vmul.f32 1.442695, %v5473_v7  ;;  %7957 = vmatmul.mubr.bf16.vlgmr.msra.gmra.mrb[176].mxu0 %v5561_v52  ;;  %9053 = vpow2.f32 %v5496_v2  ;;  %v5502_v41 = vmul.f32 1.442695, %v5475_v43  ;;  %v8692_v52 = vld [vmem:[#allocation8 + $0xac] ss:$12 sps:$4 sm:$0xff]  }
 0xcd9   : > { %v11898_v54 = vpop.xlane.xlu0 %5460  ;;  %v3761_v25 = vpop.permute.xlu1 %3760  ;;  %6283 = vmatpush1.bf16.msra.mxu0 %v8669_v51  ;;  %v8690_v51 = vld [vmem:[#allocation8 + $0xa8] ss:$12 sps:$4 sm:$0xff]   ;;  %v8695_v2 = vld [vmem:[#allocation8 + $0xc4] ss:$12 sps:$4 sm:$0xff]   ;;  %v8693_v7 = vld [vmem:[#allocation8 + $0xc0] ss:$12 sps:$4 sm:$0xff]  }
 0xcda   : > { %3781 = vst.msk [vmem:[#allocation2 + $0x60] sm:$0xff] %vm3776_vm0, %v3761_v25  ;;  %6284 = vmatprep.subr.bf16.mxu0 %v8674_v61  ;;  %9055 = vpow2.f32 %v5498_v15  ;;  %v8698_v14 = vld [vmem:[#allocation8 + $0xdc] ss:$12 sps:$4 sm:$0xff]  }
 0xcdb   : > { %9057 = vpow2.f32 %v5502_v41 }
 0xcdc   : > { %v11905_v8 = vpop.eup %9047  ;;  %9059 = vpow2.f32 %v5500_v23  ;;  %v8704_v23 = vld [vmem:[#allocation8 + $0x10c] ss:$12 sps:$4 sm:$0xff]  }
 0xcdd   : > { %v11901_v38 = vpop.xlane.xlu0 %5456  ;;  %6285 = vmatpush1.bf16.msra.mxu0 %v8672_v44 }
 0xcde   : > { %6286 = vmatprep.subr.bf16.mxu0 %v8677_v5  ;;  %v8699_v5 = vld [vmem:[#allocation8 + $0xf0] ss:$12 sps:$4 sm:$0xff]  }
 0xce0   : > { %v11907_v1 = vpop.eup %9049 }
 0xce1   : > { %v4750_v36 = vpop.permute.xlu0 %4749  ;;  %6287 = vmatpush1.bf16.msra.mxu0 %v8675_v63  ;;  %v11909_v13 = vpop.eup %9051  ;;  %v5562_v16 = vpack.c.bf16 %v11907_v1, %v11903_v62  ;;  %v11929_v57 = vld [vmem:[#allocation2 + $0x60] sm:$0xff]  ;;  %v12991_v63 = vpack.c.bf16 %v11632_v17, %v11629_v24  ;;  %v5476_v24 = vsub.f32 %v11814_v45, %v11901_v38 }
 0xce2   : > { %4769 = vst.msk [vmem:[#allocation2 + $0x68] sm:$0xff] %vm3776_vm0, %v4750_v36  ;;  %6288 = vmatprep.subr.bf16.mxu0 %v8680_v50  ;;  %v5563_v39 = vpack.c.bf16 %v11905_v8, %v11909_v13  ;;  %v11916_v12 = vpop.eup %9053  ;;  %v8702_v50 = vld [vmem:[#allocation8 + $0x108] ss:$12 sps:$4 sm:$0xff]   ;;  %v8707_v36 = vld [vmem:[#allocation8 + $0x124] ss:$12 sps:$4 sm:$0xff]  }
 0xce3   : > { %7960 = vmatprep.mubr.bf16.mxu0 %v5562_v16  ;;  %v12992_v16 = vpack.c.bf16 %v11620_v29, %v11617_v35  ;;  %v8716_v35 = vld [vmem:[#allocation8 + $0x16c] ss:$12 sps:$4 sm:$0xff]   ;;  %v5478_v29 = vsub.f32 %v11808_v58, %v11898_v54 }
 0xce4   : > { %v11918_v40 = vpop.eup %9055  ;;  %7961 = vmatmul.mubr.bf16.gmra.mrb[180].mxu0 %v5563_v39  ;;  %v8710_v39 = vld [vmem:[#allocation8 + $0x13c] ss:$12 sps:$4 sm:$0xff]  }
 0xce5   : > { %v5564_v49 = vpack.c.bf16 %v11918_v40, %v11916_v12  ;;  %6289 = vmatpush1.bf16.msra.mxu0 %v8678_v18  ;;  %v11922_v11 = vpop.eup %9057  ;;  %v8705_v18 = vld [vmem:[#allocation8 + $0x120] ss:$12 sps:$4 sm:$0xff]   ;;  %v5508_v45 = vmul.f32 1.442695, %v5478_v29  ;;  %v13002_v29 = vmov 0  }
 0xce6   : > { %6290 = vmatprep.subr.bf16.mxu0 %v8683_v60  ;;  %v11926_v33 = vpop.eup %9059 }
 0xce7   : > { %7964 = vmatprep.mubr.bf16.mxu0 %v5564_v49  ;;  %v5565_v55 = vpack.c.bf16 %v11922_v11, %v11926_v33  ;;  %v8708_v49 = vld [vmem:[#allocation8 + $0x138] ss:$12 sps:$4 sm:$0xff]  }
 0xce9   : > { %v11924_v6 = vld [vmem:[#allocation2 + $0x68] sm:$0xff]  ;;  %6291 = vmatpush1.bf16.msra.mxu0 %v8681_v53  ;;  %v8713_v53 = vld [vmem:[#allocation8 + $0x154] ss:$12 sps:$4 sm:$0xff]  }
 0xcea   : > { %6572 = vmatprep.mubr.bf16.mxu1 %v11924_v6  ;;  %6292 = vmatprep.subr.bf16.mxu0 %v8686_v20  ;;  %v8711_v20 = vld [vmem:[#allocation8 + $0x150] ss:$12 sps:$4 sm:$0xff]  }
 0xceb   : > { %6573 = vmatmul.mubr.bf16.gmra.mrb[216].mxu1 %v11929_v57 }
 0xcec   : > { %7965 = vmatmul.mubr.bf16.gmra.mrb[184].mxu0 %v5565_v55  ;;  %v5504_v55 = vmul.f32 1.442695, %v5476_v24 }
 0xced   : > { %6293 = vmatpush1.bf16.msra.mxu0 %v8684_v56 }
 0xcee   : > { %6294 = vmatprep.subr.bf16.mxu0 %v8689_v3 }
 0xcef   : > { %5048 = vadd.xlane.f32.xlu0 %v11388_v4  ;;  %5046 = vadd.xlane.f32.xlu1 %v11386_v47  ;;  %v8696_v47 = vld [vmem:[#allocation8 + $0xd8] ss:$12 sps:$4 sm:$0xff]   ;;  %v8701_v4 = vld [vmem:[#allocation8 + $0xf4] ss:$12 sps:$4 sm:$0xff]  }
 0xcf1   : > { %6295 = vmatpush1.bf16.msra.mxu0 %v8687_v30 }
 0xcf2   : > { %6296 = vmatprep.subr.bf16.mxu0 %v8692_v52 }
 0xcf5   : > { %6297 = vmatpush1.bf16.msra.mxu0 %v8690_v51  ;;  %v8714_v51 = vld [vmem:[#allocation8 + $0x168] ss:$12 sps:$4 sm:$0xff]  }
 0xcf6   : > { %v7504_v43 = vpop.f32.mrb[208].mxu1  ;;  %6298 = vmatprep.subr.bf16.mxu0 %v8695_v2 }
 0xcf7   : > { %v7505_v61 = vpop.f32.mrb[209].mxu1 }
 0xcf8   : > { %v11936_v15 = vadd.f32 %v7505_v61, %v7504_v43  ;;  %v7507_v25 = vpop.f32.mrb[210].mxu1 }
 0xcf9   : > { %v7508_v44 = vpop.f32.mrb[211].mxu1  ;;  %6299 = vmatpush1.bf16.msra.mxu0 %v8693_v7 }
 0xcfa   : > { %v11938_v41 = vadd.f32 %v7508_v44, %v7507_v25  ;;  %6300 = vmatprep.subr.bf16.mxu0 %v8698_v14 }
 0xcfd   : > { %6301 = vmatpush1.bf16.msra.mxu0 %v8696_v47 }
 0xcfe   : > { %6302 = vmatprep.subr.bf16.mxu0 %v8701_v4 }
 0xd00   : > { %3766 = vrot.lane.b32.xlu1 %v12991_v63, %s9317_s21  ;;  %v11977_v63 = vld [vmem:[#allocation2] sm:$0xff] }
 0xd01   : > { %6303 = vmatpush1.bf16.msra.mxu0 %v8699_v5 }
 0xd02   : > { %6304 = vmatprep.subr.bf16.mxu0 %v8704_v23 }
 0xd05   : > { %4755 = vrot.lane.b32.xlu0 %v12992_v16, %s9317_s21  ;;  %6305 = vmatpush1.bf16.msra.mxu0 %v8702_v50 }
 0xd06   : > { %6306 = vmatprep.subr.bf16.mxu0 %v8707_v36 }
 0xd09   : > { %6307 = vmatpush1.bf16.msra.mxu0 %v8705_v18 }
 0xd0a   : > { %v5041_v60 = vpop.xlane.xlu1 %5040  ;;  %6308 = vmatprep.subr.bf16.mxu0 %v8710_v39 }
 0xd0b   : > { %9061 = vrcp.f32 %v5041_v60 }
 0xd0d   : > { %6309 = vmatpush1.bf16.msra.mxu0 %v8708_v49 }
 0xd0e   : > { %v5463_v17 = vpop.xlane.xlu1 %5462  ;;  %6310 = vmatprep.subr.bf16.mxu0 %v8713_v53  ;;  %v13000_v53 = vld [vmem:[#allocation25_spill] sm:$0xff] }
 0xd0f   : > { %v5479_v56 = vsub.f32 %v11841_v28, %v5463_v17 }
 0xd11   : > { %v5510_v3 = vmul.f32 1.442695, %v5479_v56  ;;  %6311 = vmatpush1.bf16.msra.mxu0 %v8711_v20  ;;  %v13001_v56 = vld [vmem:[#allocation21_spill] sm:$0xff] }
 0xd12   : > { %v5039_v30 = vpop.xlane.xlu0 %5038  ;;  %v5459_v52 = vpop.xlane.xlu1 %5458  ;;  %6312 = vmatprep.subr.bf16.mxu0 %v8716_v35 }
 0xd13   : > { %v5477_v2 = vsub.f32 %v11846_v21, %v5459_v52  ;;  %9063 = vrcp.f32 %v5039_v30  ;;  %v8717_v52 = vld [vmem:[#allocation8 + $0x180] ss:$12 sps:$4 sm:$0xff]  }
 0xd14   : > { %9065 = vpow2.f32 %v5504_v55 }
 0xd15   : > { %v5506_v38 = vmul.f32 1.442695, %v5477_v2  ;;  %9067 = vpow2.f32 %v5510_v3  ;;  %6313 = vmatpush1.bf16.msra.mxu0 %v8714_v51  ;;  %v9062_v58 = vpop.eup %9061  ;;  %v8719_v51 = vld [vmem:[#allocation8 + $0x184] ss:$12 sps:$4 sm:$0xff]  }
 0xd16   : > { %v4752_v28 = vpop.permute.xlu0 %4751  ;;  %v3763_v43 = vpop.permute.xlu1 %3762  ;;  %v5192_v14 = vmul.f32 %v9062_v58, %v11686_v26  ;;  %6395 = vmatprep.subr.bf16.mxu0 %v8719_v51  ;;  %v8721_v58 = vld [vmem:[#allocation8 + $0x198] ss:$12 sps:$4 sm:$0xff]  }
 0xd17   : > { %9069 = vpow2.f32 %v5506_v38  ;;  %4770 = vst.msk [vmem:[#allocation2 + $0x80] sm:$0xff] %vm3776_vm0, %v4752_v28  ;;  %3782 = vst.msk [vmem:[#allocation2 + $0x78] sm:$0xff] %vm3776_vm0, %v3763_v43  ;;  %v8723_v28 = vld [vmem:[#allocation8 + $0x19c] ss:$12 sps:$4 sm:$0xff]   ;;  %v8724_v43 = vld [vmem:[#allocation8 + $0x1a0] ss:$12 sps:$4 sm:$0xff]  }
 0xd18   : > { %9071 = vpow2.f32 %v5508_v45  ;;  %v8720_v45 = vld [vmem:[#allocation8 + $0x188] ss:$12 sps:$4 sm:$0xff]   ;;  %v13006_v51 = vld [vmem:[#allocation29_spill] sm:$0xff] }
 0xd19   : > { %7972 = vmatprep.subr.bf16.mxu1 %v8720_v45 }
 0xd1a   : > { %7973 = vmatpush3.bf16.msra.mxu1 %v8720_v45 }
 0xd1b   : > { %7974 = vmatprep.subr.bf16.mxu1 %v8724_v43 }
 0xd1d   : > { %v9064_v54 = vpop.eup %9063 }
 0xd1e   : > { %v11956_v7 = vld [vmem:[#allocation2 + $0x80] sm:$0xff]  ;;  %v11958_v21 = vld [vmem:[#allocation2 + $0x78] sm:$0xff]  ;;  %v9066_v61 = vpop.eup %9065  ;;  %v5191_v25 = vmul.f32 %v9064_v54, %v11682_v37  ;;  %v11970_v37 = vld [vmem:[#allocation2 + $0x8] sm:$0xff]  ;;  %7975 = vmatpush3.bf16.msra.mxu1 %v8724_v43 }
 0xd1f   : > { %6580 = vmatprep.mubr.bf16.mxu1 %v11956_v7  ;;  %v9068_v44 = vpop.eup %9067  ;;  %v8727_v54 = vld [vmem:[#allocation8 + $0x1b4] ss:$12 sps:$4 sm:$0xff]  }
 0xd20   : > { %6581 = vmatmul.mubr.bf16.gmra.mrb[220].mxu1 %v11958_v21  ;;  %v5207_v4 = vpack.c.bf16 %v5192_v14, %v5191_v25  ;;  %v8725_v14 = vld [vmem:[#allocation8 + $0x1b0] ss:$12 sps:$4 sm:$0xff]   ;;  %v8731_v25 = vld [vmem:[#allocation8 + $0x1cc] ss:$12 sps:$4 sm:$0xff]  }
 0xd21   : > { %v11964_v47 = vpop.eup %9069 }
 0xd22   : > { %v5566_v5 = vpack.c.bf16 %v11964_v47, %v9066_v61  ;;  %v9072_v23 = vpop.eup %9071  ;;  %5215 = vst.msk [vmem:[#allocation2 + $0x10] sm:$0xff] %vm12993_vm6, %v5207_v4  ;;  %v8732_v4 = vld [vmem:[#allocation8 + $0x1d0] ss:$12 sps:$4 sm:$0xff]  }
 0xd23   : > { %v5567_v26 = vpack.c.bf16 %v9068_v44, %v9072_v23 }
 0xd24   : > { %5050 = vadd.xlane.f32.xlu1 %v11501_v46  ;;  %5516 = vadd.xlane.f32.xlu0 %v11881_v27  ;;  %v11980_v46 = vld [vmem:[#allocation2 + $0x20] sm:$0xff] }
 0xd25   : > { %7968 = vmatprep.mubr.bf16.mxu0 %v5566_v5  ;;  %v8729_v5 = vld [vmem:[#allocation8 + $0x1c8] ss:$12 sps:$4 sm:$0xff]  }
 0xd26   : > { %7969 = vmatmul.mubr.bf16.gmra.mrb[188].mxu0 %v5567_v26  ;;  %v8735_v26 = vld [vmem:[#allocation8 + $0x1e4] ss:$12 sps:$4 sm:$0xff]  }
 0xd27   : > { %6314 = vmatprep.mubr.bf16.mxu0 %v11970_v37 }
 0xd28   : > { %5054 = vadd.xlane.f32.xlu1 %v11516_v32  ;;  %5512 = vadd.xlane.f32.xlu0 %v11887_v19 }
 0xd2c   : > { %5056 = vadd.xlane.f32.xlu1 %v11518_v10  ;;  %5052 = vadd.xlane.f32.xlu0 %v11499_v59  ;;  %v11991_v59 = vld [vmem:[#allocation2 + $0x18] sm:$0xff] }
 0xd2e   : > { %6315 = vmatmul.mubr.bf16.vlgmr.msra.gmra.mrb[192].mxu0 %v11977_v63 }
 0xd2f   : > { %6324 = vmatprep.mubr.bf16.mxu0 %v11980_v46  ;;  %v7510_v27 = vpop.f32.mrb[212].mxu1  ;;  %6396 = vmatpush1.bf16.msra.mxu0 %v8717_v52  ;;  %v8744_v52 = vld [vmem:[#allocation8 + $0x218] ss:$12 sps:$4 sm:$0xff]  }
 0xd30   : > { %v7511_v50 = vpop.f32.mrb[213].mxu1  ;;  %5058 = vadd.xlane.f32.xlu0 %v11508_v34  ;;  %5518 = vadd.xlane.f32.xlu1 %v11883_v42  ;;  %v12994_v34 = vld [vmem:[#allocation102_spill] sm:$0xff]  ;;  %v12995_v42 = vld [vmem:[#allocation71_spill] sm:$0xff] }
 0xd31   : > { %v11985_v32 = vadd.f32 %v7511_v50, %v7510_v27  ;;  %v7513_v19 = vpop.f32.mrb[214].mxu1  ;;  %6397 = vmatprep.subr.bf16.mxu0 %v8723_v28  ;;  %v13007_v28 = vld [vmem:[#allocation26_spill] sm:$0xff] }
 0xd32   : > { %v7514_v10 = vpop.f32.mrb[215].mxu1 }
 0xd33   : > { %v11987_v36 = vadd.f32 %v7514_v10, %v7513_v19  ;;  %6398 = vmatpush1.bf16.msra.mxu0 %v8721_v58  ;;  %v8736_v19 = vld [vmem:[#allocation8 + $0x1e8] ss:$12 sps:$4 sm:$0xff]   ;;  %v8747_v58 = vld [vmem:[#allocation8 + $0x22c] ss:$12 sps:$4 sm:$0xff]  }
 0xd34   : > { %5514 = vadd.xlane.f32.xlu1 %v11889_v0  ;;  %5524 = vadd.xlane.f32.xlu0 %v11909_v13 }
 0xd35   : > { %6399 = vmatprep.subr.bf16.mxu0 %v8727_v54  ;;  %v8748_v54 = vld [vmem:[#allocation8 + $0x230] ss:$12 sps:$4 sm:$0xff]  }
 0xd36   : > { %6325 = vmatmul.mubr.bf16.gmra.mrb[196].mxu0 %v11991_v59 }
 0xd37   : > { %6334 = vmatprep.mubr.bf16.mxu0 %v11717_v22  ;;  %6400 = vmatpush1.bf16.msra.mxu0 %v8725_v14 }
 0xd38   : > { %5060 = vadd.xlane.f32.xlu1 %v11510_v48  ;;  %5520 = vadd.xlane.f32.xlu0 %v11903_v62 }
 0xd39   : > { %6401 = vmatprep.subr.bf16.mxu0 %v8731_v25 }
 0xd3b   : > { %6402 = vmatpush1.bf16.msra.mxu0 %v8729_v5 }
 0xd3c   : > { %5062 = vadd.xlane.f32.xlu1 %v11524_v9  ;;  %5532 = vadd.xlane.f32.xlu0 %v11926_v33  ;;  %v12996_v9 = vld [vmem:[#allocation28_spill] sm:$0xff]  ;;  %v12998_v33 = vld [vmem:[#allocation38_spill] sm:$0xff] }
 0xd3d   : > { %6403 = vmatprep.subr.bf16.mxu0 %v8735_v26 }
 0xd3e   : > { %6335 = vmatmul.mubr.bf16.gmra.mrb[200].mxu0 %v12994_v34 }
 0xd3f   : > { %6344 = vmatprep.mubr.bf16.mxu0 %v12995_v42 }
 0xd40   : > { %5528 = vadd.xlane.f32.xlu0 %v11916_v12  ;;  %5526 = vadd.xlane.f32.xlu1 %v11905_v8 }
 0xd44   : > { %5536 = vadd.xlane.f32.xlu0 %v9066_v61  ;;  %5522 = vadd.xlane.f32.xlu1 %v11907_v1  ;;  %v12997_v1 = vld [vmem:[#allocation42_spill] sm:$0xff]  ;;  %v8728_v61 = vld [vmem:[#allocation8 + $0x1b8] ss:$12 sps:$4 sm:$0xff]  }
 0xd45   : > { %7976 = vmatprep.subr.bf16.mxu1 %v8728_v61 }
 0xd46   : > { %6345 = vmatmul.mubr.bf16.gmra.mrb[204].mxu0 %v11829_v31  ;;  %7977 = vmatpush3.bf16.msra.mxu1 %v8728_v61  ;;  %v8745_v61 = vld [vmem:[#allocation8 + $0x228] ss:$12 sps:$4 sm:$0xff]  }
 0xd47   : > { %6354 = vmatprep.mubr.bf16.mxu0 %v11924_v6  ;;  %v5045_v48 = vpop.xlane.xlu0 %5044  ;;  %v5043_v22 = vpop.xlane.xlu1 %5042  ;;  %7978 = vmatprep.subr.bf16.mxu1 %v8732_v4 }
 0xd48   : > { %9073 = vrcp.f32 %v5045_v48  ;;  %5064 = vadd.xlane.f32.xlu1 %v12996_v9  ;;  %5542 = vadd.xlane.f32.xlu0 %v9068_v44  ;;  %v8733_v48 = vld [vmem:[#allocation8 + $0x1e0] ss:$12 sps:$4 sm:$0xff]  }
 0xd49   : > { %9075 = vrcp.f32 %v5043_v22  ;;  %6404 = vmatpush1.bf16.msra.mxu0 %v8733_v48 }
 0xd4a   : > { %7979 = vmatpush3.bf16.msra.mxu1 %v8732_v4 }
 0xd4b   : > { %v4754_v0 = vpop.permute.xlu0 %4753  ;;  %v3765_v62 = vpop.permute.xlu1 %3764  ;;  %7980 = vmatprep.subr.bf16.mxu1 %v8736_v19 }
 0xd4c   : > { %4771 = vst.msk [vmem:[#allocation2 + $0x98] sm:$0xff] %vm3776_vm0, %v4754_v0  ;;  %3783 = vst.msk [vmem:[#allocation2 + $0x90] sm:$0xff] %vm3776_vm0, %v3765_v62  ;;  %5534 = vadd.xlane.f32.xlu1 %v11922_v11 }
 0xd4e   : > { %6355 = vmatmul.mubr.bf16.gmra.mrb[208].mxu0 %v11929_v57  ;;  %7981 = vmatpush3.bf16.msra.mxu1 %v8736_v19 }
 0xd4f   : > { %6364 = vmatprep.mubr.bf16.mxu0 %v11956_v7 }
 0xd50   : > { %5530 = vadd.xlane.f32.xlu1 %v11918_v40 }
 0xd52   : > { %v9074_v31 = vpop.eup %9073 }
 0xd53   : > { %v9076_v8 = vpop.eup %9075  ;;  %v5194_v13 = vmul.f32 %v9074_v31, %v12997_v1  ;;  %v5780_v12 = vld [vmem:[#allocation2 + $0x98] sm:$0xff]  ;;  %v5779_v6 = vld [vmem:[#allocation2 + $0x90] sm:$0xff] }
 0xd54   : > { %v5193_v16 = vmul.f32 %v9076_v8, %v12998_v33  ;;  %5540 = vadd.xlane.f32.xlu1 %v9072_v23  ;;  %6588 = vmatprep.mubr.bf16.mxu1 %v5780_v12  ;;  %v8739_v1 = vld [vmem:[#allocation8 + $0x1fc] ss:$12 sps:$4 sm:$0xff]   ;;  %v8740_v33 = vld [vmem:[#allocation8 + $0x200] ss:$12 sps:$4 sm:$0xff]  }
 0xd55   : > { %6589 = vmatmul.mubr.bf16.gmra.mrb[224].mxu1 %v5779_v6  ;;  %6405 = vmatprep.subr.bf16.mxu0 %v8739_v1 }
 0xd56   : > { %6365 = vmatmul.mubr.bf16.gmra.mrb[212].mxu0 %v11958_v21  ;;  %v5208_v11 = vpack.c.bf16 %v5194_v13, %v5193_v16  ;;  %7982 = vmatprep.subr.bf16.mxu1 %v8740_v33 }
 0xd57   : > { %6374 = vmatprep.mubr.bf16.mxu0 %v5780_v12  ;;  %7983 = vmatpush3.bf16.msra.mxu1 %v8740_v33  ;;  %v13011_v33 = vld [vmem:[#allocation41_spill] sm:$0xff] }
 0xd58   : > { %5538 = vadd.xlane.f32.xlu1 %v11964_v47  ;;  %5216 = vst.msk [vmem:[#allocation2 + $0x28] sm:$0xff] %vm12999_vm13, %v5208_v11  ;;  %7984 = vmatprep.subr.bf16.mxu1 %v8744_v52 }
 0xd5b   : > { %7985 = vmatpush3.bf16.msra.mxu1 %v8744_v52 }
 0xd5c   : > { %7986 = vmatprep.subr.bf16.mxu1 %v8748_v54 }
 0xd5e   : > { %6375 = vmatmul.mubr.bf16.gmra.mrb[216].mxu0 %v5779_v6  ;;  %v8737_v6 = vld [vmem:[#allocation8 + $0x1f8] ss:$12 sps:$4 sm:$0xff]  }
 0xd5f   : > { %6406 = vmatpush1.bf16.msra.mxu0 %v8737_v6  ;;  %7987 = vmatpush3.bf16.msra.mxu1 %v8748_v54  ;;  %v13013_v54 = vld [vmem:[#allocation114_spill] sm:$0xff] }
 0xd7c   : > { %v5049_v40 = vpop.xlane.xlu0 %5048  ;;  %v5047_v57 = vpop.xlane.xlu1 %5046 }
 0xd7d   : > { %9077 = vrcp.f32 %v5049_v40 }
 0xd7e   : > { %9079 = vrcp.f32 %v5047_v57 }
 0xd80   : > { %v4756_v18 = vpop.permute.xlu0 %4755  ;;  %v3767_v39 = vpop.permute.xlu1 %3766 }
 0xd81   : > { %4772 = vst.msk [vmem:[#allocation2 + $0xb0] sm:$0xff] %vm3776_vm0, %v4756_v18  ;;  %3784 = vst.msk [vmem:[#allocation2 + $0xa8] sm:$0xff] %vm3776_vm0, %v3767_v39 }
 0xd87   : > { %v9078_v60 = vpop.eup %9077 }
 0xd88   : > { %v9080_v49 = vpop.eup %9079  ;;  %v5196_v24 = vmul.f32 %v9078_v60, %v13000_v53  ;;  %v5783_v17 = vld [vmem:[#allocation2 + $0xb0] sm:$0xff]  ;;  %v5782_v20 = vld [vmem:[#allocation2 + $0xa8] sm:$0xff] }
 0xd89   : > { %v5195_v35 = vmul.f32 %v9080_v49, %v13001_v56  ;;  %6384 = vmatprep.mubr.bf16.mxu0 %v5783_v17  ;;  %6596 = vmatprep.mubr.bf16.mxu1 %v5783_v17  ;;  %v8743_v53 = vld [vmem:[#allocation8 + $0x214] ss:$12 sps:$4 sm:$0xff]   ;;  %v13004_v17 = vld [vmem:[#allocation44_spill] sm:$0xff] }
 0xd8a   : > { %6385 = vmatmul.mubr.bf16.gmra.mrb[220].mxu0 %v5782_v20  ;;  %6597 = vmatmul.mubr.bf16.gmra.mrb[228].mxu1 %v5782_v20  ;;  %v13005_v56 = vld [vmem:[#allocation23_spill] sm:$0xff] }
 0xd8b   : > { %6427 = vmatprep.mubr.bf16.mxu0 %v13002_v29  ;;  %v5209_v55 = vpack.c.bf16 %v5196_v24, %v5195_v35  ;;  %6407 = vmatprep.subr.bf16.mxu0 %v8743_v53 }
 0xd8d   : > { %5217 = vst.msk [vmem:[#allocation2 + $0x40] sm:$0xff] %vm13003_vm8, %v5209_v55  ;;  %v8741_v55 = vld [vmem:[#allocation8 + $0x210] ss:$12 sps:$4 sm:$0xff]  }
 0xd8e   : > { %6408 = vmatpush1.bf16.msra.mxu0 %v8741_v55 }
 0xd8f   : > { %6409 = vmatprep.subr.bf16.mxu0 %v8747_v58 }
 0xd92   : > { %6410 = vmatpush1.bf16.msra.mxu0 %v8745_v61 }
 0xdab   : > { %v12024_v3 = vpop.f32.mrb[176].mxu0 }
 0xdac   : > { %v12026_v30 = vpop.f32.mrb[177].mxu0 }
 0xdad   : > { %v12028_v2 = vpop.f32.mrb[178].mxu0 }
 0xdae   : > { %v12030_v38 = vpop.f32.mrb[179].mxu0 }
 0xdb1   : > { %v5517_v7 = vpop.xlane.xlu0 %5516  ;;  %v5051_v21 = vpop.xlane.xlu1 %5050 }
 0xdb2   : > { %9081 = vrcp.f32 %v5051_v21 }
 0xdb5   : > { %v5513_v44 = vpop.xlane.xlu0 %5512  ;;  %v5055_v47 = vpop.xlane.xlu1 %5054 }
 0xdb6   : > { %9083 = vrcp.f32 %v5055_v47 }
 0xdb7   : > { %v12032_v23 = vpop.f32.mrb[180].mxu0 }
 0xdb8   : > { %v12034_v27 = vpop.f32.mrb[181].mxu0 }
 0xdb9   : > { %v5053_v50 = vpop.xlane.xlu0 %5052  ;;  %v12036_v10 = vpop.f32.mrb[182].mxu0 }
 0xdba   : > { %9085 = vrcp.f32 %v5053_v50  ;;  %v5057_v34 = vpop.xlane.xlu1 %5056  ;;  %v12038_v42 = vpop.f32.mrb[183].mxu0 }
 0xdbb   : > { %9087 = vrcp.f32 %v5057_v34  ;;  %v9133_v34 = vld [vmem:[#allocation8 + $0xc8] ss:$12 sps:$4 sm:$0xff]  }
 0xdbc   : > { %9089 = vrcp.f32 %v5517_v7  ;;  %v9082_v16 = vpop.eup %9081  ;;  %7476 = vmatprep.subr.bf16.mxu0 %v9133_v34 }
 0xdbd   : > { %v5059_v13 = vpop.xlane.xlu0 %5058  ;;  %v5197_v20 = vmul.f32 %v9082_v16, %v13004_v17 }
 0xdbe   : > { %v5519_v22 = vpop.xlane.xlu1 %5518  ;;  %v7516_v9 = vpop.f32.mrb[216].mxu1 }
 0xdbf   : > { %9091 = vrcp.f32 %v5519_v22  ;;  %v7517_v0 = vpop.f32.mrb[217].mxu1  ;;  %v12040_v62 = vpop.f32.mrb[184].mxu0 }
 0xdc0   : > { %v12042_v31 = vadd.f32 %v7517_v0, %v7516_v9  ;;  %v7519_v8 = vpop.f32.mrb[218].mxu1  ;;  %v12044_v12 = vpop.f32.mrb[185].mxu0  ;;  %9093 = vrcp.f32 %v5513_v44 }
 0xdc1   : > { %v12046_v11 = vpop.f32.mrb[186].mxu0  ;;  %v7520_v40 = vpop.f32.mrb[219].mxu1 }
 0xdc2   : > { %v9084_v57 = vpop.eup %9083  ;;  %v12048_v18 = vadd.f32 %v7520_v40, %v7519_v8  ;;  %v5515_v39 = vpop.xlane.xlu1 %5514 }
 0xdc3   : > { %v12050_v60 = vpop.f32.mrb[187].mxu0  ;;  %9095 = vrcp.f32 %v5515_v39  ;;  %v5199_v45 = vmul.f32 %v9084_v57, %v13006_v51  ;;  %v5525_v47 = vpop.xlane.xlu0 %5524 }
 0xdc4   : > { %v9086_v49 = vpop.eup %9085  ;;  %9097 = vrcp.f32 %v5059_v13  ;;  %v13010_v13 = vld [vmem:[#allocation31_spill] sm:$0xff] }
 0xdc5   : > { %v9088_v24 = vpop.eup %9087  ;;  %v5198_v35 = vmul.f32 %v9086_v49, %v13005_v56 }
 0xdc6   : > { %v5200_v43 = vmul.f32 %v9088_v24, %v13007_v28  ;;  %v9090_v7 = vpop.eup %9089  ;;  %v5061_v21 = vpop.xlane.xlu1 %5060 }
 0xdc7   : > { %v5210_v14 = vpack.c.bf16 %v5198_v35, %v5197_v20  ;;  %9099 = vrcp.f32 %v5061_v21  ;;  %v5699_v4 = vmul.f32 %v9090_v7, %v12024_v3  ;;  %v5521_v22 = vpop.xlane.xlu0 %5520  ;;  %v13014_v7 = vld [vmem:[#allocation112_spill] sm:$0xff] }
 0xdc8   : > { %v5211_v25 = vpack.c.bf16 %v5200_v43, %v5199_v45  ;;  %9101 = vrcp.f32 %v5525_v47 }
 0xdc9   : > { %v9092_v44 = vpop.eup %9091  ;;  %5218 = vst.msk [vmem:[#allocation2 + $0x58] sm:$0xff] %vm13008_vm14, %v5210_v14 }
 0xdca   : > { %v5700_v5 = vmul.f32 %v9092_v44, %v12028_v2  ;;  %5219 = vst.msk [vmem:[#allocation2 + $0x70] sm:$0xff] %vm13009_vm7, %v5211_v25  ;;  %v5063_v26 = vpop.xlane.xlu1 %5062  ;;  %v9094_v50 = vpop.eup %9093 }
 0xdcb   : > { %v5697_v0 = vmul.f32 %v9094_v50, %v12026_v30  ;;  %v5533_v57 = vpop.xlane.xlu0 %5532 }
 0xdcc   : > { %v5714_v19 = vpack.c.bf16 %v5700_v5, %v5699_v4 }
 0xdcd   : > { %v9096_v48 = vpop.eup %9095 }
 0xdce   : > { %5731 = vrot.lane.b32.xlu1 %v5714_v19, %s9317_s21  ;;  %v5527_v9 = vpop.xlane.xlu1 %5526  ;;  %v5698_v3 = vmul.f32 %v9096_v48, %v12030_v38  ;;  %v9098_v2 = vpop.eup %9097 }
 0xdcf   : > { %9103 = vrcp.f32 %v5527_v9  ;;  %v5201_v6 = vmul.f32 %v9098_v2, %v13010_v13  ;;  %v5529_v53 = vpop.xlane.xlu0 %5528 }
 0xdd0   : > { %v5713_v8 = vpack.c.bf16 %v5698_v3, %v5697_v0  ;;  %9105 = vrcp.f32 %v5521_v22 }
 0xdd1   : > { %v9100_v1 = vpop.eup %9099 }
 0xdd2   : > { %v5202_v16 = vmul.f32 %v9100_v1, %v13011_v33  ;;  %5729 = vrot.lane.b32.xlu0 %v5713_v8, %s9317_s21  ;;  %v5523_v40 = vpop.xlane.xlu1 %5522  ;;  %v9102_v30 = vpop.eup %9101 }
 0xdd3   : > { %9107 = vrcp.f32 %v5523_v40  ;;  %v5703_v17 = vmul.f32 %v9102_v30, %v12032_v23  ;;  %v5537_v25 = vpop.xlane.xlu0 %5536 }
 0xdd4   : > { %v5212_v39 = vpack.c.bf16 %v5202_v16, %v5201_v6  ;;  %9109 = vrcp.f32 %v5063_v26 }
 0xdd6   : > { %v5065_v49 = vpop.xlane.xlu1 %5064  ;;  %5220 = vst.msk [vmem:[#allocation2 + $0x88] sm:$0xff] %vm13012_vm12, %v5212_v39 }
 0xdd7   : > { %9111 = vrcp.f32 %v5065_v49  ;;  %v5543_v19 = vpop.xlane.xlu0 %5542 }
 0xdd8   : > { %9113 = vrcp.f32 %v5533_v57 }
 0xdd9   : > { %v9104_v38 = vpop.eup %9103 }
 0xdda   : > { %v5535_v24 = vpop.xlane.xlu1 %5534  ;;  %v5704_v20 = vmul.f32 %v9104_v38, %v12036_v10  ;;  %v9106_v56 = vpop.eup %9105  ;;  %v13016_v38 = vld [vmem:[#allocation34_spill] sm:$0xff] }
 0xddb   : > { %9115 = vrcp.f32 %v5535_v24  ;;  %v5701_v51 = vmul.f32 %v9106_v56, %v12034_v27 }
 0xddc   : > { %v5716_v35 = vpack.c.bf16 %v5704_v20, %v5703_v17  ;;  %9117 = vrcp.f32 %v5529_v53  ;;  %v13017_v53 = vld [vmem:[#allocation33_spill] sm:$0xff] }
 0xddd   : > { %v9108_v55 = vpop.eup %9107 }
 0xdde   : > { %5735 = vrot.lane.b32.xlu1 %v5716_v35, %s9317_s21  ;;  %v5531_v52 = vpop.xlane.xlu1 %5530  ;;  %v5702_v45 = vmul.f32 %v9108_v55, %v12038_v42  ;;  %v9110_v28 = vpop.eup %9109 }
 0xddf   : > { %9119 = vrcp.f32 %v5531_v52  ;;  %v5203_v23 = vmul.f32 %v9110_v28, %v13013_v54  ;;  %v9135_v54 = vld [vmem:[#allocation8 + $0xe0] ss:$12 sps:$4 sm:$0xff]  }
 0xde0   : > { %v5715_v43 = vpack.c.bf16 %v5702_v45, %v5701_v51  ;;  %9121 = vrcp.f32 %v5537_v25 }
 0xde1   : > { %v9112_v58 = vpop.eup %9111  ;;  %9123 = vrcp.f32 %v5543_v19 }
 0xde2   : > { %v5204_v10 = vmul.f32 %v9112_v58, %v13014_v7  ;;  %5733 = vrot.lane.b32.xlu0 %v5715_v43, %s9317_s21  ;;  %v9114_v21 = vpop.eup %9113  ;;  %v5541_v47 = vpop.xlane.xlu1 %5540  ;;  %v9134_v43 = vld [vmem:[#allocation8 + $0x8] ss:$12 sps:$4 sm:$0xff]  }
 0xde3   : > { %v5707_v44 = vmul.f32 %v9114_v21, %v12040_v62  ;;  %9125 = vrcp.f32 %v5541_v47  ;;  %v9138_v21 = vld [vmem:[#allocation8 + $0x38] ss:$12 sps:$4 sm:$0xff]  }
 0xde4   : > { %v5213_v61 = vpack.c.bf16 %v5204_v10, %v5203_v23  ;;  %v9136_v23 = vld [vmem:[#allocation8 + $0x20] ss:$12 sps:$4 sm:$0xff]   ;;  %v9137_v10 = vld [vmem:[#allocation8 + $0xf8] ss:$12 sps:$4 sm:$0xff]  }
 0xde5   : > { %v9116_v14 = vpop.eup %9115 }
 0xde6   : > { %v5708_v27 = vmul.f32 %v9116_v14, %v12046_v11  ;;  %5221 = vst.msk [vmem:[#allocation2 + $0xa0] sm:$0xff] %vm13015_vm10, %v5213_v61  ;;  %v9118_v42 = vpop.eup %9117  ;;  %v5539_v48 = vpop.xlane.xlu1 %5538  ;;  %v9139_v61 = vld [vmem:[#allocation8 + $0x110] ss:$12 sps:$4 sm:$0xff]  }
 0xde7   : > { %v5705_v26 = vmul.f32 %v9118_v42, %v12044_v12  ;;  %9127 = vrcp.f32 %v5539_v48  ;;  %v9140_v14 = vld [vmem:[#allocation8 + $0x50] ss:$12 sps:$4 sm:$0xff]   ;;  %v9144_v48 = vld [vmem:[#allocation8 + $0x80] ss:$12 sps:$4 sm:$0xff]  }
 0xde8   : > { %v5718_v4 = vpack.c.bf16 %v5708_v27, %v5707_v44  ;;  %v9141_v27 = vld [vmem:[#allocation8 + $0x128] ss:$12 sps:$4 sm:$0xff]  }
 0xde9   : > { %v9120_v5 = vpop.eup %9119 }
 0xdea   : > { %v5706_v50 = vmul.f32 %v9120_v5, %v12050_v60  ;;  %v9122_v2 = vpop.eup %9121 }
 0xdeb   : > { %v9124_v12 = vpop.eup %9123 }
 0xdec   : > { %v5717_v34 = vpack.c.bf16 %v5706_v50, %v5705_v26  ;;  %v9142_v50 = vld [vmem:[#allocation8 + $0x68] ss:$12 sps:$4 sm:$0xff]  }
 0xded   : > { %v9126_v60 = vpop.eup %9125 }
 0xdf1   : > { %v9128_v6 = vpop.eup %9127 }
 0xdf3   : > { %v7522_v62 = vpop.f32.mrb[220].mxu1 }
 0xdf4   : > { %v7523_v22 = vpop.f32.mrb[221].mxu1 }
 0xdf5   : > { %v12080_v11 = vadd.f32 %v7523_v22, %v7522_v62  ;;  %v7525_v9 = vpop.f32.mrb[222].mxu1  ;;  %v9145_v62 = vld [vmem:[#allocation8 + $0x158] ss:$12 sps:$4 sm:$0xff]  }
 0xdf6   : > { %v7526_v0 = vpop.f32.mrb[223].mxu1  ;;  %v9146_v22 = vld [vmem:[#allocation8 + $0x98] ss:$12 sps:$4 sm:$0xff]  }
 0xdf7   : > { %v12082_v3 = vadd.f32 %v7526_v0, %v7525_v9  ;;  %v9147_v9 = vld [vmem:[#allocation8 + $0x170] ss:$12 sps:$4 sm:$0xff]  }
 0xdf8   : > { %v9148_v0 = vld [vmem:[#allocation8 + $0xb0] ss:$12 sps:$4 sm:$0xff]  }
 0xdf9   : > { %v7970_v8 = vpop.f32.mrb[188].mxu0 }
 0xdfa   : > { %v5682_v1 = vpop.f32.mrb[189].mxu0  ;;  %v5711_v33 = vmul.f32 %v9126_v60, %v7970_v8 }
 0xdfb   : > { %v7971_v13 = vpop.f32.mrb[190].mxu0  ;;  %v5709_v57 = vmul.f32 %v9122_v2, %v5682_v1 }
 0xdfc   : > { %v5712_v16 = vmul.f32 %v9124_v12, %v7971_v13  ;;  %v5685_v40 = vpop.f32.mrb[191].mxu0 }
 0xdfd   : > { %v5710_v39 = vmul.f32 %v9128_v6, %v5685_v40 }
 0xdfe   : > { %v5720_v49 = vpack.c.bf16 %v5712_v16, %v5711_v33  ;;  %v13018_v33 = vld [vmem:[#allocation32_spill] sm:$0xff] }
 0xdff   : > { %v5719_v30 = vpack.c.bf16 %v5710_v39, %v5709_v57  ;;  %v13019_v57 = vld [vmem:[#allocation72_spill] sm:$0xff] }
 0xe01   : > { %5066 = vadd.xlane.f32.xlu0 %v13016_v38 }
 0xe02   : > { %5068 = vadd.xlane.f32.xlu1 %v13017_v53 }
 0xe13   : > { %5739 = vrot.lane.b32.xlu1 %v5718_v4, %s9317_s21 }
 0xe17   : > { %5737 = vrot.lane.b32.xlu0 %v5717_v34, %s9317_s21  ;;  %v9143_v34 = vld [vmem:[#allocation8 + $0x140] ss:$12 sps:$4 sm:$0xff]  }
 0xe1b   : > { %5741 = vrot.lane.b32.xlu0 %v5719_v30, %s9317_s21 }
 0xe1f   : > { %5743 = vrot.lane.b32.xlu0 %v5720_v49, %s9317_s21 }
 0xe28   : > { %v7528_v24 = vpop.f32.mrb[224].mxu1 }
 0xe29   : > { %v7529_v17 = vpop.f32.mrb[225].mxu1 }
 0xe2a   : > { %v12090_v20 = vadd.f32 %v7529_v17, %v7528_v24  ;;  %v7531_v56 = vpop.f32.mrb[226].mxu1  ;;  %v13021_v17 = vld [vmem:[#allocation53_spill] sm:$0xff] }
 0xe2b   : > { %v7532_v35 = vpop.f32.mrb[227].mxu1 }
 0xe2c   : > { %v12092_v55 = vadd.f32 %v7532_v35, %v7531_v56  ;;  %v5885_v56 = vsub.s32 0, %v13021_v17  ;;  %v5889_v35 = vsub.s32 1, %v13021_v17 }
 0xe40   : > { %v5732_v52 = vpop.permute.xlu1 %5731 }
 0xe41   : > { %5754 = vst.msk [vmem:[#allocation2 + $0x28] sm:$0xff] %vm3776_vm0, %v5732_v52  ;;  %v5881_v52 = vld [vmem:[%s12309_s3] sm:$0x7] }
 0xe44   : > { %v5730_v51 = vpop.permute.xlu0 %5729 }
 0xe45   : > { %5753 = vst.msk [vmem:[#allocation2 + $0x10] sm:$0xff] %vm3776_vm0, %v5730_v51  ;;  %v12125_v51 = vrot.slane %v5881_v52, %v5885_v56 }
 0xe48   : > { %v5766_v28 = vld [vmem:[#allocation2 + $0x28] sm:$0xff] }
 0xe4c   : > { %v5763_v45 = vld [vmem:[#allocation2 + $0x10] sm:$0xff] }
 0xe4d   : > { %6428 = vmatmul.mubr.bf16.vlgmr.msra.gmra.mrb[192].mxu0 %v5763_v45  ;;  %7988 = vmatprep.mubr.bf16.mxu1 %v5763_v45 }
 0xe4e   : > { %7989 = vmatmul.mubr.bf16.vlgmr.msra.gmra.mrb[232].mxu1 %v5766_v28  ;;  %6437 = vmatprep.mubr.bf16.mxu0 %v13002_v29 }
 0xe4f   : > { %7477 = vmatpush3.bf16.msra.mxu0 %v9134_v43 }
 0xe50   : > { %v5736_v58 = vpop.permute.xlu1 %5735  ;;  %7478 = vmatprep.subr.bf16.mxu0 %v9135_v54 }
 0xe51   : > { %5756 = vst.msk [vmem:[#allocation2 + $0x58] sm:$0xff] %vm3776_vm0, %v5736_v58 }
 0xe53   : > { %7479 = vmatpush3.bf16.msra.mxu0 %v9136_v23 }
 0xe54   : > { %v5734_v7 = vpop.permute.xlu0 %5733  ;;  %7480 = vmatprep.subr.bf16.mxu0 %v9137_v10 }
 0xe55   : > { %5755 = vst.msk [vmem:[#allocation2 + $0x40] sm:$0xff] %vm3776_vm0, %v5734_v7  ;;  %6438 = vmatmul.mubr.bf16.gmra.mrb[196].mxu0 %v5766_v28 }
 0xe56   : > { %6447 = vmatprep.mubr.bf16.mxu0 %v13002_v29 }
 0xe57   : > { %7481 = vmatpush3.bf16.msra.mxu0 %v9138_v21 }
 0xe58   : > { %7482 = vmatprep.subr.bf16.mxu0 %v9139_v61  ;;  %v5772_v42 = vld [vmem:[#allocation2 + $0x58] sm:$0xff] }
 0xe5b   : > { %7483 = vmatpush3.bf16.msra.mxu0 %v9140_v14 }
 0xe5c   : > { %v5769_v25 = vld [vmem:[#allocation2 + $0x40] sm:$0xff]  ;;  %7484 = vmatprep.subr.bf16.mxu0 %v9141_v27 }
 0xe5d   : > { %v7534_v44 = vpop.f32.mrb[228].mxu1  ;;  %6448 = vmatmul.mubr.bf16.gmra.mrb[200].mxu0 %v5769_v25  ;;  %7992 = vmatprep.mubr.bf16.mxu1 %v5769_v25  ;;  %v5893_v25 = vsub.s32 2, %v13021_v17 }
 0xe5e   : > { %v7535_v47 = vpop.f32.mrb[229].mxu1  ;;  %7993 = vmatmul.mubr.bf16.gmra.mrb[236].mxu1 %v5772_v42  ;;  %6457 = vmatprep.mubr.bf16.mxu0 %v13002_v29 }
 0xe5f   : > { %v12100_v4 = vadd.f32 %v7535_v47, %v7534_v44  ;;  %v7537_v5 = vpop.f32.mrb[230].mxu1  ;;  %7485 = vmatpush3.bf16.msra.mxu0 %v9142_v50 }
 0xe60   : > { %v7538_v26 = vpop.f32.mrb[231].mxu1  ;;  %7486 = vmatprep.subr.bf16.mxu0 %v9143_v34 }
 0xe61   : > { %v12103_v19 = vadd.f32 %v7538_v26, %v7537_v5  ;;  %v12157_v26 = vrot.slane %v5881_v52, %v5893_v25 }
 0xe63   : > { %7487 = vmatpush3.bf16.msra.mxu0 %v9144_v48  ;;  %v6567_v34 = vadd.f32 %v11985_v32, %v12157_v26  ;;  %v6570_v32 = vadd.f32 %v11987_v36, %v12157_v26  ;;  %v6583_v56 = vadd.f32 %v12080_v11, %v12157_v26  ;;  %v6586_v11 = vadd.f32 %v12082_v3, %v12157_v26 }
 0xe64   : > { %7488 = vmatprep.subr.bf16.mxu0 %v9145_v62 }
 0xe65   : > { %6458 = vmatmul.mubr.bf16.gmra.mrb[204].mxu0 %v5772_v42 }
 0xe66   : > { %6467 = vmatprep.mubr.bf16.mxu0 %v13002_v29 }
 0xe67   : > { %7489 = vmatpush3.bf16.msra.mxu0 %v9146_v22 }
 0xe68   : > { %7490 = vmatprep.subr.bf16.mxu0 %v9147_v9  ;;  %v6559_v9 = vadd.f32 %v11936_v15, %v12157_v26  ;;  %v6562_v15 = vadd.f32 %v11938_v41, %v12157_v26 }
 0xe6b   : > { %7491 = vmatpush3.bf16.msra.mxu0 %v9148_v0 }
 0xe8e   : > { %v5067_v2 = vpop.xlane.xlu0 %5066 }
 0xe8f   : > { %9129 = vrcp.f32 %v5067_v2  ;;  %v5069_v8 = vpop.xlane.xlu1 %5068 }
 0xe90   : > { %9131 = vrcp.f32 %v5069_v8 }
 0xe92   : > { %v5738_v12 = vpop.permute.xlu0 %5737 }
 0xe93   : > { %5757 = vst.msk [vmem:[#allocation2 + $0x70] sm:$0xff] %vm3776_vm0, %v5738_v12  ;;  %v5740_v1 = vpop.permute.xlu1 %5739 }
 0xe94   : > { %5758 = vst.msk [vmem:[#allocation2 + $0x88] sm:$0xff] %vm3776_vm0, %v5740_v1 }
 0xe96   : > { %v5742_v60 = vpop.permute.xlu0 %5741 }
 0xe97   : > { %5759 = vst.msk [vmem:[#allocation2 + $0xa0] sm:$0xff] %vm3776_vm0, %v5742_v60 }
 0xe99   : > { %v9130_v13 = vpop.eup %9129 }
 0xe9a   : > { %v9132_v6 = vpop.eup %9131  ;;  %v5205_v16 = vmul.f32 %v9130_v13, %v13018_v33  ;;  %v5775_v40 = vld [vmem:[#allocation2 + $0x70] sm:$0xff]  ;;  %v5744_v53 = vpop.permute.xlu0 %5743 }
 0xe9b   : > { %v5206_v39 = vmul.f32 %v9132_v6, %v13019_v57  ;;  %6468 = vmatmul.mubr.bf16.gmra.mrb[208].mxu0 %v5775_v40  ;;  %7996 = vmatprep.mubr.bf16.mxu1 %v5775_v40  ;;  %v5778_v49 = vld [vmem:[#allocation2 + $0x88] sm:$0xff] }
 0xe9c   : > { %7997 = vmatmul.mubr.bf16.gmra.mrb[240].mxu1 %v5778_v49  ;;  %6477 = vmatprep.mubr.bf16.mxu0 %v13002_v29 }
 0xe9d   : > { %v5214_v30 = vpack.c.bf16 %v5206_v39, %v5205_v16 }
 0xe9e   : > { %v5781_v38 = vld [vmem:[#allocation2 + $0xa0] sm:$0xff] }
 0xe9f   : > { %5222 = vst.msk [vmem:[#allocation2 + $0xb8] sm:$0xff] %vm13020_vm1, %v5214_v30  ;;  %8000 = vmatprep.mubr.bf16.mxu1 %v5781_v38 }
 0xea0   : > { %5760 = vst.msk [vmem:[#allocation2 + $0xb8] sm:$0xff] %vm3776_vm0, %v5744_v53 }
 0xea3   : > { %6478 = vmatmul.mubr.bf16.gmra.mrb[212].mxu0 %v5778_v49 }
 0xea4   : > { %6487 = vmatprep.mubr.bf16.mxu0 %v13002_v29 }
 0xea7   : > { %v5784_v24 = vld [vmem:[#allocation2 + $0xb8] sm:$0xff] }
 0xea8   : > { %8001 = vmatmul.mubr.bf16.gmra.mrb[244].mxu1 %v5784_v24 }
 0xeab   : > { %6488 = vmatmul.mubr.bf16.gmra.mrb[216].mxu0 %v5781_v38 }
 0xeac   : > { %6497 = vmatprep.mubr.bf16.mxu0 %v13002_v29  ;;  %v12127_v29 = vrot.slane %v5881_v52, %v5889_v35 }
 0xeb3   : > { %6498 = vmatmul.mubr.bf16.gmra.mrb[220].mxu0 %v5784_v24 }
 0xeb4   : > { %6540 = vmatprep.mubr.bf16.mxu0 %v11970_v37 }
 0xebb   : > { %6541 = vmatmul.mubr.bf16.vlgmr.msra.gmra.mrb[224].mxu0 %v11977_v63 }
 0xebc   : > { %6548 = vmatprep.mubr.bf16.mxu0 %v11980_v46 }
 0xec3   : > { %6549 = vmatmul.mubr.bf16.gmra.mrb[228].mxu0 %v11991_v59 }
 0xf20   : > { %v6429_v37 = vpop.f32.mrb[192].mxu0 }
 0xf21   : > { %v8052_v45 = vadd.f32 %v6429_v37, %v12125_v51  ;;  %v6431_v63 = vpop.f32.mrb[193].mxu0  ;;  %v12130_v28 = vpop.f32.mrb[232].mxu1 }
 0xf22   : > { %v8053_v46 = vadd.f32 %v6431_v63, %v12127_v29  ;;  %v6433_v59 = vpop.f32.mrb[194].mxu0  ;;  %v12133_v43 = vpop.f32.mrb[233].mxu1 }
 0xf23   : > { %6702 = vst [vmem:[%s12137_s5] sm:$0xff] %v8052_v45  ;;  %v8054_v58 = vadd.f32 %v6433_v59, %v12125_v51  ;;  %v6435_v54 = vpop.f32.mrb[195].mxu0  ;;  %v12141_v23 = vpop.f32.mrb[234].mxu1  ;;  %v6575_v45 = vadd.f32 %v12042_v31, %v12157_v26  ;;  %v6578_v31 = vadd.f32 %v12048_v18, %v12157_v26 }
 0xf24   : > { %6703 = vst [vmem:[%s12137_s5 + $0x8] sm:$0xff] %v8053_v46  ;;  %v8055_v7 = vadd.f32 %v6435_v54, %v12127_v29  ;;  %v12145_v10 = vpop.f32.mrb[235].mxu1 }
 0xf25   : > { %6705 = vst [vmem:[%s12137_s5 + $0x18] sm:$0xff] %v8054_v58 }
 0xf26   : > { %6706 = vst [vmem:[%s12137_s5 + $0x20] sm:$0xff] %v8055_v7 }
 0xf28   : > { %v6439_v21 = vpop.f32.mrb[196].mxu0 }
 0xf29   : > { %v8056_v61 = vadd.f32 %v6439_v21, %v12125_v51  ;;  %v6441_v14 = vpop.f32.mrb[197].mxu0 }
 0xf2a   : > { %v8057_v44 = vadd.f32 %v6441_v14, %v12127_v29  ;;  %v6443_v27 = vpop.f32.mrb[198].mxu0 }
 0xf2b   : > { %6708 = vst [vmem:[%s12137_s5 + $0x30] sm:$0xff] %v8056_v61  ;;  %v8058_v42 = vadd.f32 %v6443_v27, %v12125_v51  ;;  %v6445_v47 = vpop.f32.mrb[199].mxu0 }
 0xf2c   : > { %6709 = vst [vmem:[%s12137_s5 + $0x38] sm:$0xff] %v8057_v44  ;;  %v8059_v5 = vadd.f32 %v6445_v47, %v12127_v29 }
 0xf2d   : > { %6711 = vst [vmem:[%s12137_s5 + $0x48] sm:$0xff] %v8058_v42 }
 0xf2e   : > { %6712 = vst [vmem:[%s12137_s5 + $0x50] sm:$0xff] %v8059_v5 }
 0xf30   : > { %v6449_v50 = vpop.f32.mrb[200].mxu0 }
 0xf31   : > { %v8060_v48 = vadd.f32 %v6449_v50, %v12125_v51  ;;  %v6451_v62 = vpop.f32.mrb[201].mxu0  ;;  %v7994_v22 = vpop.f32.mrb[236].mxu1 }
 0xf32   : > { %v8061_v0 = vadd.f32 %v6451_v62, %v12127_v29  ;;  %v6664_v2 = vadd.f32 %v7994_v22, %v6567_v34  ;;  %v6453_v8 = vpop.f32.mrb[202].mxu0  ;;  %v6655_v12 = vpop.f32.mrb[237].mxu1  ;;  %v6599_v62 = vadd.f32 %v12100_v4, %v12157_v26 }
 0xf33   : > { %6714 = vst [vmem:[%s12137_s5 + $0x60] sm:$0xff] %v8060_v48  ;;  %v8062_v1 = vadd.f32 %v6453_v8, %v12125_v51  ;;  %v6656_v60 = vadd.f32 %v6655_v12, %v6559_v9  ;;  %v6455_v13 = vpop.f32.mrb[203].mxu0  ;;  %v7995_v6 = vpop.f32.mrb[238].mxu1  ;;  %v6591_v9 = vadd.f32 %v12090_v20, %v12157_v26  ;;  %v6602_v8 = vadd.f32 %v12103_v19, %v12157_v26 }
 0xf34   : > { %6715 = vst [vmem:[%s12137_s5 + $0x68] sm:$0xff] %v8061_v0  ;;  %6722 = vst [vmem:[%s12137_s5 + $0xa0] sm:$0xff] %v6664_v2  ;;  %v8063_v33 = vadd.f32 %v6455_v13, %v12127_v29  ;;  %v6667_v16 = vadd.f32 %v7995_v6, %v6570_v32  ;;  %v6658_v40 = vpop.f32.mrb[239].mxu1 }
 0xf35   : > { %6717 = vst [vmem:[%s12137_s5 + $0x78] sm:$0xff] %v8062_v1  ;;  %6716 = vst [vmem:[%s12137_s5 + $0x70] sm:$0xff] %v6656_v60  ;;  %v6659_v36 = vadd.f32 %v6658_v40, %v6562_v15  ;;  %v6594_v1 = vadd.f32 %v12092_v55, %v12157_v26 }
 0xf36   : > { %6718 = vst [vmem:[%s12137_s5 + $0x80] sm:$0xff] %v8063_v33  ;;  %6725 = vst [vmem:[%s12137_s5 + $0xb8] sm:$0xff] %v6667_v16 }
 0xf37   : > { %6719 = vst [vmem:[%s12137_s5 + $0x88] sm:$0xff] %v6659_v36 }
 0xf38   : > { %v6459_v57 = vpop.f32.mrb[204].mxu0 }
 0xf39   : > { %v8064_v39 = vadd.f32 %v6459_v57, %v12125_v51  ;;  %v6461_v41 = vpop.f32.mrb[205].mxu0 }
 0xf3a   : > { %v8065_v49 = vadd.f32 %v6461_v41, %v12127_v29  ;;  %v6463_v30 = vpop.f32.mrb[206].mxu0 }
 0xf3b   : > { %6720 = vst [vmem:[%s12137_s5 + $0x90] sm:$0xff] %v8064_v39  ;;  %v8066_v38 = vadd.f32 %v6463_v30, %v12125_v51  ;;  %v6465_v53 = vpop.f32.mrb[207].mxu0 }
 0xf3c   : > { %6721 = vst [vmem:[%s12137_s5 + $0x98] sm:$0xff] %v8065_v49  ;;  %v8067_v24 = vadd.f32 %v6465_v53, %v12127_v29 }
 0xf3d   : > { %6723 = vst [vmem:[%s12137_s5 + $0xa8] sm:$0xff] %v8066_v38 }
 0xf3e   : > { %6724 = vst [vmem:[%s12137_s5 + $0xb0] sm:$0xff] %v8067_v24 }
 0xf6e   : > { %v6469_v17 = vpop.f32.mrb[208].mxu0 }
 0xf6f   : > { %v8068_v35 = vadd.f32 %v6469_v17, %v12125_v51  ;;  %v6471_v52 = vpop.f32.mrb[209].mxu0  ;;  %v7998_v37 = vpop.f32.mrb[240].mxu1 }
 0xf70   : > { %v8069_v63 = vadd.f32 %v6471_v52, %v12127_v29  ;;  %v6680_v46 = vadd.f32 %v7998_v37, %v6583_v56  ;;  %v6473_v59 = vpop.f32.mrb[210].mxu0  ;;  %v6671_v58 = vpop.f32.mrb[241].mxu1 }
 0xf71   : > { %6726 = vst [vmem:[%s12137_s5 + $0xc0] sm:$0xff] %v8068_v35  ;;  %v8070_v54 = vadd.f32 %v6473_v59, %v12125_v51  ;;  %v6672_v7 = vadd.f32 %v6671_v58, %v6575_v45  ;;  %v6475_v21 = vpop.f32.mrb[211].mxu0  ;;  %v7999_v61 = vpop.f32.mrb[242].mxu1 }
 0xf72   : > { %6727 = vst [vmem:[%s12137_s5 + $0xc8] sm:$0xff] %v8069_v63  ;;  %6734 = vst [vmem:[%s12137_s5 + $0x100] sm:$0xff] %v6680_v46  ;;  %v8071_v14 = vadd.f32 %v6475_v21, %v12127_v29  ;;  %v6683_v25 = vadd.f32 %v7999_v61, %v6586_v11  ;;  %v6674_v44 = vpop.f32.mrb[243].mxu1 }
 0xf73   : > { %6729 = vst [vmem:[%s12137_s5 + $0xd8] sm:$0xff] %v8070_v54  ;;  %6728 = vst [vmem:[%s12137_s5 + $0xd0] sm:$0xff] %v6672_v7  ;;  %v6675_v3 = vadd.f32 %v6674_v44, %v6578_v31 }
 0xf74   : > { %6730 = vst [vmem:[%s12137_s5 + $0xe0] sm:$0xff] %v8071_v14  ;;  %6737 = vst [vmem:[%s12137_s5 + $0x118] sm:$0xff] %v6683_v25 }
 0xf75   : > { %6731 = vst [vmem:[%s12137_s5 + $0xe8] sm:$0xff] %v6675_v3 }
 0xf76   : > { %v6479_v27 = vpop.f32.mrb[212].mxu0 }
 0xf77   : > { %v8072_v42 = vadd.f32 %v6479_v27, %v12125_v51  ;;  %v6481_v18 = vpop.f32.mrb[213].mxu0 }
 0xf78   : > { %v8073_v47 = vadd.f32 %v6481_v18, %v12127_v29  ;;  %v6483_v5 = vpop.f32.mrb[214].mxu0 }
 0xf79   : > { %6732 = vst [vmem:[%s12137_s5 + $0xf0] sm:$0xff] %v8072_v42  ;;  %v8074_v50 = vadd.f32 %v6483_v5, %v12125_v51  ;;  %v6485_v34 = vpop.f32.mrb[215].mxu0 }
 0xf7a   : > { %6733 = vst [vmem:[%s12137_s5 + $0xf8] sm:$0xff] %v8073_v47  ;;  %v8075_v48 = vadd.f32 %v6485_v34, %v12127_v29 }
 0xf7b   : > { %6735 = vst [vmem:[%s12137_s5 + $0x108] sm:$0xff] %v8074_v50  ;;  %v8002_v22 = vpop.f32.mrb[244].mxu1 }
 0xf7c   : > { %6736 = vst [vmem:[%s12137_s5 + $0x110] sm:$0xff] %v8075_v48  ;;  %v6696_v0 = vadd.f32 %v8002_v22, %v6599_v62  ;;  %v6687_v2 = vpop.f32.mrb[245].mxu1 }
 0xf7d   : > { %v6688_v12 = vadd.f32 %v6687_v2, %v6591_v9  ;;  %v8003_v32 = vpop.f32.mrb[246].mxu1 }
 0xf7e   : > { %6746 = vst [vmem:[%s12137_s5 + $0x160] sm:$0xff] %v6696_v0  ;;  %v6699_v4 = vadd.f32 %v8003_v32, %v6602_v8  ;;  %v6489_v60 = vpop.f32.mrb[216].mxu0  ;;  %v6690_v20 = vpop.f32.mrb[247].mxu1 }
 0xf7f   : > { %6740 = vst [vmem:[%s12137_s5 + $0x130] sm:$0xff] %v6688_v12  ;;  %v8076_v13 = vadd.f32 %v6489_v60, %v12125_v51  ;;  %v6691_v6 = vadd.f32 %v6690_v20, %v6594_v1  ;;  %v6491_v15 = vpop.f32.mrb[217].mxu0 }
 0xf80   : > { %6749 = vst [vmem:[%s12137_s5 + $0x178] sm:$0xff] %v6699_v4  ;;  %v8077_v19 = vadd.f32 %v6491_v15, %v12127_v29  ;;  %v6493_v33 = vpop.f32.mrb[218].mxu0 }
 0xf81   : > { %6738 = vst [vmem:[%s12137_s5 + $0x120] sm:$0xff] %v8076_v13  ;;  %6743 = vst [vmem:[%s12137_s5 + $0x148] sm:$0xff] %v6691_v6  ;;  %v8078_v55 = vadd.f32 %v6493_v33, %v12125_v51  ;;  %v6495_v16 = vpop.f32.mrb[219].mxu0 }
 0xf82   : > { %6739 = vst [vmem:[%s12137_s5 + $0x128] sm:$0xff] %v8077_v19  ;;  %v8079_v40 = vadd.f32 %v6495_v16, %v12127_v29 }
 0xf83   : > { %6741 = vst [vmem:[%s12137_s5 + $0x138] sm:$0xff] %v8078_v55 }
 0xf84   : > { %6742 = vst [vmem:[%s12137_s5 + $0x140] sm:$0xff] %v8079_v40 }
 0xf86   : > { %v6499_v36 = vpop.f32.mrb[220].mxu0 }
 0xf87   : > { %v8080_v57 = vadd.f32 %v6499_v36, %v12125_v51  ;;  %v6501_v39 = vpop.f32.mrb[221].mxu0 }
 0xf88   : > { %v8081_v41 = vadd.f32 %v6501_v39, %v12127_v29  ;;  %v6503_v49 = vpop.f32.mrb[222].mxu0 }
 0xf89   : > { %6744 = vst [vmem:[%s12137_s5 + $0x150] sm:$0xff] %v8080_v57  ;;  %v8082_v30 = vadd.f32 %v6503_v49, %v12125_v51  ;;  %v6505_v38 = vpop.f32.mrb[223].mxu0 }
 0xf8a   : > { %6745 = vst [vmem:[%s12137_s5 + $0x158] sm:$0xff] %v8081_v41  ;;  %v8083_v53 = vadd.f32 %v6505_v38, %v12127_v29 }
 0xf8b   : > { %6747 = vst [vmem:[%s12137_s5 + $0x168] sm:$0xff] %v8082_v30 }
 0xf8c   : > { %6748 = vst [vmem:[%s12137_s5 + $0x170] sm:$0xff] %v8083_v53 }
 0xf8e   : > { %v7492_v24 = vpop.f32.mrb[224].mxu0 }
 0xf8f   : > { %v7493_v17 = vpop.f32.mrb[225].mxu0 }
 0xf90   : > { %v7494_v56 = vadd.f32 %v7493_v17, %v7492_v24  ;;  %v7495_v35 = vpop.f32.mrb[226].mxu0 }
 0xf91   : > { %v7496_v52 = vpop.f32.mrb[227].mxu0 }
 0xf92   : > { %v6543_v37 = vadd.f32 %v7494_v56, %v12157_v26  ;;  %v7497_v45 = vadd.f32 %v7496_v52, %v7495_v35 }
 0xf94   : > { %v6640_v63 = vadd.f32 %v12133_v43, %v6543_v37  ;;  %v6546_v51 = vadd.f32 %v7497_v45, %v12157_v26 }
 0xf96   : > { %6704 = vst [vmem:[%s12137_s5 + $0x10] sm:$0xff] %v6640_v63  ;;  %v6643_v29 = vadd.f32 %v12145_v10, %v6546_v51  ;;  %v7498_v46 = vpop.f32.mrb[228].mxu0 }
 0xf97   : > { %v7499_v59 = vpop.f32.mrb[229].mxu0 }
 0xf98   : > { %6707 = vst [vmem:[%s12137_s5 + $0x28] sm:$0xff] %v6643_v29  ;;  %v7500_v58 = vadd.f32 %v7499_v59, %v7498_v46  ;;  %v7501_v11 = vpop.f32.mrb[230].mxu0 }
 0xf99   : > { %v7502_v54 = vpop.f32.mrb[231].mxu0 }
 0xf9a   : > { %v6551_v7 = vadd.f32 %v7500_v58, %v12157_v26  ;;  %v7503_v21 = vadd.f32 %v7502_v54, %v7501_v11 }
 0xf9c   : > { %v6648_v43 = vadd.f32 %v12130_v28, %v6551_v7  ;;  %v6554_v61 = vadd.f32 %v7503_v21, %v12157_v26 }
 0xf9e   : > { %6710 = vst [vmem:[%s12137_s5 + $0x40] sm:$0xff] %v6648_v43  ;;  %v6651_v10 = vadd.f32 %v12141_v23, %v6554_v61 }
 0xfa0   : > { %6713 = vst [vmem:[%s12137_s5 + $0x58] sm:$0xff] %v6651_v10 }
 0xfa1   : > { %9248 = shalt.err (!%p9245_p7)
}
 0xfa2   : > { %s9249_s10 = scalar_lea.hbm %s12258_s24, 6144  ;;  %s9253_s21 = scalar_lea.hbm %s12310_s4, 24576 }
 0xfa3   : > { %p9250_p9 = scmp.ne.s32.totalorder %s12258_s24, %s9249_s10  ;;  %p9254_p5 = scmp.lt.u32.totalorder %s12258_s24, %s12310_s4 }
 0xfa4   : > { %p9255_p10 = scmp.lt.u32.totalorder %s9253_s21, %s9249_s10  ;;  %p9257_p1 = scmp.lt.u32.totalorder %s9249_s10, %s12258_s24 }
 0xfa5   : > { %p9251_p12 = pnand %p9250_p9, %p9461_p6 }
 0xfa6   : > { %p9256_p11 = por %p9255_p10, %p9254_p5 }
 0xfa7   : > { %p9252_p0 = pneg %p9251_p12 }
 0xfa8   : > { %p9258_p2 = por %p9257_p1, %p9256_p11 }
 0xfaa   : > { %p9259_p4 = pnand %p9258_p2, %p9252_p0 }
 0xfac   : > { %9262 = shalt.err (!%p9259_p4)
}
 0xfad   : > { %s9319_s5 = smov 384   ;;  %s9320_s25 = smov 24  }
 0xfae   : > { %8274 = dma.vmem_to_hbm [thread:$0]  (%p9461_p6), %s12260_s7, 6144, %s12258_s24, %s6751_s19, %s9319_s5, %s9319_s5, %s9320_s25  }
 0xfaf PF: > { %p8296_p8 = scmp.ge.s32.totalorder %s9305_s18, 2  ;;  %s6779_s28 = sand.u32 1, %s9293_s15  }
 0xfb0   : > { %p13022_p13 = scmp.ne.s32.totalorder %s12458_s22, 0  ;;  %s6780_s26 = scalar_lea.sflag [#allocation5], %s6779_s28 }
 0xfb2   : > { %p8288_p3 = pnand %p8296_p8, %p13022_p13 }
 0xfb4   : > { %9288 = dma.done.wait (!%p8288_p3), %s6780_s26, 6144  }
 0xfb5   : > { %9290 = vsyncadd (!%p8288_p3), %s6780_s26, 4294961152  ;;  %p18_p7 = scmp.ge.s32.totalorder %s9448_s11, 6   ;;  %s13023_s15 = smov %s9297_s16 }
 0xfb6   : > { %s13024_s16 = smov %s9301_s17  ;;  %s13025_s17 = smov %s9457_s14 }
 0xfb7   : > { %s13026_s18 = smov %s9448_s11  ;;  %20 = sbr.rel (!%p18_p7) target bundleno = 6 (0x6), region = 89 }
 0xfbe   :  { %6785 = vsyncpa [#allocation4], 1 }
 0xfbf   :  { %6787 = vsyncpa [#allocation4 + $0x1], 1 }
 0xfc0   :  { %6788 = vsyncpa [#allocation7], 1 }
 0xfc1   :  { %6789 = vsyncpa [#allocation5], 1 }
 0xfc2   :  { %6791 = vsyncpa [#allocation5 + $0x1], 1 }

</bundles_post_ra>
